<compile_context>
chip_gen: v7x
topology: tpu7x:2x2x1
jax: 0.10.0
libtpu: 0.0.40
codegen_flags: <defaults>
</compile_context>

<pallas_src>
import jax
import jax.numpy as jnp
from jax.experimental import pallas as pl
from jax.experimental.pallas import tpu as pltpu

LATENT_DIM = 100
LATENT_PAD = 128            # 100 -> 128: lane-aligned K for the first matmul
H1, H2, H3 = 256, 512, 1024
OUT = 28 * 28               # 784
OUT_PAD = 896               # 784 -> 896 (= 7*128): lane-dense output store
BN_EPS = 1e-5
LEAK = 0.2


def _leaky_relu(x):
    return jnp.where(x > 0, x, LEAK * x)


def _batch_norm(x, gamma, beta):
    # Training-mode BatchNorm1d: batch mean, biased batch variance, eps=1e-5.
    # Single pass over x: mean and E[x^2] together, var = E[x^2] - mean^2.
    # gamma * rsqrt(var + eps) is folded into one (1, d) scale so the (B, d)
    # tensor only needs one multiply and one add.
    mean = jnp.mean(x, axis=0, keepdims=True)
    mean_sq = jnp.mean(x * x, axis=0, keepdims=True)
    var = mean_sq - mean * mean
    scale = jax.lax.rsqrt(var + BN_EPS) * gamma
    shift = beta - mean * scale
    return x * scale + shift


def generator_kernel(
    z_ref,
    w1_ref, b1_ref, g1_ref, bt1_ref,
    w2_ref, b2_ref, g2_ref, bt2_ref,
    w3_ref, b3_ref, g3_ref, bt3_ref,
    w4_ref, b4_ref,
    out_ref,
):
    z = z_ref[...]

    # Block 1: Linear(128 -> 256) + LeakyReLU + BatchNorm1d(256)
    h = jnp.dot(z.astype(jnp.bfloat16), w1_ref[...],
                preferred_element_type=jnp.float32) + b1_ref[...]
    h = _batch_norm(_leaky_relu(h), g1_ref[...], bt1_ref[...])

    # Block 2: Linear(256 -> 512) + LeakyReLU + BatchNorm1d(512)
    h = jnp.dot(h.astype(jnp.bfloat16), w2_ref[...],
                preferred_element_type=jnp.float32) + b2_ref[...]
    h = _batch_norm(_leaky_relu(h), g2_ref[...], bt2_ref[...])

    # Block 3: Linear(512 -> 1024) + LeakyReLU + BatchNorm1d(1024)
    h = jnp.dot(h.astype(jnp.bfloat16), w3_ref[...],
                preferred_element_type=jnp.float32) + b3_ref[...]
    h = _batch_norm(_leaky_relu(h), g3_ref[...], bt3_ref[...])

    # Output head: Linear(1024 -> 896) + Tanh (padded cols are exactly 0 -> tanh 0)
    h = jnp.dot(h.astype(jnp.bfloat16), w4_ref[...],
                preferred_element_type=jnp.float32) + b4_ref[...]
    out_ref[...] = jnp.tanh(h)


def init_params(key, latent_dim=LATENT_DIM):
    """Deterministic synthetic parameters matching the PyTorch module's shapes."""
    dims = [(latent_dim, H1), (H1, H2), (H2, H3), (H3, OUT)]
    params = []
    for i, (din, dout) in enumerate(dims):
        kw, kb = jax.random.split(jax.random.fold_in(key, i))
        bound = 1.0 / (din ** 0.5)
        w = jax.random.uniform(kw, (din, dout), jnp.float32, -bound, bound)
        b = jax.random.uniform(kb, (1, dout), jnp.float32, -bound, bound)
        params.append((w, b))
    # BatchNorm affine params: gamma=1, beta=0 (PyTorch default init).
    bn = [(jnp.ones((1, d), jnp.float32), jnp.zeros((1, d), jnp.float32))
          for d in (H1, H2, H3)]
    return params, bn


def prepare_params(params, bn):
    """One-time weight prep: lane padding + bf16 cast (MXU-native, half the bytes).

    Do this ONCE at init so per-call HBM traffic is only the ~3.1 MiB of bf16
    weights the kernel actually needs, not a fresh f32->bf16 pad/convert pass.
    """
    (w1, b1), (w2, b2), (w3, b3), (w4, b4) = params
    (g1, bt1), (g2, bt2), (g3, bt3) = bn
    w1_p = jnp.pad(w1, ((0, LATENT_PAD - LATENT_DIM), (0, 0))).astype(jnp.bfloat16)
    w4_p = jnp.pad(w4, ((0, 0), (0, OUT_PAD - OUT))).astype(jnp.bfloat16)
    b4_p = jnp.pad(b4, ((0, 0), (0, OUT_PAD - OUT)))
    prepared = (
        w1_p, b1, g1, bt1,
        w2.astype(jnp.bfloat16), b2, g2, bt2,
        w3.astype(jnp.bfloat16), b3, g3, bt3,
        w4_p, b4_p,
    )
    return jax.tree_util.tree_map(jax.block_until_ready, prepared)


@jax.jit
def generator_forward(z, prepared):
    B = z.shape[0]
    # Only per-call prep: pad latent 100 -> 128 (32 KiB, negligible).
    z_p = jnp.pad(z, ((0, 0), (0, LATENT_PAD - LATENT_DIM)))

    vmem = pl.BlockSpec(memory_space=pltpu.MemorySpace.VMEM)

    flat = pl.pallas_call(
        generator_kernel,
        out_shape=jax.ShapeDtypeStruct((B, OUT_PAD), jnp.float32),
        in_specs=[vmem] * 15,
        out_specs=vmem,
        compiler_params=pltpu.CompilerParams(vmem_limit_bytes=12 << 20),
    )(z_p, *prepared)

    # Glue: drop the lane padding and view as (B, 1, 28, 28) NCHW.
    return flat[:, :OUT].reshape(B, 1, 28, 28)


if __name__ == "__main__":
    key = jax.random.PRNGKey(0)
    k_params, k_z = jax.random.split(key)

    B = 64  # sublane-aligned batch; >1 required for training-mode BatchNorm
    params, bn = init_params(k_params)
    prepared = prepare_params(params, bn)          # one-time pad + bf16 cast
    z = jax.random.normal(k_z, (B, LATENT_DIM), jnp.float32)

    img = generator_forward(z, prepared)
    jax.block_until_ready(img)

    assert img.shape == (B, 1, 28, 28), img.shape
    assert img.dtype == jnp.float32
    assert bool(jnp.all(jnp.isfinite(img)))
    assert bool(jnp.all(jnp.abs(img) <= 1.0))  # tanh output range
    print("KERNEL_OK")
</pallas_src>

<mosaic_0001>
module attributes {stable_mosaic.version = 11 : i64} {
  func.func @generator_kernel(%arg0: memref<64x128xf32, #tpu.memory_space<vmem>>, %arg1: memref<128x256xbf16, #tpu.memory_space<vmem>>, %arg2: memref<1x256xf32, #tpu.memory_space<vmem>>, %arg3: memref<1x256xf32, #tpu.memory_space<vmem>>, %arg4: memref<1x256xf32, #tpu.memory_space<vmem>>, %arg5: memref<256x512xbf16, #tpu.memory_space<vmem>>, %arg6: memref<1x512xf32, #tpu.memory_space<vmem>>, %arg7: memref<1x512xf32, #tpu.memory_space<vmem>>, %arg8: memref<1x512xf32, #tpu.memory_space<vmem>>, %arg9: memref<512x1024xbf16, #tpu.memory_space<vmem>>, %arg10: memref<1x1024xf32, #tpu.memory_space<vmem>>, %arg11: memref<1x1024xf32, #tpu.memory_space<vmem>>, %arg12: memref<1x1024xf32, #tpu.memory_space<vmem>>, %arg13: memref<1024x896xbf16, #tpu.memory_space<vmem>>, %arg14: memref<1x896xf32, #tpu.memory_space<vmem>>, %arg15: memref<64x896xf32, #tpu.memory_space<vmem>>) attributes {dimension_semantics = [], scalar_prefetch = 0 : i64, scratch_operands = 0 : i64, tpu.core_type = #tpu.core_type<tc>} {
    %c0 = arith.constant 0 : index
    %c0_0 = arith.constant 0 : index
    %0 = vector.load %arg0[%c0, %c0_0] : memref<64x128xf32, #tpu.memory_space<vmem>>, vector<64x128xf32>
    %1 = arith.truncf %0 : vector<64x128xf32> to vector<64x128xbf16>
    %c0_1 = arith.constant 0 : index
    %c0_2 = arith.constant 0 : index
    %2 = vector.load %arg1[%c0_1, %c0_2] : memref<128x256xbf16, #tpu.memory_space<vmem>>, vector<128x256xbf16>
    %cst = arith.constant dense<0.000000e+00> : vector<64x256xf32>
    %3 = tpu.matmul %1, %2, %cst {dimension_numbers = #tpu.dot_dimension_numbers<[1], [0], [0], [1], [0, 0, 1, 1], [], []>} : vector<64x128xbf16>, vector<128x256xbf16>, vector<64x256xf32> -> vector<64x256xf32>
    %c0_3 = arith.constant 0 : index
    %c0_4 = arith.constant 0 : index
    %4 = vector.load %arg2[%c0_3, %c0_4] : memref<1x256xf32, #tpu.memory_space<vmem>>, vector<1x256xf32>
    %5 = vector.broadcast %4 : vector<1x256xf32> to vector<64x256xf32>
    %6 = arith.addf %3, %5 : vector<64x256xf32>
    %cst_5 = arith.constant 0.000000e+00 : f32
    %7 = vector.broadcast %cst_5 : f32 to vector<64x256xf32>
    %8 = arith.cmpf ogt, %6, %7 : vector<64x256xf32>
    %cst_6 = arith.constant 2.000000e-01 : f32
    %9 = vector.broadcast %cst_6 : f32 to vector<64x256xf32>
    %10 = arith.mulf %9, %6 : vector<64x256xf32>
    %11 = arith.select %8, %6, %10 : vector<64x256xi1>, vector<64x256xf32>
    %c0_7 = arith.constant 0 : index
    %c0_8 = arith.constant 0 : index
    %12 = vector.load %arg3[%c0_7, %c0_8] : memref<1x256xf32, #tpu.memory_space<vmem>>, vector<1x256xf32>
    %c0_9 = arith.constant 0 : index
    %c0_10 = arith.constant 0 : index
    %13 = vector.load %arg4[%c0_9, %c0_10] : memref<1x256xf32, #tpu.memory_space<vmem>>, vector<1x256xf32>
    %cst_11 = arith.constant dense<0.000000e+00> : vector<256xf32>
    %14 = vector.multi_reduction <add>, %11, %cst_11 [0] : vector<64x256xf32> to vector<256xf32>
    %15 = vector.shape_cast %14 : vector<256xf32> to vector<1x256xf32>
    %cst_12 = arith.constant 6.400000e+01 : f32
    %16 = vector.broadcast %cst_12 : f32 to vector<1x256xf32>
    %17 = arith.divf %15, %16 : vector<1x256xf32>
    %18 = arith.mulf %11, %11 : vector<64x256xf32>
    %cst_13 = arith.constant dense<0.000000e+00> : vector<256xf32>
    %19 = vector.multi_reduction <add>, %18, %cst_13 [0] : vector<64x256xf32> to vector<256xf32>
    %20 = vector.shape_cast %19 : vector<256xf32> to vector<1x256xf32>
    %cst_14 = arith.constant 6.400000e+01 : f32
    %21 = vector.broadcast %cst_14 : f32 to vector<1x256xf32>
    %22 = arith.divf %20, %21 : vector<1x256xf32>
    %23 = arith.mulf %17, %17 : vector<1x256xf32>
    %24 = arith.subf %22, %23 : vector<1x256xf32>
    %cst_15 = arith.constant 9.99999974E-6 : f32
    %25 = vector.broadcast %cst_15 : f32 to vector<1x256xf32>
    %26 = arith.addf %24, %25 : vector<1x256xf32>
    %27 = math.rsqrt %26 : vector<1x256xf32>
    %28 = arith.mulf %27, %12 : vector<1x256xf32>
    %29 = arith.mulf %17, %28 : vector<1x256xf32>
    %30 = arith.subf %13, %29 : vector<1x256xf32>
    %31 = vector.broadcast %28 : vector<1x256xf32> to vector<64x256xf32>
    %32 = arith.mulf %11, %31 : vector<64x256xf32>
    %33 = vector.broadcast %30 : vector<1x256xf32> to vector<64x256xf32>
    %34 = arith.addf %32, %33 : vector<64x256xf32>
    %35 = arith.truncf %34 : vector<64x256xf32> to vector<64x256xbf16>
    %c0_16 = arith.constant 0 : index
    %c0_17 = arith.constant 0 : index
    %36 = vector.load %arg5[%c0_16, %c0_17] : memref<256x512xbf16, #tpu.memory_space<vmem>>, vector<256x512xbf16>
    %cst_18 = arith.constant dense<0.000000e+00> : vector<64x512xf32>
    %37 = tpu.matmul %35, %36, %cst_18 {dimension_numbers = #tpu.dot_dimension_numbers<[1], [0], [0], [1], [0, 0, 1, 1], [], []>} : vector<64x256xbf16>, vector<256x512xbf16>, vector<64x512xf32> -> vector<64x512xf32>
    %c0_19 = arith.constant 0 : index
    %c0_20 = arith.constant 0 : index
    %38 = vector.load %arg6[%c0_19, %c0_20] : memref<1x512xf32, #tpu.memory_space<vmem>>, vector<1x512xf32>
    %39 = vector.broadcast %38 : vector<1x512xf32> to vector<64x512xf32>
    %40 = arith.addf %37, %39 : vector<64x512xf32>
    %cst_21 = arith.constant 0.000000e+00 : f32
    %41 = vector.broadcast %cst_21 : f32 to vector<64x512xf32>
    %42 = arith.cmpf ogt, %40, %41 : vector<64x512xf32>
    %cst_22 = arith.constant 2.000000e-01 : f32
    %43 = vector.broadcast %cst_22 : f32 to vector<64x512xf32>
    %44 = arith.mulf %43, %40 : vector<64x512xf32>
    %45 = arith.select %42, %40, %44 : vector<64x512xi1>, vector<64x512xf32>
    %c0_23 = arith.constant 0 : index
    %c0_24 = arith.constant 0 : index
    %46 = vector.load %arg7[%c0_23, %c0_24] : memref<1x512xf32, #tpu.memory_space<vmem>>, vector<1x512xf32>
    %c0_25 = arith.constant 0 : index
    %c0_26 = arith.constant 0 : index
    %47 = vector.load %arg8[%c0_25, %c0_26] : memref<1x512xf32, #tpu.memory_space<vmem>>, vector<1x512xf32>
    %cst_27 = arith.constant dense<0.000000e+00> : vector<512xf32>
    %48 = vector.multi_reduction <add>, %45, %cst_27 [0] : vector<64x512xf32> to vector<512xf32>
    %49 = vector.shape_cast %48 : vector<512xf32> to vector<1x512xf32>
    %cst_28 = arith.constant 6.400000e+01 : f32
    %50 = vector.broadcast %cst_28 : f32 to vector<1x512xf32>
    %51 = arith.divf %49, %50 : vector<1x512xf32>
    %52 = arith.mulf %45, %45 : vector<64x512xf32>
    %cst_29 = arith.constant dense<0.000000e+00> : vector<512xf32>
    %53 = vector.multi_reduction <add>, %52, %cst_29 [0] : vector<64x512xf32> to vector<512xf32>
    %54 = vector.shape_cast %53 : vector<512xf32> to vector<1x512xf32>
    %cst_30 = arith.constant 6.400000e+01 : f32
    %55 = vector.broadcast %cst_30 : f32 to vector<1x512xf32>
    %56 = arith.divf %54, %55 : vector<1x512xf32>
    %57 = arith.mulf %51, %51 : vector<1x512xf32>
    %58 = arith.subf %56, %57 : vector<1x512xf32>
    %cst_31 = arith.constant 9.99999974E-6 : f32
    %59 = vector.broadcast %cst_31 : f32 to vector<1x512xf32>
    %60 = arith.addf %58, %59 : vector<1x512xf32>
    %61 = math.rsqrt %60 : vector<1x512xf32>
    %62 = arith.mulf %61, %46 : vector<1x512xf32>
    %63 = arith.mulf %51, %62 : vector<1x512xf32>
    %64 = arith.subf %47, %63 : vector<1x512xf32>
    %65 = vector.broadcast %62 : vector<1x512xf32> to vector<64x512xf32>
    %66 = arith.mulf %45, %65 : vector<64x512xf32>
    %67 = vector.broadcast %64 : vector<1x512xf32> to vector<64x512xf32>
    %68 = arith.addf %66, %67 : vector<64x512xf32>
    %69 = arith.truncf %68 : vector<64x512xf32> to vector<64x512xbf16>
    %c0_32 = arith.constant 0 : index
    %c0_33 = arith.constant 0 : index
    %70 = vector.load %arg9[%c0_32, %c0_33] : memref<512x1024xbf16, #tpu.memory_space<vmem>>, vector<512x1024xbf16>
    %cst_34 = arith.constant dense<0.000000e+00> : vector<64x1024xf32>
    %71 = tpu.matmul %69, %70, %cst_34 {dimension_numbers = #tpu.dot_dimension_numbers<[1], [0], [0], [1], [0, 0, 1, 1], [], []>} : vector<64x512xbf16>, vector<512x1024xbf16>, vector<64x1024xf32> -> vector<64x1024xf32>
    %c0_35 = arith.constant 0 : index
    %c0_36 = arith.constant 0 : index
    %72 = vector.load %arg10[%c0_35, %c0_36] : memref<1x1024xf32, #tpu.memory_space<vmem>>, vector<1x1024xf32>
    %73 = vector.broadcast %72 : vector<1x1024xf32> to vector<64x1024xf32>
    %74 = arith.addf %71, %73 : vector<64x1024xf32>
    %cst_37 = arith.constant 0.000000e+00 : f32
    %75 = vector.broadcast %cst_37 : f32 to vector<64x1024xf32>
    %76 = arith.cmpf ogt, %74, %75 : vector<64x1024xf32>
    %cst_38 = arith.constant 2.000000e-01 : f32
    %77 = vector.broadcast %cst_38 : f32 to vector<64x1024xf32>
    %78 = arith.mulf %77, %74 : vector<64x1024xf32>
    %79 = arith.select %76, %74, %78 : vector<64x1024xi1>, vector<64x1024xf32>
    %c0_39 = arith.constant 0 : index
    %c0_40 = arith.constant 0 : index
    %80 = vector.load %arg11[%c0_39, %c0_40] : memref<1x1024xf32, #tpu.memory_space<vmem>>, vector<1x1024xf32>
    %c0_41 = arith.constant 0 : index
    %c0_42 = arith.constant 0 : index
    %81 = vector.load %arg12[%c0_41, %c0_42] : memref<1x1024xf32, #tpu.memory_space<vmem>>, vector<1x1024xf32>
    %cst_43 = arith.constant dense<0.000000e+00> : vector<1024xf32>
    %82 = vector.multi_reduction <add>, %79, %cst_43 [0] : vector<64x1024xf32> to vector<1024xf32>
    %83 = vector.shape_cast %82 : vector<1024xf32> to vector<1x1024xf32>
    %cst_44 = arith.constant 6.400000e+01 : f32
    %84 = vector.broadcast %cst_44 : f32 to vector<1x1024xf32>
    %85 = arith.divf %83, %84 : vector<1x1024xf32>
    %86 = arith.mulf %79, %79 : vector<64x1024xf32>
    %cst_45 = arith.constant dense<0.000000e+00> : vector<1024xf32>
    %87 = vector.multi_reduction <add>, %86, %cst_45 [0] : vector<64x1024xf32> to vector<1024xf32>
    %88 = vector.shape_cast %87 : vector<1024xf32> to vector<1x1024xf32>
    %cst_46 = arith.constant 6.400000e+01 : f32
    %89 = vector.broadcast %cst_46 : f32 to vector<1x1024xf32>
    %90 = arith.divf %88, %89 : vector<1x1024xf32>
    %91 = arith.mulf %85, %85 : vector<1x1024xf32>
    %92 = arith.subf %90, %91 : vector<1x1024xf32>
    %cst_47 = arith.constant 9.99999974E-6 : f32
    %93 = vector.broadcast %cst_47 : f32 to vector<1x1024xf32>
    %94 = arith.addf %92, %93 : vector<1x1024xf32>
    %95 = math.rsqrt %94 : vector<1x1024xf32>
    %96 = arith.mulf %95, %80 : vector<1x1024xf32>
    %97 = arith.mulf %85, %96 : vector<1x1024xf32>
    %98 = arith.subf %81, %97 : vector<1x1024xf32>
    %99 = vector.broadcast %96 : vector<1x1024xf32> to vector<64x1024xf32>
    %100 = arith.mulf %79, %99 : vector<64x1024xf32>
    %101 = vector.broadcast %98 : vector<1x1024xf32> to vector<64x1024xf32>
    %102 = arith.addf %100, %101 : vector<64x1024xf32>
    %103 = arith.truncf %102 : vector<64x1024xf32> to vector<64x1024xbf16>
    %c0_48 = arith.constant 0 : index
    %c0_49 = arith.constant 0 : index
    %104 = vector.load %arg13[%c0_48, %c0_49] : memref<1024x896xbf16, #tpu.memory_space<vmem>>, vector<1024x896xbf16>
    %cst_50 = arith.constant dense<0.000000e+00> : vector<64x896xf32>
    %105 = tpu.matmul %103, %104, %cst_50 {dimension_numbers = #tpu.dot_dimension_numbers<[1], [0], [0], [1], [0, 0, 1, 1], [], []>} : vector<64x1024xbf16>, vector<1024x896xbf16>, vector<64x896xf32> -> vector<64x896xf32>
    %c0_51 = arith.constant 0 : index
    %c0_52 = arith.constant 0 : index
    %106 = vector.load %arg14[%c0_51, %c0_52] : memref<1x896xf32, #tpu.memory_space<vmem>>, vector<1x896xf32>
    %107 = vector.broadcast %106 : vector<1x896xf32> to vector<64x896xf32>
    %108 = arith.addf %105, %107 : vector<64x896xf32>
    %109 = math.tanh %108 : vector<64x896xf32>
    %c0_53 = arith.constant 0 : index
    %c0_54 = arith.constant 0 : index
    %110 = vector.load %arg15[%c0_53, %c0_54] : memref<64x896xf32, #tpu.memory_space<vmem>>, vector<64x896xf32>
    tpu.vector_store %arg15[%c0_53, %c0_54], %109 {strides = array<i32>} : memref<64x896xf32, #tpu.memory_space<vmem>>, vector<64x896xf32>,
    return
  }
}

</mosaic_0001>

<bundles_post_ra>
// kernel: generator_forward.1
= control target key start
LH: loop header
LB: loop body
LE: loop exit
PB: predicated region body
PF: predicated region fallthrough
CT: control target
= control target key end

     0   :  { %20 = vsyncpa [#allocation3], 0  ;;  %s13730_s0 = inlined_call_operand.vmem [shape: f32[64,128], index: 0, kind: input, shape index: {}]   ;;  %s13731_s1 = inlined_call_operand.hbm [shape: bf16[128,256], index: 1, kind: input, shape index: {}]   ;;  %s13732_s2 = inlined_call_operand.hbm [shape: f32[1,256], index: 2, kind: input, shape index: {}]   ;;  %s13733_s3 = inlined_call_operand.hbm [shape: f32[1,256], index: 3, kind: input, shape index: {}]   ;;  %s13734_s4 = inlined_call_operand.hbm [shape: f32[1,256], index: 4, kind: input, shape index: {}]   ;;  %s13735_s5 = inlined_call_operand.hbm [shape: bf16[256,512], index: 5, kind: input, shape index: {}]   ;;  %s13736_s6 = inlined_call_operand.hbm [shape: f32[1,512], index: 6, kind: input, shape index: {}]   ;;  %s13737_s7 = inlined_call_operand.hbm [shape: f32[1,512], index: 7, kind: input, shape index: {}]   ;;  %s13738_s8 = inlined_call_operand.hbm [shape: f32[1,512], index: 8, kind: input, shape index: {}]   ;;  %s13739_s9 = inlined_call_operand.hbm [shape: bf16[512,1024], index: 9, kind: input, shape index: {}]   ;;  %s13740_s10 = inlined_call_operand.hbm [shape: f32[1,1024], index: 10, kind: input, shape index: {}]   ;;  %s13741_s11 = inlined_call_operand.hbm [shape: f32[1,1024], index: 11, kind: input, shape index: {}]   ;;  %s13742_s12 = inlined_call_operand.hbm [shape: f32[1,1024], index: 12, kind: input, shape index: {}]   ;;  %s13743_s13 = inlined_call_operand.hbm [shape: bf16[1024,896], index: 13, kind: input, shape index: {}]   ;;  %s13744_s14 = inlined_call_operand.hbm [shape: f32[1,896], index: 14, kind: input, shape index: {}]   ;;  %s13745_s15 = inlined_call_operand.vmem [shape: f32[64,896], index: 15, kind: output, shape index: {}]  }
   0x1   :  { %21 = vsyncpa [#allocation5], 0 }
   0x2   :  { %22 = vsyncpa [#allocation8], 0 }
   0x3   :  { %23 = vsyncpa [#allocation11], 0 }
   0x4   :  { %24 = vsyncpa [#allocation14], 0 }
   0x5   :  { %25 = vsyncpa [#allocation17], 0 }
   0x6   :  { %26 = vsyncpa [#allocation20], 0 }
   0x7   :  { %27 = vsyncpa [#allocation23], 0  ;;  %s11290_s18 = smov [#allocation4]   ;;  %s11291_s20 = smov [#allocation7]  }
   0x8   :  { %s48_s19 = sshll.u32 %s11290_s18, 4  ;;  %s68_s21 = sshll.u32 %s11291_s20, 4  ;;  %s49_s19 = int_to_ptr.vmem [resolvable:$true] %s48_s19  ;;  %s69_s21 = int_to_ptr.vmem [resolvable:$true] %s68_s21 }
   0x9   :  { %s10966_s24 = scalar_lea.hbm %s13732_s2, 32 }
   0xa   :  { %p10967_p0 = scmp.ne.s32.totalorder %s13732_s2, %s10966_s24  ;;  %p10970_p1 = scmp.lt.u32.totalorder %s10966_s24, %s13732_s2 }
   0xc   :  { %p10972_p2 = pnand %p10970_p1, %p10967_p0 }
   0xe   :  { %10975 = shalt.err (!%p10972_p2)
}
   0xf   :  { %s10976_s29 = scalar_lea.vmem %s49_s19, 32  ;;  %p10981_p4 = scmp.lt.s32.totalorder %s49_s19, %s49_s19 }
  0x10   :  { %p10977_p3 = scmp.ne.s32.totalorder %s49_s19, %s10976_s29  ;;  %p10982_p5 = scmp.lt.s32.totalorder %s10976_s29, %s10976_s29 }
  0x12   :  { %p10983_p6 = por %p10982_p5, %p10981_p4 }
  0x14   :  { %p10984_p7 = pnand %p10983_p6, %p10977_p3 }
  0x16   :  { %10987 = shalt.err (!%p10984_p7)
}
  0x17   :  { %51 = dma.hbm_to_vmem [thread:$0]  %s13732_s2, 32, %s49_s19, [#allocation5]  }
  0x18   :  { %s10988_s20 = scalar_lea.hbm %s13734_s4, 32 }
  0x19   :  { %p10989_p8 = scmp.ne.s32.totalorder %s13734_s4, %s10988_s20  ;;  %p10992_p9 = scmp.lt.u32.totalorder %s10988_s20, %s13734_s4 }
  0x1b   :  { %p10994_p10 = pnand %p10992_p9, %p10989_p8 }
  0x1d   :  { %10997 = shalt.err (!%p10994_p10)
}
  0x1e   :  { %s10998_s26 = scalar_lea.vmem %s69_s21, 32  ;;  %p11003_p12 = scmp.lt.s32.totalorder %s69_s21, %s69_s21 }
  0x1f   :  { %p10999_p11 = scmp.ne.s32.totalorder %s69_s21, %s10998_s26  ;;  %p11004_p13 = scmp.lt.s32.totalorder %s10998_s26, %s10998_s26 }
  0x21   :  { %p11005_p0 = por %p11004_p13, %p11003_p12 }
  0x23   :  { %p11006_p1 = pnand %p11005_p0, %p10999_p11 }
  0x25   :  { %11009 = shalt.err (!%p11006_p1)
}
  0x26   :  { %71 = dma.hbm_to_vmem [thread:$0]  %s13734_s4, 32, %s69_s21, [#allocation8]  }
  0x27   :  { %s11292_s27 = smov [#allocation10]   ;;  %s11293_s29 = smov [#allocation13]  }
  0x28   :  { %s90_s28 = sshll.u32 %s11292_s27, 4  ;;  %s110_s30 = sshll.u32 %s11293_s29, 4  ;;  %s91_s28 = int_to_ptr.vmem [resolvable:$true] %s90_s28  ;;  %s111_s30 = int_to_ptr.vmem [resolvable:$true] %s110_s30 }
  0x29   :  { %s11010_s18 = scalar_lea.hbm %s13736_s6, 64 }
  0x2a   :  { %p11011_p2 = scmp.ne.s32.totalorder %s13736_s6, %s11010_s18  ;;  %p11014_p3 = scmp.lt.u32.totalorder %s11010_s18, %s13736_s6 }
  0x2c   :  { %p11016_p4 = pnand %p11014_p3, %p11011_p2 }
  0x2e   :  { %11019 = shalt.err (!%p11016_p4)
}
  0x2f   :  { %s11020_s4 = scalar_lea.vmem %s91_s28, 64  ;;  %p11025_p6 = scmp.lt.s32.totalorder %s91_s28, %s91_s28 }
  0x30   :  { %p11021_p5 = scmp.ne.s32.totalorder %s91_s28, %s11020_s4  ;;  %p11026_p7 = scmp.lt.s32.totalorder %s11020_s4, %s11020_s4 }
  0x32   :  { %p11027_p8 = por %p11026_p7, %p11025_p6 }
  0x34   :  { %p11028_p9 = pnand %p11027_p8, %p11021_p5 }
  0x36   :  { %11031 = shalt.err (!%p11028_p9)
}
  0x37   :  { %93 = dma.hbm_to_vmem [thread:$0]  %s13736_s6, 64, %s91_s28, [#allocation11]  }
  0x38   :  { %s11032_s19 = scalar_lea.hbm %s13738_s8, 64 }
  0x39   :  { %p11033_p10 = scmp.ne.s32.totalorder %s13738_s8, %s11032_s19  ;;  %p11036_p11 = scmp.lt.u32.totalorder %s11032_s19, %s13738_s8 }
  0x3b   :  { %p11038_p12 = pnand %p11036_p11, %p11033_p10 }
  0x3d   :  { %11041 = shalt.err (!%p11038_p12)
}
  0x3e   :  { %s11042_s18 = scalar_lea.vmem %s111_s30, 64  ;;  %p11047_p0 = scmp.lt.s32.totalorder %s111_s30, %s111_s30 }
  0x3f   :  { %p11043_p13 = scmp.ne.s32.totalorder %s111_s30, %s11042_s18  ;;  %p11048_p1 = scmp.lt.s32.totalorder %s11042_s18, %s11042_s18 }
  0x41   :  { %p11049_p2 = por %p11048_p1, %p11047_p0 }
  0x43   :  { %p11050_p3 = pnand %p11049_p2, %p11043_p13 }
  0x45   :  { %11053 = shalt.err (!%p11050_p3)
}
  0x46   :  { %113 = dma.hbm_to_vmem [thread:$0]  %s13738_s8, 64, %s111_s30, [#allocation14]  }
  0x47   :  { %s11294_s20 = smov [#allocation16]   ;;  %s11295_s23 = smov [#allocation19]  }
  0x48   :  { %s132_s22 = sshll.u32 %s11294_s20, 4  ;;  %s152_s24 = sshll.u32 %s11295_s23, 4  ;;  %s133_s22 = int_to_ptr.vmem [resolvable:$true] %s132_s22  ;;  %s153_s24 = int_to_ptr.vmem [resolvable:$true] %s152_s24 }
  0x49   :  { %s11054_s25 = scalar_lea.hbm %s13740_s10, 128 }
  0x4a   :  { %p11055_p4 = scmp.ne.s32.totalorder %s13740_s10, %s11054_s25  ;;  %p11058_p5 = scmp.lt.u32.totalorder %s11054_s25, %s13740_s10 }
  0x4c   :  { %p11060_p6 = pnand %p11058_p5, %p11055_p4 }
  0x4e   :  { %11063 = shalt.err (!%p11060_p6)
}
  0x4f   :  { %s11064_s8 = scalar_lea.vmem %s133_s22, 128  ;;  %p11069_p8 = scmp.lt.s32.totalorder %s133_s22, %s133_s22 }
  0x50   :  { %p11065_p7 = scmp.ne.s32.totalorder %s133_s22, %s11064_s8  ;;  %p11070_p9 = scmp.lt.s32.totalorder %s11064_s8, %s11064_s8 }
  0x52   :  { %p11071_p10 = por %p11070_p9, %p11069_p8 }
  0x54   :  { %p11072_p11 = pnand %p11071_p10, %p11065_p7 }
  0x56   :  { %11075 = shalt.err (!%p11072_p11)
}
  0x57   :  { %135 = dma.hbm_to_vmem [thread:$0]  %s13740_s10, 128, %s133_s22, [#allocation17]  }
  0x58   :  { %s11076_s18 = scalar_lea.hbm %s13742_s12, 128 }
  0x59   :  { %p11077_p12 = scmp.ne.s32.totalorder %s13742_s12, %s11076_s18  ;;  %p11080_p13 = scmp.lt.u32.totalorder %s11076_s18, %s13742_s12 }
  0x5b   :  { %p11082_p0 = pnand %p11080_p13, %p11077_p12 }
  0x5d   :  { %11085 = shalt.err (!%p11082_p0)
}
  0x5e   :  { %s11086_s4 = scalar_lea.vmem %s153_s24, 128  ;;  %p11091_p2 = scmp.lt.s32.totalorder %s153_s24, %s153_s24 }
  0x5f   :  { %p11087_p1 = scmp.ne.s32.totalorder %s153_s24, %s11086_s4  ;;  %p11092_p3 = scmp.lt.s32.totalorder %s11086_s4, %s11086_s4 }
  0x61   :  { %p11093_p4 = por %p11092_p3, %p11091_p2 }
  0x63   :  { %p11094_p5 = pnand %p11093_p4, %p11087_p1 }
  0x65   :  { %11097 = shalt.err (!%p11094_p5)
}
  0x66   :  { %155 = dma.hbm_to_vmem [thread:$0]  %s13742_s12, 128, %s153_s24, [#allocation20]  }
  0x67   :  { %s11296_s21 = smov [#allocation2]   ;;  %s11098_s19 = scalar_lea.hbm %s13731_s1, 2048 }
  0x68   :  { %s35_s25 = sshll.u32 %s11296_s21, 4  ;;  %p11099_p6 = scmp.ne.s32.totalorder %s13731_s1, %s11098_s19  ;;  %s36_s25 = int_to_ptr.vmem [resolvable:$true] %s35_s25 }
  0x69   :  { %p11102_p7 = scmp.lt.u32.totalorder %s11098_s19, %s13731_s1 }
  0x6b   :  { %p11104_p8 = pnand %p11102_p7, %p11099_p6 }
  0x6d   :  { %11107 = shalt.err (!%p11104_p8)
}
  0x6e   :  { %s11108_s16 = scalar_lea.vmem %s36_s25, 2048  ;;  %p11113_p10 = scmp.lt.s32.totalorder %s36_s25, %s36_s25 }
  0x6f   :  { %p11109_p9 = scmp.ne.s32.totalorder %s36_s25, %s11108_s16  ;;  %p11114_p11 = scmp.lt.s32.totalorder %s11108_s16, %s11108_s16 }
  0x71   :  { %p11115_p12 = por %p11114_p11, %p11113_p10 }
  0x73   :  { %p11116_p13 = pnand %p11115_p12, %p11109_p9 }
  0x75   :  { %11119 = shalt.err (!%p11116_p13)
}
  0x76   :  { %s11297_s12 = smov 128   ;;  %s11298_s24 = smov 8  }
  0x77   :  { %41 = dma.hbm_to_vmem [thread:$0]  %s13731_s1, 2048, %s36_s25, [#allocation3], %s11297_s12, %s11297_s12, %s11298_s24  }
  0x78   :  { %s11299_s6 = smov [#allocation6]   ;;  %s11300_s20 = smov [#allocation9]  }
  0x79   :  { %s58_s28 = sshll.u32 %s11299_s6, 4  ;;  %s77_s23 = sshll.u32 %s11300_s20, 4  ;;  %s59_s28 = int_to_ptr.vmem [resolvable:$true] %s58_s28  ;;  %s78_s23 = int_to_ptr.vmem [resolvable:$true] %s77_s23 }
  0x7a   :  { %s11120_s22 = scalar_lea.hbm %s13733_s3, 32 }
  0x7b   :  { %p11121_p0 = scmp.ne.s32.totalorder %s13733_s3, %s11120_s22  ;;  %p11124_p1 = scmp.lt.u32.totalorder %s11120_s22, %s13733_s3 }
  0x7d   :  { %p11126_p2 = pnand %p11124_p1, %p11121_p0 }
  0x7f   :  { %11129 = shalt.err (!%p11126_p2)
}
  0x80   :  { %s11130_s1 = scalar_lea.vmem %s59_s28, 32  ;;  %p11135_p4 = scmp.lt.s32.totalorder %s59_s28, %s59_s28 }
  0x81   :  { %p11131_p3 = scmp.ne.s32.totalorder %s59_s28, %s11130_s1  ;;  %p11136_p5 = scmp.lt.s32.totalorder %s11130_s1, %s11130_s1 }
  0x83   :  { %p11137_p6 = por %p11136_p5, %p11135_p4 }
  0x85   :  { %p11138_p7 = pnand %p11137_p6, %p11131_p3 }
  0x87   :  { %11141 = shalt.err (!%p11138_p7)
}
  0x88   :  { %61 = dma.hbm_to_vmem [thread:$0]  %s13733_s3, 32, %s59_s28, [#allocation5]  }
  0x89   :  { %s11142_s29 = scalar_lea.hbm %s13735_s5, 8192 }
  0x8a   :  { %p11143_p8 = scmp.ne.s32.totalorder %s13735_s5, %s11142_s29  ;;  %p11146_p9 = scmp.lt.u32.totalorder %s11142_s29, %s13735_s5 }
  0x8c   :  { %p11148_p10 = pnand %p11146_p9, %p11143_p8 }
  0x8e   :  { %11151 = shalt.err (!%p11148_p10)
}
  0x8f   :  { %s11152_s18 = scalar_lea.vmem %s78_s23, 8192  ;;  %p11157_p12 = scmp.lt.s32.totalorder %s78_s23, %s78_s23 }
  0x90   :  { %p11153_p11 = scmp.ne.s32.totalorder %s78_s23, %s11152_s18  ;;  %p11158_p13 = scmp.lt.s32.totalorder %s11152_s18, %s11152_s18 }
  0x92   :  { %p11159_p0 = por %p11158_p13, %p11157_p12 }
  0x94   :  { %p11160_p1 = pnand %p11159_p0, %p11153_p11 }
  0x96   :  { %11163 = shalt.err (!%p11160_p1)
}
  0x97   :  { %s11301_s3 = smov 256   ;;  %s11302_s6 = smov 16  }
  0x98   :  { %83 = dma.hbm_to_vmem [thread:$0]  %s13735_s5, 8192, %s78_s23, [#allocation8], %s11301_s3, %s11301_s3, %s11302_s6  }
  0x99   :  { %s11303_s4 = smov [#allocation12]   ;;  %s11304_s22 = smov [#allocation15]  }
  0x9a   :  { %s100_s10 = sshll.u32 %s11303_s4, 4  ;;  %s119_s21 = sshll.u32 %s11304_s22, 4  ;;  %s101_s10 = int_to_ptr.vmem [resolvable:$true] %s100_s10  ;;  %s120_s21 = int_to_ptr.vmem [resolvable:$true] %s119_s21 }
  0x9b   :  { %s11164_s19 = scalar_lea.hbm %s13737_s7, 64 }
  0x9c   :  { %p11165_p2 = scmp.ne.s32.totalorder %s13737_s7, %s11164_s19  ;;  %p11168_p3 = scmp.lt.u32.totalorder %s11164_s19, %s13737_s7 }
  0x9e   :  { %p11170_p4 = pnand %p11168_p3, %p11165_p2 }
  0xa0   :  { %11173 = shalt.err (!%p11170_p4)
}
  0xa1   :  { %s11174_s5 = scalar_lea.vmem %s101_s10, 64  ;;  %p11179_p6 = scmp.lt.s32.totalorder %s101_s10, %s101_s10 }
  0xa2   :  { %p11175_p5 = scmp.ne.s32.totalorder %s101_s10, %s11174_s5  ;;  %p11180_p7 = scmp.lt.s32.totalorder %s11174_s5, %s11174_s5 }
  0xa4   :  { %p11181_p8 = por %p11180_p7, %p11179_p6 }
  0xa6   :  { %p11182_p9 = pnand %p11181_p8, %p11175_p5 }
  0xa8   :  { %11185 = shalt.err (!%p11182_p9)
}
  0xa9   :  { %103 = dma.hbm_to_vmem [thread:$0]  %s13737_s7, 64, %s101_s10, [#allocation11]  }
  0xaa   :  { %s11186_s12 = scalar_lea.hbm %s13739_s9, 32768 }
  0xab   :  { %p11187_p10 = scmp.ne.s32.totalorder %s13739_s9, %s11186_s12  ;;  %p11190_p11 = scmp.lt.u32.totalorder %s11186_s12, %s13739_s9 }
  0xad   :  { %p11192_p12 = pnand %p11190_p11, %p11187_p10 }
  0xaf   :  { %11195 = shalt.err (!%p11192_p12)
}
  0xb0   :  { %s11196_s6 = scalar_lea.vmem %s120_s21, 32768  ;;  %p11201_p0 = scmp.lt.s32.totalorder %s120_s21, %s120_s21 }
  0xb1   :  { %p11197_p13 = scmp.ne.s32.totalorder %s120_s21, %s11196_s6  ;;  %p11202_p1 = scmp.lt.s32.totalorder %s11196_s6, %s11196_s6 }
  0xb3   :  { %p11203_p2 = por %p11202_p1, %p11201_p0 }
  0xb5   :  { %p11204_p3 = pnand %p11203_p2, %p11197_p13 }
  0xb7   :  { %11207 = shalt.err (!%p11204_p3)
}
  0xb8   :  { %s11305_s7 = smov 512   ;;  %s11306_s28 = smov 32  }
  0xb9   :  { %125 = dma.hbm_to_vmem [thread:$0]  %s13739_s9, 32768, %s120_s21, [#allocation14], %s11305_s7, %s11305_s7, %s11306_s28  }
  0xba   :  { %s11307_s10 = smov [#allocation18]   ;;  %s11308_s26 = smov [#allocation21]  }
  0xbb   :  { %s142_s22 = sshll.u32 %s11307_s10, 4  ;;  %s161_s2 = sshll.u32 %s11308_s26, 4  ;;  %s143_s22 = int_to_ptr.vmem [resolvable:$true] %s142_s22  ;;  %s162_s2 = int_to_ptr.vmem [resolvable:$true] %s161_s2 }
  0xbc   :  { %s11208_s25 = scalar_lea.hbm %s13741_s11, 128 }
  0xbd   :  { %p11209_p4 = scmp.ne.s32.totalorder %s13741_s11, %s11208_s25  ;;  %p11212_p5 = scmp.lt.u32.totalorder %s11208_s25, %s13741_s11 }
  0xbf   :  { %p11214_p6 = pnand %p11212_p5, %p11209_p4 }
  0xc1   :  { %11217 = shalt.err (!%p11214_p6)
}
  0xc2   :  { %s11218_s9 = scalar_lea.vmem %s143_s22, 128  ;;  %p11223_p8 = scmp.lt.s32.totalorder %s143_s22, %s143_s22 }
  0xc3   :  { %p11219_p7 = scmp.ne.s32.totalorder %s143_s22, %s11218_s9  ;;  %p11224_p9 = scmp.lt.s32.totalorder %s11218_s9, %s11218_s9 }
  0xc5   :  { %p11225_p10 = por %p11224_p9, %p11223_p8 }
  0xc7   :  { %p11226_p11 = pnand %p11225_p10, %p11219_p7 }
  0xc9   :  { %11229 = shalt.err (!%p11226_p11)
}
  0xca   :  { %145 = dma.hbm_to_vmem [thread:$0]  %s13741_s11, 128, %s143_s22, [#allocation17]  }
  0xcb   :  { %s11230_s12 = scalar_lea.hbm %s13743_s13, 57344 }
  0xcc   :  { %p11231_p12 = scmp.ne.s32.totalorder %s13743_s13, %s11230_s12  ;;  %p11234_p13 = scmp.lt.u32.totalorder %s11230_s12, %s13743_s13 }
  0xce   :  { %p11236_p0 = pnand %p11234_p13, %p11231_p12 }
  0xd0   :  { %11239 = shalt.err (!%p11236_p0)
}
  0xd1   :  { %s11240_s6 = scalar_lea.vmem %s162_s2, 57344  ;;  %p11245_p2 = scmp.lt.s32.totalorder %s162_s2, %s162_s2 }
  0xd2   :  { %p11241_p1 = scmp.ne.s32.totalorder %s162_s2, %s11240_s6  ;;  %p11246_p3 = scmp.lt.s32.totalorder %s11240_s6, %s11240_s6 }
  0xd4   :  { %p11247_p4 = por %p11246_p3, %p11245_p2 }
  0xd6   :  { %p11248_p5 = pnand %p11247_p4, %p11241_p1 }
  0xd8   :  { %11251 = shalt.err (!%p11248_p5)
}
  0xd9   :  { %s11309_s11 = smov 448   ;;  %s11310_s7 = smov 28  }
  0xda   :  { %167 = dma.hbm_to_vmem [thread:$0]  %s13743_s13, 57344, %s162_s2, [#allocation20], %s11309_s11, %s11309_s11, %s11310_s7  }
  0xdb   :  { %s11311_s4 = smov [#allocation22]   ;;  %s11252_s19 = scalar_lea.hbm %s13744_s14, 112 }
  0xdc   :  { %s174_s10 = sshll.u32 %s11311_s4, 4  ;;  %p11253_p6 = scmp.ne.s32.totalorder %s13744_s14, %s11252_s19  ;;  %s175_s10 = int_to_ptr.vmem [resolvable:$true] %s174_s10 }
  0xdd   :  { %p11256_p7 = scmp.lt.u32.totalorder %s11252_s19, %s13744_s14 }
  0xdf   :  { %p11258_p8 = pnand %p11256_p7, %p11253_p6 }
  0xe1   :  { %11261 = shalt.err (!%p11258_p8)
}
  0xe2   :  { %s11262_s5 = scalar_lea.vmem %s175_s10, 112  ;;  %s11266_s13 = scalar_lea.vmem %s175_s10, 128 }
  0xe3   :  { %p11263_p9 = scmp.ne.s32.totalorder %s175_s10, %s11262_s5  ;;  %p11267_p10 = scmp.lt.s32.totalorder %s175_s10, %s175_s10 }
  0xe4   :  { %p11268_p11 = scmp.lt.s32.totalorder %s11266_s13, %s11262_s5 }
  0xe6   :  { %p11269_p12 = por %p11268_p11, %p11267_p10 }
  0xe8   :  { %p11270_p13 = pnand %p11269_p12, %p11263_p9 }
  0xea   :  { %11273 = shalt.err (!%p11270_p13)
}
  0xeb   :  { %177 = dma.hbm_to_vmem [thread:$0]  %s13744_s14, 112, %s175_s10, [#allocation23]  }
  0xec   :  { %11274 = dma.done.wait [#allocation3], 2048  }
  0xed   :  { %11275 = vsyncadd [#allocation3], 4294965248 }
  0xee   :  { %11276 = dma.done.wait [#allocation5], 64  }
  0xef   :  { %11277 = vsyncadd [#allocation5], 4294967232 }
  0xf0   :  { %11278 = dma.done.wait [#allocation8], 8224  }
  0xf1   :  { %11279 = vsyncadd [#allocation8], 4294959072 }
  0xf2   :  { %11280 = dma.done.wait [#allocation11], 128  }
  0xf3   :  { %11281 = vsyncadd [#allocation11], 4294967168 }
  0xf4   :  { %11282 = dma.done.wait [#allocation14], 32832  }
  0xf5   :  { %11283 = vsyncadd [#allocation14], 4294934464 }
  0xf6   :  { %11284 = dma.done.wait [#allocation17], 256  }
  0xf7   :  { %11285 = vsyncadd [#allocation17], 4294967040 }
  0xf8   :  { %11286 = dma.done.wait [#allocation20], 57472  }
  0xf9   :  { %11287 = vsyncadd [#allocation20], 4294909824 }
  0xfa   :  { %11288 = dma.done.wait [#allocation23], 112  }
  0xfb   :  { %11289 = vsyncadd [#allocation23], 4294967184  ;;  %v11312_v0 = vmov 0   ;;  %v10066_v1 = vld [vmem:[#allocation2 + $0x4] ss:$8 sps:$4 sm:$0xff]   ;;  %v223_v20 = vld [vmem:[%s13730_s0 + $0x10] sm:$0xff]  ;;  %v251_v62 = vlaneseq }
  0xfc   :  { %373 = vmatprep.mubr.bf16.mxu0 %v11312_v0  ;;  %v10068_v2 = vld [vmem:[#allocation2] ss:$8 sps:$4 sm:$0xff]   ;;  %341 = vmatprep.subr.bf16.mxu0 %v10066_v1  ;;  %v10069_v3 = vld [vmem:[#allocation2 + $0x14] ss:$8 sps:$4 sm:$0xff]   ;;  %v10071_v4 = vld [vmem:[#allocation2 + $0x10] ss:$8 sps:$4 sm:$0xff]  }
  0xfd   :  { %342 = vmatpush1.bf16.msra.mxu0 %v10068_v2  ;;  %v10072_v5 = vld [vmem:[#allocation2 + $0x24] ss:$8 sps:$4 sm:$0xff]   ;;  %v10074_v6 = vld [vmem:[#allocation2 + $0x20] ss:$8 sps:$4 sm:$0xff]   ;;  %v10075_v7 = vld [vmem:[#allocation2 + $0x34] ss:$8 sps:$4 sm:$0xff]  }
  0xfe   :  { %343 = vmatprep.subr.bf16.mxu0 %v10069_v3  ;;  %v10077_v8 = vld [vmem:[#allocation2 + $0x30] ss:$8 sps:$4 sm:$0xff]   ;;  %v10078_v9 = vld [vmem:[#allocation2 + $0x44] ss:$8 sps:$4 sm:$0xff]   ;;  %v10080_v10 = vld [vmem:[#allocation2 + $0x40] ss:$8 sps:$4 sm:$0xff]  }
  0xff   :  { %v10081_v11 = vld [vmem:[#allocation2 + $0x54] ss:$8 sps:$4 sm:$0xff]   ;;  %v10083_v12 = vld [vmem:[#allocation2 + $0x50] ss:$8 sps:$4 sm:$0xff]   ;;  %v10084_v13 = vld [vmem:[#allocation2 + $0x64] ss:$8 sps:$4 sm:$0xff]  }
 0x100   :  { %v10086_v14 = vld [vmem:[#allocation2 + $0x60] ss:$8 sps:$4 sm:$0xff]   ;;  %v10087_v15 = vld [vmem:[#allocation2 + $0x74] ss:$8 sps:$4 sm:$0xff]   ;;  %v10089_v16 = vld [vmem:[#allocation2 + $0x70] ss:$8 sps:$4 sm:$0xff]  }
 0x101   :  { %344 = vmatpush1.bf16.msra.mxu0 %v10071_v4  ;;  %v221_v17 = vld [vmem:[%s13730_s0] sm:$0xff]  ;;  %v222_v18 = vld [vmem:[%s13730_s0 + $0x8] sm:$0xff]  ;;  %v224_v21 = vld [vmem:[%s13730_s0 + $0x18] sm:$0xff]  ;;  %v11586_v63 = vshrl.u32 %v251_v62, 7 }
 0x102   :  { %345 = vmatprep.subr.bf16.mxu0 %v10072_v5  ;;  %v229_v19 = vpack.c.bf16 %v222_v18, %v221_v17  ;;  %v230_v22 = vpack.c.bf16 %v224_v21, %v223_v20  ;;  %v225_v23 = vld [vmem:[%s13730_s0 + $0x20] sm:$0xff]  ;;  %v226_v24 = vld [vmem:[%s13730_s0 + $0x28] sm:$0xff]  ;;  %v227_v26 = vld [vmem:[%s13730_s0 + $0x30] sm:$0xff] }
 0x103   :  { %v231_v25 = vpack.c.bf16 %v226_v24, %v225_v23  ;;  %v228_v27 = vld [vmem:[%s13730_s0 + $0x38] sm:$0xff]  ;;  %v10140_v61 = vld [vmem:[#allocation9 + $0xc] ss:$16 sps:$4 sm:$0xff]   ;;  %13789 = vst [vmem:[#allocation32_spill] sm:$0xff] %v11586_v63  ;;  %v249_v1 = vld [vmem:[#allocation4] sm:$0x3] }
 0x104   :  { %v232_v28 = vpack.c.bf16 %v228_v27, %v227_v26  ;;  %v10092_v29 = vld [vmem:[#allocation9 + $0x4] ss:$16 sps:$4 sm:$0xff]   ;;  %v10090_v30 = vld [vmem:[#allocation9] ss:$16 sps:$4 sm:$0xff]   ;;  %v11592_v2 = vsub.s32 1, %v11586_v63 }
 0x105   :  { %346 = vmatpush1.bf16.msra.mxu0 %v10074_v6  ;;  %v10095_v31 = vld [vmem:[#allocation9 + $0x24] ss:$16 sps:$4 sm:$0xff]   ;;  %v10093_v32 = vld [vmem:[#allocation9 + $0x20] ss:$16 sps:$4 sm:$0xff]  }
 0x106   :  { %347 = vmatprep.subr.bf16.mxu0 %v10075_v7  ;;  %v10098_v33 = vld [vmem:[#allocation9 + $0x44] ss:$16 sps:$4 sm:$0xff]   ;;  %v10096_v34 = vld [vmem:[#allocation9 + $0x40] ss:$16 sps:$4 sm:$0xff]   ;;  %13791 = vst [vmem:[#allocation34_spill] sm:$0xff] %v11592_v2  ;;  %v11598_v4 = vrot.slane %v249_v1, %v11592_v2 }
 0x107   :  { %v10101_v35 = vld [vmem:[#allocation9 + $0x64] ss:$16 sps:$4 sm:$0xff]   ;;  %v10099_v36 = vld [vmem:[#allocation9 + $0x60] ss:$16 sps:$4 sm:$0xff]  }
 0x108   :  { %v10104_v37 = vld [vmem:[#allocation9 + $0x84] ss:$16 sps:$4 sm:$0xff]   ;;  %v10102_v38 = vld [vmem:[#allocation9 + $0x80] ss:$16 sps:$4 sm:$0xff]  }
 0x109   :  { %348 = vmatpush1.bf16.msra.mxu0 %v10077_v8  ;;  %v10107_v39 = vld [vmem:[#allocation9 + $0xa4] ss:$16 sps:$4 sm:$0xff]   ;;  %v10105_v40 = vld [vmem:[#allocation9 + $0xa0] ss:$16 sps:$4 sm:$0xff]  }
 0x10a   :  { %349 = vmatprep.subr.bf16.mxu0 %v10078_v9  ;;  %v10110_v41 = vld [vmem:[#allocation9 + $0xc4] ss:$16 sps:$4 sm:$0xff]   ;;  %v10108_v42 = vld [vmem:[#allocation9 + $0xc0] ss:$16 sps:$4 sm:$0xff]  }
 0x10b   :  { %v10113_v43 = vld [vmem:[#allocation9 + $0xe4] ss:$16 sps:$4 sm:$0xff]   ;;  %v10111_v44 = vld [vmem:[#allocation9 + $0xe0] ss:$16 sps:$4 sm:$0xff]  }
 0x10c   :  { %v10116_v45 = vld [vmem:[#allocation9 + $0x104] ss:$16 sps:$4 sm:$0xff]   ;;  %v10114_v46 = vld [vmem:[#allocation9 + $0x100] ss:$16 sps:$4 sm:$0xff]  }
 0x10d   :  { %350 = vmatpush1.bf16.msra.mxu0 %v10080_v10  ;;  %v10119_v47 = vld [vmem:[#allocation9 + $0x124] ss:$16 sps:$4 sm:$0xff]   ;;  %v10117_v48 = vld [vmem:[#allocation9 + $0x120] ss:$16 sps:$4 sm:$0xff]  }
 0x10e   :  { %351 = vmatprep.subr.bf16.mxu0 %v10081_v11  ;;  %v10122_v49 = vld [vmem:[#allocation9 + $0x144] ss:$16 sps:$4 sm:$0xff]   ;;  %v10120_v50 = vld [vmem:[#allocation9 + $0x140] ss:$16 sps:$4 sm:$0xff]  }
 0x10f   :  { %v10125_v51 = vld [vmem:[#allocation9 + $0x164] ss:$16 sps:$4 sm:$0xff]   ;;  %v10123_v52 = vld [vmem:[#allocation9 + $0x160] ss:$16 sps:$4 sm:$0xff]  }
 0x110   :  { %v10128_v53 = vld [vmem:[#allocation9 + $0x184] ss:$16 sps:$4 sm:$0xff]   ;;  %v10126_v54 = vld [vmem:[#allocation9 + $0x180] ss:$16 sps:$4 sm:$0xff]  }
 0x111   :  { %352 = vmatpush1.bf16.msra.mxu0 %v10083_v12  ;;  %v10131_v55 = vld [vmem:[#allocation9 + $0x1a4] ss:$16 sps:$4 sm:$0xff]   ;;  %v10129_v56 = vld [vmem:[#allocation9 + $0x1a0] ss:$16 sps:$4 sm:$0xff]  }
 0x112   :  { %353 = vmatprep.subr.bf16.mxu0 %v10084_v13  ;;  %v10134_v57 = vld [vmem:[#allocation9 + $0x1c4] ss:$16 sps:$4 sm:$0xff]   ;;  %v10132_v58 = vld [vmem:[#allocation9 + $0x1c0] ss:$16 sps:$4 sm:$0xff]  }
 0x113   :  { %v10135_v59 = vld [vmem:[#allocation9 + $0x1e0] ss:$16 sps:$4 sm:$0xff]   ;;  %v10137_v60 = vld [vmem:[#allocation9 + $0x1e4] ss:$16 sps:$4 sm:$0xff]  }
 0x115   :  { %354 = vmatpush1.bf16.msra.mxu0 %v10086_v14 }
 0x116   :  { %355 = vmatprep.subr.bf16.mxu0 %v10087_v15 }
 0x119   :  { %356 = vmatpush1.bf16.msra.mxu0 %v10089_v16 }
 0x11a   :  { %1044 = vmatprep.subr.bf16.mxu0 %v10092_v29 }
 0x11c   :  { %374 = vmatmul.mubr.bf16.vlgmr.msra.gmra.mrb[0].mxu0 %v229_v19 }
 0x11d   :  { %383 = vmatprep.mubr.bf16.mxu0 %v11312_v0  ;;  %1045 = vmatpush1.bf16.msra.mxu0 %v10090_v30 }
 0x11e   :  { %1046 = vmatprep.subr.bf16.mxu0 %v10095_v31 }
 0x121   :  { %1047 = vmatpush1.bf16.msra.mxu0 %v10093_v32 }
 0x122   :  { %1048 = vmatprep.subr.bf16.mxu0 %v10098_v33 }
 0x124   :  { %384 = vmatmul.mubr.bf16.gmra.mrb[4].mxu0 %v230_v22 }
 0x125   :  { %393 = vmatprep.mubr.bf16.mxu0 %v11312_v0  ;;  %1049 = vmatpush1.bf16.msra.mxu0 %v10096_v34 }
 0x126   :  { %1050 = vmatprep.subr.bf16.mxu0 %v10101_v35 }
 0x129   :  { %1051 = vmatpush1.bf16.msra.mxu0 %v10099_v36 }
 0x12a   :  { %1052 = vmatprep.subr.bf16.mxu0 %v10104_v37 }
 0x12c   :  { %394 = vmatmul.mubr.bf16.gmra.mrb[8].mxu0 %v231_v25 }
 0x12d   :  { %403 = vmatprep.mubr.bf16.mxu0 %v11312_v0  ;;  %1053 = vmatpush1.bf16.msra.mxu0 %v10102_v38  ;;  %v11589_v0 = vsub.s32 0, %v11586_v63 }
 0x12e   :  { %1054 = vmatprep.subr.bf16.mxu0 %v10107_v39 }
 0x12f   :  { %13790 = vst [vmem:[#allocation33_spill] sm:$0xff] %v11589_v0  ;;  %v11595_v3 = vrot.slane %v249_v1, %v11589_v0 }
 0x131   :  { %1055 = vmatpush1.bf16.msra.mxu0 %v10105_v40 }
 0x132   :  { %1056 = vmatprep.subr.bf16.mxu0 %v10110_v41 }
 0x134   :  { %404 = vmatmul.mubr.bf16.gmra.mrb[12].mxu0 %v232_v28 }
 0x135   :  { %1057 = vmatpush1.bf16.msra.mxu0 %v10108_v42 }
 0x136   :  { %1058 = vmatprep.subr.bf16.mxu0 %v10113_v43 }
 0x139   :  { %1059 = vmatpush1.bf16.msra.mxu0 %v10111_v44 }
 0x13a   :  { %1060 = vmatprep.subr.bf16.mxu0 %v10116_v45 }
 0x13d   :  { %1061 = vmatpush1.bf16.msra.mxu0 %v10114_v46 }
 0x13e   :  { %1062 = vmatprep.subr.bf16.mxu0 %v10119_v47 }
 0x141   :  { %1063 = vmatpush1.bf16.msra.mxu0 %v10117_v48 }
 0x142   :  { %1064 = vmatprep.subr.bf16.mxu0 %v10122_v49 }
 0x145   :  { %1065 = vmatpush1.bf16.msra.mxu0 %v10120_v50 }
 0x146   :  { %1066 = vmatprep.subr.bf16.mxu0 %v10125_v51 }
 0x149   :  { %1067 = vmatpush1.bf16.msra.mxu0 %v10123_v52 }
 0x14a   :  { %1068 = vmatprep.subr.bf16.mxu0 %v10128_v53 }
 0x14d   :  { %1069 = vmatpush1.bf16.msra.mxu0 %v10126_v54 }
 0x14e   :  { %1070 = vmatprep.subr.bf16.mxu0 %v10131_v55 }
 0x151   :  { %1071 = vmatpush1.bf16.msra.mxu0 %v10129_v56 }
 0x152   :  { %1072 = vmatprep.subr.bf16.mxu0 %v10134_v57 }
 0x155   :  { %1073 = vmatpush1.bf16.msra.mxu0 %v10132_v58 }
 0x156   :  { %1074 = vmatprep.subr.bf16.mxu0 %v10137_v60 }
 0x159   :  { %1075 = vmatpush1.bf16.msra.mxu0 %v10135_v59 }
 0x15a   :  { %1117 = vmatprep.subr.bf16.mxu0 %v10140_v61 }
 0x1ef   :  { %v375_v5 = vpop.f32.mrb[0].mxu0 }
 0x1f0   :  { %v376_v6 = vadd.f32 %v375_v5, %v11595_v3  ;;  %v377_v7 = vpop.f32.mrb[1].mxu0 }
 0x1f1   :  { %v378_v8 = vadd.f32 %v377_v7, %v11598_v4  ;;  %v379_v9 = vpop.f32.mrb[2].mxu0 }
 0x1f2   :  { %vm414_vm0 = vcmp.gt.f32.partialorder %v376_v6, 0.0  ;;  %v430_v10 = vmul.f32 0.2, %v376_v6  ;;  %v380_v11 = vadd.f32 %v379_v9, %v11595_v3  ;;  %v381_v12 = vpop.f32.mrb[3].mxu0 }
 0x1f3   :  { %vm415_vm1 = vcmp.gt.f32.partialorder %v378_v8, 0.0  ;;  %v431_v13 = vmul.f32 0.2, %v378_v8  ;;  %v382_v14 = vadd.f32 %v381_v12, %v11598_v4 }
 0x1f4   :  { %v11604_v15 = vsel %vm414_vm0, %v376_v6, %v430_v10  ;;  %vm416_vm2 = vcmp.gt.f32.partialorder %v380_v11, 0.0  ;;  %v432_v16 = vmul.f32 0.2, %v380_v11 }
 0x1f5   :  { %v11606_v17 = vsel %vm415_vm1, %v378_v8, %v431_v13  ;;  %vm417_vm3 = vcmp.gt.f32.partialorder %v382_v14, 0.0  ;;  %v433_v18 = vmul.f32 0.2, %v382_v14  ;;  %v493_v20 = vmul.f32 %v11604_v15, %v11604_v15 }
 0x1f6   :  { %v11608_v19 = vsel %vm416_vm2, %v380_v11, %v432_v16  ;;  %v494_v25 = vmul.f32 %v11606_v17, %v11606_v17 }
 0x1f7   :  { %v464_v21 = vadd.f32 %v11608_v19, %v11604_v15  ;;  %v495_v22 = vmul.f32 %v11608_v19, %v11608_v19  ;;  %v11616_v23 = vsel %vm417_vm3, %v382_v14, %v433_v18  ;;  %v385_v24 = vpop.f32.mrb[4].mxu0 }
 0x1f8   :  { %v477_v26 = vadd.f32 %v11616_v23, %v11606_v17  ;;  %v496_v27 = vmul.f32 %v11616_v23, %v11616_v23  ;;  %v386_v28 = vadd.f32 %v385_v24, %v11595_v3  ;;  %v387_v29 = vpop.f32.mrb[5].mxu0 }
 0x1f9   :  { %v509_v30 = vadd.f32 %v495_v22, %v493_v20  ;;  %v388_v31 = vadd.f32 %v387_v29, %v11598_v4  ;;  %v389_v32 = vpop.f32.mrb[6].mxu0 }
 0x1fa   :  { %v522_v33 = vadd.f32 %v496_v27, %v494_v25  ;;  %vm418_vm4 = vcmp.gt.f32.partialorder %v386_v28, 0.0  ;;  %v434_v34 = vmul.f32 0.2, %v386_v28  ;;  %v390_v35 = vadd.f32 %v389_v32, %v11595_v3  ;;  %v391_v36 = vpop.f32.mrb[7].mxu0 }
 0x1fb   :  { %vm419_vm5 = vcmp.gt.f32.partialorder %v388_v31, 0.0  ;;  %v435_v37 = vmul.f32 0.2, %v388_v31  ;;  %v392_v38 = vadd.f32 %v391_v36, %v11598_v4 }
 0x1fc   :  { %v11628_v39 = vsel %vm418_vm4, %v386_v28, %v434_v34  ;;  %vm420_vm6 = vcmp.gt.f32.partialorder %v390_v35, 0.0  ;;  %v436_v40 = vmul.f32 0.2, %v390_v35 }
 0x1fd   :  { %v465_v41 = vadd.f32 %v464_v21, %v11628_v39  ;;  %v497_v42 = vmul.f32 %v11628_v39, %v11628_v39  ;;  %v11633_v43 = vsel %vm419_vm5, %v388_v31, %v435_v37  ;;  %vm421_vm7 = vcmp.gt.f32.partialorder %v392_v38, 0.0 }
 0x1fe   :  { %v478_v44 = vadd.f32 %v477_v26, %v11633_v43  ;;  %v498_v45 = vmul.f32 %v11633_v43, %v11633_v43  ;;  %v11638_v46 = vsel %vm420_vm6, %v390_v35, %v436_v40  ;;  %v437_v47 = vmul.f32 0.2, %v392_v38 }
 0x1ff   :  { %v510_v48 = vadd.f32 %v509_v30, %v497_v42  ;;  %v466_v49 = vadd.f32 %v465_v41, %v11638_v46  ;;  %v499_v50 = vmul.f32 %v11638_v46, %v11638_v46  ;;  %v395_v51 = vpop.f32.mrb[8].mxu0 }
 0x200   :  { %v523_v52 = vadd.f32 %v522_v33, %v498_v45  ;;  %v11643_v53 = vsel %vm421_vm7, %v392_v38, %v437_v47  ;;  %v396_v54 = vadd.f32 %v395_v51, %v11595_v3  ;;  %v397_v55 = vpop.f32.mrb[9].mxu0 }
 0x201   :  { %v511_v56 = vadd.f32 %v510_v48, %v499_v50  ;;  %v479_v57 = vadd.f32 %v478_v44, %v11643_v53  ;;  %v500_v58 = vmul.f32 %v11643_v53, %v11643_v53  ;;  %v398_v59 = vadd.f32 %v397_v55, %v11598_v4  ;;  %v399_v60 = vpop.f32.mrb[10].mxu0 }
 0x202   :  { %vm422_vm8 = vcmp.gt.f32.partialorder %v396_v54, 0.0  ;;  %v438_v61 = vmul.f32 0.2, %v396_v54  ;;  %v400_v62 = vadd.f32 %v399_v60, %v11595_v3  ;;  %v401_v1 = vpop.f32.mrb[11].mxu0 }
 0x203   :  { %v524_v5 = vadd.f32 %v523_v52, %v500_v58  ;;  %vm423_vm9 = vcmp.gt.f32.partialorder %v398_v59, 0.0  ;;  %v439_v6 = vmul.f32 0.2, %v398_v59  ;;  %v402_v7 = vadd.f32 %v401_v1, %v11598_v4 }
 0x204   :  { %v11652_v8 = vsel %vm422_vm8, %v396_v54, %v438_v61  ;;  %vm424_vm10 = vcmp.gt.f32.partialorder %v400_v62, 0.0  ;;  %v440_v9 = vmul.f32 0.2, %v400_v62 }
 0x205   :  { %v467_v10 = vadd.f32 %v466_v49, %v11652_v8  ;;  %v501_v11 = vmul.f32 %v11652_v8, %v11652_v8  ;;  %v11657_v12 = vsel %vm423_vm9, %v398_v59, %v439_v6  ;;  %vm425_vm11 = vcmp.gt.f32.partialorder %v402_v7, 0.0 }
 0x206   :  { %v480_v13 = vadd.f32 %v479_v57, %v11657_v12  ;;  %v502_v14 = vmul.f32 %v11657_v12, %v11657_v12  ;;  %v11662_v16 = vsel %vm424_vm10, %v400_v62, %v440_v9  ;;  %v441_v18 = vmul.f32 0.2, %v402_v7 }
 0x207   :  { %v512_v20 = vadd.f32 %v511_v56, %v501_v11  ;;  %v468_v21 = vadd.f32 %v467_v10, %v11662_v16  ;;  %v503_v22 = vmul.f32 %v11662_v16, %v11662_v16  ;;  %v405_v24 = vpop.f32.mrb[12].mxu0 }
 0x208   :  { %v525_v25 = vadd.f32 %v524_v5, %v502_v14  ;;  %v11667_v26 = vsel %vm425_vm11, %v402_v7, %v441_v18  ;;  %v406_v27 = vadd.f32 %v405_v24, %v11595_v3  ;;  %v407_v28 = vpop.f32.mrb[13].mxu0 }
 0x209   :  { %v513_v29 = vadd.f32 %v512_v20, %v503_v22  ;;  %v481_v30 = vadd.f32 %v480_v13, %v11667_v26  ;;  %v504_v31 = vmul.f32 %v11667_v26, %v11667_v26  ;;  %v408_v32 = vadd.f32 %v407_v28, %v11598_v4  ;;  %v409_v33 = vpop.f32.mrb[14].mxu0 }
 0x20a   :  { %vm426_vm12 = vcmp.gt.f32.partialorder %v406_v27, 0.0  ;;  %v442_v34 = vmul.f32 0.2, %v406_v27  ;;  %v410_v35 = vadd.f32 %v409_v33, %v11595_v3  ;;  %v411_v36 = vpop.f32.mrb[15].mxu0 }
 0x20b   :  { %v526_v37 = vadd.f32 %v525_v25, %v504_v31  ;;  %vm427_vm13 = vcmp.gt.f32.partialorder %v408_v32, 0.0  ;;  %v443_v38 = vmul.f32 0.2, %v408_v32  ;;  %v412_v40 = vadd.f32 %v411_v36, %v11598_v4 }
 0x20c   :  { %v11676_v41 = vsel %vm426_vm12, %v406_v27, %v442_v34  ;;  %vm428_vm14 = vcmp.gt.f32.partialorder %v410_v35, 0.0  ;;  %v444_v42 = vmul.f32 0.2, %v410_v35 }
 0x20d   :  { %v469_v44 = vadd.f32 %v468_v21, %v11676_v41  ;;  %v505_v45 = vmul.f32 %v11676_v41, %v11676_v41  ;;  %v11681_v47 = vsel %vm427_vm13, %v408_v32, %v443_v38  ;;  %vm429_vm15 = vcmp.gt.f32.partialorder %v412_v40, 0.0 }
 0x20e   :  { %v482_v3 = vadd.f32 %v481_v30, %v11681_v47  ;;  %v506_v48 = vmul.f32 %v11681_v47, %v11681_v47  ;;  %v460_v49 = vsel %vm428_vm14, %v410_v35, %v444_v42  ;;  %v445_v50 = vmul.f32 0.2, %v412_v40 }
 0x20f   :  { %v514_v4 = vadd.f32 %v513_v29, %v505_v45  ;;  %v470_v51 = vadd.f32 %v469_v44, %v460_v49  ;;  %v507_v52 = vmul.f32 %v460_v49, %v460_v49 }
 0x210   :  { %v527_v54 = vadd.f32 %v526_v37, %v506_v48  ;;  %v11686_v55 = vsel %vm429_vm15, %v412_v40, %v445_v50  ;;  %v11313_v48 = vmov 1966171168  }
 0x211   :  { %v471_v56 = vrot.slane %v470_v51, 4  ;;  %v515_v57 = vadd.f32 %v514_v4, %v507_v52  ;;  %v483_v58 = vadd.f32 %v482_v3, %v11686_v55  ;;  %v508_v59 = vmul.f32 %v11686_v55, %v11686_v55  ;;  %v462_v3 = vld [vmem:[#allocation6] sm:$0x3] }
 0x212   :  { %v564_v50 = vunpack.c.l.s4 %v11313_v48  ;;  %v549_v4 = vrot.slane %v462_v3, %v11589_v0  ;;  %v10141_v48 = vld [vmem:[#allocation9 + $0x28] ss:$16 sps:$4 sm:$0xff]  }
 0x213   :  { %v472_v60 = vadd.f32 %v471_v56, %v470_v51  ;;  %v516_v61 = vrot.slane %v515_v57, 4  ;;  %v484_v62 = vrot.slane %v483_v58, 4  ;;  %v528_v1 = vadd.f32 %v527_v54, %v508_v59 }
 0x214   :  { %v553_v51 = vrot.slane %v462_v3, %v11592_v2  ;;  %v565_v54 = vunpack.c.0.s8 %v564_v50 }
 0x215   :  { %v473_v5 = vrot.slane %v472_v60, 2  ;;  %v517_v6 = vadd.f32 %v516_v61, %v515_v57  ;;  %v485_v7 = vadd.f32 %v484_v62, %v483_v58  ;;  %v529_v9 = vrot.slane %v528_v1, 4 }
 0x216   :  { %v11695_v61 = vsub.s32 %v565_v54, %v11586_v63  ;;  %v10149_v54 = vld [vmem:[#allocation9 + $0x6c] ss:$16 sps:$4 sm:$0xff]  }
 0x217   :  { %v474_v10 = vadd.f32 %v473_v5, %v472_v60  ;;  %v518_v11 = vrot.slane %v517_v6, 2  ;;  %v486_v13 = vrot.slane %v485_v7, 2  ;;  %v530_v14 = vadd.f32 %v529_v9, %v528_v1 }
 0x218   :  { %13792 = vst [vmem:[#allocation35_spill] sm:$0xff] %v11695_v61 }
 0x219   :  { %v475_v18 = vrot.slane %v474_v10, 1  ;;  %v519_v20 = vadd.f32 %v518_v11, %v517_v6  ;;  %v487_v21 = vadd.f32 %v486_v13, %v485_v7  ;;  %v531_v22 = vrot.slane %v530_v14, 2 }
 0x21b   :  { %v476_v24 = vadd.f32 %v475_v18, %v474_v10  ;;  %v520_v25 = vrot.slane %v519_v20, 1  ;;  %v488_v27 = vrot.slane %v487_v21, 1  ;;  %v532_v28 = vadd.f32 %v531_v22, %v530_v14  ;;  %v463_v22 = vld [vmem:[#allocation7] sm:$0x3] }
 0x21d   :  { %v491_v29 = vmul.f32 0.015625, %v476_v24  ;;  %v521_v30 = vadd.f32 %v520_v25, %v519_v20  ;;  %v489_v31 = vadd.f32 %v488_v27, %v487_v21  ;;  %v533_v32 = vrot.slane %v532_v28, 1 }
 0x21f   :  { %v535_v33 = vmul.f32 0.015625, %v521_v30  ;;  %v537_v34 = vmul.f32 %v491_v29, %v491_v29  ;;  %v492_v35 = vmul.f32 0.015625, %v489_v31  ;;  %v534_v36 = vadd.f32 %v533_v32, %v532_v28 }
 0x221   :  { %v539_v37 = vsub.f32 %v535_v33, %v537_v34  ;;  %v536_v38 = vmul.f32 0.015625, %v534_v36  ;;  %v538_v40 = vmul.f32 %v492_v35, %v492_v35  ;;  %v10143_v34 = vld [vmem:[#allocation9 + $0x2c] ss:$16 sps:$4 sm:$0xff]  }
 0x223   :  { %v541_v42 = vadd.f32 1e-05, %v539_v37  ;;  %v540_v44 = vsub.f32 %v536_v38, %v538_v40 }
 0x225   :  { %10826 = vrsqrt.f32 %v541_v42  ;;  %v542_v45 = vadd.f32 1e-05, %v540_v44 }
 0x227   :  { %10828 = vrsqrt.f32 %v542_v45 }
 0x22f   :  { %v10827_v52 = vpop.eup %10826 }
 0x230   :  { %v556_v56 = vmul.f32 %v10827_v52, %v549_v4  ;;  %v10146_v4 = vld [vmem:[#allocation9 + $0x4c] ss:$16 sps:$4 sm:$0xff]   ;;  %v10144_v52 = vld [vmem:[#allocation9 + $0x48] ss:$16 sps:$4 sm:$0xff]  }
 0x231   :  { %v10829_v57 = vpop.eup %10828 }
 0x232   :  { %v558_v58 = vmul.f32 %v556_v56, %v491_v29  ;;  %v582_v59 = vrot.slane %v556_v56, %v11589_v0  ;;  %v557_v60 = vmul.f32 %v10829_v57, %v553_v51  ;;  %v10147_v56 = vld [vmem:[#allocation9 + $0x68] ss:$16 sps:$4 sm:$0xff]   ;;  %v10152_v57 = vld [vmem:[#allocation9 + $0x8c] ss:$16 sps:$4 sm:$0xff]  }
 0x234   :  { %v601_v62 = vmul.f32 %v582_v59, %v460_v49  ;;  %v559_v1 = vmul.f32 %v557_v60, %v492_v35  ;;  %v586_v5 = vrot.slane %v557_v60, %v11589_v0  ;;  %v587_v6 = vmul.f32 %v582_v59, %v11604_v15  ;;  %v10153_v60 = vld [vmem:[#allocation9 + $0xa8] ss:$16 sps:$4 sm:$0xff]  }
 0x235   :  { %v589_v7 = vmul.f32 %v582_v59, %v11608_v19  ;;  %v591_v9 = vmul.f32 %v582_v59, %v11628_v39  ;;  %v593_v10 = vmul.f32 %v582_v59, %v11638_v46  ;;  %v595_v11 = vmul.f32 %v582_v59, %v11652_v8 }
 0x236   :  { %v562_v13 = vcombine.low %v558_v58, %v559_v1  ;;  %v602_v14 = vmul.f32 %v586_v5, %v11686_v55  ;;  %v588_v18 = vmul.f32 %v586_v5, %v11606_v17  ;;  %v590_v49 = vmul.f32 %v586_v5, %v11616_v23  ;;  %v10150_v58 = vld [vmem:[#allocation9 + $0x88] ss:$16 sps:$4 sm:$0xff]  }
 0x237   :  { %v592_v20 = vmul.f32 %v586_v5, %v11633_v43  ;;  %v594_v21 = vmul.f32 %v586_v5, %v11643_v53  ;;  %v596_v15 = vmul.f32 %v586_v5, %v11657_v12  ;;  %v598_v19 = vmul.f32 %v586_v5, %v11667_v26  ;;  %v10156_v1 = vld [vmem:[#allocation9 + $0xc8] ss:$16 sps:$4 sm:$0xff]  }
 0x238   :  { %v569_v39 = vrot.slane %v562_v13, %v11695_v61  ;;  %v597_v46 = vmul.f32 %v582_v59, %v11662_v16  ;;  %v600_v8 = vmul.f32 %v586_v5, %v11681_v47  ;;  %v599_v55 = vmul.f32 %v582_v59, %v11676_v41  ;;  %v10138_v47 = vld [vmem:[#allocation9 + $0x8] ss:$16 sps:$4 sm:$0xff]   ;;  %v10155_v59 = vld [vmem:[#allocation9 + $0xac] ss:$16 sps:$4 sm:$0xff]  }
 0x239   :  { %v10161_v5 = vld [vmem:[#allocation9 + $0xec] ss:$16 sps:$4 sm:$0xff]  }
 0x23a   :  { %v576_v17 = vrot.slane %v569_v39, %v11695_v61  ;;  %v10170_v13 = vld [vmem:[#allocation9 + $0x14c] ss:$16 sps:$4 sm:$0xff]  }
 0x23b   :  { %v10182_v39 = vld [vmem:[#allocation9 + $0x1cc] ss:$16 sps:$4 sm:$0xff]  }
 0x23c   :  { %v578_v23 = vsub.f32 %v463_v22, %v576_v17  ;;  %v1624_v22 = vld [vmem:[#allocation15] sm:$0xff] }
 0x23d   :  { %v1628_v17 = vld [vmem:[#allocation15 + $0x20] sm:$0xff] }
 0x23e   :  { %v607_v43 = vrot.slane %v578_v23, %v11589_v0  ;;  %v611_v53 = vrot.slane %v578_v23, %v11592_v2  ;;  %v1625_v23 = vld [vmem:[#allocation15 + $0x8] sm:$0xff] }
 0x240   :  { %v615_v24 = vadd.f32 %v611_v53, %v588_v18  ;;  %v617_v12 = vadd.f32 %v611_v53, %v590_v49  ;;  %v614_v25 = vadd.f32 %v607_v43, %v587_v6  ;;  %v616_v26 = vadd.f32 %v607_v43, %v589_v7  ;;  %v10159_v6 = vld [vmem:[#allocation9 + $0xe8] ss:$16 sps:$4 sm:$0xff]   ;;  %v10164_v7 = vld [vmem:[#allocation9 + $0x10c] ss:$16 sps:$4 sm:$0xff]  }
 0x241   :  { %v619_v27 = vadd.f32 %v611_v53, %v592_v20  ;;  %v621_v28 = vadd.f32 %v611_v53, %v594_v21  ;;  %v618_v29 = vadd.f32 %v607_v43, %v591_v9  ;;  %v620_v16 = vadd.f32 %v607_v43, %v593_v10  ;;  %v10162_v9 = vld [vmem:[#allocation9 + $0x108] ss:$16 sps:$4 sm:$0xff]   ;;  %v10167_v10 = vld [vmem:[#allocation9 + $0x12c] ss:$16 sps:$4 sm:$0xff]  }
 0x242   :  { %v631_v30 = vpack.c.bf16 %v617_v12, %v615_v24  ;;  %v11717_v31 = vpack.c.bf16 %v616_v26, %v614_v25  ;;  %v623_v41 = vadd.f32 %v611_v53, %v596_v15  ;;  %v625_v32 = vadd.f32 %v611_v53, %v598_v19  ;;  %v10173_v18 = vld [vmem:[#allocation9 + $0x16c] ss:$16 sps:$4 sm:$0xff]   ;;  %v10171_v49 = vld [vmem:[#allocation9 + $0x168] ss:$16 sps:$4 sm:$0xff]  }
 0x243   :  { %v11719_v33 = vpack.c.bf16 %v621_v28, %v619_v27  ;;  %v11721_v35 = vpack.c.bf16 %v620_v16, %v618_v29  ;;  %v622_v36 = vadd.f32 %v607_v43, %v595_v11  ;;  %v624_v37 = vadd.f32 %v607_v43, %v597_v46  ;;  %v10165_v11 = vld [vmem:[#allocation9 + $0x128] ss:$16 sps:$4 sm:$0xff]   ;;  %v10176_v20 = vld [vmem:[#allocation9 + $0x18c] ss:$16 sps:$4 sm:$0xff]  }
 0x244   :  { %1076 = vmatprep.mubr.bf16.mxu0 %v631_v30  ;;  %v11723_v38 = vpack.c.bf16 %v625_v32, %v623_v41  ;;  %v627_v40 = vadd.f32 %v611_v53, %v600_v8  ;;  %v629_v42 = vadd.f32 %v611_v53, %v602_v14  ;;  %v626_v44 = vadd.f32 %v607_v43, %v599_v55  ;;  %v10168_v14 = vld [vmem:[#allocation9 + $0x148] ss:$16 sps:$4 sm:$0xff]   ;;  %v10179_v15 = vld [vmem:[#allocation9 + $0x1ac] ss:$16 sps:$4 sm:$0xff]  }
 0x245   :  { %1077 = vmatmul.mubr.bf16.vlgmr.msra.gmra.mrb[16].mxu0 %v11717_v31  ;;  %v11726_v45 = vpack.c.bf16 %v624_v37, %v622_v36  ;;  %v628_v3 = vadd.f32 %v607_v43, %v601_v62  ;;  %v10158_v62 = vld [vmem:[#allocation9 + $0xcc] ss:$16 sps:$4 sm:$0xff]   ;;  %v10174_v21 = vld [vmem:[#allocation9 + $0x188] ss:$16 sps:$4 sm:$0xff]   ;;  %v8843_v43 = vcombine.high %v1624_v22, %v1628_v17  ;;  %v8842_v25 = vcombine.low %v1624_v22, %v1628_v17 }
 0x246   :  { %1118 = vmatpush1.bf16.msra.mxu0 %v10138_v47  ;;  %1086 = vmatprep.mubr.bf16.mxu0 %v11719_v33  ;;  %v11729_v50 = vpack.c.bf16 %v629_v42, %v627_v40  ;;  %v10177_v19 = vld [vmem:[#allocation9 + $0x1a8] ss:$16 sps:$4 sm:$0xff]   ;;  %v10185_v8 = vld [vmem:[#allocation9 + $0x1ec] ss:$16 sps:$4 sm:$0xff]  }
 0x247   :  { %1119 = vmatprep.subr.bf16.mxu0 %v10143_v34  ;;  %v11731_v51 = vpack.c.bf16 %v628_v3, %v626_v44  ;;  %v10180_v46 = vld [vmem:[#allocation9 + $0x1c8] ss:$16 sps:$4 sm:$0xff]   ;;  %3202 = vmatprep.subr.bf16.mxu1 %v8843_v43  ;;  %v1632_v26 = vld [vmem:[#allocation15 + $0x40] sm:$0xff] }
 0x248   :  { %v10183_v55 = vld [vmem:[#allocation9 + $0x1e8] ss:$16 sps:$4 sm:$0xff]   ;;  %3203 = vmatpush1.bf16.msra.mxu1 %v8842_v25  ;;  %v1636_v27 = vld [vmem:[#allocation15 + $0x60] sm:$0xff] }
 0x249   :  { %v1629_v53 = vld [vmem:[#allocation15 + $0x28] sm:$0xff]  ;;  %v8851_v29 = vcombine.high %v1632_v26, %v1636_v27  ;;  %v1640_v41 = vld [vmem:[#allocation15 + $0x80] sm:$0xff] }
 0x24a   :  { %1120 = vmatpush1.bf16.msra.mxu0 %v10141_v48  ;;  %v8844_v24 = vcombine.low %v1625_v23, %v1629_v53  ;;  %v8845_v12 = vcombine.high %v1625_v23, %v1629_v53  ;;  %v1633_v28 = vld [vmem:[#allocation15 + $0x48] sm:$0xff]  ;;  %v1644_v32 = vld [vmem:[#allocation15 + $0xa0] sm:$0xff] }
 0x24b   :  { %1121 = vmatprep.subr.bf16.mxu0 %v10146_v4  ;;  %v1637_v16 = vld [vmem:[#allocation15 + $0x68] sm:$0xff]  ;;  %3204 = vmatprep.subr.bf16.mxu1 %v8851_v29  ;;  %v8859_v34 = vcombine.high %v1640_v41, %v1644_v32  ;;  %v1648_v40 = vld [vmem:[#allocation15 + $0xc0] sm:$0xff] }
 0x24c   :  { %v8853_v47 = vcombine.high %v1633_v28, %v1637_v16  ;;  %v1652_v42 = vld [vmem:[#allocation15 + $0xe0] sm:$0xff]  ;;  %v1649_v44 = vld [vmem:[#allocation15 + $0xc8] sm:$0xff] }
 0x24d   :  { %1087 = vmatmul.mubr.bf16.gmra.mrb[20].mxu0 %v11721_v35  ;;  %v1653_v3 = vld [vmem:[#allocation15 + $0xe8] sm:$0xff]  ;;  %v8866_v4 = vcombine.low %v1648_v40, %v1652_v42  ;;  %v1688_v53 = vld [vmem:[#allocation15 + $0x200] sm:$0xff] }
 0x24e   :  { %1122 = vmatpush1.bf16.msra.mxu0 %v10144_v52  ;;  %1096 = vmatprep.mubr.bf16.mxu0 %v11723_v38  ;;  %v8868_v48 = vcombine.low %v1649_v44, %v1653_v3  ;;  %v1660_v52 = vld [vmem:[#allocation15 + $0x120] sm:$0xff]  ;;  %v1685_v22 = vld [vmem:[#allocation15 + $0x1e8] sm:$0xff] }
 0x24f   :  { %1123 = vmatprep.subr.bf16.mxu0 %v10149_v54  ;;  %v1657_v54 = vld [vmem:[#allocation15 + $0x108] sm:$0xff] }
 0x252   :  { %1124 = vmatpush1.bf16.msra.mxu0 %v10147_v56 }
 0x253   :  { %1125 = vmatprep.subr.bf16.mxu0 %v10152_v57  ;;  %v1661_v57 = vld [vmem:[#allocation15 + $0x128] sm:$0xff] }
 0x255   :  { %1097 = vmatmul.mubr.bf16.gmra.mrb[24].mxu0 %v11726_v45 }
 0x256   :  { %1126 = vmatpush1.bf16.msra.mxu0 %v10150_v58  ;;  %1106 = vmatprep.mubr.bf16.mxu0 %v11729_v50  ;;  %v8876_v58 = vcombine.low %v1657_v54, %v1661_v57 }
 0x257   :  { %1127 = vmatprep.subr.bf16.mxu0 %v10155_v59  ;;  %v8877_v59 = vcombine.high %v1657_v54, %v1661_v57 }
 0x25a   :  { %1128 = vmatpush1.bf16.msra.mxu0 %v10153_v60 }
 0x25b   :  { %1129 = vmatprep.subr.bf16.mxu0 %v10158_v62  ;;  %v1664_v62 = vld [vmem:[#allocation15 + $0x140] sm:$0xff] }
 0x25d   :  { %1107 = vmatmul.mubr.bf16.gmra.mrb[28].mxu0 %v11731_v51 }
 0x25e   :  { %1130 = vmatpush1.bf16.msra.mxu0 %v10156_v1  ;;  %1149 = vmatprep.mubr.bf16.mxu0 %v631_v30  ;;  %v8852_v30 = vcombine.low %v1633_v28, %v1637_v16  ;;  %v1668_v1 = vld [vmem:[#allocation15 + $0x160] sm:$0xff]  ;;  %v11745_v16 = vld [vmem:[#allocation10] sm:$0xf] }
 0x25f   :  { %1131 = vmatprep.subr.bf16.mxu0 %v10161_v5  ;;  %v1665_v5 = vld [vmem:[#allocation15 + $0x148] sm:$0xff] }
 0x262   :  { %1132 = vmatpush1.bf16.msra.mxu0 %v10159_v6  ;;  %v8883_v6 = vcombine.high %v1664_v62, %v1668_v1 }
 0x263   :  { %1133 = vmatprep.subr.bf16.mxu0 %v10164_v7  ;;  %v1669_v7 = vld [vmem:[#allocation15 + $0x168] sm:$0xff] }
 0x266   :  { %1134 = vmatpush1.bf16.msra.mxu0 %v10162_v9  ;;  %v8884_v9 = vcombine.low %v1665_v5, %v1669_v7 }
 0x267   :  { %1135 = vmatprep.subr.bf16.mxu0 %v10167_v10  ;;  %v8885_v10 = vcombine.high %v1665_v5, %v1669_v7  ;;  %v1717_v7 = vld [vmem:[#allocation15 + $0x2e8] sm:$0xff] }
 0x26a   :  { %1136 = vmatpush1.bf16.msra.mxu0 %v10165_v11  ;;  %v8882_v11 = vcombine.low %v1664_v62, %v1668_v1  ;;  %v1716_v62 = vld [vmem:[#allocation15 + $0x2e0] sm:$0xff] }
 0x26b   :  { %1137 = vmatprep.subr.bf16.mxu0 %v10170_v13  ;;  %v1672_v13 = vld [vmem:[#allocation15 + $0x180] sm:$0xff] }
 0x26e   :  { %1138 = vmatpush1.bf16.msra.mxu0 %v10168_v14  ;;  %v1676_v14 = vld [vmem:[#allocation15 + $0x1a0] sm:$0xff] }
 0x26f   :  { %1139 = vmatprep.subr.bf16.mxu0 %v10173_v18  ;;  %v1673_v18 = vld [vmem:[#allocation15 + $0x188] sm:$0xff] }
 0x272   :  { %1140 = vmatpush1.bf16.msra.mxu0 %v10171_v49  ;;  %v8891_v49 = vcombine.high %v1672_v13, %v1676_v14 }
 0x273   :  { %1141 = vmatprep.subr.bf16.mxu0 %v10176_v20  ;;  %v1677_v20 = vld [vmem:[#allocation15 + $0x1a8] sm:$0xff] }
 0x276   :  { %1142 = vmatpush1.bf16.msra.mxu0 %v10174_v21  ;;  %v8892_v21 = vcombine.low %v1673_v18, %v1677_v20 }
 0x277   :  { %1143 = vmatprep.subr.bf16.mxu0 %v10179_v15  ;;  %v8893_v15 = vcombine.high %v1673_v18, %v1677_v20 }
 0x27a   :  { %1144 = vmatpush1.bf16.msra.mxu0 %v10177_v19  ;;  %v8890_v19 = vcombine.low %v1672_v13, %v1676_v14 }
 0x27b   :  { %1145 = vmatprep.subr.bf16.mxu0 %v10182_v39  ;;  %v1680_v39 = vld [vmem:[#allocation15 + $0x1c0] sm:$0xff] }
 0x27e   :  { %1146 = vmatpush1.bf16.msra.mxu0 %v10180_v46  ;;  %v1684_v46 = vld [vmem:[#allocation15 + $0x1e0] sm:$0xff] }
 0x27f   :  { %1147 = vmatprep.subr.bf16.mxu0 %v10185_v8  ;;  %v1681_v8 = vld [vmem:[#allocation15 + $0x1c8] sm:$0xff]  ;;  %v8898_v43 = vcombine.low %v1680_v39, %v1684_v46 }
 0x280   :  { %v8900_v17 = vcombine.low %v1681_v8, %v1685_v22  ;;  %v8901_v23 = vcombine.high %v1681_v8, %v1685_v22 }
 0x282   :  { %1148 = vmatpush1.bf16.msra.mxu0 %v10183_v55  ;;  %v8899_v55 = vcombine.high %v1680_v39, %v1684_v46  ;;  %v1724_v39 = vld [vmem:[#allocation15 + $0x320] sm:$0xff]  ;;  %v1721_v46 = vld [vmem:[#allocation15 + $0x308] sm:$0xff] }
 0x283   :  { %3348 = vmatprep.subr.bf16.mxu0 %v8845_v12  ;;  %v1689_v12 = vld [vmem:[#allocation15 + $0x208] sm:$0xff] }
 0x285   :  { %1150 = vmatmul.mubr.bf16.vlgmr.msra.gmra.mrb[32].mxu0 %v11717_v31  ;;  %v8850_v31 = vcombine.low %v1632_v26, %v1636_v27  ;;  %v1693_v26 = vld [vmem:[#allocation15 + $0x228] sm:$0xff] }
 0x286   :  { %1159 = vmatprep.mubr.bf16.mxu0 %v11719_v33  ;;  %3349 = vmatpush1.bf16.msra.mxu0 %v8844_v24  ;;  %v1641_v33 = vld [vmem:[#allocation15 + $0x88] sm:$0xff]  ;;  %v1692_v24 = vld [vmem:[#allocation15 + $0x220] sm:$0xff]  ;;  %v8908_v27 = vcombine.low %v1689_v12, %v1693_v26  ;;  %v8909_v28 = vcombine.high %v1689_v12, %v1693_v26 }
 0x287   :  { %3350 = vmatprep.subr.bf16.mxu0 %v8853_v47  ;;  %3205 = vmatpush1.bf16.msra.mxu1 %v8850_v31  ;;  %v8907_v25 = vcombine.high %v1688_v53, %v1692_v24  ;;  %v8906_v29 = vcombine.low %v1688_v53, %v1692_v24  ;;  %v1700_v47 = vld [vmem:[#allocation15 + $0x260] sm:$0xff]  ;;  %v1697_v31 = vld [vmem:[#allocation15 + $0x248] sm:$0xff] }
 0x288   :  { %3206 = vmatprep.subr.bf16.mxu1 %v8859_v34 }
 0x28a   :  { %3351 = vmatpush1.bf16.msra.mxu0 %v8852_v30  ;;  %v1696_v30 = vld [vmem:[#allocation15 + $0x240] sm:$0xff] }
 0x28d   :  { %1160 = vmatmul.mubr.bf16.gmra.mrb[36].mxu0 %v11721_v35  ;;  %v1645_v35 = vld [vmem:[#allocation15 + $0xa8] sm:$0xff] }
 0x28e   :  { %1169 = vmatprep.mubr.bf16.mxu0 %v11723_v38  ;;  %v8860_v36 = vcombine.low %v1641_v33, %v1645_v35  ;;  %v8861_v37 = vcombine.high %v1641_v33, %v1645_v35  ;;  %v8858_v38 = vcombine.low %v1640_v41, %v1644_v32  ;;  %v8915_v41 = vcombine.high %v1696_v30, %v1700_v47  ;;  %v1701_v32 = vld [vmem:[#allocation15 + $0x268] sm:$0xff] }
 0x28f   :  { %v11749_v33 = vrot.slane %v11745_v16, %v11589_v0  ;;  %v8916_v34 = vcombine.low %v1697_v31, %v1701_v32  ;;  %v8917_v35 = vcombine.high %v1697_v31, %v1701_v32 }
 0x290   :  { %3352 = vmatprep.subr.bf16.mxu0 %v8861_v37  ;;  %3207 = vmatpush1.bf16.msra.mxu1 %v8858_v38  ;;  %v11753_v37 = vrot.slane %v11745_v16, %v11592_v2  ;;  %v1704_v38 = vld [vmem:[#allocation15 + $0x280] sm:$0xff] }
 0x291   :  { %3353 = vmatpush1.bf16.msra.mxu0 %v8860_v36  ;;  %v8914_v36 = vcombine.low %v1696_v30, %v1700_v47 }
 0x295   :  { %1170 = vmatmul.mubr.bf16.gmra.mrb[40].mxu0 %v11726_v45  ;;  %v8867_v45 = vcombine.high %v1648_v40, %v1652_v42  ;;  %v1708_v40 = vld [vmem:[#allocation15 + $0x2a0] sm:$0xff]  ;;  %v1705_v42 = vld [vmem:[#allocation15 + $0x288] sm:$0xff] }
 0x296   :  { %1179 = vmatprep.mubr.bf16.mxu0 %v11729_v50  ;;  %v8869_v50 = vcombine.high %v1649_v44, %v1653_v3  ;;  %v1709_v3 = vld [vmem:[#allocation15 + $0x2a8] sm:$0xff] }
 0x297   :  { %3208 = vmatprep.subr.bf16.mxu1 %v8867_v45  ;;  %v8923_v45 = vcombine.high %v1704_v38, %v1708_v40 }
 0x298   :  { %3354 = vmatprep.subr.bf16.mxu0 %v8869_v50  ;;  %3209 = vmatpush1.bf16.msra.mxu1 %v8866_v4  ;;  %v8924_v4 = vcombine.low %v1705_v42, %v1709_v3 }
 0x299   :  { %3355 = vmatpush1.bf16.msra.mxu0 %v8868_v48 }
 0x29a   :  { %3356 = vmatprep.subr.bf16.mxu0 %v8877_v59 }
 0x29d   :  { %1180 = vmatmul.mubr.bf16.gmra.mrb[44].mxu0 %v11731_v51  ;;  %v1656_v51 = vld [vmem:[#allocation15 + $0x100] sm:$0xff] }
 0x29e   :  { %v8875_v56 = vcombine.high %v1656_v51, %v1660_v52  ;;  %v8874_v60 = vcombine.low %v1656_v51, %v1660_v52  ;;  %3357 = vmatpush1.bf16.msra.mxu0 %v8876_v58  ;;  %v8925_v51 = vcombine.high %v1705_v42, %v1709_v3  ;;  %v8922_v52 = vcombine.low %v1704_v38, %v1708_v40 }
 0x29f   :  { %3358 = vmatprep.subr.bf16.mxu0 %v8885_v10 }
 0x2a0   :  { %3210 = vmatprep.subr.bf16.mxu1 %v8875_v56 }
 0x2a1   :  { %3211 = vmatpush1.bf16.msra.mxu1 %v8874_v60  ;;  %v1712_v60 = vld [vmem:[#allocation15 + $0x2c0] sm:$0xff] }
 0x2a2   :  { %3212 = vmatprep.subr.bf16.mxu1 %v8883_v6  ;;  %3359 = vmatpush1.bf16.msra.mxu0 %v8884_v9  ;;  %v1713_v6 = vld [vmem:[#allocation15 + $0x2c8] sm:$0xff] }
 0x2a3   :  { %3360 = vmatprep.subr.bf16.mxu0 %v8893_v15  ;;  %v8933_v15 = vcombine.high %v1713_v6, %v1717_v7 }
 0x2a5   :  { %3213 = vmatpush1.bf16.msra.mxu1 %v8882_v11  ;;  %v8931_v11 = vcombine.high %v1712_v60, %v1716_v62 }
 0x2a6   :  { %3214 = vmatprep.subr.bf16.mxu1 %v8891_v49  ;;  %3361 = vmatpush1.bf16.msra.mxu0 %v8892_v21  ;;  %v8932_v21 = vcombine.low %v1713_v6, %v1717_v7 }
 0x2a7   :  { %3362 = vmatprep.subr.bf16.mxu0 %v8901_v23  ;;  %v8930_v23 = vcombine.low %v1712_v60, %v1716_v62 }
 0x2a9   :  { %3215 = vmatpush1.bf16.msra.mxu1 %v8890_v19  ;;  %v1720_v19 = vld [vmem:[#allocation15 + $0x300] sm:$0xff] }
 0x2aa   :  { %3216 = vmatprep.subr.bf16.mxu1 %v8899_v55  ;;  %3363 = vmatpush1.bf16.msra.mxu0 %v8900_v17  ;;  %v8939_v26 = vcombine.high %v1720_v19, %v1724_v39  ;;  %v8938_v42 = vcombine.low %v1720_v19, %v1724_v39 }
 0x2ab   :  { %3364 = vmatprep.subr.bf16.mxu0 %v8909_v28 }
 0x2ad   :  { %3217 = vmatpush1.bf16.msra.mxu1 %v8898_v43  ;;  %v1725_v43 = vld [vmem:[#allocation15 + $0x328] sm:$0xff] }
 0x2ae   :  { %3218 = vmatprep.subr.bf16.mxu1 %v8907_v25  ;;  %3365 = vmatpush1.bf16.msra.mxu0 %v8908_v27  ;;  %v8940_v30 = vcombine.low %v1721_v46, %v1725_v43 }
 0x2af   :  { %3366 = vmatprep.subr.bf16.mxu0 %v8917_v35 }
 0x2b1   :  { %3219 = vmatpush1.bf16.msra.mxu1 %v8906_v29 }
 0x2b2   :  { %3220 = vmatprep.subr.bf16.mxu1 %v8915_v41  ;;  %3367 = vmatpush1.bf16.msra.mxu0 %v8916_v34 }
 0x2b3   :  { %3368 = vmatprep.subr.bf16.mxu0 %v8925_v51  ;;  %v1733_v51 = vld [vmem:[#allocation15 + $0x368] sm:$0xff] }
 0x2b5   :  { %3221 = vmatpush1.bf16.msra.mxu1 %v8914_v36  ;;  %v8941_v36 = vcombine.high %v1721_v46, %v1725_v43 }
 0x2b6   :  { %3222 = vmatprep.subr.bf16.mxu1 %v8923_v45  ;;  %3369 = vmatpush1.bf16.msra.mxu0 %v8924_v4  ;;  %v1732_v45 = vld [vmem:[#allocation15 + $0x360] sm:$0xff]  ;;  %v1729_v4 = vld [vmem:[#allocation15 + $0x348] sm:$0xff] }
 0x2b7   :  { %3370 = vmatprep.subr.bf16.mxu0 %v8933_v15 }
 0x2b9   :  { %3223 = vmatpush1.bf16.msra.mxu1 %v8922_v52 }
 0x2ba   :  { %3224 = vmatprep.subr.bf16.mxu1 %v8931_v11  ;;  %3371 = vmatpush1.bf16.msra.mxu0 %v8932_v21  ;;  %v8948_v11 = vcombine.low %v1729_v4, %v1733_v51 }
 0x2bb   :  { %3372 = vmatprep.subr.bf16.mxu0 %v8941_v36 }
 0x2bd   :  { %3225 = vmatpush1.bf16.msra.mxu1 %v8930_v23 }
 0x2be   :  { %3226 = vmatprep.subr.bf16.mxu1 %v8939_v26  ;;  %3373 = vmatpush1.bf16.msra.mxu0 %v8940_v30  ;;  %v1741_v30 = vld [vmem:[#allocation15 + $0x3a8] sm:$0xff] }
 0x2c1   :  { %3227 = vmatpush1.bf16.msra.mxu1 %v8938_v42 }
 0x318   :  { %v1078_v44 = vpop.f32.mrb[16].mxu0 }
 0x319   :  { %v1079_v48 = vadd.f32 %v1078_v44, %v11749_v33  ;;  %v1080_v50 = vpop.f32.mrb[17].mxu0  ;;  %v1728_v44 = vld [vmem:[#allocation15 + $0x340] sm:$0xff] }
 0x31a   :  { %v1081_v54 = vadd.f32 %v1080_v50, %v11753_v37  ;;  %v1082_v56 = vpop.f32.mrb[18].mxu0 }
 0x31b   :  { %vm1190_vm0 = vcmp.gt.f32.partialorder %v1079_v48, 0.0  ;;  %v1222_v57 = vmul.f32 0.2, %v1079_v48  ;;  %v1083_v58 = vadd.f32 %v1082_v56, %v11749_v33  ;;  %v1084_v59 = vpop.f32.mrb[19].mxu0 }
 0x31c   :  { %vm1191_vm1 = vcmp.gt.f32.partialorder %v1081_v54, 0.0  ;;  %v1223_v1 = vmul.f32 0.2, %v1081_v54  ;;  %v1085_v5 = vadd.f32 %v1084_v59, %v11753_v37 }
 0x31d   :  { %v11759_v9 = vsel %vm1190_vm0, %v1079_v48, %v1222_v57  ;;  %vm1194_vm2 = vcmp.gt.f32.partialorder %v1083_v58, 0.0  ;;  %v1226_v10 = vmul.f32 0.2, %v1083_v58 }
 0x31e   :  { %v1344_v13 = vmul.f32 %v11759_v9, %v11759_v9  ;;  %v11763_v14 = vsel %vm1191_vm1, %v1081_v54, %v1223_v1  ;;  %vm1195_vm3 = vcmp.gt.f32.partialorder %v1085_v5, 0.0  ;;  %v1227_v18 = vmul.f32 0.2, %v1085_v5 }
 0x31f   :  { %v1345_v49 = vmul.f32 %v11763_v14, %v11763_v14  ;;  %v11767_v20 = vsel %vm1194_vm2, %v1083_v58, %v1226_v10  ;;  %v8947_v1 = vcombine.high %v1728_v44, %v1732_v45 }
 0x320   :  { %v1288_v8 = vadd.f32 %v11767_v20, %v11759_v9  ;;  %v1348_v55 = vmul.f32 %v11767_v20, %v11767_v20  ;;  %v11773_v22 = vsel %vm1195_vm3, %v1085_v5, %v1227_v18  ;;  %v1088_v17 = vpop.f32.mrb[20].mxu0 }
 0x321   :  { %v1301_v53 = vadd.f32 %v11773_v22, %v11763_v14  ;;  %v1349_v24 = vmul.f32 %v11773_v22, %v11773_v22  ;;  %v1089_v12 = vadd.f32 %v1088_v17, %v11749_v33  ;;  %v1090_v25 = vpop.f32.mrb[21].mxu0  ;;  %3228 = vmatprep.subr.bf16.mxu1 %v8947_v1 }
 0x322   :  { %v1376_v27 = vadd.f32 %v1348_v55, %v1344_v13  ;;  %v1091_v28 = vadd.f32 %v1090_v25, %v11753_v37  ;;  %v1092_v29 = vpop.f32.mrb[22].mxu0  ;;  %v1740_v25 = vld [vmem:[#allocation15 + $0x3a0] sm:$0xff] }
 0x323   :  { %v1389_v47 = vadd.f32 %v1349_v24, %v1345_v49  ;;  %vm1198_vm4 = vcmp.gt.f32.partialorder %v1089_v12, 0.0  ;;  %v1230_v31 = vmul.f32 0.2, %v1089_v12  ;;  %v1093_v41 = vadd.f32 %v1092_v29, %v11749_v33  ;;  %v1094_v32 = vpop.f32.mrb[23].mxu0  ;;  %v1737_v29 = vld [vmem:[#allocation15 + $0x388] sm:$0xff] }
 0x324   :  { %vm1199_vm5 = vcmp.gt.f32.partialorder %v1091_v28, 0.0  ;;  %v1231_v34 = vmul.f32 0.2, %v1091_v28  ;;  %v1095_v35 = vadd.f32 %v1094_v32, %v11753_v37  ;;  %v8946_v24 = vcombine.low %v1728_v44, %v1732_v45 }
 0x325   :  { %v11783_v38 = vsel %vm1198_vm4, %v1089_v12, %v1230_v31  ;;  %vm1202_vm6 = vcmp.gt.f32.partialorder %v1093_v41, 0.0  ;;  %v1234_v40 = vmul.f32 0.2, %v1093_v41  ;;  %v1736_v12 = vld [vmem:[#allocation15 + $0x380] sm:$0xff]  ;;  %v8957_v1 = vcombine.high %v1737_v29, %v1741_v30 }
 0x326   :  { %v1289_v3 = vadd.f32 %v1288_v8, %v11783_v38  ;;  %v1352_v48 = vmul.f32 %v11783_v38, %v11783_v38  ;;  %v11788_v50 = vsel %vm1199_vm5, %v1091_v28, %v1231_v34  ;;  %vm1203_vm7 = vcmp.gt.f32.partialorder %v1095_v35, 0.0  ;;  %3229 = vmatpush1.bf16.msra.mxu1 %v8946_v24 }
 0x327   :  { %v1302_v52 = vadd.f32 %v1301_v53, %v11788_v50  ;;  %v1353_v54 = vmul.f32 %v11788_v50, %v11788_v50  ;;  %v11793_v56 = vsel %vm1202_vm6, %v1093_v41, %v1234_v40  ;;  %v1235_v57 = vmul.f32 0.2, %v1095_v35 }
 0x328   :  { %v1377_v58 = vadd.f32 %v1376_v27, %v1352_v48  ;;  %v1290_v59 = vadd.f32 %v1289_v3, %v11793_v56  ;;  %v1356_v60 = vmul.f32 %v11793_v56, %v11793_v56  ;;  %v1098_v62 = vpop.f32.mrb[24].mxu0  ;;  %v8949_v8 = vcombine.high %v1729_v4, %v1733_v51 }
 0x329   :  { %v1390_v5 = vadd.f32 %v1389_v47, %v1353_v54  ;;  %v11799_v6 = vsel %vm1203_vm7, %v1095_v35, %v1235_v57  ;;  %v1099_v7 = vadd.f32 %v1098_v62, %v11749_v33  ;;  %v1100_v10 = vpop.f32.mrb[25].mxu0  ;;  %v8955_v42 = vcombine.high %v1736_v12, %v1740_v25 }
 0x32a   :  { %v1378_v13 = vadd.f32 %v1377_v58, %v1356_v60  ;;  %v1303_v18 = vadd.f32 %v1302_v52, %v11799_v6  ;;  %v1357_v49 = vmul.f32 %v11799_v6, %v11799_v6  ;;  %v1101_v21 = vadd.f32 %v1100_v10, %v11753_v37  ;;  %v1102_v15 = vpop.f32.mrb[26].mxu0  ;;  %3374 = vmatprep.subr.bf16.mxu0 %v8949_v8 }
 0x32b   :  { %vm1206_vm8 = vcmp.gt.f32.partialorder %v1099_v7, 0.0  ;;  %v1238_v19 = vmul.f32 0.2, %v1099_v7  ;;  %v1103_v39 = vadd.f32 %v1102_v15, %v11749_v33  ;;  %v1104_v46 = vpop.f32.mrb[27].mxu0  ;;  %3375 = vmatpush1.bf16.msra.mxu0 %v8948_v11  ;;  %v8956_v4 = vcombine.low %v1737_v29, %v1741_v30  ;;  %3230 = vmatprep.subr.bf16.mxu1 %v8955_v42  ;;  %v11853_v29 = vld [vmem:[#allocation15 + $0x428] sm:$0xff] }
 0x32c   :  { %v1391_v55 = vadd.f32 %v1390_v5, %v1357_v49  ;;  %vm1207_vm9 = vcmp.gt.f32.partialorder %v1101_v21, 0.0  ;;  %v1239_v17 = vmul.f32 0.2, %v1101_v21  ;;  %v1105_v23 = vadd.f32 %v1104_v46, %v11753_v37  ;;  %3376 = vmatprep.subr.bf16.mxu0 %v8957_v1  ;;  %v1744_v49 = vld [vmem:[#allocation15 + $0x3c0] sm:$0xff]  ;;  %v1749_v46 = vld [vmem:[#allocation15 + $0x3e8] sm:$0xff]  ;;  %13796 = vst [vmem:[#allocation39_spill] sm:$0xff] %v11853_v29 }
 0x32d   :  { %v11808_v43 = vsel %vm1206_vm8, %v1099_v7, %v1238_v19  ;;  %vm1210_vm10 = vcmp.gt.f32.partialorder %v1103_v39, 0.0  ;;  %v1242_v53 = vmul.f32 0.2, %v1103_v39 }
 0x32e   :  { %v1291_v26 = vadd.f32 %v1290_v59, %v11808_v43  ;;  %v1360_v27 = vmul.f32 %v11808_v43, %v11808_v43  ;;  %v11813_v28 = vsel %vm1207_vm9, %v1101_v21, %v1239_v17  ;;  %vm1211_vm11 = vcmp.gt.f32.partialorder %v1105_v23, 0.0  ;;  %v1748_v21 = vld [vmem:[#allocation15 + $0x3e0] sm:$0xff] }
 0x32f   :  { %v1304_v47 = vadd.f32 %v1303_v18, %v11813_v28  ;;  %v1361_v31 = vmul.f32 %v11813_v28, %v11813_v28  ;;  %v11818_v41 = vsel %vm1210_vm10, %v1103_v39, %v1242_v53  ;;  %v1243_v32 = vmul.f32 0.2, %v1105_v23  ;;  %3377 = vmatpush1.bf16.msra.mxu0 %v8956_v4  ;;  %v1745_v39 = vld [vmem:[#allocation15 + $0x3c8] sm:$0xff] }
 0x330   :  { %v1379_v34 = vadd.f32 %v1378_v13, %v1360_v27  ;;  %v1292_v35 = vadd.f32 %v1291_v26, %v11818_v41  ;;  %v1364_v36 = vmul.f32 %v11818_v41, %v11818_v41  ;;  %v1108_v40 = vpop.f32.mrb[28].mxu0  ;;  %v8954_v18 = vcombine.low %v1736_v12, %v1740_v25  ;;  %v11849_v26 = vld [vmem:[#allocation15 + $0x420] sm:$0xff]  ;;  %v11851_v27 = vld [vmem:[#allocation15 + $0x408] sm:$0xff] }
 0x331   :  { %v1392_v44 = vadd.f32 %v1391_v55, %v1361_v31  ;;  %v11823_v45 = vsel %vm1211_vm11, %v1105_v23, %v1243_v32  ;;  %v1109_v3 = vadd.f32 %v1108_v40, %v11749_v33  ;;  %v1110_v48 = vpop.f32.mrb[29].mxu0  ;;  %v11844_v23 = vld [vmem:[#allocation15 + $0x400] sm:$0xff]  ;;  %v8963_v25 = vcombine.high %v1744_v49, %v1748_v21  ;;  %13794 = vst [vmem:[#allocation37_spill] sm:$0xff] %v11849_v26 }
 0x332   :  { %v1380_v51 = vadd.f32 %v1379_v34, %v1364_v36  ;;  %v1305_v52 = vadd.f32 %v1304_v47, %v11823_v45  ;;  %v1365_v54 = vmul.f32 %v11823_v45, %v11823_v45  ;;  %v1111_v57 = vadd.f32 %v1110_v48, %v11753_v37  ;;  %v1112_v58 = vpop.f32.mrb[30].mxu0  ;;  %3231 = vmatpush1.bf16.msra.mxu1 %v8954_v18 }
 0x333   :  { %vm1214_vm12 = vcmp.gt.f32.partialorder %v1109_v3, 0.0  ;;  %v1246_v59 = vmul.f32 0.2, %v1109_v3  ;;  %v1113_v60 = vadd.f32 %v1112_v58, %v11749_v33  ;;  %v1114_v62 = vpop.f32.mrb[31].mxu0  ;;  %13793 = vst [vmem:[#allocation36_spill] sm:$0xff] %v11844_v23  ;;  %13795 = vst [vmem:[#allocation38_spill] sm:$0xff] %v11851_v27  ;;  %v8964_v31 = vcombine.low %v1745_v39, %v1749_v46  ;;  %3232 = vmatprep.subr.bf16.mxu1 %v8963_v25 }
 0x334   :  { %v1393_v5 = vadd.f32 %v1392_v44, %v1365_v54  ;;  %vm1215_vm13 = vcmp.gt.f32.partialorder %v1111_v57, 0.0  ;;  %v1247_v7 = vmul.f32 0.2, %v1111_v57  ;;  %v1115_v10 = vadd.f32 %v1114_v62, %v11753_v37 }
 0x335   :  { %v11832_v11 = vsel %vm1214_vm12, %v1109_v3, %v1246_v59  ;;  %vm1218_vm14 = vcmp.gt.f32.partialorder %v1113_v60, 0.0  ;;  %v1250_v13 = vmul.f32 0.2, %v1113_v60  ;;  %v8965_v32 = vcombine.high %v1745_v39, %v1749_v46 }
 0x336   :  { %v1293_v15 = vadd.f32 %v1292_v35, %v11832_v11  ;;  %v1368_v33 = vmul.f32 %v11832_v11, %v11832_v11  ;;  %v11837_v19 = vsel %vm1215_vm13, %v1111_v57, %v1247_v7  ;;  %vm1219_vm15 = vcmp.gt.f32.partialorder %v1115_v10, 0.0 }
 0x337   :  { %v1306_v37 = vadd.f32 %v1305_v52, %v11837_v19  ;;  %v1369_v8 = vmul.f32 %v11837_v19, %v11837_v19  ;;  %v11842_v55 = vsel %vm1218_vm14, %v1113_v60, %v1250_v13  ;;  %v1251_v17 = vmul.f32 0.2, %v1115_v10  ;;  %3378 = vmatprep.subr.bf16.mxu0 %v8965_v32 }
 0x338   :  { %v1381_v53 = vadd.f32 %v1380_v51, %v1368_v33  ;;  %v1294_v24 = vadd.f32 %v1293_v15, %v11842_v55  ;;  %v1372_v12 = vmul.f32 %v11842_v55, %v11842_v55  ;;  %v8962_v42 = vcombine.low %v1744_v49, %v1748_v21  ;;  %3379 = vmatpush1.bf16.msra.mxu0 %v8964_v31 }
 0x339   :  { %v1394_v30 = vadd.f32 %v1393_v5, %v1369_v8  ;;  %v11856_v47 = vsel %vm1219_vm15, %v1115_v10, %v1251_v17  ;;  %v8971_v3 = vcombine.high %v11844_v23, %v11849_v26  ;;  %v8973_v57 = vcombine.high %v11851_v27, %v11853_v29 }
 0x33a   :  { %v1295_v34 = vrot.slane %v1294_v24, 4  ;;  %v1382_v35 = vadd.f32 %v1381_v53, %v1372_v12  ;;  %v1307_v36 = vadd.f32 %v1306_v37, %v11856_v47  ;;  %v1373_v40 = vmul.f32 %v11856_v47, %v11856_v47  ;;  %3233 = vmatpush1.bf16.msra.mxu1 %v8962_v42 }
 0x33b   :  { %3275 = vmatprep.subr.bf16.mxu1 %v8971_v3  ;;  %3421 = vmatprep.subr.bf16.mxu0 %v8973_v57  ;;  %v11870_v42 = vsub.s32 2, %v11586_v63  ;;  %v11872_v3 = vld [vmem:[#allocation12] sm:$0xf] }
 0x33c   :  { %v1296_v4 = vadd.f32 %v1295_v34, %v1294_v24  ;;  %v1383_v51 = vrot.slane %v1382_v35, 4  ;;  %v1308_v52 = vrot.slane %v1307_v36, 4  ;;  %v1395_v54 = vadd.f32 %v1394_v30, %v1373_v40 }
 0x33d   :  { %13797 = vst [vmem:[#allocation40_spill] sm:$0xff] %v11870_v42  ;;  %v1456_v57 = vrot.slane %v11872_v3, %v11592_v2 }
 0x33e   :  { %v1297_v58 = vrot.slane %v1296_v4, 2  ;;  %v1384_v59 = vadd.f32 %v1383_v51, %v1382_v35  ;;  %v1309_v60 = vadd.f32 %v1308_v52, %v1307_v36  ;;  %v1396_v62 = vrot.slane %v1395_v54, 4 }
 0x33f   :  { %v1452_v51 = vrot.slane %v11872_v3, %v11589_v0  ;;  %v11881_v52 = vrot.slane %v11745_v16, %v11870_v42 }
 0x340   :  { %v1298_v1 = vadd.f32 %v1297_v58, %v1296_v4  ;;  %v1385_v5 = vrot.slane %v1384_v59, 2  ;;  %v1310_v7 = vrot.slane %v1309_v60, 2  ;;  %v1397_v10 = vadd.f32 %v1396_v62, %v1395_v54 }
 0x341   :  { %v11875_v4 = vsub.s32 3, %v11586_v63 }
 0x342   :  { %v1299_v13 = vrot.slane %v1298_v1, 1  ;;  %v1386_v18 = vadd.f32 %v1385_v5, %v1384_v59  ;;  %v1311_v49 = vadd.f32 %v1310_v7, %v1309_v60  ;;  %v1398_v21 = vrot.slane %v1397_v10, 2 }
 0x343   :  { %13798 = vst [vmem:[#allocation41_spill] sm:$0xff] %v11875_v4  ;;  %v11885_v54 = vrot.slane %v11745_v16, %v11875_v4 }
 0x344   :  { %v1300_v15 = vadd.f32 %v1299_v13, %v1298_v1  ;;  %v1387_v33 = vrot.slane %v1386_v18, 1  ;;  %v1312_v39 = vrot.slane %v1311_v49, 1  ;;  %v1399_v46 = vadd.f32 %v1398_v21, %v1397_v10 }
 0x346   :  { %v1340_v37 = vmul.f32 0.015625, %v1300_v15  ;;  %v1388_v8 = vadd.f32 %v1387_v33, %v1386_v18  ;;  %v1313_v17 = vadd.f32 %v1312_v39, %v1311_v49  ;;  %v1400_v53 = vrot.slane %v1399_v46, 1 }
 0x348   :  { %v1428_v24 = vmul.f32 0.015625, %v1388_v8  ;;  %v1432_v12 = vmul.f32 %v1340_v37, %v1340_v37  ;;  %v1341_v25 = vmul.f32 0.015625, %v1313_v17  ;;  %v1401_v30 = vadd.f32 %v1400_v53, %v1399_v46 }
 0x34a   :  { %v1436_v31 = vsub.f32 %v1428_v24, %v1432_v12  ;;  %v1429_v32 = vmul.f32 0.015625, %v1401_v30  ;;  %v1433_v34 = vmul.f32 %v1341_v25, %v1341_v25 }
 0x34c   :  { %v1440_v35 = vadd.f32 1e-05, %v1436_v31  ;;  %v1437_v36 = vsub.f32 %v1429_v32, %v1433_v34 }
 0x34e   :  { %10830 = vrsqrt.f32 %v1440_v35  ;;  %v1441_v40 = vadd.f32 1e-05, %v1437_v36 }
 0x350   :  { %10832 = vrsqrt.f32 %v1441_v40 }
 0x358   :  { %v10831_v58 = vpop.eup %10830  ;;  %v1151_v59 = vpop.f32.mrb[32].mxu0 }
 0x359   :  { %v1469_v60 = vmul.f32 %v10831_v58, %v1452_v51  ;;  %v1152_v62 = vadd.f32 %v1151_v59, %v11881_v52  ;;  %v1153_v1 = vpop.f32.mrb[33].mxu0 }
 0x35a   :  { %v10833_v5 = vpop.eup %10832  ;;  %v1154_v7 = vadd.f32 %v1153_v1, %v11885_v54  ;;  %v1155_v10 = vpop.f32.mrb[34].mxu0 }
 0x35b   :  { %v11891_v13 = vmul.f32 %v1469_v60, %v1340_v37  ;;  %v11894_v18 = vrot.slane %v1469_v60, %v11589_v0  ;;  %v1470_v16 = vmul.f32 %v10833_v5, %v1456_v57  ;;  %vm1192_vm0 = vcmp.gt.f32.partialorder %v1152_v62, 0.0  ;;  %v1157_v49 = vpop.f32.mrb[35].mxu0 }
 0x35c   :  { %v1224_v21 = vmul.f32 0.2, %v1152_v62  ;;  %vm1193_vm1 = vcmp.gt.f32.partialorder %v1154_v7, 0.0  ;;  %v1225_v15 = vmul.f32 0.2, %v1154_v7  ;;  %v1156_v33 = vadd.f32 %v1155_v10, %v11881_v52 }
 0x35d   :  { %v11899_v39 = vmul.f32 %v11894_v18, %v11842_v55  ;;  %v11901_v46 = vmul.f32 %v1470_v16, %v1341_v25  ;;  %v11904_v37 = vrot.slane %v1470_v16, %v11589_v0  ;;  %v1158_v8 = vadd.f32 %v1157_v49, %v11885_v54 }
 0x35e   :  { %v11907_v17 = vsel %vm1192_vm0, %v1152_v62, %v1224_v21  ;;  %v11909_v53 = vsel %vm1193_vm1, %v1154_v7, %v1225_v15  ;;  %vm1196_vm2 = vcmp.gt.f32.partialorder %v1156_v33, 0.0  ;;  %v1228_v24 = vmul.f32 0.2, %v1156_v33 }
 0x35f   :  { %13799 = vst [vmem:[#allocation42_spill] sm:$0xff] %v11899_v39  ;;  %v11915_v55 = vmul.f32 %v11904_v37, %v11856_v47  ;;  %v1346_v25 = vmul.f32 %v11907_v17, %v11907_v17  ;;  %vm1197_vm3 = vcmp.gt.f32.partialorder %v1158_v8, 0.0  ;;  %v1229_v31 = vmul.f32 0.2, %v1158_v8 }
 0x360   :  { %v11919_v30 = vsel %vm1196_vm2, %v1156_v33, %v1228_v24  ;;  %v1161_v32 = vpop.f32.mrb[36].mxu0  ;;  %v11923_v34 = vmul.f32 %v11904_v37, %v11763_v14  ;;  %v1347_v35 = vmul.f32 %v11909_v53, %v11909_v53  ;;  %v11937_v14 = vmul.f32 %v11904_v37, %v11773_v22 }
 0x361   :  { %13800 = vst [vmem:[#allocation43_spill] sm:$0xff] %v11915_v55  ;;  %v1314_v36 = vadd.f32 %v11919_v30, %v11907_v17  ;;  %v1350_v47 = vmul.f32 %v11919_v30, %v11919_v30  ;;  %v1162_v40 = vadd.f32 %v1161_v32, %v11881_v52  ;;  %v1163_v51 = vpop.f32.mrb[37].mxu0  ;;  %v11932_v57 = vsel %vm1197_vm3, %v1158_v8, %v1229_v31 }
 0x362   :  { %v1164_v58 = vadd.f32 %v1163_v51, %v11885_v54  ;;  %v1165_v59 = vpop.f32.mrb[38].mxu0  ;;  %v11941_v60 = vmul.f32 %v11894_v18, %v11759_v9  ;;  %v1327_v1 = vadd.f32 %v11932_v57, %v11909_v53  ;;  %v1351_v5 = vmul.f32 %v11932_v57, %v11932_v57 }
 0x363   :  { %v1402_v62 = vadd.f32 %v1350_v47, %v1346_v25  ;;  %vm1200_vm4 = vcmp.gt.f32.partialorder %v1162_v40, 0.0  ;;  %v1167_v7 = vpop.f32.mrb[39].mxu0  ;;  %v1232_v10 = vmul.f32 0.2, %v1162_v40  ;;  %v1166_v49 = vadd.f32 %v1165_v59, %v11881_v52 }
 0x364   :  { %vm1201_vm5 = vcmp.gt.f32.partialorder %v1164_v58, 0.0  ;;  %v1233_v16 = vmul.f32 0.2, %v1164_v58  ;;  %v1415_v22 = vadd.f32 %v1351_v5, %v1347_v35  ;;  %v1168_v21 = vadd.f32 %v1167_v7, %v11885_v54 }
 0x365   :  { %v11951_v9 = vmul.f32 %v11894_v18, %v11767_v20  ;;  %v11955_v15 = vmul.f32 %v11904_v37, %v11788_v50  ;;  %v11957_v33 = vsel %vm1200_vm4, %v1162_v40, %v1232_v10  ;;  %vm1204_vm6 = vcmp.gt.f32.partialorder %v1166_v49, 0.0 }
 0x366   :  { %v11959_v8 = vsel %vm1201_vm5, %v1164_v58, %v1233_v16  ;;  %v1236_v24 = vmul.f32 0.2, %v1166_v49  ;;  %v1315_v25 = vadd.f32 %v1314_v36, %v11957_v33  ;;  %v1354_v31 = vmul.f32 %v11957_v33, %v11957_v33 }
 0x367   :  { %v1328_v32 = vadd.f32 %v1327_v1, %v11959_v8  ;;  %v1355_v20 = vmul.f32 %v11959_v8, %v11959_v8  ;;  %vm1205_vm7 = vcmp.gt.f32.partialorder %v1168_v21, 0.0  ;;  %v1237_v50 = vmul.f32 0.2, %v1168_v21 }
 0x368   :  { %v11967_v35 = vsel %vm1204_vm6, %v1166_v49, %v1236_v24  ;;  %v1171_v47 = vpop.f32.mrb[40].mxu0  ;;  %v11971_v40 = vmul.f32 %v11904_v37, %v11799_v6  ;;  %v1403_v51 = vadd.f32 %v1402_v62, %v1354_v31 }
 0x369   :  { %v1416_v58 = vadd.f32 %v1415_v22, %v1355_v20  ;;  %v1316_v36 = vadd.f32 %v1315_v25, %v11967_v35  ;;  %v1358_v59 = vmul.f32 %v11967_v35, %v11967_v35  ;;  %v1173_v1 = vpop.f32.mrb[41].mxu0  ;;  %v11976_v5 = vsel %vm1205_vm7, %v1168_v21, %v1237_v50 }
 0x36a   :  { %v1172_v7 = vadd.f32 %v1171_v47, %v11881_v52  ;;  %v1174_v10 = vadd.f32 %v1173_v1, %v11885_v54  ;;  %v1175_v16 = vpop.f32.mrb[42].mxu0  ;;  %v1329_v24 = vadd.f32 %v1328_v32, %v11976_v5  ;;  %v1359_v6 = vmul.f32 %v11976_v5, %v11976_v5 }
 0x36b   :  { %v1404_v49 = vadd.f32 %v1403_v51, %v1358_v59  ;;  %v1176_v62 = vadd.f32 %v1175_v16, %v11881_v52  ;;  %v1177_v22 = vpop.f32.mrb[43].mxu0  ;;  %v11991_v32 = vmul.f32 %v11894_v18, %v11793_v56  ;;  %v11995_v59 = vmul.f32 %v11904_v37, %v11813_v28 }
 0x36c   :  { %vm1208_vm8 = vcmp.gt.f32.partialorder %v1172_v7, 0.0  ;;  %v1240_v25 = vmul.f32 0.2, %v1172_v7  ;;  %vm1209_vm9 = vcmp.gt.f32.partialorder %v1174_v10, 0.0  ;;  %v1241_v31 = vmul.f32 0.2, %v1174_v10 }
 0x36d   :  { %v1417_v21 = vadd.f32 %v1416_v58, %v1359_v6  ;;  %vm1212_vm10 = vcmp.gt.f32.partialorder %v1176_v62, 0.0  ;;  %v1244_v20 = vmul.f32 0.2, %v1176_v62  ;;  %v1178_v50 = vadd.f32 %v1177_v22, %v11885_v54 }
 0x36e   :  { %v11985_v47 = vsel %vm1208_vm8, %v1172_v7, %v1240_v25  ;;  %v11987_v51 = vsel %vm1209_vm9, %v1174_v10, %v1241_v31  ;;  %v12007_v22 = vmul.f32 %v11904_v37, %v11823_v45 }
 0x36f   :  { %v1317_v1 = vadd.f32 %v1316_v36, %v11985_v47  ;;  %v1362_v58 = vmul.f32 %v11985_v47, %v11985_v47  ;;  %v1330_v16 = vadd.f32 %v1329_v24, %v11987_v51  ;;  %v1363_v7 = vmul.f32 %v11987_v51, %v11987_v51 }
 0x370   :  { %v12003_v10 = vsel %vm1212_vm10, %v1176_v62, %v1244_v20  ;;  %vm1213_vm11 = vcmp.gt.f32.partialorder %v1178_v50, 0.0  ;;  %v1245_v6 = vmul.f32 0.2, %v1178_v50  ;;  %v1181_v56 = vpop.f32.mrb[44].mxu0  ;;  %13801 = vst [vmem:[#allocation44_spill] sm:$0xff] %v12007_v22 }
 0x371   :  { %v1405_v28 = vadd.f32 %v1404_v49, %v1362_v58  ;;  %v1418_v25 = vadd.f32 %v1417_v21, %v1363_v7  ;;  %v1318_v36 = vadd.f32 %v1317_v1, %v12003_v10  ;;  %v1366_v31 = vmul.f32 %v12003_v10, %v12003_v10  ;;  %v1183_v24 = vpop.f32.mrb[45].mxu0 }
 0x372   :  { %v12012_v48 = vsel %vm1213_vm11, %v1178_v50, %v1245_v6  ;;  %v1182_v62 = vadd.f32 %v1181_v56, %v11881_v52  ;;  %v1184_v20 = vadd.f32 %v1183_v24, %v11885_v54  ;;  %v1185_v44 = vpop.f32.mrb[46].mxu0 }
 0x373   :  { %v1406_v12 = vadd.f32 %v1405_v28, %v1366_v31  ;;  %v1331_v63 = vadd.f32 %v1330_v16, %v12012_v48  ;;  %v1367_v45 = vmul.f32 %v12012_v48, %v12012_v48  ;;  %v1186_v49 = vadd.f32 %v1185_v44, %v11881_v52  ;;  %v1187_v21 = vpop.f32.mrb[47].mxu0 }
 0x374   :  { %vm1216_vm12 = vcmp.gt.f32.partialorder %v1182_v62, 0.0  ;;  %v1248_v1 = vmul.f32 0.2, %v1182_v62  ;;  %vm1217_vm13 = vcmp.gt.f32.partialorder %v1184_v20, 0.0  ;;  %v1249_v58 = vmul.f32 0.2, %v1184_v20 }
 0x375   :  { %v1419_v50 = vadd.f32 %v1418_v25, %v1367_v45  ;;  %vm1220_vm14 = vcmp.gt.f32.partialorder %v1186_v49, 0.0  ;;  %v1252_v7 = vmul.f32 0.2, %v1186_v49  ;;  %v1188_v6 = vadd.f32 %v1187_v21, %v11885_v54 }
 0x376   :  { %v12021_v56 = vsel %vm1216_vm12, %v1182_v62, %v1248_v1  ;;  %v12023_v28 = vsel %vm1217_vm13, %v1184_v20, %v1249_v58  ;;  %v12027_v16 = vmul.f32 %v11904_v37, %v11837_v19 }
 0x377   :  { %v1319_v44 = vadd.f32 %v1318_v36, %v12021_v56  ;;  %v1370_v52 = vmul.f32 %v12021_v56, %v12021_v56  ;;  %v1332_v31 = vadd.f32 %v1331_v63, %v12023_v28  ;;  %v1371_v25 = vmul.f32 %v12023_v28, %v12023_v28 }
 0x378   :  { %13802 = vst [vmem:[#allocation45_spill] sm:$0xff] %v12027_v16  ;;  %v1284_v24 = vsel %vm1220_vm14, %v1186_v49, %v1252_v7  ;;  %vm1221_vm15 = vcmp.gt.f32.partialorder %v1188_v6, 0.0  ;;  %v1253_v54 = vmul.f32 0.2, %v1188_v6 }
 0x379   :  { %v1407_v62 = vadd.f32 %v1406_v12, %v1370_v52  ;;  %v1420_v20 = vadd.f32 %v1419_v50, %v1371_v25  ;;  %v1320_v45 = vadd.f32 %v1319_v44, %v1284_v24  ;;  %v1374_v21 = vmul.f32 %v1284_v24, %v1284_v24 }
 0x37a   :  { %v1285_v1 = vsel %vm1221_vm15, %v1188_v6, %v1253_v54 }
 0x37b   :  { %v1321_v19 = vrot.slane %v1320_v45, 4  ;;  %v1408_v37 = vadd.f32 %v1407_v62, %v1374_v21  ;;  %v1333_v58 = vadd.f32 %v1332_v31, %v1285_v1  ;;  %v1375_v36 = vmul.f32 %v1285_v1, %v1285_v1 }
 0x37d   :  { %v1322_v39 = vadd.f32 %v1321_v19, %v1320_v45  ;;  %v1409_v29 = vrot.slane %v1408_v37, 4  ;;  %v1334_v27 = vrot.slane %v1333_v58, 4  ;;  %v1421_v26 = vadd.f32 %v1420_v20, %v1375_v36 }
 0x37f   :  { %v1323_v63 = vrot.slane %v1322_v39, 2  ;;  %v1410_v23 = vadd.f32 %v1409_v29, %v1408_v37  ;;  %v1335_v55 = vadd.f32 %v1334_v27, %v1333_v58  ;;  %v1422_v16 = vrot.slane %v1421_v26, 4 }
 0x381   :  { %v1324_v49 = vadd.f32 %v1323_v63, %v1322_v39  ;;  %v1411_v7 = vrot.slane %v1410_v23, 2  ;;  %v1336_v22 = vrot.slane %v1335_v55, 2  ;;  %v1423_v12 = vadd.f32 %v1422_v16, %v1421_v26 }
 0x383   :  { %v1325_v50 = vrot.slane %v1324_v49, 1  ;;  %v1412_v44 = vadd.f32 %v1411_v7, %v1410_v23  ;;  %v1337_v52 = vadd.f32 %v1336_v22, %v1335_v55  ;;  %v1424_v6 = vrot.slane %v1423_v12, 2 }
 0x384   :  { %v1460_v55 = vrot.slane %v11872_v3, %v11870_v42  ;;  %v1464_v22 = vrot.slane %v11872_v3, %v11875_v4 }
 0x385   :  { %v1326_v25 = vadd.f32 %v1325_v50, %v1324_v49  ;;  %v1413_v54 = vrot.slane %v1412_v44, 1  ;;  %v1338_v31 = vrot.slane %v1337_v52, 1  ;;  %v1425_v62 = vadd.f32 %v1424_v6, %v1423_v12 }
 0x387   :  { %v1342_v45 = vmul.f32 0.015625, %v1326_v25  ;;  %v1414_v21 = vadd.f32 %v1413_v54, %v1412_v44  ;;  %v1339_v19 = vadd.f32 %v1338_v31, %v1337_v52  ;;  %v1426_v20 = vrot.slane %v1425_v62, 1 }
 0x389   :  { %v1430_v36 = vmul.f32 0.015625, %v1414_v21  ;;  %v1434_v29 = vmul.f32 %v1342_v45, %v1342_v45  ;;  %v1343_v27 = vmul.f32 0.015625, %v1339_v19  ;;  %v1427_v37 = vadd.f32 %v1426_v20, %v1425_v62 }
 0x38b   :  { %v1438_v39 = vsub.f32 %v1430_v36, %v1434_v29  ;;  %v1431_v58 = vmul.f32 0.015625, %v1427_v37  ;;  %v1435_v63 = vmul.f32 %v1343_v27, %v1343_v27  ;;  %v12089_v29 = vld [vmem:[#allocation15 + $0x460] sm:$0xff] }
 0x38c   :  { %v12095_v37 = vld [vmem:[#allocation15 + $0x480] sm:$0xff] }
 0x38d   :  { %v1442_v26 = vadd.f32 1e-05, %v1438_v39  ;;  %v1439_v16 = vsub.f32 %v1431_v58, %v1435_v63  ;;  %v12099_v39 = vld [vmem:[#allocation15 + $0x488] sm:$0xff]  ;;  %v12106_v63 = vld [vmem:[#allocation15 + $0x4e0] sm:$0xff] }
 0x38f   :  { %10834 = vrsqrt.f32 %v1442_v26  ;;  %v1443_v23 = vadd.f32 1e-05, %v1439_v16  ;;  %v12108_v26 = vld [vmem:[#allocation15 + $0x4c8] sm:$0xff] }
 0x390   :  { %v12110_v16 = vld [vmem:[#allocation15 + $0x4e8] sm:$0xff] }
 0x391   :  { %10836 = vrsqrt.f32 %v1443_v23 }
 0x399   :  { %v10835_v49 = vpop.eup %10834 }
 0x39a   :  { %v1471_v7 = vmul.f32 %v10835_v49, %v1460_v55 }
 0x39b   :  { %v10837_v12 = vpop.eup %10836 }
 0x39c   :  { %v1475_v50 = vmul.f32 %v1471_v7, %v1342_v45  ;;  %v1518_v44 = vrot.slane %v1471_v7, %v11589_v0  ;;  %v1472_v52 = vmul.f32 %v10837_v12, %v1464_v22 }
 0x39e   :  { %v12040_v6 = vmul.f32 %v1518_v44, %v1284_v24  ;;  %v1476_v25 = vmul.f32 %v1472_v52, %v1343_v27  ;;  %v1522_v54 = vrot.slane %v1472_v52, %v11589_v0  ;;  %v12044_v31 = vmul.f32 %v1518_v44, %v11907_v17  ;;  %v12093_v27 = vld [vmem:[#allocation15 + $0x468] sm:$0xff] }
 0x39f   :  { %v12047_v62 = vmul.f32 %v1518_v44, %v11919_v30  ;;  %v12050_v3 = vmul.f32 %v1518_v44, %v11957_v33  ;;  %v12053_v21 = vmul.f32 %v1518_v44, %v11967_v35  ;;  %v12056_v45 = vmul.f32 %v1518_v44, %v11985_v47 }
 0x3a0   :  { %v13803_v24 = vcombine.low %v11891_v13, %v11901_v46  ;;  %v1482_v20 = vcombine.low %v1475_v50, %v1476_v25  ;;  %v1554_v17 = vmul.f32 %v1522_v54, %v1285_v1  ;;  %v12063_v36 = vmul.f32 %v1522_v54, %v11932_v57  ;;  %v1287_v1 = vld [vmem:[#allocation13] sm:$0xf] }
 0x3a1   :  { %v12066_v30 = vmul.f32 %v1522_v54, %v11959_v8  ;;  %v12069_v33 = vmul.f32 %v1522_v54, %v11976_v5  ;;  %v12072_v35 = vmul.f32 %v1522_v54, %v11987_v51  ;;  %v12075_v47 = vmul.f32 %v1522_v54, %v12012_v48  ;;  %v12087_v5 = vld [vmem:[#allocation15 + $0x440] sm:$0xff]  ;;  %v12091_v51 = vld [vmem:[#allocation15 + $0x448] sm:$0xff] }
 0x3a2   :  { %v1489_v19 = vrot.slane %v13803_v24, %v11695_v61  ;;  %v1496_v13 = vrot.slane %v1482_v20, %v11695_v61  ;;  %v12079_v46 = vmul.f32 %v1518_v44, %v12003_v10  ;;  %v12082_v57 = vmul.f32 %v1522_v54, %v12023_v28  ;;  %v12097_v10 = vld [vmem:[#allocation15 + $0x4a0] sm:$0xff]  ;;  %v12101_v28 = vld [vmem:[#allocation15 + $0x4a8] sm:$0xff] }
 0x3a3   :  { %v12085_v8 = vmul.f32 %v1518_v44, %v12021_v56  ;;  %v12103_v56 = vld [vmem:[#allocation15 + $0x4c0] sm:$0xff]  ;;  %v8979_v55 = vcombine.high %v12087_v5, %v12089_v29  ;;  %v8981_v49 = vcombine.high %v12091_v51, %v12093_v27  ;;  %v8989_v52 = vcombine.high %v12099_v39, %v12101_v28 }
 0x3a4   :  { %v1497_v48 = vcombine.low %v1489_v19, %v1496_v13  ;;  %v1531_v25 = vmul.f32 %v11894_v18, %v11783_v38  ;;  %v1543_v38 = vmul.f32 %v11894_v18, %v11818_v41  ;;  %v1547_v24 = vmul.f32 %v11894_v18, %v11832_v11 }
 0x3a5   :  { %v1526_v19 = vmul.f32 %v1522_v54, %v11909_v53  ;;  %v13804_v53 = vld [vmem:[#allocation44_spill] sm:$0xff] }
 0x3a6   :  { %v1504_v58 = vrot.slane %v1497_v48, %v11695_v61  ;;  %v1539_v48 = vmul.f32 %v11894_v18, %v11808_v43 }
 0x3a8   :  { %v1506_v7 = vsub.f32 %v1287_v1, %v1504_v58 }
 0x3aa   :  { %v1559_v20 = vrot.slane %v1506_v7, %v11589_v0  ;;  %v1563_v13 = vrot.slane %v1506_v7, %v11592_v2  ;;  %v12137_v1 = vrot.slane %v1506_v7, %v11875_v4  ;;  %v12142_v58 = vrot.slane %v1506_v7, %v11870_v42 }
 0x3ac   :  { %v12150_v44 = vadd.f32 %v12137_v1, %v1554_v17  ;;  %v1577_v12 = vadd.f32 %v1563_v13, %v11923_v34  ;;  %v1581_v50 = vadd.f32 %v1563_v13, %v11937_v14  ;;  %v1576_v43 = vadd.f32 %v1559_v20, %v11941_v60 }
 0x3ad   :  { %v1580_v7 = vadd.f32 %v1559_v20, %v11951_v9  ;;  %v1585_v22 = vadd.f32 %v1563_v13, %v11955_v15  ;;  %v1589_v41 = vadd.f32 %v1563_v13, %v11971_v40  ;;  %v1584_v23 = vadd.f32 %v1559_v20, %v1531_v25  ;;  %v13805_v40 = vld [vmem:[#allocation45_spill] sm:$0xff]  ;;  %v13807_v25 = vld [vmem:[#allocation36_spill] sm:$0xff] }
 0x3ae   :  { %v12158_v61 = vpack.c.bf16 %v1581_v50, %v1577_v12  ;;  %v1588_v11 = vadd.f32 %v1559_v20, %v11991_v32  ;;  %v1593_v18 = vadd.f32 %v1563_v13, %v11995_v59  ;;  %v1597_v54 = vadd.f32 %v1563_v13, %v13804_v53 }
 0x3af   :  { %v12163_v34 = vpack.c.bf16 %v1580_v7, %v1576_v43  ;;  %v12165_v14 = vpack.c.bf16 %v1589_v41, %v1585_v22  ;;  %v1592_v60 = vadd.f32 %v1559_v20, %v1539_v48  ;;  %v1596_v17 = vadd.f32 %v1559_v20, %v1543_v38  ;;  %v13806_v22 = vld [vmem:[#allocation43_spill] sm:$0xff]  ;;  %v13808_v48 = vld [vmem:[#allocation37_spill] sm:$0xff]  ;;  %v13810_v43 = vld [vmem:[#allocation38_spill] sm:$0xff] }
 0x3b0   :  { %3234 = vmatprep.mubr.bf16.mxu1 %v12158_v61  ;;  %3380 = vmatprep.mubr.bf16.mxu0 %v12158_v61  ;;  %v12169_v9 = vpack.c.bf16 %v1588_v11, %v1584_v23  ;;  %v12171_v15 = vpack.c.bf16 %v1597_v54, %v1593_v18  ;;  %v1601_v32 = vadd.f32 %v1563_v13, %v13805_v40  ;;  %v13811_v23 = vld [vmem:[#allocation39_spill] sm:$0xff]  ;;  %v13813_v41 = vld [vmem:[#allocation42_spill] sm:$0xff] }
 0x3b1   :  { %3235 = vmatmul.mubr.bf16.vlgmr.msra.gmra.mrb[0].mxu1 %v12163_v34  ;;  %3381 = vmatmul.mubr.bf16.vlgmr.msra.gmra.mrb[48].mxu0 %v12163_v34  ;;  %v12176_v59 = vpack.c.bf16 %v1596_v17, %v1592_v60  ;;  %v1605_v12 = vadd.f32 %v1563_v13, %v13806_v22  ;;  %v1600_v50 = vadd.f32 %v1559_v20, %v1547_v24 }
 0x3b2   :  { %v13809_v38 = vcombine.low %v13807_v25, %v13808_v48  ;;  %v13812_v7 = vcombine.low %v13810_v43, %v13811_v23  ;;  %v1604_v11 = vadd.f32 %v1559_v20, %v13813_v41  ;;  %v1579_v18 = vadd.f32 %v12137_v1, %v1526_v19  ;;  %3244 = vmatprep.mubr.bf16.mxu1 %v12165_v14  ;;  %v1797_v48 = vld [vmem:[#allocation15 + $0x568] sm:$0xff]  ;;  %v1800_v23 = vld [vmem:[#allocation15 + $0x580] sm:$0xff] }
 0x3b3   :  { %v1583_v53 = vadd.f32 %v12137_v1, %v12063_v36  ;;  %3390 = vmatprep.mubr.bf16.mxu0 %v12165_v14  ;;  %v12191_v24 = vpack.c.bf16 %v1605_v12, %v1601_v32  ;;  %v1578_v13 = vadd.f32 %v12142_v58, %v12044_v31  ;;  %v1582_v54 = vadd.f32 %v12142_v58, %v12047_v62  ;;  %v1789_v32 = vld [vmem:[#allocation15 + $0x528] sm:$0xff] }
 0x3b4   :  { %3276 = vmatpush1.bf16.msra.mxu1 %v13809_v38  ;;  %3422 = vmatpush1.bf16.msra.mxu0 %v13812_v7  ;;  %v12197_v20 = vpack.c.bf16 %v1604_v11, %v1600_v50  ;;  %v1587_v36 = vadd.f32 %v12137_v1, %v12066_v30  ;;  %v1591_v17 = vadd.f32 %v12137_v1, %v12069_v33  ;;  %v1804_v11 = vld [vmem:[#allocation15 + $0x5a0] sm:$0xff] }
 0x3b5   :  { %3277 = vmatprep.subr.bf16.mxu1 %v8979_v55  ;;  %3423 = vmatprep.subr.bf16.mxu0 %v8981_v49  ;;  %v12199_v19 = vpack.c.bf16 %v1583_v53, %v1579_v18  ;;  %v12203_v60 = vpack.c.bf16 %v1582_v54, %v1578_v13  ;;  %v1586_v31 = vadd.f32 %v12142_v58, %v12050_v3  ;;  %v1808_v13 = vld [vmem:[#allocation15 + $0x5c0] sm:$0xff] }
 0x3b6   :  { %v1590_v62 = vadd.f32 %v12142_v58, %v12053_v21  ;;  %v13814_v55 = vcombine.low %v12087_v5, %v12089_v29  ;;  %v13815_v49 = vcombine.low %v12091_v51, %v12093_v27  ;;  %v1595_v30 = vadd.f32 %v12137_v1, %v12072_v35  ;;  %v1784_v5 = vld [vmem:[#allocation15 + $0x500] sm:$0xff]  ;;  %v1785_v27 = vld [vmem:[#allocation15 + $0x508] sm:$0xff] }
 0x3b7   :  { %v1599_v33 = vadd.f32 %v12137_v1, %v12075_v47  ;;  %v1594_v3 = vadd.f32 %v12142_v58, %v12056_v45  ;;  %v13816_v21 = vcombine.high %v12095_v37, %v12097_v10  ;;  %v12226_v29 = vpack.c.bf16 %v1591_v17, %v1587_v36  ;;  %v1788_v35 = vld [vmem:[#allocation15 + $0x520] sm:$0xff]  ;;  %v1809_v36 = vld [vmem:[#allocation15 + $0x5c8] sm:$0xff] }
 0x3b8   :  { %3278 = vmatpush1.bf16.msra.mxu1 %v13814_v55  ;;  %3424 = vmatpush1.bf16.msra.mxu0 %v13815_v49  ;;  %v12228_v40 = vpack.c.bf16 %v1590_v62, %v1586_v31  ;;  %v1598_v51 = vadd.f32 %v12142_v58, %v12079_v46  ;;  %v1603_v45 = vadd.f32 %v12137_v1, %v12082_v57  ;;  %v1812_v54 = vld [vmem:[#allocation15 + $0x5e0] sm:$0xff]  ;;  %v1813_v17 = vld [vmem:[#allocation15 + $0x5e8] sm:$0xff] }
 0x3b9   :  { %3279 = vmatprep.subr.bf16.mxu1 %v13816_v21  ;;  %3425 = vmatprep.subr.bf16.mxu0 %v8989_v52  ;;  %v12232_v47 = vpack.c.bf16 %v1599_v33, %v1595_v30  ;;  %v1602_v22 = vadd.f32 %v12142_v58, %v12085_v8  ;;  %v1606_v52 = vadd.f32 %v12142_v58, %v12040_v6  ;;  %v1816_v55 = vld [vmem:[#allocation15 + $0x600] sm:$0xff]  ;;  %v1821_v21 = vld [vmem:[#allocation15 + $0x628] sm:$0xff] }
 0x3ba   :  { %3245 = vmatmul.mubr.bf16.gmra.mrb[4].mxu1 %v12169_v9  ;;  %3391 = vmatmul.mubr.bf16.gmra.mrb[52].mxu0 %v12169_v9  ;;  %v8994_v46 = vcombine.low %v12103_v56, %v12106_v63  ;;  %v12244_v12 = vpack.c.bf16 %v1598_v51, %v1594_v3  ;;  %v13817_v50 = vcombine.low %v12095_v37, %v12097_v10  ;;  %v1820_v33 = vld [vmem:[#allocation15 + $0x620] sm:$0xff]  ;;  %v1817_v3 = vld [vmem:[#allocation15 + $0x608] sm:$0xff] }
 0x3bb   :  { %v13818_v57 = vcombine.low %v12099_v39, %v12101_v28  ;;  %v8996_v6 = vcombine.low %v12108_v26, %v12110_v16  ;;  %v12255_v8 = vpack.c.bf16 %v12150_v44, %v1603_v45  ;;  %v12257_v1 = vpack.c.bf16 %v1606_v52, %v1602_v22  ;;  %3254 = vmatprep.mubr.bf16.mxu1 %v12171_v15  ;;  %v1792_v39 = vld [vmem:[#allocation15 + $0x540] sm:$0xff]  ;;  %v1793_v44 = vld [vmem:[#allocation15 + $0x548] sm:$0xff] }
 0x3bc   :  { %3280 = vmatpush1.bf16.msra.mxu1 %v13817_v50  ;;  %3400 = vmatprep.mubr.bf16.mxu0 %v12171_v15  ;;  %v9003_v58 = vcombine.high %v1784_v5, %v1788_v35  ;;  %v9005_v25 = vcombine.high %v1785_v27, %v1789_v32  ;;  %v13819_v37 = vcombine.high %v12103_v56, %v12106_v63  ;;  %v1796_v28 = vld [vmem:[#allocation15 + $0x560] sm:$0xff]  ;;  %v1801_v56 = vld [vmem:[#allocation15 + $0x588] sm:$0xff] }
 0x3bd   :  { %3426 = vmatpush1.bf16.msra.mxu0 %v13818_v57  ;;  %v13820_v10 = vcombine.high %v12108_v26, %v12110_v16  ;;  %v9002_v38 = vcombine.low %v1784_v5, %v1788_v35  ;;  %v9004_v43 = vcombine.low %v1785_v27, %v1789_v32  ;;  %v9011_v7 = vcombine.high %v1792_v39, %v1796_v28  ;;  %v1805_v63 = vld [vmem:[#allocation15 + $0x5a8] sm:$0xff]  ;;  %v1824_v32 = vld [vmem:[#allocation15 + $0x640] sm:$0xff] }
 0x3be   :  { %3281 = vmatprep.subr.bf16.mxu1 %v13819_v37  ;;  %v9013_v41 = vcombine.high %v1793_v44, %v1797_v48  ;;  %v9010_v26 = vcombine.low %v1792_v39, %v1796_v28  ;;  %v9012_v16 = vcombine.low %v1793_v44, %v1797_v48  ;;  %v9019_v18 = vcombine.high %v1800_v23, %v1804_v11  ;;  %v1828_v45 = vld [vmem:[#allocation15 + $0x660] sm:$0xff]  ;;  %v1825_v22 = vld [vmem:[#allocation15 + $0x648] sm:$0xff] }
 0x3bf   :  { %3427 = vmatprep.subr.bf16.mxu0 %v13820_v10  ;;  %v9021_v53 = vcombine.high %v1801_v56, %v1805_v63  ;;  %v9018_v31 = vcombine.low %v1800_v23, %v1804_v11  ;;  %v9020_v62 = vcombine.low %v1801_v56, %v1805_v63  ;;  %v9027_v49 = vcombine.high %v1808_v13, %v1812_v54  ;;  %v1829_v52 = vld [vmem:[#allocation15 + $0x668] sm:$0xff] }
 0x3c0   :  { %3282 = vmatpush1.bf16.msra.mxu1 %v8994_v46  ;;  %v9029_v30 = vcombine.high %v1809_v36, %v1813_v17  ;;  %v9026_v5 = vcombine.low %v1808_v13, %v1812_v54  ;;  %v9028_v51 = vcombine.low %v1809_v36, %v1813_v17  ;;  %v9035_v35 = vcombine.high %v1816_v55, %v1820_v33  ;;  %v1833_v37 = vld [vmem:[#allocation15 + $0x688] sm:$0xff] }
 0x3c1   :  { %3428 = vmatpush1.bf16.msra.mxu0 %v8996_v6  ;;  %3283 = vmatprep.subr.bf16.mxu1 %v9003_v58  ;;  %v9037_v27 = vcombine.high %v1817_v3, %v1821_v21  ;;  %v9034_v46 = vcombine.low %v1816_v55, %v1820_v33  ;;  %v9036_v50 = vcombine.low %v1817_v3, %v1821_v21  ;;  %v1832_v58 = vld [vmem:[#allocation15 + $0x680] sm:$0xff]  ;;  %v1837_v10 = vld [vmem:[#allocation15 + $0x6a8] sm:$0xff] }
 0x3c2   :  { %3429 = vmatprep.subr.bf16.mxu0 %v9005_v25  ;;  %3255 = vmatmul.mubr.bf16.gmra.mrb[8].mxu1 %v12176_v59  ;;  %v9043_v57 = vcombine.high %v1824_v32, %v1828_v45  ;;  %v9045_v6 = vcombine.high %v1825_v22, %v1829_v52  ;;  %v1836_v25 = vld [vmem:[#allocation15 + $0x6a0] sm:$0xff]  ;;  %v9042_v39 = vcombine.low %v1824_v32, %v1828_v45  ;;  %v1841_v23 = vld [vmem:[#allocation15 + $0x6c8] sm:$0xff] }
 0x3c3   :  { %3401 = vmatmul.mubr.bf16.gmra.mrb[56].mxu0 %v12176_v59  ;;  %3264 = vmatprep.mubr.bf16.mxu1 %v12191_v24  ;;  %v9044_v28 = vcombine.low %v1825_v22, %v1829_v52  ;;  %v9051_v44 = vcombine.high %v1832_v58, %v1836_v25  ;;  %v9053_v48 = vcombine.high %v1833_v37, %v1837_v10  ;;  %v1857_v55 = vld [vmem:[#allocation15 + $0x748] sm:$0xff] }
 0x3c4   :  { %3284 = vmatpush1.bf16.msra.mxu1 %v9002_v38  ;;  %3410 = vmatprep.mubr.bf16.mxu0 %v12191_v24  ;;  %v1840_v38 = vld [vmem:[#allocation15 + $0x6c0] sm:$0xff]  ;;  %v9052_v11 = vcombine.low %v1833_v37, %v1837_v10 }
 0x3c5   :  { %3430 = vmatpush1.bf16.msra.mxu0 %v9004_v43  ;;  %3285 = vmatprep.subr.bf16.mxu1 %v9011_v7  ;;  %v1844_v43 = vld [vmem:[#allocation15 + $0x6e0] sm:$0xff]  ;;  %v1845_v7 = vld [vmem:[#allocation15 + $0x6e8] sm:$0xff] }
 0x3c6   :  { %3431 = vmatprep.subr.bf16.mxu0 %v9013_v41  ;;  %v9050_v41 = vcombine.low %v1832_v58, %v1836_v25  ;;  %v9059_v56 = vcombine.high %v1840_v38, %v1844_v43  ;;  %v9061_v63 = vcombine.high %v1841_v23, %v1845_v7  ;;  %v9058_v13 = vcombine.low %v1840_v38, %v1844_v43 }
 0x3c7   :  { %v9060_v54 = vcombine.low %v1841_v23, %v1845_v7 }
 0x3c8   :  { %3286 = vmatpush1.bf16.msra.mxu1 %v9010_v26  ;;  %v1848_v26 = vld [vmem:[#allocation15 + $0x700] sm:$0xff] }
 0x3c9   :  { %3432 = vmatpush1.bf16.msra.mxu0 %v9012_v16  ;;  %3287 = vmatprep.subr.bf16.mxu1 %v9019_v18  ;;  %v1852_v16 = vld [vmem:[#allocation15 + $0x720] sm:$0xff]  ;;  %v1849_v18 = vld [vmem:[#allocation15 + $0x708] sm:$0xff] }
 0x3ca   :  { %3433 = vmatprep.subr.bf16.mxu0 %v9021_v53  ;;  %3265 = vmatmul.mubr.bf16.gmra.mrb[12].mxu1 %v12197_v20  ;;  %v1853_v53 = vld [vmem:[#allocation15 + $0x728] sm:$0xff]  ;;  %v9067_v36 = vcombine.high %v1848_v26, %v1852_v16 }
 0x3cb   :  { %3411 = vmatmul.mubr.bf16.gmra.mrb[60].mxu0 %v12197_v20  ;;  %3307 = vmatprep.mubr.bf16.mxu1 %v12199_v19  ;;  %v9069_v17 = vcombine.high %v1849_v18, %v1853_v53  ;;  %v9068_v33 = vcombine.low %v1849_v18, %v1853_v53 }
 0x3cc   :  { %3288 = vmatpush1.bf16.msra.mxu1 %v9018_v31  ;;  %3453 = vmatprep.mubr.bf16.mxu0 %v12199_v19  ;;  %v1856_v31 = vld [vmem:[#allocation15 + $0x740] sm:$0xff] }
 0x3cd   :  { %3434 = vmatpush1.bf16.msra.mxu0 %v9020_v62  ;;  %3289 = vmatprep.subr.bf16.mxu1 %v9027_v49  ;;  %v1860_v62 = vld [vmem:[#allocation15 + $0x760] sm:$0xff]  ;;  %v1861_v49 = vld [vmem:[#allocation15 + $0x768] sm:$0xff] }
 0x3ce   :  { %3435 = vmatprep.subr.bf16.mxu0 %v9029_v30  ;;  %v9066_v30 = vcombine.low %v1848_v26, %v1852_v16  ;;  %v9075_v3 = vcombine.high %v1856_v31, %v1860_v62  ;;  %v9077_v21 = vcombine.high %v1857_v55, %v1861_v49  ;;  %v9074_v32 = vcombine.low %v1856_v31, %v1860_v62 }
 0x3cf   :  { %v9076_v45 = vcombine.low %v1857_v55, %v1861_v49 }
 0x3d0   :  { %3290 = vmatpush1.bf16.msra.mxu1 %v9026_v5  ;;  %v1864_v5 = vld [vmem:[#allocation15 + $0x780] sm:$0xff] }
 0x3d1   :  { %3436 = vmatpush1.bf16.msra.mxu0 %v9028_v51  ;;  %3291 = vmatprep.subr.bf16.mxu1 %v9035_v35  ;;  %v1868_v51 = vld [vmem:[#allocation15 + $0x7a0] sm:$0xff]  ;;  %v1865_v35 = vld [vmem:[#allocation15 + $0x788] sm:$0xff] }
 0x3d2   :  { %3437 = vmatprep.subr.bf16.mxu0 %v9037_v27  ;;  %v1869_v27 = vld [vmem:[#allocation15 + $0x7a8] sm:$0xff]  ;;  %v9083_v22 = vcombine.high %v1864_v5, %v1868_v51  ;;  %v9082_v58 = vcombine.low %v1864_v5, %v1868_v51 }
 0x3d3   :  { %v9085_v52 = vcombine.high %v1865_v35, %v1869_v27  ;;  %v9084_v25 = vcombine.low %v1865_v35, %v1869_v27 }
 0x3d4   :  { %3292 = vmatpush1.bf16.msra.mxu1 %v9034_v46  ;;  %v1872_v46 = vld [vmem:[#allocation15 + $0x7c0] sm:$0xff] }
 0x3d5   :  { %3438 = vmatpush1.bf16.msra.mxu0 %v9036_v50  ;;  %3293 = vmatprep.subr.bf16.mxu1 %v9043_v57  ;;  %v1876_v50 = vld [vmem:[#allocation15 + $0x7e0] sm:$0xff]  ;;  %v1873_v57 = vld [vmem:[#allocation15 + $0x7c8] sm:$0xff] }
 0x3d6   :  { %3439 = vmatprep.subr.bf16.mxu0 %v9045_v6  ;;  %v1877_v6 = vld [vmem:[#allocation15 + $0x7e8] sm:$0xff]  ;;  %v9091_v37 = vcombine.high %v1872_v46, %v1876_v50  ;;  %v9090_v38 = vcombine.low %v1872_v46, %v1876_v50 }
 0x3d7   :  { %v9093_v10 = vcombine.high %v1873_v57, %v1877_v6  ;;  %v9092_v43 = vcombine.low %v1873_v57, %v1877_v6 }
 0x3d8   :  { %3294 = vmatpush1.bf16.msra.mxu1 %v9042_v39  ;;  %v1626_v39 = vld [vmem:[#allocation15 + $0x10] sm:$0xff] }
 0x3d9   :  { %3440 = vmatpush1.bf16.msra.mxu0 %v9044_v28  ;;  %3295 = vmatprep.subr.bf16.mxu1 %v9051_v44  ;;  %v1630_v28 = vld [vmem:[#allocation15 + $0x30] sm:$0xff]  ;;  %v1627_v44 = vld [vmem:[#allocation15 + $0x18] sm:$0xff] }
 0x3da   :  { %3441 = vmatprep.subr.bf16.mxu0 %v9053_v48  ;;  %v1631_v48 = vld [vmem:[#allocation15 + $0x38] sm:$0xff]  ;;  %v8847_v23 = vcombine.high %v1626_v39, %v1630_v28  ;;  %v8846_v26 = vcombine.low %v1626_v39, %v1630_v28 }
 0x3db   :  { %v8849_v7 = vcombine.high %v1627_v44, %v1631_v48  ;;  %v8848_v16 = vcombine.low %v1627_v44, %v1631_v48 }
 0x3dc   :  { %3296 = vmatpush1.bf16.msra.mxu1 %v9050_v41  ;;  %v1634_v41 = vld [vmem:[#allocation15 + $0x50] sm:$0xff] }
 0x3dd   :  { %3442 = vmatpush1.bf16.msra.mxu0 %v9052_v11  ;;  %3297 = vmatprep.subr.bf16.mxu1 %v9059_v56  ;;  %v1638_v11 = vld [vmem:[#allocation15 + $0x70] sm:$0xff]  ;;  %v1635_v56 = vld [vmem:[#allocation15 + $0x58] sm:$0xff] }
 0x3de   :  { %3443 = vmatprep.subr.bf16.mxu0 %v9061_v63  ;;  %v1639_v63 = vld [vmem:[#allocation15 + $0x78] sm:$0xff]  ;;  %v8855_v18 = vcombine.high %v1634_v41, %v1638_v11  ;;  %v8854_v31 = vcombine.low %v1634_v41, %v1638_v11 }
 0x3df   :  { %v8857_v53 = vcombine.high %v1635_v56, %v1639_v63  ;;  %v8856_v62 = vcombine.low %v1635_v56, %v1639_v63 }
 0x3e0   :  { %3298 = vmatpush1.bf16.msra.mxu1 %v9058_v13  ;;  %v1642_v13 = vld [vmem:[#allocation15 + $0x90] sm:$0xff] }
 0x3e1   :  { %3444 = vmatpush1.bf16.msra.mxu0 %v9060_v54  ;;  %3299 = vmatprep.subr.bf16.mxu1 %v9067_v36  ;;  %v1646_v54 = vld [vmem:[#allocation15 + $0xb0] sm:$0xff]  ;;  %v1643_v36 = vld [vmem:[#allocation15 + $0x98] sm:$0xff] }
 0x3e2   :  { %3445 = vmatprep.subr.bf16.mxu0 %v9069_v17  ;;  %v1647_v17 = vld [vmem:[#allocation15 + $0xb8] sm:$0xff]  ;;  %v8863_v55 = vcombine.high %v1642_v13, %v1646_v54  ;;  %v8862_v5 = vcombine.low %v1642_v13, %v1646_v54 }
 0x3e3   :  { %v8865_v49 = vcombine.high %v1643_v36, %v1647_v17  ;;  %v8864_v51 = vcombine.low %v1643_v36, %v1647_v17 }
 0x3e4   :  { %3300 = vmatpush1.bf16.msra.mxu1 %v9066_v30  ;;  %v1650_v30 = vld [vmem:[#allocation15 + $0xd0] sm:$0xff] }
 0x3e5   :  { %3446 = vmatpush1.bf16.msra.mxu0 %v9068_v33  ;;  %3301 = vmatprep.subr.bf16.mxu1 %v9075_v3  ;;  %v1654_v33 = vld [vmem:[#allocation15 + $0xf0] sm:$0xff]  ;;  %v1651_v3 = vld [vmem:[#allocation15 + $0xd8] sm:$0xff] }
 0x3e6   :  { %3447 = vmatprep.subr.bf16.mxu0 %v9077_v21  ;;  %v1655_v21 = vld [vmem:[#allocation15 + $0xf8] sm:$0xff]  ;;  %v8871_v35 = vcombine.high %v1650_v30, %v1654_v33  ;;  %v8870_v46 = vcombine.low %v1650_v30, %v1654_v33 }
 0x3e7   :  { %v8873_v27 = vcombine.high %v1651_v3, %v1655_v21  ;;  %v8872_v50 = vcombine.low %v1651_v3, %v1655_v21 }
 0x3e8   :  { %3302 = vmatpush1.bf16.msra.mxu1 %v9074_v32  ;;  %v1658_v32 = vld [vmem:[#allocation15 + $0x110] sm:$0xff] }
 0x3e9   :  { %3448 = vmatpush1.bf16.msra.mxu0 %v9076_v45  ;;  %3303 = vmatprep.subr.bf16.mxu1 %v9083_v22  ;;  %v1662_v45 = vld [vmem:[#allocation15 + $0x130] sm:$0xff]  ;;  %v1659_v22 = vld [vmem:[#allocation15 + $0x118] sm:$0xff] }
 0x3ea   :  { %3449 = vmatprep.subr.bf16.mxu0 %v9085_v52  ;;  %v1663_v52 = vld [vmem:[#allocation15 + $0x138] sm:$0xff]  ;;  %v8879_v57 = vcombine.high %v1658_v32, %v1662_v45  ;;  %v8878_v39 = vcombine.low %v1658_v32, %v1662_v45 }
 0x3eb   :  { %v8881_v6 = vcombine.high %v1659_v22, %v1663_v52  ;;  %v8880_v28 = vcombine.low %v1659_v22, %v1663_v52  ;;  %v1706_v52 = vld [vmem:[#allocation15 + $0x290] sm:$0xff] }
 0x3ec   :  { %3304 = vmatpush1.bf16.msra.mxu1 %v9082_v58  ;;  %v1666_v58 = vld [vmem:[#allocation15 + $0x150] sm:$0xff] }
 0x3ed   :  { %3450 = vmatpush1.bf16.msra.mxu0 %v9084_v25  ;;  %3305 = vmatprep.subr.bf16.mxu1 %v9091_v37  ;;  %v1670_v25 = vld [vmem:[#allocation15 + $0x170] sm:$0xff]  ;;  %v1667_v37 = vld [vmem:[#allocation15 + $0x158] sm:$0xff] }
 0x3ee   :  { %3451 = vmatprep.subr.bf16.mxu0 %v9093_v10  ;;  %v1671_v10 = vld [vmem:[#allocation15 + $0x178] sm:$0xff]  ;;  %v8887_v44 = vcombine.high %v1666_v58, %v1670_v25  ;;  %v8886_v41 = vcombine.low %v1666_v58, %v1670_v25 }
 0x3ef   :  { %v8889_v48 = vcombine.high %v1667_v37, %v1671_v10  ;;  %v8888_v11 = vcombine.low %v1667_v37, %v1671_v10  ;;  %v1714_v10 = vld [vmem:[#allocation15 + $0x2d0] sm:$0xff] }
 0x3f0   :  { %3306 = vmatpush1.bf16.msra.mxu1 %v9090_v38  ;;  %v1674_v38 = vld [vmem:[#allocation15 + $0x190] sm:$0xff] }
 0x3f1   :  { %3452 = vmatpush1.bf16.msra.mxu0 %v9092_v43  ;;  %3494 = vmatprep.subr.bf16.mxu1 %v8847_v23  ;;  %v1678_v43 = vld [vmem:[#allocation15 + $0x1b0] sm:$0xff]  ;;  %v1675_v23 = vld [vmem:[#allocation15 + $0x198] sm:$0xff] }
 0x3f2   :  { %3640 = vmatprep.subr.bf16.mxu0 %v8849_v7  ;;  %v1679_v7 = vld [vmem:[#allocation15 + $0x1b8] sm:$0xff]  ;;  %v8895_v56 = vcombine.high %v1674_v38, %v1678_v43  ;;  %v8894_v13 = vcombine.low %v1674_v38, %v1678_v43 }
 0x3f3   :  { %3308 = vmatmul.mubr.bf16.vlgmr.msra.gmra.mrb[0].mxu1 %v12203_v60  ;;  %v8897_v63 = vcombine.high %v1675_v23, %v1679_v7  ;;  %v8896_v54 = vcombine.low %v1675_v23, %v1679_v7  ;;  %v1722_v7 = vld [vmem:[#allocation15 + $0x310] sm:$0xff] }
 0x3f4   :  { %3454 = vmatmul.mubr.bf16.vlgmr.msra.gmra.mrb[48].mxu0 %v12203_v60  ;;  %3317 = vmatprep.mubr.bf16.mxu1 %v12226_v29 }
 0x3f5   :  { %3463 = vmatprep.mubr.bf16.mxu0 %v12226_v29  ;;  %3495 = vmatpush1.bf16.msra.mxu1 %v8846_v26  ;;  %v1682_v26 = vld [vmem:[#allocation15 + $0x1d0] sm:$0xff] }
 0x3f6   :  { %3641 = vmatpush1.bf16.msra.mxu0 %v8848_v16  ;;  %3496 = vmatprep.subr.bf16.mxu1 %v8855_v18  ;;  %v1686_v16 = vld [vmem:[#allocation15 + $0x1f0] sm:$0xff]  ;;  %v1683_v18 = vld [vmem:[#allocation15 + $0x1d8] sm:$0xff] }
 0x3f7   :  { %3642 = vmatprep.subr.bf16.mxu0 %v8857_v53  ;;  %v1687_v53 = vld [vmem:[#allocation15 + $0x1f8] sm:$0xff]  ;;  %v8903_v36 = vcombine.high %v1682_v26, %v1686_v16  ;;  %v8902_v30 = vcombine.low %v1682_v26, %v1686_v16 }
 0x3f8   :  { %v8905_v17 = vcombine.high %v1683_v18, %v1687_v53  ;;  %v8904_v33 = vcombine.low %v1683_v18, %v1687_v53  ;;  %v1730_v53 = vld [vmem:[#allocation15 + $0x350] sm:$0xff] }
 0x3f9   :  { %3497 = vmatpush1.bf16.msra.mxu1 %v8854_v31  ;;  %v1690_v31 = vld [vmem:[#allocation15 + $0x210] sm:$0xff] }
 0x3fa   :  { %3643 = vmatpush1.bf16.msra.mxu0 %v8856_v62  ;;  %3498 = vmatprep.subr.bf16.mxu1 %v8863_v55  ;;  %v1694_v62 = vld [vmem:[#allocation15 + $0x230] sm:$0xff]  ;;  %v1691_v55 = vld [vmem:[#allocation15 + $0x218] sm:$0xff] }
 0x3fb   :  { %3644 = vmatprep.subr.bf16.mxu0 %v8865_v49  ;;  %3318 = vmatmul.mubr.bf16.gmra.mrb[4].mxu1 %v12228_v40  ;;  %v1695_v49 = vld [vmem:[#allocation15 + $0x238] sm:$0xff]  ;;  %v8911_v3 = vcombine.high %v1690_v31, %v1694_v62  ;;  %v8910_v32 = vcombine.low %v1690_v31, %v1694_v62 }
 0x3fc   :  { %3464 = vmatmul.mubr.bf16.gmra.mrb[52].mxu0 %v12228_v40  ;;  %3327 = vmatprep.mubr.bf16.mxu1 %v12232_v47  ;;  %v8913_v21 = vcombine.high %v1691_v55, %v1695_v49  ;;  %v8912_v45 = vcombine.low %v1691_v55, %v1695_v49  ;;  %v1738_v49 = vld [vmem:[#allocation15 + $0x390] sm:$0xff] }
 0x3fd   :  { %3473 = vmatprep.mubr.bf16.mxu0 %v12232_v47  ;;  %3499 = vmatpush1.bf16.msra.mxu1 %v8862_v5  ;;  %v1698_v5 = vld [vmem:[#allocation15 + $0x250] sm:$0xff] }
 0x3fe   :  { %3645 = vmatpush1.bf16.msra.mxu0 %v8864_v51  ;;  %3500 = vmatprep.subr.bf16.mxu1 %v8871_v35  ;;  %v1702_v51 = vld [vmem:[#allocation15 + $0x270] sm:$0xff]  ;;  %v1699_v35 = vld [vmem:[#allocation15 + $0x258] sm:$0xff] }
 0x3ff   :  { %3646 = vmatprep.subr.bf16.mxu0 %v8873_v27  ;;  %v1703_v27 = vld [vmem:[#allocation15 + $0x278] sm:$0xff]  ;;  %v8919_v22 = vcombine.high %v1698_v5, %v1702_v51 }
 0x400   :  { %v8920_v58 = vcombine.low %v1699_v35, %v1703_v27 }
 0x401   :  { %3501 = vmatpush1.bf16.msra.mxu1 %v8870_v46  ;;  %v1710_v46 = vld [vmem:[#allocation15 + $0x2b0] sm:$0xff] }
 0x402   :  { %3647 = vmatpush1.bf16.msra.mxu0 %v8872_v50  ;;  %3502 = vmatprep.subr.bf16.mxu1 %v8879_v57  ;;  %v1707_v50 = vld [vmem:[#allocation15 + $0x298] sm:$0xff]  ;;  %v8927_v25 = vcombine.high %v1706_v52, %v1710_v46 }
 0x403   :  { %3648 = vmatprep.subr.bf16.mxu0 %v8881_v6  ;;  %3328 = vmatmul.mubr.bf16.gmra.mrb[8].mxu1 %v12244_v12  ;;  %v1711_v57 = vld [vmem:[#allocation15 + $0x2b8] sm:$0xff]  ;;  %v8918_v6 = vcombine.low %v1698_v5, %v1702_v51 }
 0x404   :  { %3474 = vmatmul.mubr.bf16.gmra.mrb[56].mxu0 %v12244_v12  ;;  %3337 = vmatprep.mubr.bf16.mxu1 %v12255_v8  ;;  %v8929_v37 = vcombine.high %v1707_v50, %v1711_v57  ;;  %v8928_v38 = vcombine.low %v1707_v50, %v1711_v57  ;;  %v1754_v57 = vld [vmem:[#allocation15 + $0x410] sm:$0xff] }
 0x405   :  { %3483 = vmatprep.mubr.bf16.mxu0 %v12255_v8  ;;  %3503 = vmatpush1.bf16.msra.mxu1 %v8878_v39  ;;  %v1718_v39 = vld [vmem:[#allocation15 + $0x2f0] sm:$0xff] }
 0x406   :  { %3649 = vmatpush1.bf16.msra.mxu0 %v8880_v28  ;;  %3504 = vmatprep.subr.bf16.mxu1 %v8887_v44  ;;  %v1715_v28 = vld [vmem:[#allocation15 + $0x2d8] sm:$0xff]  ;;  %v8935_v43 = vcombine.high %v1714_v10, %v1718_v39 }
 0x407   :  { %3650 = vmatprep.subr.bf16.mxu0 %v8889_v48  ;;  %v1719_v44 = vld [vmem:[#allocation15 + $0x2f8] sm:$0xff]  ;;  %v8926_v48 = vcombine.low %v1706_v52, %v1710_v46 }
 0x408   :  { %v8937_v23 = vcombine.high %v1715_v28, %v1719_v44  ;;  %v8936_v26 = vcombine.low %v1715_v28, %v1719_v44  ;;  %v1762_v44 = vld [vmem:[#allocation15 + $0x450] sm:$0xff] }
 0x409   :  { %3505 = vmatpush1.bf16.msra.mxu1 %v8886_v41  ;;  %v1726_v41 = vld [vmem:[#allocation15 + $0x330] sm:$0xff] }
 0x40a   :  { %3651 = vmatpush1.bf16.msra.mxu0 %v8888_v11  ;;  %3506 = vmatprep.subr.bf16.mxu1 %v8895_v56  ;;  %v1723_v11 = vld [vmem:[#allocation15 + $0x318] sm:$0xff]  ;;  %v8943_v16 = vcombine.high %v1722_v7, %v1726_v41 }
 0x40b   :  { %3652 = vmatprep.subr.bf16.mxu0 %v8897_v63  ;;  %3338 = vmatmul.mubr.bf16.gmra.mrb[12].mxu1 %v12257_v1  ;;  %v1727_v56 = vld [vmem:[#allocation15 + $0x338] sm:$0xff]  ;;  %v8934_v63 = vcombine.low %v1714_v10, %v1718_v39 }
 0x40c   :  { %3484 = vmatmul.mubr.bf16.gmra.mrb[60].mxu0 %v12257_v1  ;;  %3526 = vmatprep.mubr.bf16.mxu1 %v12158_v61  ;;  %v8945_v18 = vcombine.high %v1723_v11, %v1727_v56  ;;  %v8944_v31 = vcombine.low %v1723_v11, %v1727_v56  ;;  %v1770_v56 = vld [vmem:[#allocation15 + $0x490] sm:$0xff] }
 0x40d   :  { %3672 = vmatprep.mubr.bf16.mxu0 %v12158_v61  ;;  %3507 = vmatpush1.bf16.msra.mxu1 %v8894_v13  ;;  %v8921_v61 = vcombine.high %v1699_v35, %v1703_v27  ;;  %v1734_v13 = vld [vmem:[#allocation15 + $0x370] sm:$0xff] }
 0x40e   :  { %3653 = vmatpush1.bf16.msra.mxu0 %v8896_v54  ;;  %3508 = vmatprep.subr.bf16.mxu1 %v8903_v36  ;;  %v1731_v54 = vld [vmem:[#allocation15 + $0x358] sm:$0xff]  ;;  %v8951_v62 = vcombine.high %v1730_v53, %v1734_v13  ;;  %v1746_v27 = vld [vmem:[#allocation15 + $0x3d0] sm:$0xff] }
 0x40f   :  { %3654 = vmatprep.subr.bf16.mxu0 %v8905_v17  ;;  %v1735_v36 = vld [vmem:[#allocation15 + $0x378] sm:$0xff]  ;;  %v8942_v17 = vcombine.low %v1722_v7, %v1726_v41 }
 0x410   :  { %v8953_v55 = vcombine.high %v1731_v54, %v1735_v36  ;;  %v8952_v5 = vcombine.low %v1731_v54, %v1735_v36  ;;  %v1778_v36 = vld [vmem:[#allocation15 + $0x4d0] sm:$0xff] }
 0x411   :  { %3509 = vmatpush1.bf16.msra.mxu1 %v8902_v30  ;;  %v1742_v30 = vld [vmem:[#allocation15 + $0x3b0] sm:$0xff] }
 0x412   :  { %3655 = vmatpush1.bf16.msra.mxu0 %v8904_v33  ;;  %3510 = vmatprep.subr.bf16.mxu1 %v8911_v3  ;;  %v1739_v33 = vld [vmem:[#allocation15 + $0x398] sm:$0xff]  ;;  %v8959_v51 = vcombine.high %v1738_v49, %v1742_v30 }
 0x413   :  { %3656 = vmatprep.subr.bf16.mxu0 %v8913_v21  ;;  %v1743_v3 = vld [vmem:[#allocation15 + $0x3b8] sm:$0xff]  ;;  %v8950_v21 = vcombine.low %v1730_v53, %v1734_v13 }
 0x414   :  { %v8961_v35 = vcombine.high %v1739_v33, %v1743_v3  ;;  %v8960_v52 = vcombine.low %v1739_v33, %v1743_v3  ;;  %v1786_v33 = vld [vmem:[#allocation15 + $0x510] sm:$0xff]  ;;  %v1787_v3 = vld [vmem:[#allocation15 + $0x518] sm:$0xff] }
 0x415   :  { %3511 = vmatpush1.bf16.msra.mxu1 %v8910_v32  ;;  %v1750_v32 = vld [vmem:[#allocation15 + $0x3f0] sm:$0xff] }
 0x416   :  { %3657 = vmatpush1.bf16.msra.mxu0 %v8912_v45  ;;  %3512 = vmatprep.subr.bf16.mxu1 %v8919_v22  ;;  %v1747_v45 = vld [vmem:[#allocation15 + $0x3d8] sm:$0xff]  ;;  %v8967_v46 = vcombine.high %v1746_v27, %v1750_v32 }
 0x417   :  { %3658 = vmatprep.subr.bf16.mxu0 %v8921_v61  ;;  %v1751_v22 = vld [vmem:[#allocation15 + $0x3f8] sm:$0xff]  ;;  %v8958_v61 = vcombine.low %v1738_v49, %v1742_v30 }
 0x418   :  { %v8969_v50 = vcombine.high %v1747_v45, %v1751_v22  ;;  %v8968_v10 = vcombine.low %v1747_v45, %v1751_v22  ;;  %v1798_v45 = vld [vmem:[#allocation15 + $0x570] sm:$0xff]  ;;  %v1795_v22 = vld [vmem:[#allocation15 + $0x558] sm:$0xff] }
 0x419   :  { %3513 = vmatpush1.bf16.msra.mxu1 %v8918_v6  ;;  %v1758_v6 = vld [vmem:[#allocation15 + $0x430] sm:$0xff] }
 0x41a   :  { %3659 = vmatpush1.bf16.msra.mxu0 %v8920_v58  ;;  %3514 = vmatprep.subr.bf16.mxu1 %v8927_v25  ;;  %v1755_v58 = vld [vmem:[#allocation15 + $0x418] sm:$0xff]  ;;  %v8975_v39 = vcombine.high %v1754_v57, %v1758_v6 }
 0x41b   :  { %3660 = vmatprep.subr.bf16.mxu0 %v8929_v37  ;;  %v1759_v25 = vld [vmem:[#allocation15 + $0x438] sm:$0xff]  ;;  %v8966_v37 = vcombine.low %v1746_v27, %v1750_v32  ;;  %v1794_v32 = vld [vmem:[#allocation15 + $0x550] sm:$0xff] }
 0x41c   :  { %v8977_v28 = vcombine.high %v1755_v58, %v1759_v25  ;;  %v8976_v7 = vcombine.low %v1755_v58, %v1759_v25  ;;  %v1807_v58 = vld [vmem:[#allocation15 + $0x5b8] sm:$0xff]  ;;  %v9014_v25 = vcombine.low %v1794_v32, %v1798_v45 }
 0x41d   :  { %3515 = vmatpush1.bf16.msra.mxu1 %v8926_v48  ;;  %v1766_v48 = vld [vmem:[#allocation15 + $0x470] sm:$0xff] }
 0x41e   :  { %3661 = vmatpush1.bf16.msra.mxu0 %v8928_v38  ;;  %3516 = vmatprep.subr.bf16.mxu1 %v8935_v43  ;;  %v1763_v38 = vld [vmem:[#allocation15 + $0x458] sm:$0xff]  ;;  %v8983_v41 = vcombine.high %v1762_v44, %v1766_v48 }
 0x41f   :  { %3662 = vmatprep.subr.bf16.mxu0 %v8937_v23  ;;  %v1767_v43 = vld [vmem:[#allocation15 + $0x478] sm:$0xff]  ;;  %v8974_v23 = vcombine.low %v1754_v57, %v1758_v6  ;;  %v1802_v57 = vld [vmem:[#allocation15 + $0x590] sm:$0xff] }
 0x420   :  { %v8985_v11 = vcombine.high %v1763_v38, %v1767_v43  ;;  %v8984_v53 = vcombine.low %v1763_v38, %v1767_v43  ;;  %v1803_v6 = vld [vmem:[#allocation15 + $0x598] sm:$0xff] }
 0x421   :  { %3517 = vmatpush1.bf16.msra.mxu1 %v8934_v63  ;;  %v1774_v63 = vld [vmem:[#allocation15 + $0x4b0] sm:$0xff]  ;;  %v1815_v38 = vld [vmem:[#allocation15 + $0x5f8] sm:$0xff]  ;;  %v9024_v43 = vcombine.low %v1803_v6, %v1807_v58 }
 0x422   :  { %3663 = vmatpush1.bf16.msra.mxu0 %v8936_v26  ;;  %3518 = vmatprep.subr.bf16.mxu1 %v8943_v16  ;;  %v1771_v26 = vld [vmem:[#allocation15 + $0x498] sm:$0xff]  ;;  %v8991_v13 = vcombine.high %v1770_v56, %v1774_v63 }
 0x423   :  { %3664 = vmatprep.subr.bf16.mxu0 %v8945_v18  ;;  %v1775_v16 = vld [vmem:[#allocation15 + $0x4b8] sm:$0xff]  ;;  %v8982_v18 = vcombine.low %v1762_v44, %v1766_v48  ;;  %v1814_v44 = vld [vmem:[#allocation15 + $0x5f0] sm:$0xff] }
 0x424   :  { %v8993_v54 = vcombine.high %v1771_v26, %v1775_v16  ;;  %v1811_v48 = vld [vmem:[#allocation15 + $0x5d8] sm:$0xff] }
 0x425   :  { %3519 = vmatpush1.bf16.msra.mxu1 %v8942_v17  ;;  %v1782_v17 = vld [vmem:[#allocation15 + $0x4f0] sm:$0xff] }
 0x426   :  { %3665 = vmatpush1.bf16.msra.mxu0 %v8944_v31  ;;  %3520 = vmatprep.subr.bf16.mxu1 %v8951_v62  ;;  %v1779_v31 = vld [vmem:[#allocation15 + $0x4d8] sm:$0xff]  ;;  %v8999_v49 = vcombine.high %v1778_v36, %v1782_v17 }
 0x427   :  { %3666 = vmatprep.subr.bf16.mxu0 %v8953_v55  ;;  %v1783_v62 = vld [vmem:[#allocation15 + $0x4f8] sm:$0xff]  ;;  %v8992_v55 = vcombine.low %v1771_v26, %v1775_v16  ;;  %v9032_v26 = vcombine.low %v1811_v48, %v1815_v38 }
 0x428   :  { %v9001_v30 = vcombine.high %v1779_v31, %v1783_v62 }
 0x429   :  { %3521 = vmatpush1.bf16.msra.mxu1 %v8950_v21  ;;  %v1791_v21 = vld [vmem:[#allocation15 + $0x538] sm:$0xff] }
 0x42a   :  { %3667 = vmatpush1.bf16.msra.mxu0 %v8952_v5  ;;  %3522 = vmatprep.subr.bf16.mxu1 %v8959_v51  ;;  %v8998_v5 = vcombine.low %v1778_v36, %v1782_v17  ;;  %v9000_v51 = vcombine.low %v1779_v31, %v1783_v62  ;;  %v9009_v27 = vcombine.high %v1787_v3, %v1791_v21  ;;  %v1831_v36 = vld [vmem:[#allocation15 + $0x678] sm:$0xff] }
 0x42b   :  { %3668 = vmatprep.subr.bf16.mxu0 %v8961_v35 }
 0x42d   :  { %3523 = vmatpush1.bf16.msra.mxu1 %v8958_v61  ;;  %v1799_v61 = vld [vmem:[#allocation15 + $0x578] sm:$0xff] }
 0x42e   :  { %3669 = vmatpush1.bf16.msra.mxu0 %v8960_v52  ;;  %3524 = vmatprep.subr.bf16.mxu1 %v8967_v46  ;;  %v9008_v52 = vcombine.low %v1787_v3, %v1791_v21  ;;  %v9015_v46 = vcombine.high %v1794_v32, %v1798_v45  ;;  %v1842_v21 = vld [vmem:[#allocation15 + $0x6d0] sm:$0xff] }
 0x42f   :  { %3670 = vmatprep.subr.bf16.mxu0 %v8969_v50  ;;  %v9017_v50 = vcombine.high %v1795_v22, %v1799_v61 }
 0x431   :  { %3525 = vmatpush1.bf16.msra.mxu1 %v8966_v37  ;;  %v9016_v37 = vcombine.low %v1795_v22, %v1799_v61  ;;  %v1850_v61 = vld [vmem:[#allocation15 + $0x710] sm:$0xff] }
 0x432   :  { %3671 = vmatpush1.bf16.msra.mxu0 %v8968_v10  ;;  %3567 = vmatprep.subr.bf16.mxu1 %v8975_v39  ;;  %v9025_v39 = vcombine.high %v1803_v6, %v1807_v58  ;;  %v1858_v58 = vld [vmem:[#allocation15 + $0x750] sm:$0xff] }
 0x433   :  { %3713 = vmatprep.subr.bf16.mxu0 %v8977_v28  ;;  %v1810_v28 = vld [vmem:[#allocation15 + $0x5d0] sm:$0xff] }
 0x434   :  { %3527 = vmatmul.mubr.bf16.vlgmr.msra.gmra.mrb[16].mxu1 %v12163_v34 }
 0x435   :  { %3673 = vmatmul.mubr.bf16.vlgmr.msra.gmra.mrb[64].mxu0 %v12163_v34  ;;  %3536 = vmatprep.mubr.bf16.mxu1 %v12165_v14  ;;  %v8990_v34 = vcombine.low %v1770_v56, %v1774_v63  ;;  %v1823_v56 = vld [vmem:[#allocation15 + $0x638] sm:$0xff]  ;;  %v9030_v63 = vcombine.low %v1810_v28, %v1814_v44 }
 0x436   :  { %3568 = vmatpush1.bf16.msra.mxu1 %v8974_v23  ;;  %3682 = vmatprep.mubr.bf16.mxu0 %v12165_v14  ;;  %v1790_v14 = vld [vmem:[#allocation15 + $0x530] sm:$0xff]  ;;  %v9031_v23 = vcombine.high %v1810_v28, %v1814_v44 }
 0x437   :  { %3714 = vmatpush1.bf16.msra.mxu0 %v8976_v7  ;;  %3569 = vmatprep.subr.bf16.mxu1 %v8983_v41  ;;  %v9007_v35 = vcombine.high %v1786_v33, %v1790_v14  ;;  %v9033_v7 = vcombine.high %v1811_v48, %v1815_v38  ;;  %v1818_v41 = vld [vmem:[#allocation15 + $0x610] sm:$0xff] }
 0x438   :  { %3715 = vmatprep.subr.bf16.mxu0 %v8985_v11  ;;  %v1819_v11 = vld [vmem:[#allocation15 + $0x618] sm:$0xff]  ;;  %v1866_v38 = vld [vmem:[#allocation15 + $0x790] sm:$0xff] }
 0x439   :  { %v9040_v17 = vcombine.low %v1819_v11, %v1823_v56 }
 0x43a   :  { %3570 = vmatpush1.bf16.msra.mxu1 %v8982_v18  ;;  %v9041_v18 = vcombine.high %v1819_v11, %v1823_v56  ;;  %v1874_v56 = vld [vmem:[#allocation15 + $0x7d0] sm:$0xff] }
 0x43b   :  { %3716 = vmatpush1.bf16.msra.mxu0 %v8984_v53  ;;  %3571 = vmatprep.subr.bf16.mxu1 %v8991_v13  ;;  %v1826_v53 = vld [vmem:[#allocation15 + $0x650] sm:$0xff] }
 0x43c   :  { %3717 = vmatprep.subr.bf16.mxu0 %v8993_v54  ;;  %3537 = vmatmul.mubr.bf16.gmra.mrb[20].mxu1 %v12169_v9  ;;  %v1830_v13 = vld [vmem:[#allocation15 + $0x670] sm:$0xff]  ;;  %v1827_v54 = vld [vmem:[#allocation15 + $0x658] sm:$0xff] }
 0x43d   :  { %3683 = vmatmul.mubr.bf16.gmra.mrb[68].mxu0 %v12169_v9  ;;  %3546 = vmatprep.mubr.bf16.mxu1 %v12171_v15  ;;  %v9006_v9 = vcombine.low %v1786_v33, %v1790_v14  ;;  %v9047_v31 = vcombine.high %v1826_v53, %v1830_v13  ;;  %v9049_v62 = vcombine.high %v1827_v54, %v1831_v36 }
 0x43e   :  { %3572 = vmatpush1.bf16.msra.mxu1 %v8990_v34  ;;  %3692 = vmatprep.mubr.bf16.mxu0 %v12171_v15  ;;  %v1806_v15 = vld [vmem:[#allocation15 + $0x5b0] sm:$0xff]  ;;  %v9048_v33 = vcombine.low %v1827_v54, %v1831_v36 }
 0x43f   :  { %3718 = vmatpush1.bf16.msra.mxu0 %v8992_v55  ;;  %3573 = vmatprep.subr.bf16.mxu1 %v8999_v49  ;;  %v9023_v10 = vcombine.high %v1802_v57, %v1806_v15  ;;  %v1834_v34 = vld [vmem:[#allocation15 + $0x690] sm:$0xff]  ;;  %v1839_v49 = vld [vmem:[#allocation15 + $0x6b8] sm:$0xff] }
 0x440   :  { %3719 = vmatprep.subr.bf16.mxu0 %v9001_v30  ;;  %v1838_v55 = vld [vmem:[#allocation15 + $0x6b0] sm:$0xff]  ;;  %v9046_v30 = vcombine.low %v1826_v53, %v1830_v13 }
 0x441   :  { %v9055_v14 = vcombine.high %v1834_v34, %v1838_v55 }
 0x442   :  { %3574 = vmatpush1.bf16.msra.mxu1 %v8998_v5  ;;  %v1846_v5 = vld [vmem:[#allocation15 + $0x6f0] sm:$0xff] }
 0x443   :  { %3720 = vmatpush1.bf16.msra.mxu0 %v9000_v51  ;;  %3575 = vmatprep.subr.bf16.mxu1 %v9007_v35  ;;  %v1843_v51 = vld [vmem:[#allocation15 + $0x6d8] sm:$0xff]  ;;  %v9063_v45 = vcombine.high %v1842_v21, %v1846_v5 }
 0x444   :  { %3721 = vmatprep.subr.bf16.mxu0 %v9009_v27  ;;  %3547 = vmatmul.mubr.bf16.gmra.mrb[24].mxu1 %v12176_v59  ;;  %v1847_v35 = vld [vmem:[#allocation15 + $0x6f8] sm:$0xff]  ;;  %v9054_v27 = vcombine.low %v1834_v34, %v1838_v55 }
 0x445   :  { %3693 = vmatmul.mubr.bf16.gmra.mrb[72].mxu0 %v12176_v59  ;;  %3556 = vmatprep.mubr.bf16.mxu1 %v12191_v24  ;;  %v9022_v59 = vcombine.low %v1802_v57, %v1806_v15  ;;  %v9065_v22 = vcombine.high %v1843_v51, %v1847_v35  ;;  %v9064_v57 = vcombine.low %v1843_v51, %v1847_v35 }
 0x446   :  { %3576 = vmatpush1.bf16.msra.mxu1 %v9006_v9  ;;  %3702 = vmatprep.mubr.bf16.mxu0 %v12191_v24  ;;  %v1822_v24 = vld [vmem:[#allocation15 + $0x630] sm:$0xff] }
 0x447   :  { %3722 = vmatpush1.bf16.msra.mxu0 %v9008_v52  ;;  %3577 = vmatprep.subr.bf16.mxu1 %v9015_v46  ;;  %v9039_v16 = vcombine.high %v1818_v41, %v1822_v24  ;;  %v1854_v9 = vld [vmem:[#allocation15 + $0x730] sm:$0xff]  ;;  %v1851_v52 = vld [vmem:[#allocation15 + $0x718] sm:$0xff] }
 0x448   :  { %3723 = vmatprep.subr.bf16.mxu0 %v9017_v50  ;;  %v1855_v46 = vld [vmem:[#allocation15 + $0x738] sm:$0xff]  ;;  %v9062_v50 = vcombine.low %v1842_v21, %v1846_v5  ;;  %v9071_v15 = vcombine.high %v1850_v61, %v1854_v9 }
 0x449   :  { %v9073_v6 = vcombine.high %v1851_v52, %v1855_v46  ;;  %v9072_v28 = vcombine.low %v1851_v52, %v1855_v46 }
 0x44a   :  { %3578 = vmatpush1.bf16.msra.mxu1 %v9014_v25  ;;  %v1862_v25 = vld [vmem:[#allocation15 + $0x770] sm:$0xff] }
 0x44b   :  { %3724 = vmatpush1.bf16.msra.mxu0 %v9016_v37  ;;  %3579 = vmatprep.subr.bf16.mxu1 %v9023_v10  ;;  %v1859_v37 = vld [vmem:[#allocation15 + $0x758] sm:$0xff]  ;;  %v9079_v44 = vcombine.high %v1858_v58, %v1862_v25 }
 0x44c   :  { %3725 = vmatprep.subr.bf16.mxu0 %v9025_v39  ;;  %3557 = vmatmul.mubr.bf16.gmra.mrb[28].mxu1 %v12197_v20  ;;  %v1863_v10 = vld [vmem:[#allocation15 + $0x778] sm:$0xff]  ;;  %v9070_v39 = vcombine.low %v1850_v61, %v1854_v9 }
 0x44d   :  { %3703 = vmatmul.mubr.bf16.gmra.mrb[76].mxu0 %v12197_v20  ;;  %3599 = vmatprep.mubr.bf16.mxu1 %v12199_v19  ;;  %v9038_v20 = vcombine.low %v1818_v41, %v1822_v24  ;;  %v9081_v48 = vcombine.high %v1859_v37, %v1863_v10  ;;  %v9080_v41 = vcombine.low %v1859_v37, %v1863_v10 }
 0x44e   :  { %3580 = vmatpush1.bf16.msra.mxu1 %v9022_v59  ;;  %3745 = vmatprep.mubr.bf16.mxu0 %v12199_v19  ;;  %v1835_v19 = vld [vmem:[#allocation15 + $0x698] sm:$0xff]  ;;  %v1870_v59 = vld [vmem:[#allocation15 + $0x7b0] sm:$0xff] }
 0x44f   :  { %3726 = vmatpush1.bf16.msra.mxu0 %v9024_v43  ;;  %3581 = vmatprep.subr.bf16.mxu1 %v9031_v23  ;;  %v9057_v3 = vcombine.high %v1835_v19, %v1839_v49  ;;  %v9056_v32 = vcombine.low %v1835_v19, %v1839_v49  ;;  %v1867_v43 = vld [vmem:[#allocation15 + $0x798] sm:$0xff]  ;;  %v9087_v24 = vcombine.high %v1866_v38, %v1870_v59 }
 0x450   :  { %3727 = vmatprep.subr.bf16.mxu0 %v9033_v7  ;;  %v1871_v23 = vld [vmem:[#allocation15 + $0x7b8] sm:$0xff]  ;;  %v9078_v7 = vcombine.low %v1858_v58, %v1862_v25 }
 0x451   :  { %v9089_v11 = vcombine.high %v1867_v43, %v1871_v23  ;;  %v9088_v53 = vcombine.low %v1867_v43, %v1871_v23 }
 0x452   :  { %3582 = vmatpush1.bf16.msra.mxu1 %v9030_v63  ;;  %v1878_v63 = vld [vmem:[#allocation15 + $0x7f0] sm:$0xff] }
 0x453   :  { %3728 = vmatpush1.bf16.msra.mxu0 %v9032_v26  ;;  %3583 = vmatprep.subr.bf16.mxu1 %v9039_v16  ;;  %v1875_v26 = vld [vmem:[#allocation15 + $0x7d8] sm:$0xff]  ;;  %v9095_v13 = vcombine.high %v1874_v56, %v1878_v63  ;;  %v9094_v36 = vcombine.low %v1874_v56, %v1878_v63 }
 0x454   :  { %3729 = vmatprep.subr.bf16.mxu0 %v9041_v18  ;;  %v1879_v16 = vld [vmem:[#allocation15 + $0x7f8] sm:$0xff]  ;;  %v9086_v18 = vcombine.low %v1866_v38, %v1870_v59 }
 0x455   :  { %v9097_v54 = vcombine.high %v1875_v26, %v1879_v16 }
 0x456   :  { %3584 = vmatpush1.bf16.msra.mxu1 %v9038_v20  ;;  %v9096_v20 = vcombine.low %v1875_v26, %v1879_v16 }
 0x457   :  { %3730 = vmatpush1.bf16.msra.mxu0 %v9040_v17  ;;  %3585 = vmatprep.subr.bf16.mxu1 %v9047_v31 }
 0x458   :  { %3731 = vmatprep.subr.bf16.mxu0 %v9049_v62 }
 0x45a   :  { %3586 = vmatpush1.bf16.msra.mxu1 %v9046_v30 }
 0x45b   :  { %3732 = vmatpush1.bf16.msra.mxu0 %v9048_v33  ;;  %3587 = vmatprep.subr.bf16.mxu1 %v9055_v14 }
 0x45c   :  { %3733 = vmatprep.subr.bf16.mxu0 %v9057_v3 }
 0x45e   :  { %3588 = vmatpush1.bf16.msra.mxu1 %v9054_v27 }
 0x45f   :  { %3734 = vmatpush1.bf16.msra.mxu0 %v9056_v32  ;;  %3589 = vmatprep.subr.bf16.mxu1 %v9063_v45 }
 0x460   :  { %3735 = vmatprep.subr.bf16.mxu0 %v9065_v22 }
 0x462   :  { %3590 = vmatpush1.bf16.msra.mxu1 %v9062_v50 }
 0x463   :  { %3736 = vmatpush1.bf16.msra.mxu0 %v9064_v57  ;;  %3591 = vmatprep.subr.bf16.mxu1 %v9071_v15 }
 0x464   :  { %3737 = vmatprep.subr.bf16.mxu0 %v9073_v6 }
 0x466   :  { %3592 = vmatpush1.bf16.msra.mxu1 %v9070_v39 }
 0x467   :  { %3738 = vmatpush1.bf16.msra.mxu0 %v9072_v28  ;;  %3593 = vmatprep.subr.bf16.mxu1 %v9079_v44 }
 0x468   :  { %3739 = vmatprep.subr.bf16.mxu0 %v9081_v48 }
 0x46a   :  { %3594 = vmatpush1.bf16.msra.mxu1 %v9078_v7 }
 0x46b   :  { %3740 = vmatpush1.bf16.msra.mxu0 %v9080_v41  ;;  %3595 = vmatprep.subr.bf16.mxu1 %v9087_v24 }
 0x46c   :  { %3741 = vmatprep.subr.bf16.mxu0 %v9089_v11 }
 0x46e   :  { %3596 = vmatpush1.bf16.msra.mxu1 %v9086_v18 }
 0x46f   :  { %3742 = vmatpush1.bf16.msra.mxu0 %v9088_v53  ;;  %3597 = vmatprep.subr.bf16.mxu1 %v9095_v13 }
 0x470   :  { %3743 = vmatprep.subr.bf16.mxu0 %v9097_v54 }
 0x472   :  { %3598 = vmatpush1.bf16.msra.mxu1 %v9094_v36 }
 0x473   :  { %3744 = vmatpush1.bf16.msra.mxu0 %v9096_v20 }
 0x475   :  { %3600 = vmatmul.mubr.bf16.vlgmr.msra.gmra.mrb[16].mxu1 %v12203_v60 }
 0x476   :  { %3746 = vmatmul.mubr.bf16.vlgmr.msra.gmra.mrb[64].mxu0 %v12203_v60  ;;  %3609 = vmatprep.mubr.bf16.mxu1 %v12226_v29  ;;  %v12321_v60 = vld [vmem:[#allocation16] sm:$0xff] }
 0x477   :  { %3755 = vmatprep.mubr.bf16.mxu0 %v12226_v29  ;;  %v12325_v29 = vrot.slane %v12321_v60, %v11589_v0 }
 0x47d   :  { %3610 = vmatmul.mubr.bf16.gmra.mrb[20].mxu1 %v12228_v40 }
 0x47e   :  { %3756 = vmatmul.mubr.bf16.gmra.mrb[68].mxu0 %v12228_v40  ;;  %3619 = vmatprep.mubr.bf16.mxu1 %v12232_v47  ;;  %v12329_v40 = vrot.slane %v12321_v60, %v11870_v42 }
 0x47f   :  { %3765 = vmatprep.mubr.bf16.mxu0 %v12232_v47  ;;  %v12333_v47 = vrot.slane %v12321_v60, %v11592_v2 }
 0x485   :  { %3620 = vmatmul.mubr.bf16.gmra.mrb[24].mxu1 %v12244_v12 }
 0x486   :  { %3766 = vmatmul.mubr.bf16.gmra.mrb[72].mxu0 %v12244_v12  ;;  %3629 = vmatprep.mubr.bf16.mxu1 %v12255_v8  ;;  %v12337_v12 = vrot.slane %v12321_v60, %v11875_v4 }
 0x487   :  { %3775 = vmatprep.mubr.bf16.mxu0 %v12255_v8 }
 0x48d   :  { %3630 = vmatmul.mubr.bf16.gmra.mrb[28].mxu1 %v12257_v1 }
 0x48e   :  { %3776 = vmatmul.mubr.bf16.gmra.mrb[76].mxu0 %v12257_v1 }
 0x4c6   :  { %v3309_v8 = vpop.f32.mrb[0].mxu1 }
 0x4c7   :  { %v3455_v1 = vpop.f32.mrb[48].mxu0  ;;  %v9722_v17 = vadd.f32 %v3309_v8, %v12325_v29  ;;  %v3311_v62 = vpop.f32.mrb[1].mxu1 }
 0x4c8   :  { %v9738_v31 = vadd.f32 %v3455_v1, %v12329_v40  ;;  %v3457_v34 = vpop.f32.mrb[49].mxu0  ;;  %v9723_v55 = vadd.f32 %v3311_v62, %v12333_v47  ;;  %v3313_v49 = vpop.f32.mrb[2].mxu1 }
 0x4c9   :  { %v9739_v19 = vadd.f32 %v3457_v34, %v12337_v12  ;;  %v3459_v30 = vpop.f32.mrb[50].mxu0  ;;  %vm3786_vm0 = vcmp.gt.f32.partialorder %v9722_v17, 0.0  ;;  %v3850_v33 = vmul.f32 0.2, %v9722_v17  ;;  %v9724_v35 = vadd.f32 %v3313_v49, %v12325_v29  ;;  %v3315_v32 = vpop.f32.mrb[3].mxu1 }
 0x4ca   :  { %vm3788_vm1 = vcmp.gt.f32.partialorder %v9738_v31, 0.0  ;;  %v3852_v14 = vmul.f32 0.2, %v9738_v31  ;;  %vm3787_vm2 = vcmp.gt.f32.partialorder %v9723_v55, 0.0  ;;  %v3851_v3 = vmul.f32 0.2, %v9723_v55 }
 0x4cb   :  { %vm3789_vm3 = vcmp.gt.f32.partialorder %v9739_v19, 0.0  ;;  %v3853_v21 = vmul.f32 0.2, %v9739_v19  ;;  %v12343_v5 = vsel %vm3786_vm0, %v9722_v17, %v3850_v33  ;;  %v9740_v27 = vadd.f32 %v3459_v30, %v12329_v40  ;;  %v3461_v45 = vpop.f32.mrb[51].mxu0 }
 0x4cc   :  { %v12345_v51 = vsel %vm3788_vm1, %v9738_v31, %v3852_v14  ;;  %v4092_v22 = vmul.f32 %v12343_v5, %v12343_v5  ;;  %v12351_v61 = vsel %vm3787_vm2, %v9723_v55, %v3851_v3  ;;  %vm3794_vm4 = vcmp.gt.f32.partialorder %v9724_v35, 0.0 }
 0x4cd   :  { %v12353_v9 = vsel %vm3789_vm3, %v9739_v19, %v3853_v21  ;;  %v4094_v52 = vmul.f32 %v12345_v51, %v12345_v51  ;;  %v4093_v46 = vmul.f32 %v12351_v61, %v12351_v61  ;;  %v3858_v50 = vmul.f32 0.2, %v9724_v35 }
 0x4ce   :  { %vm3796_vm5 = vcmp.gt.f32.partialorder %v9740_v27, 0.0  ;;  %v3860_v57 = vmul.f32 0.2, %v9740_v27  ;;  %v9725_v15 = vadd.f32 %v3315_v32, %v12333_v47  ;;  %v9741_v6 = vadd.f32 %v3461_v45, %v12337_v12  ;;  %v3319_v58 = vpop.f32.mrb[4].mxu1 }
 0x4cf   :  { %v3465_v25 = vpop.f32.mrb[52].mxu0  ;;  %v4095_v37 = vmul.f32 %v12353_v9, %v12353_v9  ;;  %v12363_v10 = vsel %vm3794_vm4, %v9724_v35, %v3858_v50  ;;  %v9726_v39 = vadd.f32 %v3319_v58, %v12325_v29  ;;  %v3321_v44 = vpop.f32.mrb[5].mxu1 }
 0x4d0   :  { %v9742_v28 = vadd.f32 %v3465_v25, %v12329_v40  ;;  %v3467_v48 = vpop.f32.mrb[53].mxu0  ;;  %v3980_v38 = vadd.f32 %v12363_v10, %v12343_v5  ;;  %v4100_v59 = vmul.f32 %v12363_v10, %v12363_v10  ;;  %v12371_v43 = vsel %vm3796_vm5, %v9740_v27, %v3860_v57  ;;  %v3323_v23 = vpop.f32.mrb[6].mxu1 }
 0x4d1   :  { %13821 = vst [vmem:[#allocation44_spill] sm:$0xff] %v12371_v43  ;;  %vm3795_vm6 = vcmp.gt.f32.partialorder %v9725_v15, 0.0  ;;  %v3469_v7 = vpop.f32.mrb[54].mxu0  ;;  %v4006_v41 = vadd.f32 %v12371_v43, %v12345_v51  ;;  %v4102_v24 = vmul.f32 %v12371_v43, %v12371_v43  ;;  %v3859_v11 = vmul.f32 0.2, %v9725_v15  ;;  %v3325_v56 = vpop.f32.mrb[7].mxu1 }
 0x4d2   :  { %vm3797_vm7 = vcmp.gt.f32.partialorder %v9741_v6, 0.0  ;;  %v3471_v63 = vpop.f32.mrb[55].mxu0  ;;  %v4156_v26 = vadd.f32 %v4100_v59, %v4092_v22  ;;  %v3861_v16 = vmul.f32 0.2, %v9741_v6  ;;  %vm3802_vm8 = vcmp.gt.f32.partialorder %v9726_v39, 0.0 }
 0x4d3   :  { %v3866_v18 = vmul.f32 0.2, %v9726_v39  ;;  %v4182_v53 = vadd.f32 %v4102_v24, %v4094_v52  ;;  %v12377_v13 = vsel %vm3795_vm6, %v9725_v15, %v3859_v11  ;;  %vm3804_vm9 = vcmp.gt.f32.partialorder %v9742_v28, 0.0 }
 0x4d4   :  { %v3868_v54 = vmul.f32 0.2, %v9742_v28  ;;  %v3993_v36 = vadd.f32 %v12377_v13, %v12351_v61  ;;  %v4101_v20 = vmul.f32 %v12377_v13, %v12377_v13  ;;  %v12383_v8 = vsel %vm3797_vm7, %v9741_v6, %v3861_v16 }
 0x4d5   :  { %v12385_v1 = vsel %vm3802_vm8, %v9726_v39, %v3866_v18  ;;  %v4019_v17 = vadd.f32 %v12383_v8, %v12353_v9  ;;  %v4103_v31 = vmul.f32 %v12383_v8, %v12383_v8  ;;  %v9727_v49 = vadd.f32 %v3321_v44, %v12333_v47 }
 0x4d6   :  { %v3981_v62 = vadd.f32 %v3980_v38, %v12385_v1  ;;  %v4108_v34 = vmul.f32 %v12385_v1, %v12385_v1  ;;  %v4169_v55 = vadd.f32 %v4101_v20, %v4093_v46  ;;  %v12394_v19 = vsel %vm3804_vm9, %v9742_v28, %v3868_v54  ;;  %v3329_v33 = vpop.f32.mrb[8].mxu1 }
 0x4d7   :  { %13822 = vst [vmem:[#allocation45_spill] sm:$0xff] %v12394_v19  ;;  %v9743_v30 = vadd.f32 %v3467_v48, %v12337_v12  ;;  %v12398_v14 = vpop.f32.mrb[56].mxu0  ;;  %v4195_v3 = vadd.f32 %v4103_v31, %v4095_v37  ;;  %v4007_v35 = vadd.f32 %v4006_v41, %v12394_v19  ;;  %v4110_v27 = vmul.f32 %v12394_v19, %v12394_v19  ;;  %v3331_v32 = vpop.f32.mrb[9].mxu1 }
 0x4d8   :  { %v4157_v21 = vadd.f32 %v4156_v26, %v4108_v34  ;;  %v12403_v45 = vpop.f32.mrb[57].mxu0  ;;  %vm3803_vm10 = vcmp.gt.f32.partialorder %v9727_v49, 0.0  ;;  %v3867_v22 = vmul.f32 0.2, %v9727_v49  ;;  %v9728_v50 = vadd.f32 %v3323_v23, %v12325_v29  ;;  %v3333_v6 = vpop.f32.mrb[10].mxu1 }
 0x4d9   :  { %vm3805_vm11 = vcmp.gt.f32.partialorder %v9743_v30, 0.0  ;;  %v3869_v52 = vmul.f32 0.2, %v9743_v30  ;;  %v4183_v46 = vadd.f32 %v4182_v53, %v4110_v27  ;;  %v9744_v57 = vadd.f32 %v3469_v7, %v12329_v40  ;;  %v3479_v58 = vpop.f32.mrb[58].mxu0  ;;  %v12414_v44 = vpop.f32.mrb[11].mxu1 }
 0x4da   :  { %v9729_v15 = vadd.f32 %v3325_v56, %v12333_v47  ;;  %v12408_v25 = vsel %vm3803_vm10, %v9727_v49, %v3867_v22  ;;  %v9745_v39 = vadd.f32 %v3471_v63, %v12337_v12  ;;  %v9730_v28 = vadd.f32 %v3329_v33, %v12325_v29  ;;  %v12416_v48 = vpop.f32.mrb[59].mxu0 }
 0x4db   :  { %v12410_v37 = vsel %vm3805_vm11, %v9743_v30, %v3869_v52  ;;  %v3994_v38 = vadd.f32 %v3993_v36, %v12408_v25  ;;  %v4109_v59 = vmul.f32 %v12408_v25, %v12408_v25  ;;  %vm3810_vm12 = vcmp.gt.f32.partialorder %v9728_v50, 0.0 }
 0x4dc   :  { %13823 = vst [vmem:[#allocation43_spill] sm:$0xff] %v12410_v37  ;;  %v4020_v23 = vadd.f32 %v4019_v17, %v12410_v37  ;;  %v4111_v7 = vmul.f32 %v12410_v37, %v12410_v37  ;;  %v3874_v41 = vmul.f32 0.2, %v9728_v50  ;;  %vm3812_vm13 = vcmp.gt.f32.partialorder %v9744_v57, 0.0 }
 0x4dd   :  { %v3876_v24 = vmul.f32 0.2, %v9744_v57  ;;  %v4170_v11 = vadd.f32 %v4169_v55, %v4109_v59  ;;  %vm3811_vm14 = vcmp.gt.f32.partialorder %v9729_v15, 0.0  ;;  %v3875_v63 = vmul.f32 0.2, %v9729_v15 }
 0x4de   :  { %v4196_v56 = vadd.f32 %v4195_v3, %v4111_v7  ;;  %v12424_v26 = vsel %vm3810_vm12, %v9728_v50, %v3874_v41  ;;  %vm3813_vm15 = vcmp.gt.f32.partialorder %v9745_v39, 0.0  ;;  %v3877_v18 = vmul.f32 0.2, %v9745_v39  ;;  %v12428_v53 = vpop.f32.mrb[12].mxu1 }
 0x4df   :  { %v12426_v16 = vsel %vm3812_vm13, %v9744_v57, %v3876_v24  ;;  %v12430_v54 = vpop.f32.mrb[60].mxu0  ;;  %v3982_v36 = vadd.f32 %v3981_v62, %v12424_v26  ;;  %v4116_v20 = vmul.f32 %v12424_v26, %v12424_v26  ;;  %v12438_v34 = vpop.f32.mrb[13].mxu1  ;;  %v12442_v49 = vsel %vm3811_vm14, %v9729_v15, %v3875_v63 }
 0x4e0   :  { %13824 = vst [vmem:[#allocation36_spill] sm:$0xff] %v12426_v16  ;;  %v4008_v17 = vadd.f32 %v4007_v35, %v12426_v16  ;;  %v4118_v31 = vmul.f32 %v12426_v16, %v12426_v16  ;;  %v12440_v55 = vpop.f32.mrb[61].mxu0  ;;  %v12444_v30 = vsel %vm3813_vm15, %v9745_v39, %v3877_v18  ;;  %vm3818_vm0 = vcmp.gt.f32.partialorder %v9730_v28, 0.0  ;;  %v12446_v3 = vpop.f32.mrb[14].mxu1  ;;  %v10209_v16 = vld [vmem:[#allocation21 + $0xb4] ss:$28 sps:$4 sm:$0xff]  }
 0x4e1   :  { %13825 = vst [vmem:[#allocation37_spill] sm:$0xff] %v12444_v30  ;;  %v3882_v33 = vmul.f32 0.2, %v9730_v28  ;;  %v12448_v62 = vpop.f32.mrb[62].mxu0  ;;  %v4158_v27 = vadd.f32 %v4157_v21, %v4116_v20  ;;  %v3995_v35 = vadd.f32 %v3994_v38, %v12442_v49  ;;  %v4117_v52 = vmul.f32 %v12442_v49, %v12442_v49  ;;  %v12453_v50 = vpop.f32.mrb[15].mxu1 }
 0x4e2   :  { %v4184_v22 = vadd.f32 %v4183_v46, %v4118_v31  ;;  %v12455_v57 = vpop.f32.mrb[63].mxu0  ;;  %v4021_v15 = vadd.f32 %v4020_v23, %v12444_v30  ;;  %v4119_v39 = vmul.f32 %v12444_v30, %v12444_v30  ;;  %v9746_v21 = vadd.f32 %v12398_v14, %v12329_v40  ;;  %v10212_v30 = vld [vmem:[#allocation21 + $0xe4] ss:$28 sps:$4 sm:$0xff]  }
 0x4e3   :  { %v12460_v59 = vsel %vm3818_vm0, %v9730_v28, %v3882_v33  ;;  %v4171_v46 = vadd.f32 %v4170_v11, %v4117_v52  ;;  %v9731_v41 = vadd.f32 %v3331_v32, %v12333_v47  ;;  %v9747_v23 = vadd.f32 %v12403_v45, %v12337_v12 }
 0x4e4   :  { %v3983_v38 = vadd.f32 %v3982_v36, %v12460_v59  ;;  %v4124_v7 = vmul.f32 %v12460_v59, %v12460_v59  ;;  %v4197_v24 = vadd.f32 %v4196_v56, %v4119_v39  ;;  %vm3820_vm1 = vcmp.gt.f32.partialorder %v9746_v21, 0.0 }
 0x4e5   :  { %v3884_v63 = vmul.f32 0.2, %v9746_v21  ;;  %vm3819_vm2 = vcmp.gt.f32.partialorder %v9731_v41, 0.0  ;;  %v3883_v28 = vmul.f32 0.2, %v9731_v41  ;;  %v9732_v20 = vadd.f32 %v3333_v6, %v12325_v29 }
 0x4e6   :  { %v4159_v18 = vadd.f32 %v4158_v27, %v4124_v7  ;;  %vm3821_vm3 = vcmp.gt.f32.partialorder %v9747_v23, 0.0  ;;  %v3885_v11 = vmul.f32 0.2, %v9747_v23  ;;  %v9748_v36 = vadd.f32 %v3479_v58, %v12329_v40 }
 0x4e7   :  { %v12471_v14 = vsel %vm3820_vm1, %v9746_v21, %v3884_v63  ;;  %v12477_v56 = vsel %vm3819_vm2, %v9731_v41, %v3883_v28  ;;  %vm3826_vm4 = vcmp.gt.f32.partialorder %v9732_v20, 0.0  ;;  %v3890_v27 = vmul.f32 0.2, %v9732_v20 }
 0x4e8   :  { %13826 = vst [vmem:[#allocation38_spill] sm:$0xff] %v12471_v14  ;;  %v4009_v31 = vadd.f32 %v4008_v17, %v12471_v14  ;;  %v4126_v32 = vmul.f32 %v12471_v14, %v12471_v14  ;;  %v3996_v45 = vadd.f32 %v3995_v35, %v12477_v56  ;;  %v4125_v33 = vmul.f32 %v12477_v56, %v12477_v56  ;;  %v10206_v14 = vld [vmem:[#allocation21 + $0xac] ss:$28 sps:$4 sm:$0xff]  }
 0x4e9   :  { %v12482_v6 = vsel %vm3821_vm3, %v9747_v23, %v3885_v11  ;;  %vm3828_vm5 = vcmp.gt.f32.partialorder %v9748_v36, 0.0  ;;  %v12487_v21 = vsel %vm3826_vm4, %v9732_v20, %v3890_v27  ;;  %v3892_v7 = vmul.f32 0.2, %v9748_v36 }
 0x4ea   :  { %v4185_v52 = vadd.f32 %v4184_v22, %v4126_v32  ;;  %v4022_v39 = vadd.f32 %v4021_v15, %v12482_v6  ;;  %v4127_v58 = vmul.f32 %v12482_v6, %v12482_v6  ;;  %v4172_v17 = vadd.f32 %v4171_v46, %v4125_v33 }
 0x4eb   :  { %v9733_v35 = vadd.f32 %v12414_v44, %v12333_v47  ;;  %v3984_v63 = vadd.f32 %v3983_v38, %v12487_v21  ;;  %v4132_v23 = vmul.f32 %v12487_v21, %v12487_v21  ;;  %v9749_v22 = vadd.f32 %v12416_v48, %v12337_v12 }
 0x4ec   :  { %v4198_v41 = vadd.f32 %v4197_v24, %v4127_v58  ;;  %v12496_v15 = vsel %vm3828_vm5, %v9748_v36, %v3892_v7  ;;  %v9734_v46 = vadd.f32 %v12428_v53, %v12325_v29  ;;  %v9750_v53 = vadd.f32 %v12430_v54, %v12329_v40 }
 0x4ed   :  { %vm3827_vm6 = vcmp.gt.f32.partialorder %v9733_v35, 0.0  ;;  %v3891_v28 = vmul.f32 0.2, %v9733_v35  ;;  %v4160_v20 = vadd.f32 %v4159_v18, %v4132_v23  ;;  %v4010_v11 = vadd.f32 %v4009_v31, %v12496_v15 }
 0x4ee   :  { %v4134_v44 = vmul.f32 %v12496_v15, %v12496_v15  ;;  %vm3829_vm7 = vcmp.gt.f32.partialorder %v9749_v22, 0.0  ;;  %v3893_v24 = vmul.f32 0.2, %v9749_v22  ;;  %vm3834_vm8 = vcmp.gt.f32.partialorder %v9734_v46, 0.0 }
 0x4ef   :  { %v12503_v38 = vsel %vm3827_vm6, %v9733_v35, %v3891_v28  ;;  %v3898_v32 = vmul.f32 0.2, %v9734_v46  ;;  %v9735_v27 = vadd.f32 %v12438_v34, %v12333_v47  ;;  %v9751_v58 = vadd.f32 %v12440_v55, %v12337_v12 }
 0x4f0   :  { %v4186_v48 = vadd.f32 %v4185_v52, %v4134_v44  ;;  %v3997_v36 = vadd.f32 %v3996_v45, %v12503_v38  ;;  %v4133_v33 = vmul.f32 %v12503_v38, %v12503_v38  ;;  %v12510_v18 = vsel %vm3829_vm7, %v9749_v22, %v3893_v24 }
 0x4f1   :  { %v12512_v31 = vsel %vm3834_vm8, %v9734_v46, %v3898_v32  ;;  %v4023_v52 = vadd.f32 %v4022_v39, %v12510_v18  ;;  %v4135_v45 = vmul.f32 %v12510_v18, %v12510_v18  ;;  %vm3836_vm9 = vcmp.gt.f32.partialorder %v9750_v53, 0.0 }
 0x4f2   :  { %v4173_v7 = vadd.f32 %v4172_v17, %v4133_v33  ;;  %v3985_v35 = vadd.f32 %v3984_v63, %v12512_v31  ;;  %v4140_v54 = vmul.f32 %v12512_v31, %v12512_v31  ;;  %v3900_v23 = vmul.f32 0.2, %v9750_v53 }
 0x4f3   :  { %vm3835_vm10 = vcmp.gt.f32.partialorder %v9735_v27, 0.0  ;;  %v4199_v22 = vadd.f32 %v4198_v41, %v4135_v45  ;;  %v3899_v28 = vmul.f32 0.2, %v9735_v27  ;;  %vm3837_vm11 = vcmp.gt.f32.partialorder %v9751_v58, 0.0 }
 0x4f4   :  { %v3901_v34 = vmul.f32 0.2, %v9751_v58  ;;  %v4161_v46 = vadd.f32 %v4160_v20, %v4140_v54  ;;  %v12524_v55 = vsel %vm3836_vm9, %v9750_v53, %v3900_v23  ;;  %v9736_v39 = vadd.f32 %v12446_v3, %v12325_v29  ;;  %v10191_v3 = vld [vmem:[#allocation21 + $0xc] ss:$28 sps:$4 sm:$0xff]   ;;  %v10186_v53 = vld [vmem:[#allocation21] ss:$28 sps:$4 sm:$0xff]  }
 0x4f5   :  { %v9752_v17 = vadd.f32 %v12448_v62, %v12329_v40  ;;  %v4011_v63 = vadd.f32 %v4010_v11, %v12524_v55  ;;  %v4142_v44 = vmul.f32 %v12524_v55, %v12524_v55  ;;  %v12533_v24 = vsel %vm3835_vm10, %v9735_v27, %v3899_v28  ;;  %v10188_v40 = vld [vmem:[#allocation21 + $0x4] ss:$28 sps:$4 sm:$0xff]   ;;  %7794 = vmatprep.subr.bf16.mxu0 %v10191_v3  ;;  %v10194_v28 = vld [vmem:[#allocation21 + $0x3c] ss:$28 sps:$4 sm:$0xff]  }
 0x4f6   :  { %v12535_v41 = vsel %vm3837_vm11, %v9751_v58, %v3901_v34  ;;  %v3998_v32 = vadd.f32 %v3997_v36, %v12533_v24  ;;  %v4141_v20 = vmul.f32 %v12533_v24, %v12533_v24  ;;  %vm3842_vm12 = vcmp.gt.f32.partialorder %v9736_v39, 0.0  ;;  %7502 = vmatprep.subr.bf16.mxu1 %v10188_v40  ;;  %v10189_v54 = vld [vmem:[#allocation21 + $0x8] ss:$28 sps:$4 sm:$0xff]  }
 0x4f7   :  { %v4024_v33 = vadd.f32 %v4023_v52, %v12535_v41  ;;  %v4143_v29 = vmul.f32 %v12535_v41, %v12535_v41  ;;  %v4187_v62 = vadd.f32 %v4186_v48, %v4142_v44  ;;  %v3906_v11 = vmul.f32 0.2, %v9736_v39  ;;  %7503 = vmatpush1.bf16.msra.mxu1 %v10186_v53  ;;  %7795 = vmatpush1.bf16.msra.mxu0 %v10189_v54  ;;  %v10192_v44 = vld [vmem:[#allocation21 + $0x38] ss:$28 sps:$4 sm:$0xff]  }
 0x4f8   :  { %vm3844_vm13 = vcmp.gt.f32.partialorder %v9752_v17, 0.0  ;;  %v4174_v27 = vadd.f32 %v4173_v7, %v4141_v20  ;;  %v3908_v45 = vmul.f32 0.2, %v9752_v17  ;;  %v9737_v36 = vadd.f32 %v12453_v50, %v12333_v47  ;;  %v10197_v47 = vld [vmem:[#allocation21 + $0x44] ss:$28 sps:$4 sm:$0xff]   ;;  %7504 = vmatprep.subr.bf16.mxu1 %v10194_v28 }
 0x4f9   :  { %v12543_v58 = vadd.f32 %v4199_v22, %v4143_v29  ;;  %v12547_v52 = vsel %vm3842_vm12, %v9736_v39, %v3906_v11  ;;  %v9753_v23 = vadd.f32 %v12455_v57, %v12337_v12  ;;  %v10195_v20 = vld [vmem:[#allocation21 + $0x40] ss:$28 sps:$4 sm:$0xff]   ;;  %7796 = vmatprep.subr.bf16.mxu0 %v10197_v47  ;;  %v10201_v47 = vld [vmem:[#allocation21 + $0x78] ss:$28 sps:$4 sm:$0xff]  }
 0x4fa   :  { %v3986_v48 = vadd.f32 %v3985_v35, %v12547_v52  ;;  %v4148_v7 = vmul.f32 %v12547_v52, %v12547_v52  ;;  %v12554_v22 = vsel %vm3844_vm13, %v9752_v17, %v3908_v45  ;;  %vm3843_vm14 = vcmp.gt.f32.partialorder %v9737_v36, 0.0  ;;  %v10203_v45 = vld [vmem:[#allocation21 + $0x7c] ss:$28 sps:$4 sm:$0xff]  }
 0x4fb   :  { %v4012_v50 = vadd.f32 %v4011_v63, %v12554_v22  ;;  %v4150_v34 = vmul.f32 %v12554_v22, %v12554_v22  ;;  %v3907_v39 = vmul.f32 0.2, %v9737_v36  ;;  %vm3845_vm15 = vcmp.gt.f32.partialorder %v9753_v23, 0.0  ;;  %7505 = vmatpush1.bf16.msra.mxu1 %v10192_v44  ;;  %7797 = vmatpush1.bf16.msra.mxu0 %v10195_v20 }
 0x4fc   :  { %v3987_v12 = vrot.slane %v3986_v48, 4  ;;  %v4162_v57 = vadd.f32 %v4161_v46, %v4148_v7  ;;  %v3909_v35 = vmul.f32 0.2, %v9753_v23  ;;  %v10200_v46 = vld [vmem:[#allocation21 + $0x74] ss:$28 sps:$4 sm:$0xff]   ;;  %7798 = vmatprep.subr.bf16.mxu0 %v10203_v45 }
 0x4fd   :  { %v4013_v17 = vrot.slane %v4012_v50, 4  ;;  %v4188_v29 = vadd.f32 %v4187_v62, %v4150_v34  ;;  %v12560_v40 = vsel %vm3843_vm14, %v9737_v36, %v3907_v39  ;;  %v10198_v62 = vld [vmem:[#allocation21 + $0x70] ss:$28 sps:$4 sm:$0xff]   ;;  %7506 = vmatprep.subr.bf16.mxu1 %v10200_v46  ;;  %v10204_v46 = vld [vmem:[#allocation21 + $0xa8] ss:$28 sps:$4 sm:$0xff]  }
 0x4fe   :  { %v3988_v3 = vadd.f32 %v3987_v12, %v3986_v48  ;;  %v4163_v63 = vrot.slane %v4162_v57, 4  ;;  %v3999_v11 = vadd.f32 %v3998_v32, %v12560_v40  ;;  %v4149_v53 = vmul.f32 %v12560_v40, %v12560_v40 }
 0x4ff   :  { %v4014_v54 = vadd.f32 %v4013_v17, %v4012_v50  ;;  %v4189_v7 = vrot.slane %v4188_v29, 4  ;;  %v12566_v28 = vsel %vm3845_vm15, %v9753_v23, %v3909_v35  ;;  %7507 = vmatpush1.bf16.msra.mxu1 %v10198_v62  ;;  %7799 = vmatpush1.bf16.msra.mxu0 %v10201_v47 }
 0x500   :  { %v3989_v36 = vrot.slane %v3988_v3, 2  ;;  %v4164_v34 = vadd.f32 %v4163_v63, %v4162_v57  ;;  %v4000_v39 = vrot.slane %v3999_v11, 4  ;;  %v4175_v48 = vadd.f32 %v4174_v27, %v4149_v53  ;;  %7508 = vmatprep.subr.bf16.mxu1 %v10206_v14  ;;  %7800 = vmatprep.subr.bf16.mxu0 %v10209_v16 }
 0x501   :  { %v4015_v32 = vrot.slane %v4014_v54, 2  ;;  %v4190_v44 = vadd.f32 %v4189_v7, %v4188_v29  ;;  %v4025_v12 = vadd.f32 %v4024_v33, %v12566_v28  ;;  %v4151_v20 = vmul.f32 %v12566_v28, %v12566_v28  ;;  %v10207_v29 = vld [vmem:[#allocation21 + $0xb0] ss:$28 sps:$4 sm:$0xff]  }
 0x502   :  { %v3990_v50 = vadd.f32 %v3989_v36, %v3988_v3  ;;  %v4165_v17 = vrot.slane %v4164_v34, 2  ;;  %v4001_v23 = vadd.f32 %v4000_v39, %v3999_v11  ;;  %v4176_v35 = vrot.slane %v4175_v48, 4 }
 0x503   :  { %v4016_v57 = vadd.f32 %v4015_v32, %v4014_v54  ;;  %v4191_v63 = vrot.slane %v4190_v44, 2  ;;  %v4026_v27 = vrot.slane %v4025_v12, 4  ;;  %v4201_v53 = vadd.f32 %v12543_v58, %v4151_v20  ;;  %7509 = vmatpush1.bf16.msra.mxu1 %v10204_v46  ;;  %7801 = vmatpush1.bf16.msra.mxu0 %v10207_v29  ;;  %v10215_v58 = vld [vmem:[#allocation21 + $0xec] ss:$28 sps:$4 sm:$0xff]   ;;  %v10218_v29 = vld [vmem:[#allocation21 + $0x11c] ss:$28 sps:$4 sm:$0xff]  }
 0x504   :  { %v3991_v45 = vrot.slane %v3990_v50, 1  ;;  %v4166_v33 = vadd.f32 %v4165_v17, %v4164_v34  ;;  %v4002_v7 = vrot.slane %v4001_v23, 2  ;;  %v4177_v19 = vadd.f32 %v4176_v35, %v4175_v48  ;;  %v10210_v17 = vld [vmem:[#allocation21 + $0xe0] ss:$28 sps:$4 sm:$0xff]   ;;  %v10213_v48 = vld [vmem:[#allocation21 + $0xe8] ss:$28 sps:$4 sm:$0xff]   ;;  %7510 = vmatprep.subr.bf16.mxu1 %v10212_v30  ;;  %7802 = vmatprep.subr.bf16.mxu0 %v10215_v58 }
 0x505   :  { %v4017_v3 = vrot.slane %v4016_v57, 1  ;;  %v4192_v62 = vadd.f32 %v4191_v63, %v4190_v44  ;;  %v4027_v11 = vadd.f32 %v4026_v27, %v4025_v12  ;;  %v4202_v36 = vrot.slane %v4201_v53, 4 }
 0x506   :  { %v3992_v47 = vadd.f32 %v3991_v45, %v3990_v50  ;;  %v4167_v39 = vrot.slane %v4166_v33, 1  ;;  %v4003_v54 = vadd.f32 %v4002_v7, %v4001_v23  ;;  %v4178_v32 = vrot.slane %v4177_v19, 2  ;;  %v10221_v45 = vld [vmem:[#allocation21 + $0x124] ss:$28 sps:$4 sm:$0xff]  }
 0x507   :  { %v4018_v20 = vadd.f32 %v4017_v3, %v4016_v57  ;;  %v4193_v37 = vrot.slane %v4192_v62, 1  ;;  %v4028_v43 = vrot.slane %v4027_v11, 2  ;;  %v4203_v34 = vadd.f32 %v4202_v36, %v4201_v53  ;;  %7511 = vmatpush1.bf16.msra.mxu1 %v10210_v17  ;;  %7803 = vmatpush1.bf16.msra.mxu0 %v10213_v48  ;;  %v10216_v3 = vld [vmem:[#allocation21 + $0x118] ss:$28 sps:$4 sm:$0xff]  }
 0x508   :  { %v12572_v14 = vmul.f32 0.015625, %v3992_v47  ;;  %v4168_v16 = vadd.f32 %v4167_v39, %v4166_v33  ;;  %v4004_v44 = vrot.slane %v4003_v54, 1  ;;  %v4179_v12 = vadd.f32 %v4178_v32, %v4177_v19  ;;  %7512 = vmatprep.subr.bf16.mxu1 %v10218_v29  ;;  %7804 = vmatprep.subr.bf16.mxu0 %v10221_v45  ;;  %v10228_v29 = vld [vmem:[#allocation21 + $0x188] ss:$28 sps:$4 sm:$0xff]   ;;  %v10231_v45 = vld [vmem:[#allocation21 + $0x190] ss:$28 sps:$4 sm:$0xff]  }
 0x509   :  { %v12574_v50 = vmul.f32 0.015625, %v4018_v20  ;;  %v4194_v23 = vadd.f32 %v4193_v37, %v4192_v62  ;;  %v4029_v35 = vadd.f32 %v4028_v43, %v4027_v11  ;;  %v4204_v63 = vrot.slane %v4203_v34, 2  ;;  %v10219_v37 = vld [vmem:[#allocation21 + $0x120] ss:$28 sps:$4 sm:$0xff]   ;;  %v10224_v20 = vld [vmem:[#allocation21 + $0x154] ss:$28 sps:$4 sm:$0xff]  }
 0x50a   :  { %v4260_v27 = vmul.f32 0.015625, %v4168_v16  ;;  %v4268_v57 = vmul.f32 %v12572_v14, %v12572_v14  ;;  %v4005_v53 = vadd.f32 %v4004_v44, %v4003_v54  ;;  %v4180_v46 = vrot.slane %v4179_v12, 1  ;;  %v10222_v16 = vld [vmem:[#allocation21 + $0x150] ss:$28 sps:$4 sm:$0xff]  }
 0x50b   :  { %v4262_v33 = vmul.f32 0.015625, %v4194_v23  ;;  %v4270_v19 = vmul.f32 %v12574_v50, %v12574_v50  ;;  %v4030_v30 = vrot.slane %v4029_v35, 1  ;;  %v4205_v7 = vadd.f32 %v4204_v63, %v4203_v34  ;;  %7513 = vmatpush1.bf16.msra.mxu1 %v10216_v3  ;;  %7805 = vmatpush1.bf16.msra.mxu0 %v10219_v37  ;;  %v10227_v23 = vld [vmem:[#allocation21 + $0x15c] ss:$28 sps:$4 sm:$0xff]  }
 0x50c   :  { %v4276_v43 = vsub.f32 %v4260_v27, %v4268_v57  ;;  %v12580_v62 = vmul.f32 0.015625, %v4005_v53  ;;  %v4181_v11 = vadd.f32 %v4180_v46, %v4179_v12  ;;  %7514 = vmatprep.subr.bf16.mxu1 %v10224_v20  ;;  %v10225_v12 = vld [vmem:[#allocation21 + $0x158] ss:$28 sps:$4 sm:$0xff]   ;;  %7806 = vmatprep.subr.bf16.mxu0 %v10227_v23  ;;  %v10230_v57 = vld [vmem:[#allocation21 + $0x18c] ss:$28 sps:$4 sm:$0xff]  }
 0x50d   :  { %v4278_v36 = vsub.f32 %v4262_v33, %v4270_v19  ;;  %v4031_v47 = vadd.f32 %v4030_v30, %v4029_v35  ;;  %v4206_v39 = vrot.slane %v4205_v7, 1  ;;  %v10233_v53 = vld [vmem:[#allocation21 + $0x194] ss:$28 sps:$4 sm:$0xff]   ;;  %v10236_v30 = vld [vmem:[#allocation21 + $0x1c4] ss:$28 sps:$4 sm:$0xff]  }
 0x50e   :  { %v4284_v54 = vadd.f32 1e-05, %v4276_v43  ;;  %v4261_v32 = vmul.f32 0.015625, %v4181_v11  ;;  %v4269_v58 = vmul.f32 %v12580_v62, %v12580_v62  ;;  %v12588_v33 = vld [vmem:[#allocation18] sm:$0xff]  ;;  %v10234_v37 = vld [vmem:[#allocation21 + $0x1c0] ss:$28 sps:$4 sm:$0xff]  }
 0x50f   :  { %v4286_v34 = vadd.f32 1e-05, %v4278_v36  ;;  %v12584_v17 = vmul.f32 0.015625, %v4031_v47  ;;  %v4207_v48 = vadd.f32 %v4206_v39, %v4205_v7  ;;  %7515 = vmatpush1.bf16.msra.mxu1 %v10222_v16  ;;  %7807 = vmatpush1.bf16.msra.mxu0 %v10225_v12  ;;  %v10239_v7 = vld [vmem:[#allocation21 + $0x1cc] ss:$28 sps:$4 sm:$0xff]   ;;  %v4304_v3 = vrot.slane %v12588_v33, %v11589_v0 }
 0x510   :  { %10838 = vrsqrt.f32 %v4284_v54  ;;  %v4277_v44 = vsub.f32 %v4261_v32, %v4269_v58  ;;  %7516 = vmatprep.subr.bf16.mxu1 %v10230_v57  ;;  %7808 = vmatprep.subr.bf16.mxu0 %v10233_v53  ;;  %v10237_v43 = vld [vmem:[#allocation21 + $0x1c8] ss:$28 sps:$4 sm:$0xff]   ;;  %v4312_v11 = vrot.slane %v12588_v33, %v11870_v42  ;;  %v10242_v47 = vld [vmem:[#allocation21 + $0x1fc] ss:$28 sps:$4 sm:$0xff]   ;;  %v4308_v58 = vrot.slane %v12588_v33, %v11592_v2 }
 0x511   :  { %10840 = vrsqrt.f32 %v4286_v34  ;;  %v4263_v35 = vmul.f32 0.015625, %v4207_v48  ;;  %v4271_v63 = vmul.f32 %v12584_v17, %v12584_v17  ;;  %v10245_v39 = vld [vmem:[#allocation21 + $0x204] ss:$28 sps:$4 sm:$0xff]   ;;  %v10240_v20 = vld [vmem:[#allocation21 + $0x1f8] ss:$28 sps:$4 sm:$0xff]  }
 0x512   :  { %v4285_v27 = vadd.f32 1e-05, %v4277_v44  ;;  %v10243_v34 = vld [vmem:[#allocation21 + $0x200] ss:$28 sps:$4 sm:$0xff]  }
 0x513   :  { %v4279_v46 = vsub.f32 %v4263_v35, %v4271_v63  ;;  %7517 = vmatpush1.bf16.msra.mxu1 %v10228_v29  ;;  %7809 = vmatpush1.bf16.msra.mxu0 %v10231_v45  ;;  %v4316_v63 = vrot.slane %v12588_v33, %v11875_v4  ;;  %v10251_v57 = vld [vmem:[#allocation21 + $0x23c] ss:$28 sps:$4 sm:$0xff]  }
 0x514   :  { %10842 = vrsqrt.f32 %v4285_v27  ;;  %7518 = vmatprep.subr.bf16.mxu1 %v10236_v30  ;;  %7810 = vmatprep.subr.bf16.mxu0 %v10239_v7  ;;  %v10248_v27 = vld [vmem:[#allocation21 + $0x234] ss:$28 sps:$4 sm:$0xff]  }
 0x515   :  { %v4287_v19 = vadd.f32 1e-05, %v4279_v46  ;;  %v10246_v46 = vld [vmem:[#allocation21 + $0x230] ss:$28 sps:$4 sm:$0xff]   ;;  %v10249_v29 = vld [vmem:[#allocation21 + $0x238] ss:$28 sps:$4 sm:$0xff]  }
 0x517   :  { %10844 = vrsqrt.f32 %v4287_v19  ;;  %7519 = vmatpush1.bf16.msra.mxu1 %v10234_v37  ;;  %7811 = vmatpush1.bf16.msra.mxu0 %v10237_v43  ;;  %v10254_v37 = vld [vmem:[#allocation21 + $0x26c] ss:$28 sps:$4 sm:$0xff]  }
 0x518   :  { %7520 = vmatprep.subr.bf16.mxu1 %v10242_v47  ;;  %7812 = vmatprep.subr.bf16.mxu0 %v10245_v39  ;;  %v10255_v47 = vld [vmem:[#allocation21 + $0x270] ss:$28 sps:$4 sm:$0xff]  }
 0x51a   :  { %v10839_v36 = vpop.eup %10838 }
 0x51b   :  { %v10841_v54 = vpop.eup %10840  ;;  %v4341_v32 = vmul.f32 %v10839_v36, %v4304_v3  ;;  %7521 = vmatpush1.bf16.msra.mxu1 %v10240_v20  ;;  %7813 = vmatpush1.bf16.msra.mxu0 %v10243_v34  ;;  %v10252_v36 = vld [vmem:[#allocation21 + $0x268] ss:$28 sps:$4 sm:$0xff]  }
 0x51c   :  { %v4343_v48 = vmul.f32 %v10841_v54, %v4312_v11  ;;  %7522 = vmatprep.subr.bf16.mxu1 %v10248_v27  ;;  %7814 = vmatprep.subr.bf16.mxu0 %v10251_v57  ;;  %v10263_v34 = vld [vmem:[#allocation21 + $0x2ac] ss:$28 sps:$4 sm:$0xff]   ;;  %v10267_v57 = vld [vmem:[#allocation21 + $0x2e0] ss:$28 sps:$4 sm:$0xff]  }
 0x51d   :  { %v4349_v16 = vmul.f32 %v4341_v32, %v12572_v14  ;;  %v12598_v44 = vrot.slane %v4341_v32, %v11589_v0 }
 0x51e   :  { %v10843_v12 = vpop.eup %10842  ;;  %v4351_v23 = vmul.f32 %v4343_v48, %v12574_v50  ;;  %v12602_v35 = vrot.slane %v4343_v48, %v11589_v0 }
 0x51f   :  { %v12608_v53 = vmul.f32 %v12598_v44, %v12547_v52  ;;  %v4342_v14 = vmul.f32 %v10843_v12, %v4308_v58  ;;  %v12612_v45 = vmul.f32 %v12598_v44, %v12343_v5  ;;  %7523 = vmatpush1.bf16.msra.mxu1 %v10246_v46  ;;  %v12622_v7 = vmul.f32 %v12598_v44, %v12363_v10  ;;  %v10257_v5 = vld [vmem:[#allocation21 + $0x274] ss:$28 sps:$4 sm:$0xff]   ;;  %v10266_v12 = vld [vmem:[#allocation21 + $0x2dc] ss:$28 sps:$4 sm:$0xff]  }
 0x520   :  { %v12616_v50 = vmul.f32 %v12602_v35, %v12554_v22  ;;  %v12626_v43 = vmul.f32 %v12598_v44, %v12460_v59  ;;  %v12630_v22 = vmul.f32 %v12598_v44, %v12487_v21  ;;  %7815 = vmatpush1.bf16.msra.mxu0 %v10249_v29  ;;  %7524 = vmatprep.subr.bf16.mxu1 %v10254_v37  ;;  %v10275_v46 = vld [vmem:[#allocation21 + $0x31c] ss:$28 sps:$4 sm:$0xff]   ;;  %v10270_v29 = vld [vmem:[#allocation21 + $0x310] ss:$28 sps:$4 sm:$0xff]  }
 0x521   :  { %13827 = vst [vmem:[#allocation39_spill] sm:$0xff] %v12608_v53  ;;  %13828 = vst [vmem:[#allocation42_spill] sm:$0xff] %v12612_v45  ;;  %v10845_v19 = vpop.eup %10844  ;;  %v4350_v30 = vmul.f32 %v4342_v14, %v12580_v62  ;;  %v4423_v52 = vrot.slane %v4342_v14, %v11589_v0  ;;  %7816 = vmatprep.subr.bf16.mxu0 %v10257_v5  ;;  %v10272_v14 = vld [vmem:[#allocation21 + $0x314] ss:$28 sps:$4 sm:$0xff]   ;;  %v13851_v37 = vld [vmem:[#allocation32_spill] sm:$0xff] }
 0x522   :  { %13829 = vst [vmem:[#allocation46_spill] sm:$0xff] %v12616_v50  ;;  %13830 = vst [vmem:[#allocation47_spill] sm:$0xff] %v12622_v7  ;;  %v4344_v3 = vmul.f32 %v10845_v19, %v4316_v63  ;;  %v12686_v63 = vmul.f32 %v12602_v35, %v12496_v15  ;;  %v10273_v15 = vld [vmem:[#allocation21 + $0x318] ss:$28 sps:$4 sm:$0xff]   ;;  %v12697_v5 = vsub.s32 4, %v13851_v37 }
 0x523   :  { %13831 = vst [vmem:[#allocation48_spill] sm:$0xff] %v12626_v43  ;;  %13832 = vst [vmem:[#allocation49_spill] sm:$0xff] %v12630_v22  ;;  %v4365_v11 = vcombine.low %v4349_v16, %v4350_v30  ;;  %v12633_v62 = vmul.f32 %v4423_v52, %v12560_v40  ;;  %v12636_v10 = vmul.f32 %v4423_v52, %v12351_v61  ;;  %v13837_v40 = vld [vmem:[#allocation35_spill] sm:$0xff]  ;;  %7525 = vmatpush1.bf16.msra.mxu1 %v10252_v36  ;;  %v10281_v19 = vld [vmem:[#allocation21 + $0x354] ss:$28 sps:$4 sm:$0xff]  }
 0x524   :  { %v12639_v39 = vmul.f32 %v4423_v52, %v12377_v13  ;;  %v4352_v59 = vmul.f32 %v4344_v3, %v12584_v17  ;;  %v12643_v54 = vrot.slane %v4344_v3, %v11589_v0  ;;  %v12646_v21 = vmul.f32 %v4423_v52, %v12408_v25  ;;  %v10260_v25 = vld [vmem:[#allocation21 + $0x2a4] ss:$28 sps:$4 sm:$0xff]   ;;  %7817 = vmatpush1.bf16.msra.mxu0 %v10255_v47  ;;  %v10287_v3 = vld [vmem:[#allocation21 + $0x38c] ss:$28 sps:$4 sm:$0xff]  }
 0x525   :  { %13833 = vst [vmem:[#allocation50_spill] sm:$0xff] %v12633_v62  ;;  %13834 = vst [vmem:[#allocation51_spill] sm:$0xff] %v12636_v10  ;;  %v12649_v32 = vrot.slane %v4365_v11, %v13837_v40  ;;  %v12652_v61 = vmul.f32 %v4423_v52, %v12442_v49  ;;  %v12655_v13 = vmul.f32 %v4423_v52, %v12477_v56  ;;  %v10258_v56 = vld [vmem:[#allocation21 + $0x2a0] ss:$28 sps:$4 sm:$0xff]   ;;  %v10261_v16 = vld [vmem:[#allocation21 + $0x2a8] ss:$28 sps:$4 sm:$0xff]   ;;  %7526 = vmatprep.subr.bf16.mxu1 %v10260_v25 }
 0x526   :  { %13835 = vst [vmem:[#allocation52_spill] sm:$0xff] %v12639_v39  ;;  %13836 = vst [vmem:[#allocation53_spill] sm:$0xff] %v12646_v21  ;;  %v12658_v17 = vmul.f32 %v4423_v52, %v12503_v38  ;;  %v4366_v58 = vcombine.low %v4351_v23, %v4352_v59  ;;  %v12662_v20 = vmul.f32 %v12643_v54, %v12566_v28  ;;  %7818 = vmatprep.subr.bf16.mxu0 %v10263_v34  ;;  %v10269_v23 = vld [vmem:[#allocation21 + $0x2e4] ss:$28 sps:$4 sm:$0xff]  }
 0x527   :  { %13838 = vst [vmem:[#allocation35_spill] sm:$0xff] %v12649_v32  ;;  %13839 = vst [vmem:[#allocation54_spill] sm:$0xff] %v12652_v61  ;;  %v12665_v48 = vmul.f32 %v4423_v52, %v12533_v24  ;;  %v12669_v49 = vmul.f32 %v12598_v44, %v12512_v31  ;;  %7527 = vmatpush1.bf16.msra.mxu1 %v10258_v56  ;;  %v12676_v28 = vmul.f32 %v12643_v54, %v12482_v6  ;;  %v10264_v6 = vld [vmem:[#allocation21 + $0x2d8] ss:$28 sps:$4 sm:$0xff]   ;;  %v10276_v30 = vld [vmem:[#allocation21 + $0x348] ss:$28 sps:$4 sm:$0xff]  }
 0x528   :  { %13840 = vst [vmem:[#allocation55_spill] sm:$0xff] %v12655_v13  ;;  %13841 = vst [vmem:[#allocation56_spill] sm:$0xff] %v12658_v17  ;;  %v12672_v38 = vrot.slane %v4366_v58, %v13837_v40  ;;  %v12680_v24 = vmul.f32 %v12643_v54, %v12510_v18  ;;  %v12690_v27 = vmul.f32 %v12643_v54, %v12535_v41  ;;  %7819 = vmatpush1.bf16.msra.mxu0 %v10261_v16  ;;  %v10278_v41 = vld [vmem:[#allocation21 + $0x34c] ss:$28 sps:$4 sm:$0xff]  }
 0x529   :  { %13842 = vst [vmem:[#allocation57_spill] sm:$0xff] %v12662_v20  ;;  %13843 = vst [vmem:[#allocation58_spill] sm:$0xff] %v12665_v48  ;;  %v12694_v18 = vmul.f32 %v12602_v35, %v12524_v55  ;;  %7528 = vmatprep.subr.bf16.mxu1 %v10266_v12  ;;  %7820 = vmatprep.subr.bf16.mxu0 %v10269_v23  ;;  %v10279_v52 = vld [vmem:[#allocation21 + $0x350] ss:$28 sps:$4 sm:$0xff]   ;;  %v10284_v55 = vld [vmem:[#allocation21 + $0x384] ss:$28 sps:$4 sm:$0xff]   ;;  %v12710_v59 = vrot.slane %v12321_v60, %v12697_v5 }
 0x52a   :  { %13844 = vst [vmem:[#allocation59_spill] sm:$0xff] %v12669_v49  ;;  %13845 = vst [vmem:[#allocation60_spill] sm:$0xff] %v12672_v38  ;;  %v12700_v11 = vsub.s32 6, %v13851_v37  ;;  %v12703_v36 = vsub.s32 5, %v13851_v37  ;;  %v12706_v47 = vsub.s32 7, %v13851_v37 }
 0x52b   :  { %13846 = vst [vmem:[#allocation61_spill] sm:$0xff] %v12676_v28  ;;  %13847 = vst [vmem:[#allocation62_spill] sm:$0xff] %v12680_v24  ;;  %7529 = vmatpush1.bf16.msra.mxu1 %v10264_v6 }
 0x52c   :  { %13848 = vst [vmem:[#allocation63_spill] sm:$0xff] %v12686_v63  ;;  %13849 = vst [vmem:[#allocation64_spill] sm:$0xff] %v12690_v27  ;;  %7821 = vmatpush1.bf16.msra.mxu0 %v10267_v57  ;;  %7530 = vmatprep.subr.bf16.mxu1 %v10272_v14  ;;  %v12714_v58 = vrot.slane %v12321_v60, %v12700_v11  ;;  %v12718_v25 = vrot.slane %v12321_v60, %v12703_v36 }
 0x52d   :  { %13850 = vst [vmem:[#allocation65_spill] sm:$0xff] %v12694_v18  ;;  %7822 = vmatprep.subr.bf16.mxu0 %v10275_v46  ;;  %13852 = vst [vmem:[#allocation32_spill] sm:$0xff] %v12697_v5  ;;  %v12722_v34 = vrot.slane %v12321_v60, %v12706_v47 }
 0x52e   :  { %13853 = vst [vmem:[#allocation66_spill] sm:$0xff] %v12700_v11  ;;  %13854 = vst [vmem:[#allocation67_spill] sm:$0xff] %v12703_v36 }
 0x52f   :  { %7531 = vmatpush1.bf16.msra.mxu1 %v10270_v29 }
 0x530   :  { %7823 = vmatpush1.bf16.msra.mxu0 %v10273_v15  ;;  %7532 = vmatprep.subr.bf16.mxu1 %v10278_v41 }
 0x531   :  { %7824 = vmatprep.subr.bf16.mxu0 %v10281_v19 }
 0x533   :  { %7533 = vmatpush1.bf16.msra.mxu1 %v10276_v30 }
 0x534   :  { %7825 = vmatpush1.bf16.msra.mxu0 %v10279_v52  ;;  %7575 = vmatprep.subr.bf16.mxu1 %v10284_v55 }
 0x535   :  { %7867 = vmatprep.subr.bf16.mxu0 %v10287_v3 }
 0x548   :  { %v3601_v56 = vpop.f32.mrb[16].mxu1 }
 0x549   :  { %v9754_v16 = vadd.f32 %v3601_v56, %v12710_v59  ;;  %v3747_v12 = vpop.f32.mrb[64].mxu0  ;;  %v3603_v23 = vpop.f32.mrb[17].mxu1 }
 0x54a   :  { %v9770_v6 = vadd.f32 %v3747_v12, %v12714_v58  ;;  %v9755_v57 = vadd.f32 %v3603_v23, %v12718_v25  ;;  %v3749_v14 = vpop.f32.mrb[65].mxu0  ;;  %v3605_v46 = vpop.f32.mrb[18].mxu1 }
 0x54b   :  { %vm3790_vm0 = vcmp.gt.f32.partialorder %v9754_v16, 0.0  ;;  %v3854_v29 = vmul.f32 0.2, %v9754_v16  ;;  %v9771_v15 = vadd.f32 %v3749_v14, %v12722_v34  ;;  %v9756_v41 = vadd.f32 %v3605_v46, %v12710_v59  ;;  %v3751_v19 = vpop.f32.mrb[66].mxu0  ;;  %v3607_v60 = vpop.f32.mrb[19].mxu1 }
 0x54c   :  { %vm3792_vm1 = vcmp.gt.f32.partialorder %v9770_v6, 0.0  ;;  %v3856_v30 = vmul.f32 0.2, %v9770_v6  ;;  %vm3791_vm2 = vcmp.gt.f32.partialorder %v9755_v57, 0.0  ;;  %v3855_v52 = vmul.f32 0.2, %v9755_v57 }
 0x54d   :  { %v12729_v55 = vsel %vm3790_vm0, %v9754_v16, %v3854_v29  ;;  %vm3793_vm3 = vcmp.gt.f32.partialorder %v9771_v15, 0.0  ;;  %v3857_v3 = vmul.f32 0.2, %v9771_v15  ;;  %vm3798_vm4 = vcmp.gt.f32.partialorder %v9756_v41, 0.0  ;;  %v3753_v37 = vpop.f32.mrb[67].mxu0 }
 0x54e   :  { %13855 = vst [vmem:[#allocation68_spill] sm:$0xff] %v12729_v55  ;;  %v4096_v56 = vmul.f32 %v12729_v55, %v12729_v55  ;;  %v12733_v12 = vsel %vm3792_vm1, %v9770_v6, %v3856_v30  ;;  %v12735_v23 = vsel %vm3791_vm2, %v9755_v57, %v3855_v52  ;;  %v3862_v14 = vmul.f32 0.2, %v9756_v41 }
 0x54f   :  { %13856 = vst [vmem:[#allocation69_spill] sm:$0xff] %v12733_v12  ;;  %13857 = vst [vmem:[#allocation70_spill] sm:$0xff] %v12735_v23  ;;  %v4098_v46 = vmul.f32 %v12733_v12, %v12733_v12  ;;  %v4097_v31 = vmul.f32 %v12735_v23, %v12735_v23  ;;  %v12741_v16 = vsel %vm3793_vm3, %v9771_v15, %v3857_v3 }
 0x550   :  { %13858 = vst [vmem:[#allocation71_spill] sm:$0xff] %v12741_v16  ;;  %v9772_v29 = vadd.f32 %v3751_v19, %v12714_v58  ;;  %v4099_v50 = vmul.f32 %v12741_v16, %v12741_v16  ;;  %v12746_v18 = vsel %vm3798_vm4, %v9756_v41, %v3862_v14  ;;  %v9757_v6 = vadd.f32 %v3607_v60, %v12718_v25  ;;  %v3611_v30 = vpop.f32.mrb[20].mxu1 }
 0x551   :  { %13859 = vst [vmem:[#allocation72_spill] sm:$0xff] %v12746_v18  ;;  %v9773_v57 = vadd.f32 %v3753_v37, %v12722_v34  ;;  %v4032_v52 = vadd.f32 %v12746_v18, %v12729_v55  ;;  %v4104_v20 = vmul.f32 %v12746_v18, %v12746_v18  ;;  %v3757_v3 = vpop.f32.mrb[68].mxu0  ;;  %v3613_v19 = vpop.f32.mrb[21].mxu1  ;;  %v9758_v60 = vadd.f32 %v3611_v30, %v12710_v59 }
 0x552   :  { %vm3800_vm5 = vcmp.gt.f32.partialorder %v9772_v29, 0.0  ;;  %v3864_v15 = vmul.f32 0.2, %v9772_v29  ;;  %vm3799_vm6 = vcmp.gt.f32.partialorder %v9757_v6, 0.0  ;;  %v3863_v27 = vmul.f32 0.2, %v9757_v6 }
 0x553   :  { %vm3801_vm7 = vcmp.gt.f32.partialorder %v9773_v57, 0.0  ;;  %v3865_v41 = vmul.f32 0.2, %v9773_v57  ;;  %v4208_v14 = vadd.f32 %v4104_v20, %v4096_v56  ;;  %v9774_v37 = vadd.f32 %v3757_v3, %v12714_v58  ;;  %v3759_v24 = vpop.f32.mrb[69].mxu0  ;;  %v3615_v28 = vpop.f32.mrb[22].mxu1 }
 0x554   :  { %v12754_v63 = vsel %vm3800_vm5, %v9772_v29, %v3864_v15  ;;  %v12762_v62 = vsel %vm3799_vm6, %v9757_v6, %v3863_v27  ;;  %v3761_v22 = vpop.f32.mrb[70].mxu0  ;;  %v3617_v20 = vpop.f32.mrb[23].mxu1  ;;  %vm3806_vm8 = vcmp.gt.f32.partialorder %v9758_v60, 0.0  ;;  %v3870_v27 = vmul.f32 0.2, %v9758_v60 }
 0x555   :  { %13860 = vst [vmem:[#allocation73_spill] sm:$0xff] %v12754_v63  ;;  %v4058_v53 = vadd.f32 %v12754_v63, %v12733_v12  ;;  %v4106_v49 = vmul.f32 %v12754_v63, %v12754_v63  ;;  %13861 = vst [vmem:[#allocation74_spill] sm:$0xff] %v12762_v62  ;;  %v12764_v48 = vsel %vm3801_vm7, %v9773_v57, %v3865_v41  ;;  %v3763_v3 = vpop.f32.mrb[71].mxu0  ;;  %vm3808_vm9 = vcmp.gt.f32.partialorder %v9774_v37, 0.0 }
 0x556   :  { %13862 = vst [vmem:[#allocation75_spill] sm:$0xff] %v12764_v48  ;;  %v4045_v56 = vadd.f32 %v12762_v62, %v12735_v23  ;;  %v4105_v29 = vmul.f32 %v12762_v62, %v12762_v62  ;;  %v4071_v30 = vadd.f32 %v12764_v48, %v12741_v16  ;;  %v4107_v15 = vmul.f32 %v12764_v48, %v12764_v48 }
 0x557   :  { %v4234_v43 = vadd.f32 %v4106_v49, %v4098_v46  ;;  %v3872_v41 = vmul.f32 0.2, %v9774_v37  ;;  %v9759_v17 = vadd.f32 %v3613_v19, %v12718_v25  ;;  %v12775_v13 = vsel %vm3806_vm8, %v9758_v60, %v3870_v27 }
 0x558   :  { %v4221_v6 = vadd.f32 %v4105_v29, %v4097_v31  ;;  %v4247_v57 = vadd.f32 %v4107_v15, %v4099_v50  ;;  %13863 = vst [vmem:[#allocation76_spill] sm:$0xff] %v12775_v13  ;;  %v9775_v61 = vadd.f32 %v3759_v24, %v12722_v34  ;;  %v9760_v21 = vadd.f32 %v3615_v28, %v12710_v59  ;;  %v3621_v45 = vpop.f32.mrb[24].mxu1 }
 0x559   :  { %v9776_v7 = vadd.f32 %v3761_v22, %v12714_v58  ;;  %v4033_v39 = vadd.f32 %v4032_v52, %v12775_v13  ;;  %v4112_v49 = vmul.f32 %v12775_v13, %v12775_v13  ;;  %v12783_v46 = vsel %vm3808_vm9, %v9774_v37, %v3872_v41  ;;  %v3767_v50 = vpop.f32.mrb[72].mxu0  ;;  %v3623_v31 = vpop.f32.mrb[25].mxu1 }
 0x55a   :  { %13864 = vst [vmem:[#allocation77_spill] sm:$0xff] %v12783_v46  ;;  %vm3807_vm10 = vcmp.gt.f32.partialorder %v9759_v17, 0.0  ;;  %v4059_v19 = vadd.f32 %v4058_v53, %v12783_v46  ;;  %v4114_v24 = vmul.f32 %v12783_v46, %v12783_v46  ;;  %v3871_v60 = vmul.f32 0.2, %v9759_v17  ;;  %v3769_v28 = vpop.f32.mrb[73].mxu0  ;;  %v3625_v22 = vpop.f32.mrb[26].mxu1 }
 0x55b   :  { %vm3809_vm11 = vcmp.gt.f32.partialorder %v9775_v61, 0.0  ;;  %v4209_v29 = vadd.f32 %v4208_v14, %v4112_v49  ;;  %v3873_v15 = vmul.f32 0.2, %v9775_v61  ;;  %vm3814_vm12 = vcmp.gt.f32.partialorder %v9760_v21, 0.0  ;;  %v12788_v27 = vpop.f32.mrb[74].mxu0  ;;  %v12792_v42 = vpop.f32.mrb[27].mxu1 }
 0x55c   :  { %v3878_v52 = vmul.f32 0.2, %v9760_v21  ;;  %v4235_v37 = vadd.f32 %v4234_v43, %v4114_v24  ;;  %v12790_v41 = vsel %vm3807_vm10, %v9759_v17, %v3871_v60  ;;  %vm3816_vm13 = vcmp.gt.f32.partialorder %v9776_v7, 0.0  ;;  %v12794_v53 = vpop.f32.mrb[75].mxu0 }
 0x55d   :  { %13865 = vst [vmem:[#allocation78_spill] sm:$0xff] %v12790_v41  ;;  %v3880_v10 = vmul.f32 0.2, %v9776_v7  ;;  %v4046_v4 = vadd.f32 %v4045_v56, %v12790_v41  ;;  %v4113_v2 = vmul.f32 %v12790_v41, %v12790_v41  ;;  %v12800_v14 = vsel %vm3809_vm11, %v9775_v61, %v3873_v15 }
 0x55e   :  { %13866 = vst [vmem:[#allocation79_spill] sm:$0xff] %v12800_v14  ;;  %v12802_v49 = vsel %vm3814_vm12, %v9760_v21, %v3878_v52  ;;  %v4072_v43 = vadd.f32 %v4071_v30, %v12800_v14  ;;  %v4115_v17 = vmul.f32 %v12800_v14, %v12800_v14  ;;  %v9761_v63 = vadd.f32 %v3617_v20, %v12718_v25 }
 0x55f   :  { %13867 = vst [vmem:[#allocation80_spill] sm:$0xff] %v12802_v49  ;;  %v4034_v24 = vadd.f32 %v4033_v39, %v12802_v49  ;;  %v4120_v60 = vmul.f32 %v12802_v49, %v12802_v49  ;;  %v4222_v46 = vadd.f32 %v4221_v6, %v4113_v2  ;;  %v12810_v56 = vsel %vm3816_vm13, %v9776_v7, %v3880_v10 }
 0x560   :  { %13868 = vst [vmem:[#allocation81_spill] sm:$0xff] %v12810_v56  ;;  %v9777_v61 = vadd.f32 %v3763_v3, %v12722_v34  ;;  %v4248_v15 = vadd.f32 %v4247_v57, %v4115_v17  ;;  %v4060_v52 = vadd.f32 %v4059_v19, %v12810_v56  ;;  %v4122_v30 = vmul.f32 %v12810_v56, %v12810_v56  ;;  %v12817_v14 = vpop.f32.mrb[28].mxu1 }
 0x561   :  { %v4210_v21 = vadd.f32 %v4209_v29, %v4120_v60  ;;  %vm3815_vm14 = vcmp.gt.f32.partialorder %v9761_v63, 0.0  ;;  %v3879_v39 = vmul.f32 0.2, %v9761_v63  ;;  %v9762_v7 = vadd.f32 %v3621_v45, %v12710_v59  ;;  %v3777_v3 = vpop.f32.mrb[76].mxu0  ;;  %v12822_v6 = vpop.f32.mrb[29].mxu1 }
 0x562   :  { %vm3817_vm15 = vcmp.gt.f32.partialorder %v9777_v61, 0.0  ;;  %v3881_v48 = vmul.f32 0.2, %v9777_v61  ;;  %v4236_v2 = vadd.f32 %v4235_v37, %v4122_v30  ;;  %v9778_v10 = vadd.f32 %v3767_v50, %v12714_v58  ;;  %v12830_v60 = vpop.f32.mrb[77].mxu0  ;;  %v12832_v37 = vpop.f32.mrb[30].mxu1 }
 0x563   :  { %v9763_v20 = vadd.f32 %v3623_v31, %v12718_v25  ;;  %v12824_v57 = vsel %vm3815_vm14, %v9761_v63, %v3879_v39  ;;  %v9779_v29 = vadd.f32 %v3769_v28, %v12722_v34  ;;  %v9764_v17 = vadd.f32 %v3625_v22, %v12710_v59 }
 0x564   :  { %13869 = vst [vmem:[#allocation82_spill] sm:$0xff] %v12824_v57  ;;  %v12826_v19 = vsel %vm3817_vm15, %v9777_v61, %v3881_v48  ;;  %v4047_v45 = vadd.f32 %v4046_v4, %v12824_v57  ;;  %v4121_v50 = vmul.f32 %v12824_v57, %v12824_v57  ;;  %v12840_v48 = vpop.f32.mrb[78].mxu0  ;;  %v12842_v61 = vpop.f32.mrb[31].mxu1  ;;  %vm3822_vm0 = vcmp.gt.f32.partialorder %v9762_v7, 0.0 }
 0x565   :  { %13870 = vst [vmem:[#allocation83_spill] sm:$0xff] %v12826_v19  ;;  %v4073_v31 = vadd.f32 %v4072_v43, %v12826_v19  ;;  %v4123_v63 = vmul.f32 %v12826_v19, %v12826_v19  ;;  %v3886_v28 = vmul.f32 0.2, %v9762_v7  ;;  %vm3824_vm1 = vcmp.gt.f32.partialorder %v9778_v10, 0.0  ;;  %v12844_v56 = vpop.f32.mrb[79].mxu0 }
 0x566   :  { %v3888_v22 = vmul.f32 0.2, %v9778_v10  ;;  %v4223_v30 = vadd.f32 %v4222_v46, %v4121_v50  ;;  %vm3823_vm2 = vcmp.gt.f32.partialorder %v9763_v20, 0.0  ;;  %v3887_v4 = vmul.f32 0.2, %v9763_v20 }
 0x567   :  { %v4249_v39 = vadd.f32 %v4248_v15, %v4123_v63  ;;  %v12846_v16 = vsel %vm3822_vm0, %v9762_v7, %v3886_v28  ;;  %vm3825_vm3 = vcmp.gt.f32.partialorder %v9779_v29, 0.0  ;;  %v3889_v19 = vmul.f32 0.2, %v9779_v29 }
 0x568   :  { %v12848_v43 = vsel %vm3824_vm1, %v9778_v10, %v3888_v22  ;;  %v4035_v57 = vadd.f32 %v4034_v24, %v12846_v16  ;;  %v4128_v41 = vmul.f32 %v12846_v16, %v12846_v16  ;;  %v12856_v15 = vsel %vm3823_vm2, %v9763_v20, %v3887_v4 }
 0x569   :  { %13871 = vst [vmem:[#allocation84_spill] sm:$0xff] %v12848_v43  ;;  %v4061_v62 = vadd.f32 %v4060_v52, %v12848_v43  ;;  %v4130_v46 = vmul.f32 %v12848_v43, %v12848_v43  ;;  %v12858_v50 = vsel %vm3825_vm3, %v9779_v29, %v3889_v19  ;;  %vm3830_vm4 = vcmp.gt.f32.partialorder %v9764_v17, 0.0 }
 0x56a   :  { %v3894_v7 = vmul.f32 0.2, %v9764_v17  ;;  %v4211_v10 = vadd.f32 %v4210_v21, %v4128_v41  ;;  %v4048_v28 = vadd.f32 %v4047_v45, %v12856_v15  ;;  %v4129_v24 = vmul.f32 %v12856_v15, %v12856_v15 }
 0x56b   :  { %v4237_v63 = vadd.f32 %v4236_v2, %v4130_v46  ;;  %v4074_v22 = vadd.f32 %v4073_v31, %v12858_v50  ;;  %v4131_v52 = vmul.f32 %v12858_v50, %v12858_v50  ;;  %v9780_v20 = vadd.f32 %v12788_v27, %v12714_v58 }
 0x56c   :  { %v12866_v12 = vsel %vm3830_vm4, %v9764_v17, %v3894_v7  ;;  %v4224_v19 = vadd.f32 %v4223_v30, %v4129_v24  ;;  %v9765_v21 = vadd.f32 %v12792_v42, %v12718_v25  ;;  %v9781_v31 = vadd.f32 %v12794_v53, %v12722_v34 }
 0x56d   :  { %v4036_v29 = vadd.f32 %v4035_v57, %v12866_v12  ;;  %v4136_v41 = vmul.f32 %v12866_v12, %v12866_v12  ;;  %v4250_v2 = vadd.f32 %v4249_v39, %v4131_v52  ;;  %vm3832_vm5 = vcmp.gt.f32.partialorder %v9780_v20, 0.0 }
 0x56e   :  { %v3896_v45 = vmul.f32 0.2, %v9780_v20  ;;  %vm3831_vm6 = vcmp.gt.f32.partialorder %v9765_v21, 0.0  ;;  %v3895_v4 = vmul.f32 0.2, %v9765_v21  ;;  %v9766_v27 = vadd.f32 %v12817_v14, %v12710_v59 }
 0x56f   :  { %v4212_v17 = vadd.f32 %v4211_v10, %v4136_v41  ;;  %vm3833_vm7 = vcmp.gt.f32.partialorder %v9781_v31, 0.0  ;;  %v3897_v57 = vmul.f32 0.2, %v9781_v31  ;;  %v9782_v46 = vadd.f32 %v3777_v3, %v12714_v58 }
 0x570   :  { %v12879_v30 = vsel %vm3832_vm5, %v9780_v20, %v3896_v45  ;;  %v12885_v7 = vsel %vm3831_vm6, %v9765_v21, %v3895_v4  ;;  %vm3838_vm8 = vcmp.gt.f32.partialorder %v9766_v27, 0.0  ;;  %v3902_v24 = vmul.f32 0.2, %v9766_v27 }
 0x571   :  { %v4062_v42 = vadd.f32 %v4061_v62, %v12879_v30  ;;  %v4138_v39 = vmul.f32 %v12879_v30, %v12879_v30  ;;  %v4049_v53 = vadd.f32 %v4048_v28, %v12885_v7  ;;  %v4137_v10 = vmul.f32 %v12885_v7, %v12885_v7 }
 0x572   :  { %v12890_v14 = vsel %vm3833_vm7, %v9781_v31, %v3897_v57  ;;  %vm3840_vm9 = vcmp.gt.f32.partialorder %v9782_v46, 0.0  ;;  %v12895_v41 = vsel %vm3838_vm8, %v9766_v27, %v3902_v24  ;;  %v3904_v21 = vmul.f32 0.2, %v9782_v46 }
 0x573   :  { %v4238_v52 = vadd.f32 %v4237_v63, %v4138_v39  ;;  %v4075_v20 = vadd.f32 %v4074_v22, %v12890_v14  ;;  %v4139_v62 = vmul.f32 %v12890_v14, %v12890_v14  ;;  %v4225_v3 = vadd.f32 %v4224_v19, %v4137_v10 }
 0x574   :  { %v9767_v28 = vadd.f32 %v12822_v6, %v12718_v25  ;;  %v4037_v4 = vadd.f32 %v4036_v29, %v12895_v41  ;;  %v4144_v31 = vmul.f32 %v12895_v41, %v12895_v41  ;;  %v9783_v63 = vadd.f32 %v12830_v60, %v12722_v34 }
 0x575   :  { %v4251_v45 = vadd.f32 %v4250_v2, %v4139_v62  ;;  %v12904_v22 = vsel %vm3840_vm9, %v9782_v46, %v3904_v21  ;;  %v9768_v19 = vadd.f32 %v12832_v37, %v12710_v59  ;;  %v9784_v59 = vadd.f32 %v12840_v48, %v12714_v58 }
 0x576   :  { %vm3839_vm10 = vcmp.gt.f32.partialorder %v9767_v28, 0.0  ;;  %v3903_v57 = vmul.f32 0.2, %v9767_v28  ;;  %v4213_v27 = vadd.f32 %v4212_v17, %v4144_v31  ;;  %v4063_v39 = vadd.f32 %v4062_v42, %v12904_v22 }
 0x577   :  { %v4146_v6 = vmul.f32 %v12904_v22, %v12904_v22  ;;  %vm3841_vm11 = vcmp.gt.f32.partialorder %v9783_v63, 0.0  ;;  %v3905_v2 = vmul.f32 0.2, %v9783_v63  ;;  %vm3846_vm12 = vcmp.gt.f32.partialorder %v9768_v19, 0.0 }
 0x578   :  { %v12911_v29 = vsel %vm3839_vm10, %v9767_v28, %v3903_v57  ;;  %v3910_v10 = vmul.f32 0.2, %v9768_v19  ;;  %v9769_v42 = vadd.f32 %v12842_v61, %v12718_v25  ;;  %v9785_v62 = vadd.f32 %v12844_v56, %v12722_v34 }
 0x579   :  { %v4239_v60 = vadd.f32 %v4238_v52, %v4146_v6  ;;  %v4050_v46 = vadd.f32 %v4049_v53, %v12911_v29  ;;  %v4145_v24 = vmul.f32 %v12911_v29, %v12911_v29  ;;  %v12918_v37 = vsel %vm3841_vm11, %v9783_v63, %v3905_v2 }
 0x57a   :  { %v12920_v17 = vsel %vm3846_vm12, %v9768_v19, %v3910_v10  ;;  %v4076_v52 = vadd.f32 %v4075_v20, %v12918_v37  ;;  %v4147_v53 = vmul.f32 %v12918_v37, %v12918_v37  ;;  %vm3848_vm13 = vcmp.gt.f32.partialorder %v9784_v59, 0.0 }
 0x57b   :  { %v4226_v21 = vadd.f32 %v4225_v3, %v4145_v24  ;;  %v4038_v28 = vadd.f32 %v4037_v4, %v12920_v17  ;;  %v4152_v58 = vmul.f32 %v12920_v17, %v12920_v17  ;;  %v3912_v48 = vmul.f32 0.2, %v9784_v59 }
 0x57c   :  { %vm3847_vm14 = vcmp.gt.f32.partialorder %v9769_v42, 0.0  ;;  %v4252_v31 = vadd.f32 %v4251_v45, %v4147_v53  ;;  %v3911_v25 = vmul.f32 0.2, %v9769_v42  ;;  %vm3849_vm15 = vcmp.gt.f32.partialorder %v9785_v62, 0.0 }
 0x57d   :  { %v4039_v63 = vrot.slane %v4038_v28, 4  ;;  %v4214_v61 = vadd.f32 %v4213_v27, %v4152_v58  ;;  %v12932_v34 = vsel %vm3848_vm13, %v9784_v59, %v3912_v48  ;;  %v3913_v56 = vmul.f32 0.2, %v9785_v62 }
 0x57e   :  { %v4064_v3 = vadd.f32 %v4063_v39, %v12932_v34  ;;  %v4154_v4 = vmul.f32 %v12932_v34, %v12932_v34  ;;  %v12937_v57 = vsel %vm3847_vm14, %v9769_v42, %v3911_v25 }
 0x57f   :  { %v4040_v20 = vadd.f32 %v4039_v63, %v4038_v28  ;;  %v4215_v19 = vrot.slane %v4214_v61, 4  ;;  %v4051_v6 = vadd.f32 %v4050_v46, %v12937_v57  ;;  %v4153_v45 = vmul.f32 %v12937_v57, %v12937_v57 }
 0x580   :  { %v12942_v2 = vsel %vm3849_vm15, %v9785_v62, %v3913_v56  ;;  %v4065_v10 = vrot.slane %v4064_v3, 4  ;;  %v4240_v24 = vadd.f32 %v4239_v60, %v4154_v4 }
 0x581   :  { %v4041_v27 = vrot.slane %v4040_v20, 2  ;;  %v4077_v59 = vadd.f32 %v4076_v52, %v12942_v2  ;;  %v4216_v53 = vadd.f32 %v4215_v19, %v4214_v61  ;;  %v4052_v39 = vrot.slane %v4051_v6, 4 }
 0x582   :  { %v4227_v28 = vadd.f32 %v4226_v21, %v4153_v45  ;;  %v4155_v42 = vmul.f32 %v12942_v2, %v12942_v2  ;;  %v4066_v48 = vadd.f32 %v4065_v10, %v4064_v3  ;;  %v4241_v63 = vrot.slane %v4240_v24, 4 }
 0x583   :  { %v4042_v58 = vadd.f32 %v4041_v27, %v4040_v20  ;;  %v4078_v46 = vrot.slane %v4077_v59, 4  ;;  %v4217_v25 = vrot.slane %v4216_v53, 2  ;;  %v4053_v43 = vadd.f32 %v4052_v39, %v4051_v6 }
 0x584   :  { %v4228_v49 = vrot.slane %v4227_v28, 4  ;;  %v4253_v62 = vadd.f32 %v4252_v31, %v4155_v42  ;;  %v4067_v23 = vrot.slane %v4066_v48, 2  ;;  %v4242_v13 = vadd.f32 %v4241_v63, %v4240_v24 }
 0x585   :  { %v4043_v56 = vrot.slane %v4042_v58, 1  ;;  %v4079_v60 = vadd.f32 %v4078_v46, %v4077_v59  ;;  %v4218_v4 = vadd.f32 %v4217_v25, %v4216_v53  ;;  %v4054_v52 = vrot.slane %v4053_v43, 2 }
 0x586   :  { %v4229_v61 = vadd.f32 %v4228_v49, %v4227_v28  ;;  %v4254_v19 = vrot.slane %v4253_v62, 4  ;;  %v4068_v45 = vadd.f32 %v4067_v23, %v4066_v48  ;;  %v4243_v18 = vrot.slane %v4242_v13, 2 }
 0x587   :  { %v4044_v21 = vadd.f32 %v4043_v56, %v4042_v58  ;;  %v4080_v55 = vrot.slane %v4079_v60, 2  ;;  %v4219_v20 = vrot.slane %v4218_v4, 1  ;;  %v4055_v3 = vadd.f32 %v4054_v52, %v4053_v43 }
 0x588   :  { %v4230_v27 = vrot.slane %v4229_v61, 2  ;;  %v4255_v10 = vadd.f32 %v4254_v19, %v4253_v62  ;;  %v4069_v6 = vrot.slane %v4068_v45, 1  ;;  %v4244_v39 = vadd.f32 %v4243_v18, %v4242_v13 }
 0x589   :  { %v4088_v38 = vmul.f32 0.015625, %v4044_v21  ;;  %v4081_v31 = vadd.f32 %v4080_v55, %v4079_v60  ;;  %v4220_v42 = vadd.f32 %v4219_v20, %v4218_v4  ;;  %v4056_v32 = vrot.slane %v4055_v3, 1 }
 0x58a   :  { %v4231_v24 = vadd.f32 %v4230_v27, %v4229_v61  ;;  %v4256_v59 = vrot.slane %v4255_v10, 2  ;;  %v4070_v63 = vadd.f32 %v4069_v6, %v4068_v45  ;;  %v4245_v49 = vrot.slane %v4244_v39, 1 }
 0x58b   :  { %v4272_v53 = vmul.f32 %v4088_v38, %v4088_v38  ;;  %v4082_v28 = vrot.slane %v4081_v31, 1  ;;  %v4264_v58 = vmul.f32 0.015625, %v4220_v42  ;;  %v4057_v23 = vadd.f32 %v4056_v32, %v4055_v3 }
 0x58c   :  { %v4232_v48 = vrot.slane %v4231_v24, 1  ;;  %v4257_v46 = vadd.f32 %v4256_v59, %v4255_v10  ;;  %v4090_v25 = vmul.f32 0.015625, %v4070_v63  ;;  %v4246_v43 = vadd.f32 %v4245_v49, %v4244_v39 }
 0x58d   :  { %v4083_v56 = vadd.f32 %v4082_v28, %v4081_v31  ;;  %v4280_v62 = vsub.f32 %v4264_v58, %v4272_v53  ;;  %v4089_v52 = vmul.f32 0.015625, %v4057_v23  ;;  %v4320_v42 = vrot.slane %v12588_v33, %v12697_v5 }
 0x58e   :  { %v4233_v19 = vadd.f32 %v4232_v48, %v4231_v24  ;;  %v4258_v13 = vrot.slane %v4257_v46, 1  ;;  %v4266_v18 = vmul.f32 0.015625, %v4246_v43  ;;  %v4274_v55 = vmul.f32 %v4090_v25, %v4090_v25 }
 0x58f   :  { %v4091_v60 = vmul.f32 0.015625, %v4083_v56  ;;  %v4288_v4 = vadd.f32 1e-05, %v4280_v62  ;;  %v4273_v21 = vmul.f32 %v4089_v52, %v4089_v52  ;;  %v4328_v59 = vrot.slane %v12588_v33, %v12700_v11 }
 0x590   :  { %v4265_v61 = vmul.f32 0.015625, %v4233_v19  ;;  %v4259_v45 = vadd.f32 %v4258_v13, %v4257_v46  ;;  %v4282_v20 = vsub.f32 %v4266_v18, %v4274_v55  ;;  %v4324_v63 = vrot.slane %v12588_v33, %v12703_v36 }
 0x591   :  { %v4275_v27 = vmul.f32 %v4091_v60, %v4091_v60  ;;  %10846 = vrsqrt.f32 %v4288_v4  ;;  %v4332_v23 = vrot.slane %v12588_v33, %v12706_v47 }
 0x592   :  { %v4281_v32 = vsub.f32 %v4265_v61, %v4273_v21  ;;  %v4267_v3 = vmul.f32 0.015625, %v4259_v45  ;;  %v4290_v10 = vadd.f32 1e-05, %v4282_v20 }
 0x594   :  { %v4289_v6 = vadd.f32 1e-05, %v4281_v32  ;;  %v4283_v39 = vsub.f32 %v4267_v3, %v4275_v27  ;;  %10848 = vrsqrt.f32 %v4290_v10  ;;  %v4472_v32 = vmul.f32 %v12598_v44, %v12424_v26 }
 0x596   :  { %10850 = vrsqrt.f32 %v4289_v6  ;;  %v4291_v31 = vadd.f32 1e-05, %v4283_v39  ;;  %v13882_v39 = vld [vmem:[#allocation60_spill] sm:$0xff] }
 0x598   :  { %10852 = vrsqrt.f32 %v4291_v31 }
 0x59b   :  { %v10847_v24 = vpop.eup %10846 }
 0x59c   :  { %v4345_v53 = vmul.f32 %v10847_v24, %v4320_v42  ;;  %v13884_v24 = vld [vmem:[#allocation45_spill] sm:$0xff] }
 0x59e   :  { %v10849_v49 = vpop.eup %10848  ;;  %v4353_v28 = vmul.f32 %v4345_v53, %v4088_v38  ;;  %v4435_v58 = vrot.slane %v4345_v53, %v11589_v0  ;;  %v13885_v53 = vld [vmem:[#allocation36_spill] sm:$0xff] }
 0x59f   :  { %v4347_v46 = vmul.f32 %v10849_v49, %v4328_v59  ;;  %v13039_v59 = vmul.f32 %v12602_v35, %v13884_v24  ;;  %v13886_v49 = vld [vmem:[#allocation38_spill] sm:$0xff]  ;;  %v13899_v24 = vld [vmem:[#allocation79_spill] sm:$0xff] }
 0x5a0   :  { %v10851_v48 = vpop.eup %10850  ;;  %v12957_v43 = vmul.f32 %v4435_v58, %v12920_v17  ;;  %v12962_v38 = vmul.f32 %v4435_v58, %v12846_v16  ;;  %v12968_v33 = vmul.f32 %v4435_v58, %v12866_v12  ;;  %v12971_v17 = vmul.f32 %v4435_v58, %v12895_v41 }
 0x5a1   :  { %v4346_v56 = vmul.f32 %v10851_v48, %v4324_v63  ;;  %v4355_v19 = vmul.f32 %v4347_v46, %v4090_v25  ;;  %v4443_v13 = vrot.slane %v4347_v46, %v11589_v0  ;;  %v13043_v63 = vmul.f32 %v12602_v35, %v13885_v53  ;;  %v13888_v48 = vld [vmem:[#allocation72_spill] sm:$0xff] }
 0x5a2   :  { %v10853_v62 = vpop.eup %10852  ;;  %v13053_v46 = vmul.f32 %v4435_v58, %v13888_v48  ;;  %v13901_v48 = vld [vmem:[#allocation77_spill] sm:$0xff] }
 0x5a3   :  { %v4354_v18 = vmul.f32 %v4346_v56, %v4089_v52  ;;  %v4439_v55 = vrot.slane %v4346_v56, %v11589_v0  ;;  %v4348_v4 = vmul.f32 %v10853_v62, %v4332_v23  ;;  %v12965_v61 = vmul.f32 %v4443_v13, %v12932_v34 }
 0x5a4   :  { %v13012_v26 = vmul.f32 %v4443_v13, %v12879_v30  ;;  %v13881_v30 = vld [vmem:[#allocation35_spill] sm:$0xff] }
 0x5a5   :  { %13872 = vst [vmem:[#allocation85_spill] sm:$0xff] %v12965_v61  ;;  %v4367_v21 = vcombine.low %v4353_v28, %v4354_v18  ;;  %v12974_v25 = vmul.f32 %v4439_v55, %v12937_v57  ;;  %v4356_v52 = vmul.f32 %v4348_v4, %v4091_v60  ;;  %v4447_v45 = vrot.slane %v4348_v4, %v11589_v0  ;;  %v13887_v28 = vld [vmem:[#allocation68_spill] sm:$0xff]  ;;  %v13914_v61 = vld [vmem:[#allocation53_spill] sm:$0xff] }
 0x5a6   :  { %v12980_v34 = vmul.f32 %v4439_v55, %v12856_v15  ;;  %v12983_v12 = vmul.f32 %v4439_v55, %v12885_v7  ;;  %v12986_v41 = vmul.f32 %v4439_v55, %v12911_v29  ;;  %v4464_v60 = vmul.f32 %v12598_v44, %v12385_v1  ;;  %13875 = vst [vmem:[#allocation88_spill] sm:$0xff] %v13012_v26  ;;  %v13877_v44 = vld [vmem:[#allocation44_spill] sm:$0xff] }
 0x5a7   :  { %v4389_v20 = vrot.slane %v4367_v21, %v13837_v40  ;;  %v4368_v16 = vcombine.low %v4355_v19, %v4356_v52  ;;  %v4511_v27 = vmul.f32 %v4447_v45, %v12942_v2  ;;  %v12995_v2 = vmul.f32 %v12643_v54, %v12353_v9  ;;  %v13890_v19 = vld [vmem:[#allocation70_spill] sm:$0xff]  ;;  %v13891_v4 = vld [vmem:[#allocation80_spill] sm:$0xff]  ;;  %v13892_v52 = vld [vmem:[#allocation69_spill] sm:$0xff] }
 0x5a8   :  { %v12999_v15 = vmul.f32 %v12643_v54, %v12383_v8  ;;  %v13002_v7 = vmul.f32 %v4447_v45, %v12858_v50  ;;  %v13005_v29 = vmul.f32 %v4447_v45, %v12890_v14  ;;  %v13009_v1 = vmul.f32 %v12602_v35, %v12345_v51  ;;  %v13878_v50 = vld [vmem:[#allocation43_spill] sm:$0xff]  ;;  %v13879_v14 = vld [vmem:[#allocation37_spill] sm:$0xff] }
 0x5a9   :  { %v4396_v57 = vrot.slane %v4368_v16, %v13837_v40  ;;  %v13015_v9 = vmul.f32 %v4447_v45, %v12918_v37  ;;  %v13019_v8 = vmul.f32 %v12602_v35, %v13877_v44  ;;  %v13023_v10 = vmul.f32 %v12643_v54, %v13878_v50  ;;  %v13895_v44 = vld [vmem:[#allocation82_spill] sm:$0xff] }
 0x5aa   :  { %13873 = vst [vmem:[#allocation86_spill] sm:$0xff] %v13002_v7  ;;  %13874 = vst [vmem:[#allocation87_spill] sm:$0xff] %v13005_v29  ;;  %v13027_v6 = vmul.f32 %v12643_v54, %v13879_v14  ;;  %v13030_v51 = vmul.f32 %v4443_v13, %v12904_v22  ;;  %v13883_v37 = vcombine.low %v13881_v30, %v13882_v39  ;;  %v3979_v54 = vld [vmem:[#allocation19] sm:$0xff]  ;;  %v13896_v14 = vld [vmem:[#allocation71_spill] sm:$0xff] }
 0x5ab   :  { %v4398_v3 = vcombine.low %v4389_v20, %v4396_v57  ;;  %13876 = vst [vmem:[#allocation89_spill] sm:$0xff] %v13015_v9  ;;  %v13047_v22 = vmul.f32 %v12602_v35, %v13886_v49  ;;  %v13050_v23 = vmul.f32 %v4435_v58, %v13887_v28  ;;  %v13059_v18 = vmul.f32 %v4439_v55, %v13890_v19  ;;  %v13893_v35 = vld [vmem:[#allocation74_spill] sm:$0xff]  ;;  %v13900_v49 = vld [vmem:[#allocation83_spill] sm:$0xff]  ;;  %v13917_v29 = vld [vmem:[#allocation56_spill] sm:$0xff] }
 0x5ac   :  { %13880 = vst [vmem:[#allocation44_spill] sm:$0xff] %v13030_v51  ;;  %v4405_v31 = vrot.slane %v13883_v37, %v13837_v40  ;;  %v13062_v21 = vmul.f32 %v4435_v58, %v13891_v4  ;;  %v13065_v20 = vmul.f32 %v4443_v13, %v13892_v52  ;;  %v13068_v16 = vmul.f32 %v4439_v55, %v13893_v35  ;;  %v13894_v57 = vld [vmem:[#allocation78_spill] sm:$0xff]  ;;  %v13897_v37 = vld [vmem:[#allocation75_spill] sm:$0xff]  ;;  %v13904_v4 = vld [vmem:[#allocation84_spill] sm:$0xff] }
 0x5ad   :  { %v4412_v42 = vrot.slane %v4398_v3, %v13837_v40  ;;  %v13889_v40 = vld [vmem:[#allocation76_spill] sm:$0xff]  ;;  %v13071_v3 = vmul.f32 %v4439_v55, %v13894_v57  ;;  %v13074_v50 = vmul.f32 %v4439_v55, %v13895_v44  ;;  %v13077_v30 = vmul.f32 %v4447_v45, %v13896_v14  ;;  %v13902_v55 = vld [vmem:[#allocation81_spill] sm:$0xff]  ;;  %v13906_v52 = vld [vmem:[#allocation34_spill] sm:$0xff] }
 0x5ae   :  { %v13056_v56 = vmul.f32 %v4435_v58, %v13889_v40  ;;  %v13898_v58 = vld [vmem:[#allocation73_spill] sm:$0xff]  ;;  %v13086_v53 = vmul.f32 %v4447_v45, %v13899_v24  ;;  %v13089_v28 = vmul.f32 %v4447_v45, %v13900_v49  ;;  %v13092_v40 = vmul.f32 %v4443_v13, %v13901_v48  ;;  %v13910_v49 = vld [vmem:[#allocation51_spill] sm:$0xff]  ;;  %v13915_v51 = vld [vmem:[#allocation54_spill] sm:$0xff] }
 0x5af   :  { %v4413_v62 = vcombine.low %v4405_v31, %v4412_v42  ;;  %v13080_v31 = vmul.f32 %v4447_v45, %v13897_v37  ;;  %v13083_v42 = vmul.f32 %v4443_v13, %v13898_v58  ;;  %v13095_v19 = vmul.f32 %v4443_v13, %v13902_v55  ;;  %v13907_v44 = vld [vmem:[#allocation41_spill] sm:$0xff]  ;;  %v13908_v45 = vld [vmem:[#allocation40_spill] sm:$0xff] }
 0x5b0   :  { %v13911_v55 = vld [vmem:[#allocation52_spill] sm:$0xff] }
 0x5b1   :  { %v4415_v39 = vsub.f32 %v3979_v54, %v4413_v62  ;;  %13903 = vst [vmem:[#allocation43_spill] sm:$0xff] %v13095_v19  ;;  %v13098_v54 = vmul.f32 %v4443_v13, %v13904_v4  ;;  %v13919_v19 = vld [vmem:[#allocation49_spill] sm:$0xff] }
 0x5b3   :  { %13905 = vst [vmem:[#allocation37_spill] sm:$0xff] %v13098_v54  ;;  %v13101_v62 = vrot.slane %v4415_v39, %v12706_v47  ;;  %v4520_v35 = vrot.slane %v4415_v39, %v13906_v52  ;;  %v4516_v57 = vrot.slane %v4415_v39, %v11589_v0  ;;  %v13106_v14 = vrot.slane %v4415_v39, %v13907_v44  ;;  %v13912_v44 = vld [vmem:[#allocation42_spill] sm:$0xff] }
 0x5b4   :  { %v13109_v37 = vrot.slane %v4415_v39, %v13908_v45  ;;  %v13112_v58 = vrot.slane %v4415_v39, %v12703_v36  ;;  %v13115_v24 = vrot.slane %v4415_v39, %v12697_v5  ;;  %v13118_v13 = vrot.slane %v4415_v39, %v12700_v11  ;;  %v13913_v45 = vld [vmem:[#allocation47_spill] sm:$0xff] }
 0x5b5   :  { %v13121_v47 = vadd.f32 %v13101_v62, %v4511_v27  ;;  %v4554_v48 = vadd.f32 %v4520_v35, %v13910_v49  ;;  %v4562_v4 = vadd.f32 %v4520_v35, %v13911_v55  ;;  %v4553_v52 = vadd.f32 %v4516_v57, %v13912_v44  ;;  %v10282_v39 = vld [vmem:[#allocation21 + $0x380] ss:$28 sps:$4 sm:$0xff]   ;;  %v10285_v11 = vld [vmem:[#allocation21 + $0x388] ss:$28 sps:$4 sm:$0xff]  }
 0x5b6   :  { %v4561_v0 = vadd.f32 %v4516_v57, %v13913_v45  ;;  %v4570_v36 = vadd.f32 %v4520_v35, %v13914_v61  ;;  %v4578_v9 = vadd.f32 %v4520_v35, %v13915_v51  ;;  %v4569_v5 = vadd.f32 %v4516_v57, %v4464_v60  ;;  %v13916_v27 = vld [vmem:[#allocation55_spill] sm:$0xff]  ;;  %v13918_v44 = vld [vmem:[#allocation48_spill] sm:$0xff]  ;;  %v10290_v60 = vld [vmem:[#allocation21 + $0x3bc] ss:$28 sps:$4 sm:$0xff]  }
 0x5b7   :  { %13909 = vst [vmem:[#allocation35_spill] sm:$0xff] %v13121_v47  ;;  %v13129_v26 = vpack.c.bf16 %v4562_v4, %v4554_v48  ;;  %v4577_v54 = vadd.f32 %v4516_v57, %v4472_v32  ;;  %v4586_v47 = vadd.f32 %v4520_v35, %v13916_v27  ;;  %v4594_v49 = vadd.f32 %v4520_v35, %v13917_v29  ;;  %v10293_v51 = vld [vmem:[#allocation21 + $0x3c4] ss:$28 sps:$4 sm:$0xff]   ;;  %v13920_v4 = vld [vmem:[#allocation58_spill] sm:$0xff] }
 0x5b8   :  { %v13133_v7 = vpack.c.bf16 %v4561_v0, %v4553_v52  ;;  %v13135_v55 = vpack.c.bf16 %v4578_v9, %v4570_v36  ;;  %v4585_v45 = vadd.f32 %v4516_v57, %v13918_v44  ;;  %v4593_v61 = vadd.f32 %v4516_v57, %v13919_v19  ;;  %v13921_v36 = vld [vmem:[#allocation50_spill] sm:$0xff]  ;;  %v13922_v19 = vld [vmem:[#allocation59_spill] sm:$0xff] }
 0x5b9   :  { %7534 = vmatprep.mubr.bf16.mxu1 %v13129_v26  ;;  %7826 = vmatprep.mubr.bf16.mxu0 %v13129_v26  ;;  %v13141_v48 = vpack.c.bf16 %v4577_v54, %v4569_v5  ;;  %v13143_v32 = vpack.c.bf16 %v4594_v49, %v4586_v47  ;;  %v4602_v29 = vadd.f32 %v4520_v35, %v13920_v4  ;;  %v10288_v27 = vld [vmem:[#allocation21 + $0x3b8] ss:$28 sps:$4 sm:$0xff]   ;;  %v10291_v44 = vld [vmem:[#allocation21 + $0x3c0] ss:$28 sps:$4 sm:$0xff]  }
 0x5ba   :  { %7535 = vmatmul.mubr.bf16.vlgmr.msra.gmra.mrb[32].mxu1 %v13133_v7  ;;  %7827 = vmatmul.mubr.bf16.vlgmr.msra.gmra.mrb[80].mxu0 %v13133_v7  ;;  %v13148_v0 = vpack.c.bf16 %v4593_v61, %v4585_v45  ;;  %v4610_v9 = vadd.f32 %v4520_v35, %v13921_v36  ;;  %v4601_v52 = vadd.f32 %v4516_v57, %v13922_v19  ;;  %v13923_v5 = vld [vmem:[#allocation39_spill] sm:$0xff]  ;;  %v10296_v45 = vld [vmem:[#allocation21 + $0x3f4] ss:$28 sps:$4 sm:$0xff]   ;;  %v10299_v35 = vld [vmem:[#allocation21 + $0x3fc] ss:$28 sps:$4 sm:$0xff]  }
 0x5bb   :  { %7576 = vmatpush1.bf16.msra.mxu1 %v10282_v39  ;;  %7868 = vmatpush1.bf16.msra.mxu0 %v10285_v11  ;;  %v4609_v54 = vadd.f32 %v4516_v57, %v13923_v5  ;;  %v4556_v47 = vadd.f32 %v13106_v14, %v12995_v2  ;;  %v4564_v49 = vadd.f32 %v13106_v14, %v12999_v15  ;;  %v13924_v36 = vld [vmem:[#allocation61_spill] sm:$0xff]  ;;  %v13925_v19 = vld [vmem:[#allocation62_spill] sm:$0xff] }
 0x5bc   :  { %7544 = vmatprep.mubr.bf16.mxu1 %v13135_v55  ;;  %7836 = vmatprep.mubr.bf16.mxu0 %v13135_v55  ;;  %v13159_v61 = vpack.c.bf16 %v4610_v9, %v4602_v29  ;;  %v4555_v11 = vadd.f32 %v13109_v37, %v13009_v1  ;;  %v4563_v57 = vadd.f32 %v13109_v37, %v13019_v8  ;;  %v10305_v5 = vld [vmem:[#allocation21 + $0x434] ss:$28 sps:$4 sm:$0xff]  }
 0x5bd   :  { %7577 = vmatprep.subr.bf16.mxu1 %v10290_v60  ;;  %7869 = vmatprep.subr.bf16.mxu0 %v10293_v51  ;;  %v13165_v2 = vpack.c.bf16 %v4609_v54, %v4601_v52  ;;  %v13167_v39 = vpack.c.bf16 %v4564_v49, %v4556_v47  ;;  %v4572_v15 = vadd.f32 %v13106_v14, %v13023_v10  ;;  %v10294_v60 = vld [vmem:[#allocation21 + $0x3f0] ss:$28 sps:$4 sm:$0xff]   ;;  %v10297_v51 = vld [vmem:[#allocation21 + $0x3f8] ss:$28 sps:$4 sm:$0xff]  }
 0x5be   :  { %v13171_v4 = vpack.c.bf16 %v4563_v57, %v4555_v11  ;;  %v4580_v29 = vadd.f32 %v13106_v14, %v13027_v6  ;;  %v4571_v1 = vadd.f32 %v13109_v37, %v13039_v59  ;;  %v4579_v8 = vadd.f32 %v13109_v37, %v13043_v63  ;;  %v13926_v63 = vld [vmem:[#allocation63_spill] sm:$0xff]  ;;  %v13927_v47 = vld [vmem:[#allocation64_spill] sm:$0xff]  ;;  %v13928_v11 = vld [vmem:[#allocation57_spill] sm:$0xff] }
 0x5bf   :  { %7578 = vmatpush1.bf16.msra.mxu1 %v10288_v27  ;;  %7870 = vmatpush1.bf16.msra.mxu0 %v10291_v44  ;;  %v4588_v9 = vadd.f32 %v13106_v14, %v13924_v36  ;;  %v4596_v10 = vadd.f32 %v13106_v14, %v13925_v19  ;;  %v4587_v52 = vadd.f32 %v13109_v37, %v13047_v22  ;;  %v10302_v44 = vld [vmem:[#allocation21 + $0x42c] ss:$28 sps:$4 sm:$0xff]   ;;  %v13929_v22 = vld [vmem:[#allocation65_spill] sm:$0xff] }
 0x5c0   :  { %7579 = vmatprep.subr.bf16.mxu1 %v10296_v45  ;;  %7871 = vmatprep.subr.bf16.mxu0 %v10299_v35  ;;  %v13185_v6 = vpack.c.bf16 %v4580_v29, %v4572_v15  ;;  %v13187_v59 = vpack.c.bf16 %v4579_v8, %v4571_v1  ;;  %v4595_v27 = vadd.f32 %v13109_v37, %v13926_v63  ;;  %v13930_v15 = vld [vmem:[#allocation46_spill] sm:$0xff]  ;;  %v10300_v8 = vld [vmem:[#allocation21 + $0x428] ss:$28 sps:$4 sm:$0xff]   ;;  %v10303_v36 = vld [vmem:[#allocation21 + $0x430] ss:$28 sps:$4 sm:$0xff]  }
 0x5c1   :  { %v13191_v54 = vpack.c.bf16 %v4596_v10, %v4588_v9  ;;  %v4604_v49 = vadd.f32 %v13106_v14, %v13927_v47  ;;  %v4612_v57 = vadd.f32 %v13106_v14, %v13928_v11  ;;  %v4603_v45 = vadd.f32 %v13109_v37, %v13929_v22  ;;  %v10311_v10 = vld [vmem:[#allocation21 + $0x46c] ss:$28 sps:$4 sm:$0xff]   ;;  %v10317_v11 = vld [vmem:[#allocation21 + $0x4a4] ss:$28 sps:$4 sm:$0xff]  }
 0x5c2   :  { %7545 = vmatmul.mubr.bf16.gmra.mrb[36].mxu1 %v13141_v48  ;;  %7837 = vmatmul.mubr.bf16.gmra.mrb[84].mxu0 %v13141_v48  ;;  %v13201_v35 = vpack.c.bf16 %v4595_v27, %v4587_v52  ;;  %v4611_v29 = vadd.f32 %v13109_v37, %v13930_v15  ;;  %v4558_v1 = vadd.f32 %v13112_v58, %v13059_v18  ;;  %v10308_v37 = vld [vmem:[#allocation21 + $0x464] ss:$28 sps:$4 sm:$0xff]  }
 0x5c3   :  { %7580 = vmatpush1.bf16.msra.mxu1 %v10294_v60  ;;  %7872 = vmatpush1.bf16.msra.mxu0 %v10297_v51  ;;  %v13207_v14 = vpack.c.bf16 %v4612_v57, %v4604_v49  ;;  %v4566_v9 = vadd.f32 %v13112_v58, %v13068_v16  ;;  %v4557_v19 = vadd.f32 %v13115_v24, %v13050_v23  ;;  %v10314_v49 = vld [vmem:[#allocation21 + $0x49c] ss:$28 sps:$4 sm:$0xff]  }
 0x5c4   :  { %7554 = vmatprep.mubr.bf16.mxu1 %v13143_v32  ;;  %7846 = vmatprep.mubr.bf16.mxu0 %v13143_v32  ;;  %v13215_v52 = vpack.c.bf16 %v4611_v29, %v4603_v45  ;;  %v4565_v18 = vadd.f32 %v13115_v24, %v13053_v46  ;;  %v4574_v60 = vadd.f32 %v13112_v58, %v13071_v3 }
 0x5c5   :  { %7581 = vmatprep.subr.bf16.mxu1 %v10302_v44  ;;  %7873 = vmatprep.subr.bf16.mxu0 %v10305_v5  ;;  %v13221_v16 = vpack.c.bf16 %v4566_v9, %v4558_v1  ;;  %v4582_v23 = vadd.f32 %v13112_v58, %v13074_v50  ;;  %v4573_v51 = vadd.f32 %v13115_v24, %v13056_v56  ;;  %v10306_v44 = vld [vmem:[#allocation21 + $0x460] ss:$28 sps:$4 sm:$0xff]   ;;  %v10309_v5 = vld [vmem:[#allocation21 + $0x468] ss:$28 sps:$4 sm:$0xff]  }
 0x5c6   :  { %v13227_v63 = vpack.c.bf16 %v4565_v18, %v4557_v19  ;;  %v4581_v27 = vadd.f32 %v13115_v24, %v13062_v21  ;;  %v4590_v46 = vadd.f32 %v13112_v58, %v12980_v34  ;;  %v4598_v3 = vadd.f32 %v13112_v58, %v12983_v12  ;;  %v13933_v18 = vld [vmem:[#allocation87_spill] sm:$0xff] }
 0x5c7   :  { %7582 = vmatpush1.bf16.msra.mxu1 %v10300_v8  ;;  %7874 = vmatpush1.bf16.msra.mxu0 %v10303_v36  ;;  %v13235_v47 = vpack.c.bf16 %v4582_v23, %v4574_v60  ;;  %v4589_v56 = vadd.f32 %v13115_v24, %v12962_v38  ;;  %v4597_v50 = vadd.f32 %v13115_v24, %v12968_v33  ;;  %v13931_v36 = vld [vmem:[#allocation43_spill] sm:$0xff]  ;;  %v13934_v60 = vld [vmem:[#allocation37_spill] sm:$0xff] }
 0x5c8   :  { %7583 = vmatprep.subr.bf16.mxu1 %v10308_v37  ;;  %7875 = vmatprep.subr.bf16.mxu0 %v10311_v10  ;;  %v13241_v21 = vpack.c.bf16 %v4581_v27, %v4573_v51  ;;  %v13243_v34 = vpack.c.bf16 %v4598_v3, %v4590_v46  ;;  %v4606_v12 = vadd.f32 %v13112_v58, %v12986_v41  ;;  %v13932_v37 = vld [vmem:[#allocation86_spill] sm:$0xff]  ;;  %v10318_v23 = vld [vmem:[#allocation21 + $0x4d0] ss:$28 sps:$4 sm:$0xff]  }
 0x5c9   :  { %v13247_v57 = vpack.c.bf16 %v4597_v50, %v4589_v56  ;;  %v4614_v22 = vadd.f32 %v13112_v58, %v12974_v25  ;;  %v4605_v38 = vadd.f32 %v13115_v24, %v12971_v17  ;;  %v4613_v33 = vadd.f32 %v13115_v24, %v12957_v43  ;;  %v10312_v25 = vld [vmem:[#allocation21 + $0x498] ss:$28 sps:$4 sm:$0xff]   ;;  %v10315_v17 = vld [vmem:[#allocation21 + $0x4a0] ss:$28 sps:$4 sm:$0xff]   ;;  %v13937_v56 = vld [vmem:[#allocation44_spill] sm:$0xff] }
 0x5ca   :  { %7555 = vmatmul.mubr.bf16.gmra.mrb[40].mxu1 %v13148_v0  ;;  %7847 = vmatmul.mubr.bf16.gmra.mrb[88].mxu0 %v13148_v0  ;;  %v4560_v41 = vadd.f32 %v13101_v62, %v13077_v30  ;;  %v4568_v45 = vadd.f32 %v13101_v62, %v13080_v31  ;;  %v4559_v15 = vadd.f32 %v13118_v13, %v13065_v20  ;;  %v10320_v30 = vld [vmem:[#allocation21 + $0x4d4] ss:$28 sps:$4 sm:$0xff]   ;;  %v10323_v31 = vld [vmem:[#allocation21 + $0x4dc] ss:$28 sps:$4 sm:$0xff]  }
 0x5cb   :  { %7584 = vmatpush1.bf16.msra.mxu1 %v10306_v44  ;;  %7876 = vmatpush1.bf16.msra.mxu0 %v10309_v5  ;;  %v13263_v58 = vpack.c.bf16 %v4614_v22, %v4606_v12  ;;  %v13265_v43 = vpack.c.bf16 %v4613_v33, %v4605_v38  ;;  %v4567_v24 = vadd.f32 %v13118_v13, %v13083_v42  ;;  %v10321_v51 = vld [vmem:[#allocation21 + $0x4d8] ss:$28 sps:$4 sm:$0xff]   ;;  %v13939_v33 = vld [vmem:[#allocation35_spill] sm:$0xff] }
 0x5cc   :  { %7564 = vmatprep.mubr.bf16.mxu1 %v13159_v61  ;;  %7856 = vmatprep.mubr.bf16.mxu0 %v13159_v61  ;;  %v13271_v29 = vpack.c.bf16 %v4568_v45, %v4560_v41  ;;  %v4576_v20 = vadd.f32 %v13101_v62, %v13086_v53  ;;  %v4584_v1 = vadd.f32 %v13101_v62, %v13089_v28  ;;  %v13936_v3 = vld [vmem:[#allocation89_spill] sm:$0xff]  ;;  %v10324_v45 = vld [vmem:[#allocation21 + $0x508] ss:$28 sps:$4 sm:$0xff]  }
 0x5cd   :  { %7585 = vmatprep.subr.bf16.mxu1 %v10314_v49  ;;  %7877 = vmatprep.subr.bf16.mxu0 %v10317_v11  ;;  %v13277_v8 = vpack.c.bf16 %v4567_v24, %v4559_v15  ;;  %v4575_v42 = vadd.f32 %v13118_v13, %v13092_v40  ;;  %v4583_v9 = vadd.f32 %v13118_v13, %v13931_v36  ;;  %v13935_v40 = vld [vmem:[#allocation88_spill] sm:$0xff]  ;;  %v13938_v12 = vld [vmem:[#allocation85_spill] sm:$0xff]  ;;  %v10347_v36 = vld [vmem:[#allocation21 + $0x5bc] ss:$28 sps:$4 sm:$0xff]  }
 0x5ce   :  { %v13283_v19 = vpack.c.bf16 %v4584_v1, %v4576_v20  ;;  %v4592_v10 = vadd.f32 %v13101_v62, %v13932_v37  ;;  %v4600_v53 = vadd.f32 %v13101_v62, %v13933_v18  ;;  %v4591_v28 = vadd.f32 %v13118_v13, %v13934_v60  ;;  %v10326_v11 = vld [vmem:[#allocation21 + $0x50c] ss:$28 sps:$4 sm:$0xff]   ;;  %v10329_v22 = vld [vmem:[#allocation21 + $0x514] ss:$28 sps:$4 sm:$0xff]   ;;  %v10339_v1 = vld [vmem:[#allocation21 + $0x580] ss:$28 sps:$4 sm:$0xff]  }
 0x5cf   :  { %7586 = vmatpush1.bf16.msra.mxu1 %v10312_v25  ;;  %7878 = vmatpush1.bf16.msra.mxu0 %v10315_v17  ;;  %v13291_v27 = vpack.c.bf16 %v4583_v9, %v4575_v42  ;;  %v4599_v46 = vadd.f32 %v13118_v13, %v13935_v40  ;;  %v4608_v44 = vadd.f32 %v13101_v62, %v13936_v3  ;;  %v10327_v15 = vld [vmem:[#allocation21 + $0x510] ss:$28 sps:$4 sm:$0xff]   ;;  %v10330_v17 = vld [vmem:[#allocation21 + $0x540] ss:$28 sps:$4 sm:$0xff]   ;;  %v10333_v24 = vld [vmem:[#allocation21 + $0x548] ss:$28 sps:$4 sm:$0xff]  }
 0x5d0   :  { %7587 = vmatprep.subr.bf16.mxu1 %v10320_v30  ;;  %7879 = vmatprep.subr.bf16.mxu0 %v10323_v31  ;;  %v13297_v5 = vpack.c.bf16 %v4600_v53, %v4592_v10  ;;  %v4607_v50 = vadd.f32 %v13118_v13, %v13937_v56  ;;  %v4615_v49 = vadd.f32 %v13118_v13, %v13938_v12  ;;  %v10332_v13 = vld [vmem:[#allocation21 + $0x544] ss:$28 sps:$4 sm:$0xff]   ;;  %v10335_v25 = vld [vmem:[#allocation21 + $0x54c] ss:$28 sps:$4 sm:$0xff]   ;;  %v10338_v30 = vld [vmem:[#allocation21 + $0x57c] ss:$28 sps:$4 sm:$0xff]  }
 0x5d1   :  { %v13303_v38 = vpack.c.bf16 %v4599_v46, %v4591_v28  ;;  %v13306_v41 = vpack.c.bf16 %v13939_v33, %v4608_v44  ;;  %v10341_v31 = vld [vmem:[#allocation21 + $0x584] ss:$28 sps:$4 sm:$0xff]   ;;  %v10336_v20 = vld [vmem:[#allocation21 + $0x578] ss:$28 sps:$4 sm:$0xff]   ;;  %v10342_v9 = vld [vmem:[#allocation21 + $0x5b0] ss:$28 sps:$4 sm:$0xff]  }
 0x5d2   :  { %7565 = vmatmul.mubr.bf16.gmra.mrb[44].mxu1 %v13165_v2  ;;  %7857 = vmatmul.mubr.bf16.gmra.mrb[92].mxu0 %v13165_v2  ;;  %v13310_v62 = vpack.c.bf16 %v4615_v49, %v4607_v50  ;;  %v10344_v42 = vld [vmem:[#allocation21 + $0x5b4] ss:$28 sps:$4 sm:$0xff]   ;;  %v10350_v10 = vld [vmem:[#allocation21 + $0x5ec] ss:$28 sps:$4 sm:$0xff]   ;;  %v10356_v28 = vld [vmem:[#allocation21 + $0x624] ss:$28 sps:$4 sm:$0xff]  }
 0x5d3   :  { %7588 = vmatpush1.bf16.msra.mxu1 %v10318_v23  ;;  %7880 = vmatpush1.bf16.msra.mxu0 %v10321_v51  ;;  %v10345_v37 = vld [vmem:[#allocation21 + $0x5b8] ss:$28 sps:$4 sm:$0xff]   ;;  %v10348_v53 = vld [vmem:[#allocation21 + $0x5e8] ss:$28 sps:$4 sm:$0xff]   ;;  %v10351_v60 = vld [vmem:[#allocation21 + $0x5f0] ss:$28 sps:$4 sm:$0xff]  }
 0x5d4   :  { %7607 = vmatprep.mubr.bf16.mxu1 %v13167_v39  ;;  %7899 = vmatprep.mubr.bf16.mxu0 %v13167_v39  ;;  %v10353_v18 = vld [vmem:[#allocation21 + $0x5f4] ss:$28 sps:$4 sm:$0xff]   ;;  %v10359_v23 = vld [vmem:[#allocation21 + $0x62c] ss:$28 sps:$4 sm:$0xff]   ;;  %v10354_v51 = vld [vmem:[#allocation21 + $0x620] ss:$28 sps:$4 sm:$0xff]  }
 0x5d5   :  { %7589 = vmatprep.subr.bf16.mxu1 %v10326_v11  ;;  %7881 = vmatprep.subr.bf16.mxu0 %v10329_v22  ;;  %v10357_v40 = vld [vmem:[#allocation21 + $0x628] ss:$28 sps:$4 sm:$0xff]   ;;  %v10362_v46 = vld [vmem:[#allocation21 + $0x65c] ss:$28 sps:$4 sm:$0xff]   ;;  %v10368_v50 = vld [vmem:[#allocation21 + $0x694] ss:$28 sps:$4 sm:$0xff]  }
 0x5d6   :  { %v10365_v3 = vld [vmem:[#allocation21 + $0x664] ss:$28 sps:$4 sm:$0xff]   ;;  %v10360_v44 = vld [vmem:[#allocation21 + $0x658] ss:$28 sps:$4 sm:$0xff]   ;;  %v10366_v49 = vld [vmem:[#allocation21 + $0x690] ss:$28 sps:$4 sm:$0xff]  }
 0x5d7   :  { %7590 = vmatpush1.bf16.msra.mxu1 %v10324_v45  ;;  %7882 = vmatpush1.bf16.msra.mxu0 %v10327_v15  ;;  %v10363_v56 = vld [vmem:[#allocation21 + $0x660] ss:$28 sps:$4 sm:$0xff]   ;;  %v10369_v11 = vld [vmem:[#allocation21 + $0x698] ss:$28 sps:$4 sm:$0xff]   ;;  %v10374_v22 = vld [vmem:[#allocation21 + $0x6cc] ss:$28 sps:$4 sm:$0xff]  }
 0x5d8   :  { %7591 = vmatprep.subr.bf16.mxu1 %v10332_v13  ;;  %7883 = vmatprep.subr.bf16.mxu0 %v10335_v25  ;;  %v10371_v12 = vld [vmem:[#allocation21 + $0x69c] ss:$28 sps:$4 sm:$0xff]   ;;  %v10377_v33 = vld [vmem:[#allocation21 + $0x6d4] ss:$28 sps:$4 sm:$0xff]   ;;  %v10372_v45 = vld [vmem:[#allocation21 + $0x6c8] ss:$28 sps:$4 sm:$0xff]  }
 0x5d9   :  { %v10375_v15 = vld [vmem:[#allocation21 + $0x6d0] ss:$28 sps:$4 sm:$0xff]   ;;  %v10380_v13 = vld [vmem:[#allocation21 + $0x704] ss:$28 sps:$4 sm:$0xff]  }
 0x5da   :  { %v10383_v25 = vld [vmem:[#allocation21 + $0x70c] ss:$28 sps:$4 sm:$0xff]  }
 0x5db   :  { %7592 = vmatpush1.bf16.msra.mxu1 %v10330_v17  ;;  %7884 = vmatpush1.bf16.msra.mxu0 %v10333_v24  ;;  %v10378_v17 = vld [vmem:[#allocation21 + $0x700] ss:$28 sps:$4 sm:$0xff]   ;;  %v10381_v24 = vld [vmem:[#allocation21 + $0x708] ss:$28 sps:$4 sm:$0xff]  }
 0x5dc   :  { %7593 = vmatprep.subr.bf16.mxu1 %v10338_v30  ;;  %7885 = vmatprep.subr.bf16.mxu0 %v10341_v31  ;;  %v10386_v30 = vld [vmem:[#allocation21 + $0x73c] ss:$28 sps:$4 sm:$0xff]   ;;  %v10389_v31 = vld [vmem:[#allocation21 + $0x744] ss:$28 sps:$4 sm:$0xff]  }
 0x5df   :  { %7594 = vmatpush1.bf16.msra.mxu1 %v10336_v20  ;;  %7886 = vmatpush1.bf16.msra.mxu0 %v10339_v1  ;;  %v10384_v20 = vld [vmem:[#allocation21 + $0x738] ss:$28 sps:$4 sm:$0xff]   ;;  %v10387_v1 = vld [vmem:[#allocation21 + $0x740] ss:$28 sps:$4 sm:$0xff]  }
 0x5e0   :  { %7595 = vmatprep.subr.bf16.mxu1 %v10344_v42  ;;  %7887 = vmatprep.subr.bf16.mxu0 %v10347_v36  ;;  %v10392_v42 = vld [vmem:[#allocation21 + $0x774] ss:$28 sps:$4 sm:$0xff]   ;;  %v10395_v36 = vld [vmem:[#allocation21 + $0x77c] ss:$28 sps:$4 sm:$0xff]  }
 0x5e3   :  { %7596 = vmatpush1.bf16.msra.mxu1 %v10342_v9  ;;  %7888 = vmatpush1.bf16.msra.mxu0 %v10345_v37  ;;  %v10390_v9 = vld [vmem:[#allocation21 + $0x770] ss:$28 sps:$4 sm:$0xff]   ;;  %v10393_v37 = vld [vmem:[#allocation21 + $0x778] ss:$28 sps:$4 sm:$0xff]  }
 0x5e4   :  { %7597 = vmatprep.subr.bf16.mxu1 %v10350_v10  ;;  %7889 = vmatprep.subr.bf16.mxu0 %v10353_v18  ;;  %v10398_v10 = vld [vmem:[#allocation21 + $0x7ac] ss:$28 sps:$4 sm:$0xff]   ;;  %v10401_v18 = vld [vmem:[#allocation21 + $0x7b4] ss:$28 sps:$4 sm:$0xff]  }
 0x5e7   :  { %7598 = vmatpush1.bf16.msra.mxu1 %v10348_v53  ;;  %7890 = vmatpush1.bf16.msra.mxu0 %v10351_v60  ;;  %v10396_v53 = vld [vmem:[#allocation21 + $0x7a8] ss:$28 sps:$4 sm:$0xff]   ;;  %v10399_v60 = vld [vmem:[#allocation21 + $0x7b0] ss:$28 sps:$4 sm:$0xff]  }
 0x5e8   :  { %7599 = vmatprep.subr.bf16.mxu1 %v10356_v28  ;;  %7891 = vmatprep.subr.bf16.mxu0 %v10359_v23  ;;  %v10404_v28 = vld [vmem:[#allocation21 + $0x7e4] ss:$28 sps:$4 sm:$0xff]   ;;  %v10407_v23 = vld [vmem:[#allocation21 + $0x7ec] ss:$28 sps:$4 sm:$0xff]  }
 0x5eb   :  { %7600 = vmatpush1.bf16.msra.mxu1 %v10354_v51  ;;  %7892 = vmatpush1.bf16.msra.mxu0 %v10357_v40  ;;  %v10402_v51 = vld [vmem:[#allocation21 + $0x7e0] ss:$28 sps:$4 sm:$0xff]   ;;  %v10405_v40 = vld [vmem:[#allocation21 + $0x7e8] ss:$28 sps:$4 sm:$0xff]  }
 0x5ec   :  { %7601 = vmatprep.subr.bf16.mxu1 %v10362_v46  ;;  %7893 = vmatprep.subr.bf16.mxu0 %v10365_v3  ;;  %v10410_v46 = vld [vmem:[#allocation21 + $0x81c] ss:$28 sps:$4 sm:$0xff]   ;;  %v10413_v3 = vld [vmem:[#allocation21 + $0x824] ss:$28 sps:$4 sm:$0xff]  }
 0x5ef   :  { %7602 = vmatpush1.bf16.msra.mxu1 %v10360_v44  ;;  %7894 = vmatpush1.bf16.msra.mxu0 %v10363_v56  ;;  %v10408_v44 = vld [vmem:[#allocation21 + $0x818] ss:$28 sps:$4 sm:$0xff]   ;;  %v10411_v56 = vld [vmem:[#allocation21 + $0x820] ss:$28 sps:$4 sm:$0xff]  }
 0x5f0   :  { %7603 = vmatprep.subr.bf16.mxu1 %v10368_v50  ;;  %7895 = vmatprep.subr.bf16.mxu0 %v10371_v12  ;;  %v10416_v50 = vld [vmem:[#allocation21 + $0x854] ss:$28 sps:$4 sm:$0xff]   ;;  %v10419_v12 = vld [vmem:[#allocation21 + $0x85c] ss:$28 sps:$4 sm:$0xff]  }
 0x5f3   :  { %7604 = vmatpush1.bf16.msra.mxu1 %v10366_v49  ;;  %7896 = vmatpush1.bf16.msra.mxu0 %v10369_v11  ;;  %v10414_v49 = vld [vmem:[#allocation21 + $0x850] ss:$28 sps:$4 sm:$0xff]   ;;  %v10417_v11 = vld [vmem:[#allocation21 + $0x858] ss:$28 sps:$4 sm:$0xff]  }
 0x5f4   :  { %7605 = vmatprep.subr.bf16.mxu1 %v10374_v22  ;;  %7897 = vmatprep.subr.bf16.mxu0 %v10377_v33  ;;  %v10422_v22 = vld [vmem:[#allocation21 + $0x88c] ss:$28 sps:$4 sm:$0xff]   ;;  %v10425_v33 = vld [vmem:[#allocation21 + $0x894] ss:$28 sps:$4 sm:$0xff]  }
 0x5f7   :  { %7606 = vmatpush1.bf16.msra.mxu1 %v10372_v45  ;;  %7898 = vmatpush1.bf16.msra.mxu0 %v10375_v15  ;;  %v10420_v45 = vld [vmem:[#allocation21 + $0x888] ss:$28 sps:$4 sm:$0xff]   ;;  %v10423_v15 = vld [vmem:[#allocation21 + $0x890] ss:$28 sps:$4 sm:$0xff]  }
 0x5f8   :  { %7648 = vmatprep.subr.bf16.mxu1 %v10380_v13  ;;  %7940 = vmatprep.subr.bf16.mxu0 %v10383_v25  ;;  %v10428_v13 = vld [vmem:[#allocation21 + $0x8c4] ss:$28 sps:$4 sm:$0xff]   ;;  %v10431_v25 = vld [vmem:[#allocation21 + $0x8cc] ss:$28 sps:$4 sm:$0xff]  }
 0x5fa   :  { %7608 = vmatmul.mubr.bf16.vlgmr.msra.gmra.mrb[32].mxu1 %v13171_v4  ;;  %7900 = vmatmul.mubr.bf16.vlgmr.msra.gmra.mrb[80].mxu0 %v13171_v4 }
 0x5fb   :  { %7617 = vmatprep.mubr.bf16.mxu1 %v13185_v6  ;;  %7649 = vmatpush1.bf16.msra.mxu1 %v10378_v17  ;;  %v10426_v17 = vld [vmem:[#allocation21 + $0x8c0] ss:$28 sps:$4 sm:$0xff]  }
 0x5fc   :  { %7909 = vmatprep.mubr.bf16.mxu0 %v13185_v6  ;;  %7941 = vmatpush1.bf16.msra.mxu0 %v10381_v24  ;;  %v10429_v24 = vld [vmem:[#allocation21 + $0x8c8] ss:$28 sps:$4 sm:$0xff]  }
 0x5fd   :  { %7650 = vmatprep.subr.bf16.mxu1 %v10386_v30  ;;  %7942 = vmatprep.subr.bf16.mxu0 %v10389_v31  ;;  %v10434_v30 = vld [vmem:[#allocation21 + $0x8fc] ss:$28 sps:$4 sm:$0xff]   ;;  %v10437_v31 = vld [vmem:[#allocation21 + $0x904] ss:$28 sps:$4 sm:$0xff]  }
 0x5ff   :  { %7651 = vmatpush1.bf16.msra.mxu1 %v10384_v20  ;;  %v10432_v20 = vld [vmem:[#allocation21 + $0x8f8] ss:$28 sps:$4 sm:$0xff]  }
 0x600   :  { %7943 = vmatpush1.bf16.msra.mxu0 %v10387_v1  ;;  %7652 = vmatprep.subr.bf16.mxu1 %v10392_v42  ;;  %v10435_v1 = vld [vmem:[#allocation21 + $0x900] ss:$28 sps:$4 sm:$0xff]   ;;  %v10440_v42 = vld [vmem:[#allocation21 + $0x934] ss:$28 sps:$4 sm:$0xff]  }
 0x601   :  { %7944 = vmatprep.subr.bf16.mxu0 %v10395_v36  ;;  %v10443_v36 = vld [vmem:[#allocation21 + $0x93c] ss:$28 sps:$4 sm:$0xff]  }
 0x602   :  { %7618 = vmatmul.mubr.bf16.gmra.mrb[36].mxu1 %v13187_v59  ;;  %7910 = vmatmul.mubr.bf16.gmra.mrb[84].mxu0 %v13187_v59 }
 0x603   :  { %7627 = vmatprep.mubr.bf16.mxu1 %v13191_v54  ;;  %7653 = vmatpush1.bf16.msra.mxu1 %v10390_v9  ;;  %v10438_v9 = vld [vmem:[#allocation21 + $0x930] ss:$28 sps:$4 sm:$0xff]  }
 0x604   :  { %7919 = vmatprep.mubr.bf16.mxu0 %v13191_v54  ;;  %7945 = vmatpush1.bf16.msra.mxu0 %v10393_v37  ;;  %v10441_v37 = vld [vmem:[#allocation21 + $0x938] ss:$28 sps:$4 sm:$0xff]  }
 0x605   :  { %7654 = vmatprep.subr.bf16.mxu1 %v10398_v10  ;;  %7946 = vmatprep.subr.bf16.mxu0 %v10401_v18  ;;  %v10446_v10 = vld [vmem:[#allocation21 + $0x96c] ss:$28 sps:$4 sm:$0xff]   ;;  %v10449_v18 = vld [vmem:[#allocation21 + $0x974] ss:$28 sps:$4 sm:$0xff]  }
 0x607   :  { %7655 = vmatpush1.bf16.msra.mxu1 %v10396_v53  ;;  %v10444_v53 = vld [vmem:[#allocation21 + $0x968] ss:$28 sps:$4 sm:$0xff]  }
 0x608   :  { %7947 = vmatpush1.bf16.msra.mxu0 %v10399_v60  ;;  %7656 = vmatprep.subr.bf16.mxu1 %v10404_v28  ;;  %v10447_v60 = vld [vmem:[#allocation21 + $0x970] ss:$28 sps:$4 sm:$0xff]   ;;  %v10452_v28 = vld [vmem:[#allocation21 + $0x9a4] ss:$28 sps:$4 sm:$0xff]  }
 0x609   :  { %7948 = vmatprep.subr.bf16.mxu0 %v10407_v23  ;;  %v10455_v23 = vld [vmem:[#allocation21 + $0x9ac] ss:$28 sps:$4 sm:$0xff]  }
 0x60a   :  { %7628 = vmatmul.mubr.bf16.gmra.mrb[40].mxu1 %v13201_v35  ;;  %7920 = vmatmul.mubr.bf16.gmra.mrb[88].mxu0 %v13201_v35 }
 0x60b   :  { %7637 = vmatprep.mubr.bf16.mxu1 %v13207_v14  ;;  %7657 = vmatpush1.bf16.msra.mxu1 %v10402_v51  ;;  %v10450_v51 = vld [vmem:[#allocation21 + $0x9a0] ss:$28 sps:$4 sm:$0xff]  }
 0x60c   :  { %7929 = vmatprep.mubr.bf16.mxu0 %v13207_v14  ;;  %7949 = vmatpush1.bf16.msra.mxu0 %v10405_v40  ;;  %v10453_v40 = vld [vmem:[#allocation21 + $0x9a8] ss:$28 sps:$4 sm:$0xff]  }
 0x60d   :  { %7658 = vmatprep.subr.bf16.mxu1 %v10410_v46  ;;  %7950 = vmatprep.subr.bf16.mxu0 %v10413_v3  ;;  %v10458_v46 = vld [vmem:[#allocation21 + $0x9dc] ss:$28 sps:$4 sm:$0xff]   ;;  %v10461_v3 = vld [vmem:[#allocation21 + $0x9e4] ss:$28 sps:$4 sm:$0xff]  }
 0x60f   :  { %7659 = vmatpush1.bf16.msra.mxu1 %v10408_v44  ;;  %v10456_v44 = vld [vmem:[#allocation21 + $0x9d8] ss:$28 sps:$4 sm:$0xff]  }
 0x610   :  { %7951 = vmatpush1.bf16.msra.mxu0 %v10411_v56  ;;  %7660 = vmatprep.subr.bf16.mxu1 %v10416_v50  ;;  %v10459_v56 = vld [vmem:[#allocation21 + $0x9e0] ss:$28 sps:$4 sm:$0xff]   ;;  %v10464_v50 = vld [vmem:[#allocation21 + $0xa14] ss:$28 sps:$4 sm:$0xff]  }
 0x611   :  { %7952 = vmatprep.subr.bf16.mxu0 %v10419_v12  ;;  %v10467_v12 = vld [vmem:[#allocation21 + $0xa1c] ss:$28 sps:$4 sm:$0xff]  }
 0x612   :  { %7638 = vmatmul.mubr.bf16.gmra.mrb[44].mxu1 %v13215_v52  ;;  %7930 = vmatmul.mubr.bf16.gmra.mrb[92].mxu0 %v13215_v52 }
 0x613   :  { %7661 = vmatpush1.bf16.msra.mxu1 %v10414_v49  ;;  %7680 = vmatprep.mubr.bf16.mxu1 %v13221_v16  ;;  %v10462_v49 = vld [vmem:[#allocation21 + $0xa10] ss:$28 sps:$4 sm:$0xff]  }
 0x614   :  { %7953 = vmatpush1.bf16.msra.mxu0 %v10417_v11  ;;  %7972 = vmatprep.mubr.bf16.mxu0 %v13221_v16  ;;  %v10465_v11 = vld [vmem:[#allocation21 + $0xa18] ss:$28 sps:$4 sm:$0xff]  }
 0x615   :  { %7662 = vmatprep.subr.bf16.mxu1 %v10422_v22  ;;  %7954 = vmatprep.subr.bf16.mxu0 %v10425_v33  ;;  %v10470_v22 = vld [vmem:[#allocation21 + $0xa4c] ss:$28 sps:$4 sm:$0xff]   ;;  %v10473_v33 = vld [vmem:[#allocation21 + $0xa54] ss:$28 sps:$4 sm:$0xff]  }
 0x617   :  { %7663 = vmatpush1.bf16.msra.mxu1 %v10420_v45  ;;  %v10468_v45 = vld [vmem:[#allocation21 + $0xa48] ss:$28 sps:$4 sm:$0xff]  }
 0x618   :  { %7955 = vmatpush1.bf16.msra.mxu0 %v10423_v15  ;;  %7664 = vmatprep.subr.bf16.mxu1 %v10428_v13  ;;  %v10471_v15 = vld [vmem:[#allocation21 + $0xa50] ss:$28 sps:$4 sm:$0xff]   ;;  %v10476_v13 = vld [vmem:[#allocation21 + $0xa84] ss:$28 sps:$4 sm:$0xff]  }
 0x619   :  { %7956 = vmatprep.subr.bf16.mxu0 %v10431_v25  ;;  %v10479_v25 = vld [vmem:[#allocation21 + $0xa8c] ss:$28 sps:$4 sm:$0xff]  }
 0x61b   :  { %7665 = vmatpush1.bf16.msra.mxu1 %v10426_v17  ;;  %v10474_v17 = vld [vmem:[#allocation21 + $0xa80] ss:$28 sps:$4 sm:$0xff]  }
 0x61c   :  { %7957 = vmatpush1.bf16.msra.mxu0 %v10429_v24  ;;  %7666 = vmatprep.subr.bf16.mxu1 %v10434_v30  ;;  %v10477_v24 = vld [vmem:[#allocation21 + $0xa88] ss:$28 sps:$4 sm:$0xff]   ;;  %v10482_v30 = vld [vmem:[#allocation21 + $0xabc] ss:$28 sps:$4 sm:$0xff]  }
 0x61d   :  { %7958 = vmatprep.subr.bf16.mxu0 %v10437_v31  ;;  %v10485_v31 = vld [vmem:[#allocation21 + $0xac4] ss:$28 sps:$4 sm:$0xff]  }
 0x61f   :  { %7667 = vmatpush1.bf16.msra.mxu1 %v10432_v20  ;;  %v10480_v20 = vld [vmem:[#allocation21 + $0xab8] ss:$28 sps:$4 sm:$0xff]  }
 0x620   :  { %7959 = vmatpush1.bf16.msra.mxu0 %v10435_v1  ;;  %7668 = vmatprep.subr.bf16.mxu1 %v10440_v42  ;;  %v10483_v1 = vld [vmem:[#allocation21 + $0xac0] ss:$28 sps:$4 sm:$0xff]   ;;  %v10488_v42 = vld [vmem:[#allocation21 + $0xaf4] ss:$28 sps:$4 sm:$0xff]  }
 0x621   :  { %7960 = vmatprep.subr.bf16.mxu0 %v10443_v36  ;;  %v10491_v36 = vld [vmem:[#allocation21 + $0xafc] ss:$28 sps:$4 sm:$0xff]  }
 0x623   :  { %7669 = vmatpush1.bf16.msra.mxu1 %v10438_v9  ;;  %v10486_v9 = vld [vmem:[#allocation21 + $0xaf0] ss:$28 sps:$4 sm:$0xff]  }
 0x624   :  { %7961 = vmatpush1.bf16.msra.mxu0 %v10441_v37  ;;  %7670 = vmatprep.subr.bf16.mxu1 %v10446_v10  ;;  %v10489_v37 = vld [vmem:[#allocation21 + $0xaf8] ss:$28 sps:$4 sm:$0xff]   ;;  %v10494_v10 = vld [vmem:[#allocation21 + $0xb2c] ss:$28 sps:$4 sm:$0xff]  }
 0x625   :  { %7962 = vmatprep.subr.bf16.mxu0 %v10449_v18  ;;  %v10497_v18 = vld [vmem:[#allocation21 + $0xb34] ss:$28 sps:$4 sm:$0xff]  }
 0x627   :  { %7671 = vmatpush1.bf16.msra.mxu1 %v10444_v53  ;;  %v10492_v53 = vld [vmem:[#allocation21 + $0xb28] ss:$28 sps:$4 sm:$0xff]  }
 0x628   :  { %7963 = vmatpush1.bf16.msra.mxu0 %v10447_v60  ;;  %7672 = vmatprep.subr.bf16.mxu1 %v10452_v28  ;;  %v10495_v60 = vld [vmem:[#allocation21 + $0xb30] ss:$28 sps:$4 sm:$0xff]   ;;  %v10500_v28 = vld [vmem:[#allocation21 + $0xb64] ss:$28 sps:$4 sm:$0xff]  }
 0x629   :  { %7964 = vmatprep.subr.bf16.mxu0 %v10455_v23  ;;  %v10503_v23 = vld [vmem:[#allocation21 + $0xb6c] ss:$28 sps:$4 sm:$0xff]  }
 0x62b   :  { %7673 = vmatpush1.bf16.msra.mxu1 %v10450_v51  ;;  %v10498_v51 = vld [vmem:[#allocation21 + $0xb60] ss:$28 sps:$4 sm:$0xff]  }
 0x62c   :  { %7965 = vmatpush1.bf16.msra.mxu0 %v10453_v40  ;;  %7674 = vmatprep.subr.bf16.mxu1 %v10458_v46  ;;  %v10501_v40 = vld [vmem:[#allocation21 + $0xb68] ss:$28 sps:$4 sm:$0xff]   ;;  %v10506_v46 = vld [vmem:[#allocation21 + $0xb9c] ss:$28 sps:$4 sm:$0xff]  }
 0x62d   :  { %7966 = vmatprep.subr.bf16.mxu0 %v10461_v3  ;;  %v10509_v3 = vld [vmem:[#allocation21 + $0xba4] ss:$28 sps:$4 sm:$0xff]  }
 0x62f   :  { %7675 = vmatpush1.bf16.msra.mxu1 %v10456_v44  ;;  %v10504_v44 = vld [vmem:[#allocation21 + $0xb98] ss:$28 sps:$4 sm:$0xff]  }
 0x630   :  { %7967 = vmatpush1.bf16.msra.mxu0 %v10459_v56  ;;  %7676 = vmatprep.subr.bf16.mxu1 %v10464_v50  ;;  %v10507_v56 = vld [vmem:[#allocation21 + $0xba0] ss:$28 sps:$4 sm:$0xff]   ;;  %v10512_v50 = vld [vmem:[#allocation21 + $0xbd4] ss:$28 sps:$4 sm:$0xff]  }
 0x631   :  { %7968 = vmatprep.subr.bf16.mxu0 %v10467_v12  ;;  %v10515_v12 = vld [vmem:[#allocation21 + $0xbdc] ss:$28 sps:$4 sm:$0xff]  }
 0x633   :  { %7677 = vmatpush1.bf16.msra.mxu1 %v10462_v49  ;;  %v10510_v49 = vld [vmem:[#allocation21 + $0xbd0] ss:$28 sps:$4 sm:$0xff]  }
 0x634   :  { %7969 = vmatpush1.bf16.msra.mxu0 %v10465_v11  ;;  %7678 = vmatprep.subr.bf16.mxu1 %v10470_v22  ;;  %v10513_v11 = vld [vmem:[#allocation21 + $0xbd8] ss:$28 sps:$4 sm:$0xff]   ;;  %v10518_v22 = vld [vmem:[#allocation21 + $0xc0c] ss:$28 sps:$4 sm:$0xff]  }
 0x635   :  { %7970 = vmatprep.subr.bf16.mxu0 %v10473_v33  ;;  %v10521_v33 = vld [vmem:[#allocation21 + $0xc14] ss:$28 sps:$4 sm:$0xff]  }
 0x637   :  { %7679 = vmatpush1.bf16.msra.mxu1 %v10468_v45  ;;  %v10516_v45 = vld [vmem:[#allocation21 + $0xc08] ss:$28 sps:$4 sm:$0xff]  }
 0x638   :  { %7971 = vmatpush1.bf16.msra.mxu0 %v10471_v15  ;;  %7721 = vmatprep.subr.bf16.mxu1 %v10476_v13  ;;  %v10519_v15 = vld [vmem:[#allocation21 + $0xc10] ss:$28 sps:$4 sm:$0xff]   ;;  %v10524_v13 = vld [vmem:[#allocation21 + $0xc44] ss:$28 sps:$4 sm:$0xff]  }
 0x639   :  { %8013 = vmatprep.subr.bf16.mxu0 %v10479_v25  ;;  %v10527_v25 = vld [vmem:[#allocation21 + $0xc4c] ss:$28 sps:$4 sm:$0xff]  }
 0x63a   :  { %7681 = vmatmul.mubr.bf16.vlgmr.msra.gmra.mrb[32].mxu1 %v13227_v63 }
 0x63b   :  { %7973 = vmatmul.mubr.bf16.vlgmr.msra.gmra.mrb[80].mxu0 %v13227_v63  ;;  %7690 = vmatprep.mubr.bf16.mxu1 %v13235_v47 }
 0x63c   :  { %7722 = vmatpush1.bf16.msra.mxu1 %v10474_v17  ;;  %7982 = vmatprep.mubr.bf16.mxu0 %v13235_v47  ;;  %v10522_v17 = vld [vmem:[#allocation21 + $0xc40] ss:$28 sps:$4 sm:$0xff]  }
 0x63d   :  { %8014 = vmatpush1.bf16.msra.mxu0 %v10477_v24  ;;  %7723 = vmatprep.subr.bf16.mxu1 %v10482_v30  ;;  %v10525_v24 = vld [vmem:[#allocation21 + $0xc48] ss:$28 sps:$4 sm:$0xff]   ;;  %v10530_v30 = vld [vmem:[#allocation21 + $0xc7c] ss:$28 sps:$4 sm:$0xff]  }
 0x63e   :  { %8015 = vmatprep.subr.bf16.mxu0 %v10485_v31  ;;  %v10533_v31 = vld [vmem:[#allocation21 + $0xc84] ss:$28 sps:$4 sm:$0xff]  }
 0x640   :  { %7724 = vmatpush1.bf16.msra.mxu1 %v10480_v20  ;;  %v10528_v20 = vld [vmem:[#allocation21 + $0xc78] ss:$28 sps:$4 sm:$0xff]  }
 0x641   :  { %8016 = vmatpush1.bf16.msra.mxu0 %v10483_v1  ;;  %7725 = vmatprep.subr.bf16.mxu1 %v10488_v42  ;;  %v10531_v1 = vld [vmem:[#allocation21 + $0xc80] ss:$28 sps:$4 sm:$0xff]   ;;  %v10536_v42 = vld [vmem:[#allocation21 + $0xcb4] ss:$28 sps:$4 sm:$0xff]  }
 0x642   :  { %7691 = vmatmul.mubr.bf16.gmra.mrb[36].mxu1 %v13241_v21  ;;  %8017 = vmatprep.subr.bf16.mxu0 %v10491_v36  ;;  %v10539_v36 = vld [vmem:[#allocation21 + $0xcbc] ss:$28 sps:$4 sm:$0xff]  }
 0x643   :  { %7983 = vmatmul.mubr.bf16.gmra.mrb[84].mxu0 %v13241_v21  ;;  %7700 = vmatprep.mubr.bf16.mxu1 %v13243_v34 }
 0x644   :  { %7726 = vmatpush1.bf16.msra.mxu1 %v10486_v9  ;;  %7992 = vmatprep.mubr.bf16.mxu0 %v13243_v34  ;;  %v10534_v9 = vld [vmem:[#allocation21 + $0xcb0] ss:$28 sps:$4 sm:$0xff]  }
 0x645   :  { %8018 = vmatpush1.bf16.msra.mxu0 %v10489_v37  ;;  %7727 = vmatprep.subr.bf16.mxu1 %v10494_v10  ;;  %v10537_v37 = vld [vmem:[#allocation21 + $0xcb8] ss:$28 sps:$4 sm:$0xff]   ;;  %v10542_v10 = vld [vmem:[#allocation21 + $0xcec] ss:$28 sps:$4 sm:$0xff]  }
 0x646   :  { %8019 = vmatprep.subr.bf16.mxu0 %v10497_v18  ;;  %v10545_v18 = vld [vmem:[#allocation21 + $0xcf4] ss:$28 sps:$4 sm:$0xff]  }
 0x648   :  { %7728 = vmatpush1.bf16.msra.mxu1 %v10492_v53  ;;  %v10540_v53 = vld [vmem:[#allocation21 + $0xce8] ss:$28 sps:$4 sm:$0xff]  }
 0x649   :  { %8020 = vmatpush1.bf16.msra.mxu0 %v10495_v60  ;;  %7729 = vmatprep.subr.bf16.mxu1 %v10500_v28  ;;  %v10543_v60 = vld [vmem:[#allocation21 + $0xcf0] ss:$28 sps:$4 sm:$0xff]   ;;  %v10548_v28 = vld [vmem:[#allocation21 + $0xd24] ss:$28 sps:$4 sm:$0xff]  }
 0x64a   :  { %7701 = vmatmul.mubr.bf16.gmra.mrb[40].mxu1 %v13247_v57  ;;  %8021 = vmatprep.subr.bf16.mxu0 %v10503_v23  ;;  %v10551_v23 = vld [vmem:[#allocation21 + $0xd2c] ss:$28 sps:$4 sm:$0xff]  }
 0x64b   :  { %7993 = vmatmul.mubr.bf16.gmra.mrb[88].mxu0 %v13247_v57  ;;  %7710 = vmatprep.mubr.bf16.mxu1 %v13263_v58 }
 0x64c   :  { %7730 = vmatpush1.bf16.msra.mxu1 %v10498_v51  ;;  %8002 = vmatprep.mubr.bf16.mxu0 %v13263_v58  ;;  %v10546_v51 = vld [vmem:[#allocation21 + $0xd20] ss:$28 sps:$4 sm:$0xff]  }
 0x64d   :  { %8022 = vmatpush1.bf16.msra.mxu0 %v10501_v40  ;;  %7731 = vmatprep.subr.bf16.mxu1 %v10506_v46  ;;  %v10549_v40 = vld [vmem:[#allocation21 + $0xd28] ss:$28 sps:$4 sm:$0xff]   ;;  %v10554_v46 = vld [vmem:[#allocation21 + $0xd5c] ss:$28 sps:$4 sm:$0xff]  }
 0x64e   :  { %8023 = vmatprep.subr.bf16.mxu0 %v10509_v3  ;;  %v10557_v3 = vld [vmem:[#allocation21 + $0xd64] ss:$28 sps:$4 sm:$0xff]  }
 0x650   :  { %7732 = vmatpush1.bf16.msra.mxu1 %v10504_v44  ;;  %v10552_v44 = vld [vmem:[#allocation21 + $0xd58] ss:$28 sps:$4 sm:$0xff]  }
 0x651   :  { %8024 = vmatpush1.bf16.msra.mxu0 %v10507_v56  ;;  %7733 = vmatprep.subr.bf16.mxu1 %v10512_v50  ;;  %v10555_v56 = vld [vmem:[#allocation21 + $0xd60] ss:$28 sps:$4 sm:$0xff]   ;;  %v10560_v50 = vld [vmem:[#allocation21 + $0xd94] ss:$28 sps:$4 sm:$0xff]  }
 0x652   :  { %7711 = vmatmul.mubr.bf16.gmra.mrb[44].mxu1 %v13265_v43  ;;  %8025 = vmatprep.subr.bf16.mxu0 %v10515_v12  ;;  %v10563_v12 = vld [vmem:[#allocation21 + $0xd9c] ss:$28 sps:$4 sm:$0xff]  }
 0x653   :  { %8003 = vmatmul.mubr.bf16.gmra.mrb[92].mxu0 %v13265_v43  ;;  %7753 = vmatprep.mubr.bf16.mxu1 %v13271_v29 }
 0x654   :  { %7734 = vmatpush1.bf16.msra.mxu1 %v10510_v49  ;;  %8045 = vmatprep.mubr.bf16.mxu0 %v13271_v29  ;;  %v10558_v49 = vld [vmem:[#allocation21 + $0xd90] ss:$28 sps:$4 sm:$0xff]  }
 0x655   :  { %8026 = vmatpush1.bf16.msra.mxu0 %v10513_v11  ;;  %7735 = vmatprep.subr.bf16.mxu1 %v10518_v22  ;;  %v10561_v11 = vld [vmem:[#allocation21 + $0xd98] ss:$28 sps:$4 sm:$0xff]   ;;  %v10566_v22 = vld [vmem:[#allocation21 + $0xdcc] ss:$28 sps:$4 sm:$0xff]  }
 0x656   :  { %8027 = vmatprep.subr.bf16.mxu0 %v10521_v33  ;;  %v10569_v33 = vld [vmem:[#allocation21 + $0xdd4] ss:$28 sps:$4 sm:$0xff]  }
 0x658   :  { %7736 = vmatpush1.bf16.msra.mxu1 %v10516_v45  ;;  %v10564_v45 = vld [vmem:[#allocation21 + $0xdc8] ss:$28 sps:$4 sm:$0xff]  }
 0x659   :  { %8028 = vmatpush1.bf16.msra.mxu0 %v10519_v15  ;;  %7737 = vmatprep.subr.bf16.mxu1 %v10524_v13  ;;  %v10567_v15 = vld [vmem:[#allocation21 + $0xdd0] ss:$28 sps:$4 sm:$0xff]  }
 0x65a   :  { %8029 = vmatprep.subr.bf16.mxu0 %v10527_v25  ;;  %v10572_v13 = vld [vmem:[#allocation21 + $0x14] ss:$28 sps:$4 sm:$0xff]  }
 0x65b   :  { %v10573_v25 = vld [vmem:[#allocation21 + $0x1d8] ss:$28 sps:$4 sm:$0xff]  }
 0x65c   :  { %7738 = vmatpush1.bf16.msra.mxu1 %v10522_v17  ;;  %v10570_v17 = vld [vmem:[#allocation21 + $0x10] ss:$28 sps:$4 sm:$0xff]  }
 0x65d   :  { %8030 = vmatpush1.bf16.msra.mxu0 %v10525_v24  ;;  %7739 = vmatprep.subr.bf16.mxu1 %v10530_v30  ;;  %v10574_v24 = vld [vmem:[#allocation21 + $0x18] ss:$28 sps:$4 sm:$0xff]   ;;  %v10577_v30 = vld [vmem:[#allocation21 + $0x4c] ss:$28 sps:$4 sm:$0xff]  }
 0x65e   :  { %8031 = vmatprep.subr.bf16.mxu0 %v10533_v31  ;;  %v10578_v31 = vld [vmem:[#allocation21 + $0x210] ss:$28 sps:$4 sm:$0xff]  }
 0x660   :  { %7740 = vmatpush1.bf16.msra.mxu1 %v10528_v20  ;;  %v10575_v20 = vld [vmem:[#allocation21 + $0x48] ss:$28 sps:$4 sm:$0xff]  }
 0x661   :  { %8032 = vmatpush1.bf16.msra.mxu0 %v10531_v1  ;;  %7741 = vmatprep.subr.bf16.mxu1 %v10536_v42  ;;  %v10579_v1 = vld [vmem:[#allocation21 + $0x50] ss:$28 sps:$4 sm:$0xff]   ;;  %v10582_v42 = vld [vmem:[#allocation21 + $0x84] ss:$28 sps:$4 sm:$0xff]  }
 0x662   :  { %8033 = vmatprep.subr.bf16.mxu0 %v10539_v36  ;;  %v10583_v36 = vld [vmem:[#allocation21 + $0x248] ss:$28 sps:$4 sm:$0xff]  }
 0x664   :  { %7742 = vmatpush1.bf16.msra.mxu1 %v10534_v9  ;;  %v10580_v9 = vld [vmem:[#allocation21 + $0x80] ss:$28 sps:$4 sm:$0xff]  }
 0x665   :  { %8034 = vmatpush1.bf16.msra.mxu0 %v10537_v37  ;;  %7743 = vmatprep.subr.bf16.mxu1 %v10542_v10  ;;  %v10584_v37 = vld [vmem:[#allocation21 + $0x88] ss:$28 sps:$4 sm:$0xff]   ;;  %v10587_v10 = vld [vmem:[#allocation21 + $0xbc] ss:$28 sps:$4 sm:$0xff]  }
 0x666   :  { %8035 = vmatprep.subr.bf16.mxu0 %v10545_v18  ;;  %v10588_v18 = vld [vmem:[#allocation21 + $0x280] ss:$28 sps:$4 sm:$0xff]  }
 0x668   :  { %7744 = vmatpush1.bf16.msra.mxu1 %v10540_v53  ;;  %v10585_v53 = vld [vmem:[#allocation21 + $0xb8] ss:$28 sps:$4 sm:$0xff]  }
 0x669   :  { %8036 = vmatpush1.bf16.msra.mxu0 %v10543_v60  ;;  %7745 = vmatprep.subr.bf16.mxu1 %v10548_v28  ;;  %v10589_v60 = vld [vmem:[#allocation21 + $0xc0] ss:$28 sps:$4 sm:$0xff]   ;;  %v10592_v28 = vld [vmem:[#allocation21 + $0xf4] ss:$28 sps:$4 sm:$0xff]  }
 0x66a   :  { %8037 = vmatprep.subr.bf16.mxu0 %v10551_v23  ;;  %v10593_v23 = vld [vmem:[#allocation21 + $0x2b8] ss:$28 sps:$4 sm:$0xff]  }
 0x66c   :  { %7746 = vmatpush1.bf16.msra.mxu1 %v10546_v51  ;;  %v10590_v51 = vld [vmem:[#allocation21 + $0xf0] ss:$28 sps:$4 sm:$0xff]  }
 0x66d   :  { %8038 = vmatpush1.bf16.msra.mxu0 %v10549_v40  ;;  %7747 = vmatprep.subr.bf16.mxu1 %v10554_v46  ;;  %v10594_v40 = vld [vmem:[#allocation21 + $0xf8] ss:$28 sps:$4 sm:$0xff]   ;;  %v10597_v46 = vld [vmem:[#allocation21 + $0x12c] ss:$28 sps:$4 sm:$0xff]  }
 0x66e   :  { %8039 = vmatprep.subr.bf16.mxu0 %v10557_v3  ;;  %v10598_v3 = vld [vmem:[#allocation21 + $0x2f0] ss:$28 sps:$4 sm:$0xff]  }
 0x670   :  { %7748 = vmatpush1.bf16.msra.mxu1 %v10552_v44  ;;  %v10595_v44 = vld [vmem:[#allocation21 + $0x128] ss:$28 sps:$4 sm:$0xff]  }
 0x671   :  { %8040 = vmatpush1.bf16.msra.mxu0 %v10555_v56  ;;  %7749 = vmatprep.subr.bf16.mxu1 %v10560_v50  ;;  %v10599_v56 = vld [vmem:[#allocation21 + $0x130] ss:$28 sps:$4 sm:$0xff]   ;;  %v10602_v50 = vld [vmem:[#allocation21 + $0x164] ss:$28 sps:$4 sm:$0xff]  }
 0x672   :  { %8041 = vmatprep.subr.bf16.mxu0 %v10563_v12  ;;  %v10603_v12 = vld [vmem:[#allocation21 + $0x328] ss:$28 sps:$4 sm:$0xff]  }
 0x674   :  { %7750 = vmatpush1.bf16.msra.mxu1 %v10558_v49  ;;  %v10600_v49 = vld [vmem:[#allocation21 + $0x160] ss:$28 sps:$4 sm:$0xff]  }
 0x675   :  { %8042 = vmatpush1.bf16.msra.mxu0 %v10561_v11  ;;  %7751 = vmatprep.subr.bf16.mxu1 %v10566_v22  ;;  %v10604_v11 = vld [vmem:[#allocation21 + $0x168] ss:$28 sps:$4 sm:$0xff]   ;;  %v10607_v22 = vld [vmem:[#allocation21 + $0x19c] ss:$28 sps:$4 sm:$0xff]  }
 0x676   :  { %8043 = vmatprep.subr.bf16.mxu0 %v10569_v33  ;;  %v10608_v33 = vld [vmem:[#allocation21 + $0x360] ss:$28 sps:$4 sm:$0xff]  }
 0x678   :  { %7752 = vmatpush1.bf16.msra.mxu1 %v10564_v45  ;;  %v10605_v45 = vld [vmem:[#allocation21 + $0x198] ss:$28 sps:$4 sm:$0xff]  }
 0x679   :  { %8044 = vmatpush1.bf16.msra.mxu0 %v10567_v15  ;;  %8086 = vmatprep.subr.bf16.mxu1 %v10572_v13  ;;  %v10609_v15 = vld [vmem:[#allocation21 + $0x1a0] ss:$28 sps:$4 sm:$0xff]   ;;  %v10612_v13 = vld [vmem:[#allocation21 + $0x1d4] ss:$28 sps:$4 sm:$0xff]  }
 0x67a   :  { %9546 = vmatprep.subr.bf16.mxu0 %v10573_v25  ;;  %v10613_v25 = vld [vmem:[#allocation21 + $0x558] ss:$28 sps:$4 sm:$0xff]  }
 0x67b   :  { %7754 = vmatmul.mubr.bf16.vlgmr.msra.gmra.mrb[32].mxu1 %v13277_v8 }
 0x67c   :  { %8046 = vmatmul.mubr.bf16.vlgmr.msra.gmra.mrb[80].mxu0 %v13277_v8  ;;  %7763 = vmatprep.mubr.bf16.mxu1 %v13283_v19 }
 0x67d   :  { %8055 = vmatprep.mubr.bf16.mxu0 %v13283_v19  ;;  %8087 = vmatpush1.bf16.msra.mxu1 %v10570_v17  ;;  %v10610_v17 = vld [vmem:[#allocation21 + $0x1d0] ss:$28 sps:$4 sm:$0xff]  }
 0x67e   :  { %9547 = vmatpush3.bf16.msra.mxu0 %v10574_v24  ;;  %8088 = vmatprep.subr.bf16.mxu1 %v10577_v30  ;;  %v10614_v24 = vld [vmem:[#allocation21 + $0x398] ss:$28 sps:$4 sm:$0xff]   ;;  %v10617_v30 = vld [vmem:[#allocation21 + $0x20c] ss:$28 sps:$4 sm:$0xff]  }
 0x67f   :  { %9548 = vmatprep.subr.bf16.mxu0 %v10578_v31  ;;  %v10618_v31 = vld [vmem:[#allocation21 + $0x590] ss:$28 sps:$4 sm:$0xff]  }
 0x681   :  { %8089 = vmatpush1.bf16.msra.mxu1 %v10575_v20  ;;  %v10615_v20 = vld [vmem:[#allocation21 + $0x208] ss:$28 sps:$4 sm:$0xff]  }
 0x682   :  { %9549 = vmatpush3.bf16.msra.mxu0 %v10579_v1  ;;  %8090 = vmatprep.subr.bf16.mxu1 %v10582_v42  ;;  %v10622_v1 = vld [vmem:[#allocation21 + $0x244] ss:$28 sps:$4 sm:$0xff]  }
 0x683   :  { %7764 = vmatmul.mubr.bf16.gmra.mrb[36].mxu1 %v13291_v27  ;;  %9550 = vmatprep.subr.bf16.mxu0 %v10583_v36  ;;  %v10623_v42 = vld [vmem:[#allocation21 + $0x5c8] ss:$28 sps:$4 sm:$0xff]   ;;  %v10620_v36 = vld [vmem:[#allocation21 + $0x240] ss:$28 sps:$4 sm:$0xff]  }
 0x684   :  { %8056 = vmatmul.mubr.bf16.gmra.mrb[84].mxu0 %v13291_v27  ;;  %7773 = vmatprep.mubr.bf16.mxu1 %v13297_v5 }
 0x685   :  { %8065 = vmatprep.mubr.bf16.mxu0 %v13297_v5  ;;  %8091 = vmatpush1.bf16.msra.mxu1 %v10580_v9  ;;  %v10624_v9 = vld [vmem:[#allocation21 + $0x408] ss:$28 sps:$4 sm:$0xff]  }
 0x686   :  { %9551 = vmatpush3.bf16.msra.mxu0 %v10584_v37  ;;  %8092 = vmatprep.subr.bf16.mxu1 %v10587_v10  ;;  %v10627_v37 = vld [vmem:[#allocation21 + $0x27c] ss:$28 sps:$4 sm:$0xff]  }
 0x687   :  { %9552 = vmatprep.subr.bf16.mxu0 %v10588_v18  ;;  %v10628_v10 = vld [vmem:[#allocation21 + $0x600] ss:$28 sps:$4 sm:$0xff]   ;;  %v10625_v18 = vld [vmem:[#allocation21 + $0x278] ss:$28 sps:$4 sm:$0xff]  }
 0x689   :  { %8093 = vmatpush1.bf16.msra.mxu1 %v10585_v53  ;;  %v10629_v53 = vld [vmem:[#allocation21 + $0x440] ss:$28 sps:$4 sm:$0xff]  }
 0x68a   :  { %9553 = vmatpush3.bf16.msra.mxu0 %v10589_v60  ;;  %8094 = vmatprep.subr.bf16.mxu1 %v10592_v28  ;;  %v10632_v60 = vld [vmem:[#allocation21 + $0x2b4] ss:$28 sps:$4 sm:$0xff]  }
 0x68b   :  { %7774 = vmatmul.mubr.bf16.gmra.mrb[40].mxu1 %v13303_v38  ;;  %9554 = vmatprep.subr.bf16.mxu0 %v10593_v23  ;;  %v10633_v28 = vld [vmem:[#allocation21 + $0x638] ss:$28 sps:$4 sm:$0xff]   ;;  %v10630_v23 = vld [vmem:[#allocation21 + $0x2b0] ss:$28 sps:$4 sm:$0xff]  }
 0x68c   :  { %8066 = vmatmul.mubr.bf16.gmra.mrb[88].mxu0 %v13303_v38  ;;  %7783 = vmatprep.mubr.bf16.mxu1 %v13306_v41 }
 0x68d   :  { %8075 = vmatprep.mubr.bf16.mxu0 %v13306_v41  ;;  %8095 = vmatpush1.bf16.msra.mxu1 %v10590_v51  ;;  %v10634_v51 = vld [vmem:[#allocation21 + $0x478] ss:$28 sps:$4 sm:$0xff]  }
 0x68e   :  { %9555 = vmatpush3.bf16.msra.mxu0 %v10594_v40  ;;  %8096 = vmatprep.subr.bf16.mxu1 %v10597_v46  ;;  %v10637_v40 = vld [vmem:[#allocation21 + $0x2ec] ss:$28 sps:$4 sm:$0xff]  }
 0x68f   :  { %9556 = vmatprep.subr.bf16.mxu0 %v10598_v3  ;;  %v10638_v46 = vld [vmem:[#allocation21 + $0x670] ss:$28 sps:$4 sm:$0xff]   ;;  %v10635_v3 = vld [vmem:[#allocation21 + $0x2e8] ss:$28 sps:$4 sm:$0xff]  }
 0x691   :  { %8097 = vmatpush1.bf16.msra.mxu1 %v10595_v44  ;;  %v10639_v44 = vld [vmem:[#allocation21 + $0x4b0] ss:$28 sps:$4 sm:$0xff]  }
 0x692   :  { %9557 = vmatpush3.bf16.msra.mxu0 %v10599_v56  ;;  %8098 = vmatprep.subr.bf16.mxu1 %v10602_v50  ;;  %v10642_v56 = vld [vmem:[#allocation21 + $0x324] ss:$28 sps:$4 sm:$0xff]  }
 0x693   :  { %7784 = vmatmul.mubr.bf16.gmra.mrb[44].mxu1 %v13310_v62  ;;  %9558 = vmatprep.subr.bf16.mxu0 %v10603_v12  ;;  %v10643_v50 = vld [vmem:[#allocation21 + $0x6a8] ss:$28 sps:$4 sm:$0xff]   ;;  %v10640_v12 = vld [vmem:[#allocation21 + $0x320] ss:$28 sps:$4 sm:$0xff]  }
 0x694   :  { %8076 = vmatmul.mubr.bf16.gmra.mrb[92].mxu0 %v13310_v62  ;;  %8118 = vmatprep.mubr.bf16.mxu1 %v13129_v26 }
 0x695   :  { %8099 = vmatpush1.bf16.msra.mxu1 %v10600_v49  ;;  %8410 = vmatprep.mubr.bf16.mxu0 %v13129_v26  ;;  %v10619_v26 = vld [vmem:[#allocation21 + $0x3d0] ss:$28 sps:$4 sm:$0xff]   ;;  %v10644_v49 = vld [vmem:[#allocation21 + $0x4e8] ss:$28 sps:$4 sm:$0xff]  }
 0x696   :  { %9559 = vmatpush3.bf16.msra.mxu0 %v10604_v11  ;;  %8100 = vmatprep.subr.bf16.mxu1 %v10607_v22  ;;  %v10647_v11 = vld [vmem:[#allocation21 + $0x35c] ss:$28 sps:$4 sm:$0xff]  }
 0x697   :  { %9560 = vmatprep.subr.bf16.mxu0 %v10608_v33  ;;  %v10648_v22 = vld [vmem:[#allocation21 + $0x6e0] ss:$28 sps:$4 sm:$0xff]   ;;  %v10645_v33 = vld [vmem:[#allocation21 + $0x358] ss:$28 sps:$4 sm:$0xff]  }
 0x699   :  { %8101 = vmatpush1.bf16.msra.mxu1 %v10605_v45  ;;  %v10649_v45 = vld [vmem:[#allocation21 + $0x520] ss:$28 sps:$4 sm:$0xff]  }
 0x69a   :  { %9561 = vmatpush3.bf16.msra.mxu0 %v10609_v15  ;;  %8102 = vmatprep.subr.bf16.mxu1 %v10612_v13  ;;  %v10652_v15 = vld [vmem:[#allocation21 + $0x394] ss:$28 sps:$4 sm:$0xff]  }
 0x69b   :  { %9586 = vmatprep.subr.bf16.mxu0 %v10613_v25  ;;  %v10653_v13 = vld [vmem:[#allocation21 + $0x8d8] ss:$28 sps:$4 sm:$0xff]   ;;  %v10650_v25 = vld [vmem:[#allocation21 + $0x390] ss:$28 sps:$4 sm:$0xff]  }
 0x69d   :  { %8411 = vmatmul.mubr.bf16.vlgmr.msra.gmra.mrb[96].mxu0 %v13133_v7  ;;  %8103 = vmatpush1.bf16.msra.mxu1 %v10610_v17  ;;  %v10654_v17 = vld [vmem:[#allocation21 + $0x718] ss:$28 sps:$4 sm:$0xff]  }
 0x69e   :  { %8418 = vmatprep.mubr.bf16.mxu0 %v13135_v55  ;;  %9587 = vmatpush3.bf16.msra.mxu0 %v10614_v24  ;;  %v10657_v24 = vld [vmem:[#allocation21 + $0x3cc] ss:$28 sps:$4 sm:$0xff]  }
 0x69f   :  { %8104 = vmatprep.subr.bf16.mxu1 %v10617_v30  ;;  %9588 = vmatprep.subr.bf16.mxu0 %v10618_v31  ;;  %v10658_v30 = vld [vmem:[#allocation21 + $0x910] ss:$28 sps:$4 sm:$0xff]   ;;  %v10655_v31 = vld [vmem:[#allocation21 + $0x3c8] ss:$28 sps:$4 sm:$0xff]  }
 0x6a1   :  { %8105 = vmatpush1.bf16.msra.mxu1 %v10615_v20  ;;  %v10659_v20 = vld [vmem:[#allocation21 + $0x750] ss:$28 sps:$4 sm:$0xff]  }
 0x6a2   :  { %9589 = vmatpush3.bf16.msra.mxu0 %v10619_v26  ;;  %8106 = vmatprep.subr.bf16.mxu1 %v10622_v1  ;;  %v10662_v26 = vld [vmem:[#allocation21 + $0x404] ss:$28 sps:$4 sm:$0xff]  }
 0x6a3   :  { %9590 = vmatprep.subr.bf16.mxu0 %v10623_v42  ;;  %v10663_v1 = vld [vmem:[#allocation21 + $0x948] ss:$28 sps:$4 sm:$0xff]   ;;  %v10660_v42 = vld [vmem:[#allocation21 + $0x400] ss:$28 sps:$4 sm:$0xff]  }
 0x6a5   :  { %8419 = vmatmul.mubr.bf16.gmra.mrb[100].mxu0 %v13141_v48  ;;  %8107 = vmatpush1.bf16.msra.mxu1 %v10620_v36  ;;  %v10667_v36 = vld [vmem:[#allocation21 + $0x43c] ss:$28 sps:$4 sm:$0xff]  }
 0x6a6   :  { %8426 = vmatprep.mubr.bf16.mxu0 %v13143_v32  ;;  %9591 = vmatpush3.bf16.msra.mxu0 %v10624_v9  ;;  %v10665_v9 = vld [vmem:[#allocation21 + $0x438] ss:$28 sps:$4 sm:$0xff]  }
 0x6a7   :  { %8108 = vmatprep.subr.bf16.mxu1 %v10627_v37  ;;  %9592 = vmatprep.subr.bf16.mxu0 %v10628_v10  ;;  %v10669_v37 = vld [vmem:[#allocation21 + $0x7c0] ss:$28 sps:$4 sm:$0xff]   ;;  %v10672_v10 = vld [vmem:[#allocation21 + $0x474] ss:$28 sps:$4 sm:$0xff]  }
 0x6a9   :  { %8109 = vmatpush1.bf16.msra.mxu1 %v10625_v18  ;;  %v10673_v18 = vld [vmem:[#allocation21 + $0x9b8] ss:$28 sps:$4 sm:$0xff]  }
 0x6aa   :  { %9593 = vmatpush3.bf16.msra.mxu0 %v10629_v53  ;;  %8110 = vmatprep.subr.bf16.mxu1 %v10632_v60  ;;  %v10670_v53 = vld [vmem:[#allocation21 + $0x470] ss:$28 sps:$4 sm:$0xff]  }
 0x6ab   :  { %9594 = vmatprep.subr.bf16.mxu0 %v10633_v28  ;;  %v10677_v60 = vld [vmem:[#allocation21 + $0x4ac] ss:$28 sps:$4 sm:$0xff]  }
 0x6ac   :  { %v10675_v28 = vld [vmem:[#allocation21 + $0x4a8] ss:$28 sps:$4 sm:$0xff]  }
 0x6ad   :  { %8427 = vmatmul.mubr.bf16.gmra.mrb[104].mxu0 %v13148_v0  ;;  %8111 = vmatpush1.bf16.msra.mxu1 %v10630_v23  ;;  %v10679_v23 = vld [vmem:[#allocation21 + $0x830] ss:$28 sps:$4 sm:$0xff]  }
 0x6ae   :  { %8434 = vmatprep.mubr.bf16.mxu0 %v13159_v61  ;;  %9595 = vmatpush3.bf16.msra.mxu0 %v10634_v51  ;;  %v10682_v51 = vld [vmem:[#allocation21 + $0x4e4] ss:$28 sps:$4 sm:$0xff]  }
 0x6af   :  { %8112 = vmatprep.subr.bf16.mxu1 %v10637_v40  ;;  %9596 = vmatprep.subr.bf16.mxu0 %v10638_v46  ;;  %v10683_v40 = vld [vmem:[#allocation21 + $0xa28] ss:$28 sps:$4 sm:$0xff]   ;;  %v10680_v46 = vld [vmem:[#allocation21 + $0x4e0] ss:$28 sps:$4 sm:$0xff]  }
 0x6b1   :  { %8113 = vmatpush1.bf16.msra.mxu1 %v10635_v3  ;;  %v10687_v3 = vld [vmem:[#allocation21 + $0x51c] ss:$28 sps:$4 sm:$0xff]  }
 0x6b2   :  { %9597 = vmatpush3.bf16.msra.mxu0 %v10639_v44  ;;  %8114 = vmatprep.subr.bf16.mxu1 %v10642_v56  ;;  %v10685_v44 = vld [vmem:[#allocation21 + $0x518] ss:$28 sps:$4 sm:$0xff]   ;;  %v10689_v56 = vld [vmem:[#allocation21 + $0x8a0] ss:$28 sps:$4 sm:$0xff]  }
 0x6b3   :  { %9598 = vmatprep.subr.bf16.mxu0 %v10643_v50  ;;  %v10692_v50 = vld [vmem:[#allocation21 + $0x554] ss:$28 sps:$4 sm:$0xff]  }
 0x6b5   :  { %8435 = vmatmul.mubr.bf16.gmra.mrb[108].mxu0 %v13165_v2  ;;  %8115 = vmatpush1.bf16.msra.mxu1 %v10640_v12  ;;  %v13386_v12 = vld [vmem:[#allocation21 + $0xc58] ss:$28 sps:$4 sm:$0xff]  }
 0x6b6   :  { %9599 = vmatpush3.bf16.msra.mxu0 %v10644_v49  ;;  %8475 = vmatprep.mubr.bf16.mxu0 %v13167_v39  ;;  %v10690_v49 = vld [vmem:[#allocation21 + $0x550] ss:$28 sps:$4 sm:$0xff]  }
 0x6b7   :  { %8116 = vmatprep.subr.bf16.mxu1 %v10647_v11  ;;  %9600 = vmatprep.subr.bf16.mxu0 %v10648_v22  ;;  %v13391_v11 = vld [vmem:[#allocation21 + $0xc90] ss:$28 sps:$4 sm:$0xff]   ;;  %v10695_v22 = vld [vmem:[#allocation21 + $0x588] ss:$28 sps:$4 sm:$0xff]  }
 0x6b9   :  { %8117 = vmatpush1.bf16.msra.mxu1 %v10645_v33  ;;  %v13396_v33 = vld [vmem:[#allocation21 + $0xad0] ss:$28 sps:$4 sm:$0xff]  }
 0x6ba   :  { %9601 = vmatpush3.bf16.msra.mxu0 %v10649_v45  ;;  %8159 = vmatprep.subr.bf16.mxu1 %v10652_v15  ;;  %v10702_v45 = vld [vmem:[#allocation21 + $0x5c4] ss:$28 sps:$4 sm:$0xff]  }
 0x6bb   :  { %9626 = vmatprep.subr.bf16.mxu0 %v10653_v13  ;;  %v13399_v15 = vld [vmem:[#allocation21 + $0xcc8] ss:$28 sps:$4 sm:$0xff]   ;;  %v10700_v13 = vld [vmem:[#allocation21 + $0x5c0] ss:$28 sps:$4 sm:$0xff]  }
 0x6bc   :  { %8119 = vmatmul.mubr.bf16.vlgmr.msra.gmra.mrb[48].mxu1 %v13133_v7  ;;  %v10664_v7 = vld [vmem:[#allocation21 + $0x788] ss:$28 sps:$4 sm:$0xff]  }
 0x6bd   :  { %8476 = vmatmul.mubr.bf16.vlgmr.msra.gmra.mrb[112].mxu0 %v13171_v4  ;;  %8128 = vmatprep.mubr.bf16.mxu1 %v13135_v55  ;;  %v10668_v55 = vld [vmem:[#allocation21 + $0x980] ss:$28 sps:$4 sm:$0xff]  }
 0x6be   :  { %8160 = vmatpush1.bf16.msra.mxu1 %v10650_v25  ;;  %8483 = vmatprep.mubr.bf16.mxu0 %v13185_v6  ;;  %v13402_v25 = vld [vmem:[#allocation21 + $0xb08] ss:$28 sps:$4 sm:$0xff]  }
 0x6bf   :  { %9627 = vmatpush3.bf16.msra.mxu0 %v10654_v17  ;;  %8161 = vmatprep.subr.bf16.mxu1 %v10657_v24  ;;  %v10707_v17 = vld [vmem:[#allocation21 + $0x5fc] ss:$28 sps:$4 sm:$0xff]  }
 0x6c0   :  { %9628 = vmatprep.subr.bf16.mxu0 %v10658_v30  ;;  %v13405_v24 = vld [vmem:[#allocation21 + $0xd00] ss:$28 sps:$4 sm:$0xff]   ;;  %v10705_v30 = vld [vmem:[#allocation21 + $0x5f8] ss:$28 sps:$4 sm:$0xff]  }
 0x6c2   :  { %8162 = vmatpush1.bf16.msra.mxu1 %v10655_v31  ;;  %v13410_v31 = vld [vmem:[#allocation21 + $0xb40] ss:$28 sps:$4 sm:$0xff]  }
 0x6c3   :  { %9629 = vmatpush3.bf16.msra.mxu0 %v10659_v20  ;;  %8163 = vmatprep.subr.bf16.mxu1 %v10662_v26  ;;  %v10712_v20 = vld [vmem:[#allocation21 + $0x634] ss:$28 sps:$4 sm:$0xff]  }
 0x6c4   :  { %8129 = vmatmul.mubr.bf16.gmra.mrb[52].mxu1 %v13141_v48  ;;  %9630 = vmatprep.subr.bf16.mxu0 %v10663_v1  ;;  %v10674_v48 = vld [vmem:[#allocation21 + $0x7f8] ss:$28 sps:$4 sm:$0xff]   ;;  %v10710_v1 = vld [vmem:[#allocation21 + $0x630] ss:$28 sps:$4 sm:$0xff]  }
 0x6c5   :  { %8484 = vmatmul.mubr.bf16.gmra.mrb[116].mxu0 %v13187_v59  ;;  %8138 = vmatprep.mubr.bf16.mxu1 %v13143_v32  ;;  %v10678_v32 = vld [vmem:[#allocation21 + $0x9f0] ss:$28 sps:$4 sm:$0xff]   ;;  %v13413_v26 = vld [vmem:[#allocation21 + $0xd38] ss:$28 sps:$4 sm:$0xff]  }
 0x6c6   :  { %8164 = vmatpush1.bf16.msra.mxu1 %v10660_v42  ;;  %8491 = vmatprep.mubr.bf16.mxu0 %v13191_v54  ;;  %v13416_v42 = vld [vmem:[#allocation21 + $0xb78] ss:$28 sps:$4 sm:$0xff]  }
 0x6c7   :  { %9631 = vmatpush3.bf16.msra.mxu0 %v10664_v7  ;;  %8165 = vmatprep.subr.bf16.mxu1 %v10667_v36  ;;  %v10717_v7 = vld [vmem:[#allocation21 + $0x66c] ss:$28 sps:$4 sm:$0xff]  }
 0x6c8   :  { %9632 = vmatprep.subr.bf16.mxu0 %v10668_v55  ;;  %v13419_v36 = vld [vmem:[#allocation21 + $0xd70] ss:$28 sps:$4 sm:$0xff]   ;;  %v10715_v55 = vld [vmem:[#allocation21 + $0x668] ss:$28 sps:$4 sm:$0xff]  }
 0x6ca   :  { %8166 = vmatpush1.bf16.msra.mxu1 %v10665_v9  ;;  %v13424_v9 = vld [vmem:[#allocation21 + $0xbb0] ss:$28 sps:$4 sm:$0xff]  }
 0x6cb   :  { %9633 = vmatpush3.bf16.msra.mxu0 %v10669_v37  ;;  %8167 = vmatprep.subr.bf16.mxu1 %v10672_v10  ;;  %v10722_v37 = vld [vmem:[#allocation21 + $0x6a4] ss:$28 sps:$4 sm:$0xff]  }
 0x6cc   :  { %8139 = vmatmul.mubr.bf16.gmra.mrb[56].mxu1 %v13148_v0  ;;  %9634 = vmatprep.subr.bf16.mxu0 %v10673_v18  ;;  %v10684_v0 = vld [vmem:[#allocation21 + $0x868] ss:$28 sps:$4 sm:$0xff]   ;;  %v10720_v18 = vld [vmem:[#allocation21 + $0x6a0] ss:$28 sps:$4 sm:$0xff]  }
 0x6cd   :  { %8492 = vmatmul.mubr.bf16.gmra.mrb[120].mxu0 %v13201_v35  ;;  %8148 = vmatprep.mubr.bf16.mxu1 %v13159_v61  ;;  %v10688_v61 = vld [vmem:[#allocation21 + $0xa60] ss:$28 sps:$4 sm:$0xff]   ;;  %v13427_v10 = vld [vmem:[#allocation21 + $0xda8] ss:$28 sps:$4 sm:$0xff]  }
 0x6ce   :  { %8168 = vmatpush1.bf16.msra.mxu1 %v10670_v53  ;;  %8499 = vmatprep.mubr.bf16.mxu0 %v13207_v14  ;;  %v13430_v53 = vld [vmem:[#allocation21 + $0xbe8] ss:$28 sps:$4 sm:$0xff]  }
 0x6cf   :  { %9635 = vmatpush3.bf16.msra.mxu0 %v10674_v48  ;;  %8169 = vmatprep.subr.bf16.mxu1 %v10677_v60  ;;  %v10727_v48 = vld [vmem:[#allocation21 + $0x6dc] ss:$28 sps:$4 sm:$0xff]  }
 0x6d0   :  { %9636 = vmatprep.subr.bf16.mxu0 %v10678_v32  ;;  %v13433_v60 = vld [vmem:[#allocation21 + $0xde0] ss:$28 sps:$4 sm:$0xff]   ;;  %v10725_v32 = vld [vmem:[#allocation21 + $0x6d8] ss:$28 sps:$4 sm:$0xff]  }
 0x6d2   :  { %8170 = vmatpush1.bf16.msra.mxu1 %v10675_v28  ;;  %v13438_v28 = vld [vmem:[#allocation21 + $0xc20] ss:$28 sps:$4 sm:$0xff]  }
 0x6d3   :  { %9637 = vmatpush3.bf16.msra.mxu0 %v10679_v23  ;;  %8171 = vmatprep.subr.bf16.mxu1 %v10682_v51  ;;  %v10732_v23 = vld [vmem:[#allocation21 + $0x714] ss:$28 sps:$4 sm:$0xff]  }
 0x6d4   :  { %8149 = vmatmul.mubr.bf16.gmra.mrb[60].mxu1 %v13165_v2  ;;  %9638 = vmatprep.subr.bf16.mxu0 %v10683_v40  ;;  %v13388_v2 = vld [vmem:[#allocation21 + $0xa98] ss:$28 sps:$4 sm:$0xff]   ;;  %v10730_v51 = vld [vmem:[#allocation21 + $0x710] ss:$28 sps:$4 sm:$0xff]  }
 0x6d5   :  { %8500 = vmatmul.mubr.bf16.gmra.mrb[124].mxu0 %v13215_v52  ;;  %8191 = vmatprep.mubr.bf16.mxu1 %v13167_v39  ;;  %v10697_v39 = vld [vmem:[#allocation21 + $0x58c] ss:$28 sps:$4 sm:$0xff]  }
 0x6d6   :  { %8172 = vmatpush1.bf16.msra.mxu1 %v10680_v46  ;;  %8540 = vmatprep.mubr.bf16.mxu0 %v13221_v16  ;;  %v10735_v40 = vld [vmem:[#allocation21 + $0x74c] ss:$28 sps:$4 sm:$0xff]  }
 0x6d7   :  { %9639 = vmatpush3.bf16.msra.mxu0 %v10684_v0  ;;  %8173 = vmatprep.subr.bf16.mxu1 %v10687_v3  ;;  %v10733_v46 = vld [vmem:[#allocation21 + $0x748] ss:$28 sps:$4 sm:$0xff]   ;;  %v10736_v3 = vld [vmem:[#allocation21 + $0x780] ss:$28 sps:$4 sm:$0xff]  }
 0x6d8   :  { %9640 = vmatprep.subr.bf16.mxu0 %v10688_v61  ;;  %v10738_v0 = vld [vmem:[#allocation21 + $0x784] ss:$28 sps:$4 sm:$0xff]   ;;  %v10741_v61 = vld [vmem:[#allocation21 + $0x7bc] ss:$28 sps:$4 sm:$0xff]  }
 0x6da   :  { %8174 = vmatpush1.bf16.msra.mxu1 %v10685_v44  ;;  %v10742_v44 = vld [vmem:[#allocation21 + $0x7f0] ss:$28 sps:$4 sm:$0xff]  }
 0x6db   :  { %9641 = vmatpush3.bf16.msra.mxu0 %v10689_v56  ;;  %8175 = vmatprep.subr.bf16.mxu1 %v10692_v50  ;;  %v10747_v56 = vld [vmem:[#allocation21 + $0x82c] ss:$28 sps:$4 sm:$0xff]  }
 0x6dc   :  { %9666 = vmatprep.subr.bf16.mxu0 %v13386_v12  ;;  %v10745_v50 = vld [vmem:[#allocation21 + $0x828] ss:$28 sps:$4 sm:$0xff]  }
 0x6de   :  { %8541 = vmatmul.mubr.bf16.vlgmr.msra.gmra.mrb[128].mxu0 %v13227_v63  ;;  %8176 = vmatpush1.bf16.msra.mxu1 %v10690_v49  ;;  %v10748_v49 = vld [vmem:[#allocation21 + $0x860] ss:$28 sps:$4 sm:$0xff]  }
 0x6df   :  { %8548 = vmatprep.mubr.bf16.mxu0 %v13235_v47  ;;  %9667 = vmatpush3.bf16.msra.mxu0 %v13388_v2 }
 0x6e0   :  { %8177 = vmatprep.subr.bf16.mxu1 %v10697_v39  ;;  %9668 = vmatprep.subr.bf16.mxu0 %v13391_v11  ;;  %v10751_v39 = vld [vmem:[#allocation21 + $0x898] ss:$28 sps:$4 sm:$0xff]  }
 0x6e2   :  { %8178 = vmatpush1.bf16.msra.mxu1 %v10695_v22  ;;  %v10756_v22 = vld [vmem:[#allocation21 + $0x8d4] ss:$28 sps:$4 sm:$0xff]  }
 0x6e3   :  { %9669 = vmatpush3.bf16.msra.mxu0 %v13396_v33  ;;  %8179 = vmatprep.subr.bf16.mxu1 %v10702_v45  ;;  %v10757_v45 = vld [vmem:[#allocation21 + $0x908] ss:$28 sps:$4 sm:$0xff]  }
 0x6e4   :  { %9670 = vmatprep.subr.bf16.mxu0 %v13399_v15 }
 0x6e6   :  { %8549 = vmatmul.mubr.bf16.gmra.mrb[132].mxu0 %v13241_v21  ;;  %8180 = vmatpush1.bf16.msra.mxu1 %v10700_v13  ;;  %v10762_v13 = vld [vmem:[#allocation21 + $0x944] ss:$28 sps:$4 sm:$0xff]  }
 0x6e7   :  { %8556 = vmatprep.mubr.bf16.mxu0 %v13243_v34  ;;  %9671 = vmatpush3.bf16.msra.mxu0 %v13402_v25 }
 0x6e8   :  { %8181 = vmatprep.subr.bf16.mxu1 %v10707_v17  ;;  %9672 = vmatprep.subr.bf16.mxu0 %v13405_v24  ;;  %v10760_v17 = vld [vmem:[#allocation21 + $0x940] ss:$28 sps:$4 sm:$0xff]  }
 0x6ea   :  { %8182 = vmatpush1.bf16.msra.mxu1 %v10705_v30  ;;  %v10765_v30 = vld [vmem:[#allocation21 + $0x97c] ss:$28 sps:$4 sm:$0xff]  }
 0x6eb   :  { %9673 = vmatpush3.bf16.msra.mxu0 %v13410_v31  ;;  %8183 = vmatprep.subr.bf16.mxu1 %v10712_v20  ;;  %v10766_v20 = vld [vmem:[#allocation21 + $0x9b0] ss:$28 sps:$4 sm:$0xff]  }
 0x6ec   :  { %9674 = vmatprep.subr.bf16.mxu0 %v13413_v26 }
 0x6ee   :  { %8557 = vmatmul.mubr.bf16.gmra.mrb[136].mxu0 %v13247_v57  ;;  %8184 = vmatpush1.bf16.msra.mxu1 %v10710_v1  ;;  %v10771_v1 = vld [vmem:[#allocation21 + $0x9ec] ss:$28 sps:$4 sm:$0xff]  }
 0x6ef   :  { %8564 = vmatprep.mubr.bf16.mxu0 %v13263_v58  ;;  %9675 = vmatpush3.bf16.msra.mxu0 %v13416_v42 }
 0x6f0   :  { %8185 = vmatprep.subr.bf16.mxu1 %v10717_v7  ;;  %9676 = vmatprep.subr.bf16.mxu0 %v13419_v36  ;;  %v10769_v7 = vld [vmem:[#allocation21 + $0x9e8] ss:$28 sps:$4 sm:$0xff]  }
 0x6f2   :  { %8186 = vmatpush1.bf16.msra.mxu1 %v10715_v55  ;;  %v10774_v55 = vld [vmem:[#allocation21 + $0xa24] ss:$28 sps:$4 sm:$0xff]  }
 0x6f3   :  { %9677 = vmatpush3.bf16.msra.mxu0 %v13424_v9  ;;  %8187 = vmatprep.subr.bf16.mxu1 %v10722_v37  ;;  %v10772_v37 = vld [vmem:[#allocation21 + $0xa20] ss:$28 sps:$4 sm:$0xff]  }
 0x6f4   :  { %9678 = vmatprep.subr.bf16.mxu0 %v13427_v10 }
 0x6f6   :  { %8565 = vmatmul.mubr.bf16.gmra.mrb[140].mxu0 %v13265_v43  ;;  %8188 = vmatpush1.bf16.msra.mxu1 %v10720_v18  ;;  %v10777_v18 = vld [vmem:[#allocation21 + $0xa5c] ss:$28 sps:$4 sm:$0xff]  }
 0x6f7   :  { %9679 = vmatpush3.bf16.msra.mxu0 %v13430_v53  ;;  %8605 = vmatprep.mubr.bf16.mxu0 %v13271_v29 }
 0x6f8   :  { %8189 = vmatprep.subr.bf16.mxu1 %v10727_v48  ;;  %9680 = vmatprep.subr.bf16.mxu0 %v13433_v60  ;;  %v10775_v48 = vld [vmem:[#allocation21 + $0xa58] ss:$28 sps:$4 sm:$0xff]  }
 0x6fa   :  { %8190 = vmatpush1.bf16.msra.mxu1 %v10725_v32  ;;  %v10780_v32 = vld [vmem:[#allocation21 + $0xa94] ss:$28 sps:$4 sm:$0xff]  }
 0x6fb   :  { %9681 = vmatpush3.bf16.msra.mxu0 %v13438_v28  ;;  %8232 = vmatprep.subr.bf16.mxu1 %v10732_v23  ;;  %v10778_v23 = vld [vmem:[#allocation21 + $0xa90] ss:$28 sps:$4 sm:$0xff]  }
 0x6fd   :  { %8192 = vmatmul.mubr.bf16.vlgmr.msra.gmra.mrb[48].mxu1 %v13171_v4  ;;  %v10739_v4 = vld [vmem:[#allocation21 + $0x7b8] ss:$28 sps:$4 sm:$0xff]  }
 0x6fe   :  { %8606 = vmatmul.mubr.bf16.vlgmr.msra.gmra.mrb[144].mxu0 %v13277_v8  ;;  %8201 = vmatprep.mubr.bf16.mxu1 %v13185_v6  ;;  %v10744_v6 = vld [vmem:[#allocation21 + $0x7f4] ss:$28 sps:$4 sm:$0xff]  }
 0x6ff   :  { %8233 = vmatpush1.bf16.msra.mxu1 %v10730_v51  ;;  %8613 = vmatprep.mubr.bf16.mxu0 %v13283_v19  ;;  %v10783_v51 = vld [vmem:[#allocation21 + $0xacc] ss:$28 sps:$4 sm:$0xff]  }
 0x700   :  { %8234 = vmatprep.subr.bf16.mxu1 %v10735_v40  ;;  %v10781_v40 = vld [vmem:[#allocation21 + $0xac8] ss:$28 sps:$4 sm:$0xff]  }
 0x703   :  { %8235 = vmatpush1.bf16.msra.mxu1 %v10733_v46  ;;  %v10786_v46 = vld [vmem:[#allocation21 + $0xb04] ss:$28 sps:$4 sm:$0xff]  }
 0x704   :  { %8236 = vmatprep.subr.bf16.mxu1 %v10738_v0  ;;  %v10784_v0 = vld [vmem:[#allocation21 + $0xb00] ss:$28 sps:$4 sm:$0xff]  }
 0x705   :  { %8202 = vmatmul.mubr.bf16.gmra.mrb[52].mxu1 %v13187_v59  ;;  %v10750_v59 = vld [vmem:[#allocation21 + $0x864] ss:$28 sps:$4 sm:$0xff]  }
 0x706   :  { %8614 = vmatmul.mubr.bf16.gmra.mrb[148].mxu0 %v13291_v27  ;;  %8211 = vmatprep.mubr.bf16.mxu1 %v13191_v54  ;;  %v10753_v54 = vld [vmem:[#allocation21 + $0x89c] ss:$28 sps:$4 sm:$0xff]  }
 0x707   :  { %8237 = vmatpush1.bf16.msra.mxu1 %v10736_v3  ;;  %v10789_v3 = vld [vmem:[#allocation21 + $0xb3c] ss:$28 sps:$4 sm:$0xff]  }
 0x708   :  { %8238 = vmatprep.subr.bf16.mxu1 %v10741_v61  ;;  %v10787_v61 = vld [vmem:[#allocation21 + $0xb38] ss:$28 sps:$4 sm:$0xff]  }
 0x70b   :  { %8239 = vmatpush1.bf16.msra.mxu1 %v10739_v4  ;;  %v10792_v4 = vld [vmem:[#allocation21 + $0xb74] ss:$28 sps:$4 sm:$0xff]  }
 0x70c   :  { %8240 = vmatprep.subr.bf16.mxu1 %v10744_v6  ;;  %v13457_v6 = vld [vmem:[#allocation22] sm:$0xff] }
 0x70d   :  { %8212 = vmatmul.mubr.bf16.gmra.mrb[56].mxu1 %v13201_v35  ;;  %v10754_v35 = vld [vmem:[#allocation21 + $0x8d0] ss:$28 sps:$4 sm:$0xff]  }
 0x70e   :  { %8221 = vmatprep.mubr.bf16.mxu1 %v13207_v14  ;;  %v10759_v14 = vld [vmem:[#allocation21 + $0x90c] ss:$28 sps:$4 sm:$0xff]  }
 0x70f   :  { %8241 = vmatpush1.bf16.msra.mxu1 %v10742_v44 }
 0x710   :  { %8242 = vmatprep.subr.bf16.mxu1 %v10747_v56  ;;  %v13941_v56 = vld [vmem:[#allocation40_spill] sm:$0xff] }
 0x713   :  { %8243 = vmatpush1.bf16.msra.mxu1 %v10745_v50  ;;  %v13465_v50 = vrot.slane %v13457_v6, %v13941_v56 }
 0x714   :  { %8244 = vmatprep.subr.bf16.mxu1 %v10750_v59  ;;  %v10795_v59 = vld [vmem:[#allocation21 + $0xbac] ss:$28 sps:$4 sm:$0xff]  }
 0x715   :  { %8222 = vmatmul.mubr.bf16.gmra.mrb[60].mxu1 %v13215_v52  ;;  %v10763_v52 = vld [vmem:[#allocation21 + $0x978] ss:$28 sps:$4 sm:$0xff]  }
 0x716   :  { %8264 = vmatprep.mubr.bf16.mxu1 %v13221_v16  ;;  %v10768_v16 = vld [vmem:[#allocation21 + $0x9b4] ss:$28 sps:$4 sm:$0xff]  }
 0x717   :  { %8245 = vmatpush1.bf16.msra.mxu1 %v10748_v49  ;;  %v13943_v49 = vld [vmem:[#allocation41_spill] sm:$0xff] }
 0x718   :  { %8246 = vmatprep.subr.bf16.mxu1 %v10753_v54  ;;  %v13473_v54 = vrot.slane %v13457_v6, %v13943_v49 }
 0x71b   :  { %8247 = vmatpush1.bf16.msra.mxu1 %v10751_v39 }
 0x71c   :  { %8248 = vmatprep.subr.bf16.mxu1 %v10756_v22 }
 0x71f   :  { %8249 = vmatpush1.bf16.msra.mxu1 %v10754_v35 }
 0x720   :  { %8250 = vmatprep.subr.bf16.mxu1 %v10759_v14 }
 0x723   :  { %8251 = vmatpush1.bf16.msra.mxu1 %v10757_v45  ;;  %v10793_v45 = vld [vmem:[#allocation21 + $0xba8] ss:$28 sps:$4 sm:$0xff]  }
 0x724   :  { %8252 = vmatprep.subr.bf16.mxu1 %v10762_v13 }
 0x727   :  { %8253 = vmatpush1.bf16.msra.mxu1 %v10760_v17 }
 0x728   :  { %8254 = vmatprep.subr.bf16.mxu1 %v10765_v30 }
 0x72b   :  { %8255 = vmatpush1.bf16.msra.mxu1 %v10763_v52 }
 0x72c   :  { %8256 = vmatprep.subr.bf16.mxu1 %v10768_v16  ;;  %v10798_v16 = vld [vmem:[#allocation21 + $0xbe4] ss:$28 sps:$4 sm:$0xff]  }
 0x72f   :  { %8257 = vmatpush1.bf16.msra.mxu1 %v10766_v20 }
 0x730   :  { %8258 = vmatprep.subr.bf16.mxu1 %v10771_v1 }
 0x733   :  { %8259 = vmatpush1.bf16.msra.mxu1 %v10769_v7 }
 0x734   :  { %8260 = vmatprep.subr.bf16.mxu1 %v10774_v55 }
 0x737   :  { %8261 = vmatpush1.bf16.msra.mxu1 %v10772_v37 }
 0x738   :  { %8262 = vmatprep.subr.bf16.mxu1 %v10777_v18  ;;  %v10796_v18 = vld [vmem:[#allocation21 + $0xbe0] ss:$28 sps:$4 sm:$0xff]  }
 0x73b   :  { %8263 = vmatpush1.bf16.msra.mxu1 %v10775_v48 }
 0x73c   :  { %8305 = vmatprep.subr.bf16.mxu1 %v10780_v32  ;;  %v10801_v32 = vld [vmem:[#allocation21 + $0xc1c] ss:$28 sps:$4 sm:$0xff]  }
 0x73e   :  { %8265 = vmatmul.mubr.bf16.vlgmr.msra.gmra.mrb[48].mxu1 %v13227_v63  ;;  %v10790_v63 = vld [vmem:[#allocation21 + $0xb70] ss:$28 sps:$4 sm:$0xff]  }
 0x73f   :  { %8274 = vmatprep.mubr.bf16.mxu1 %v13235_v47  ;;  %8306 = vmatpush1.bf16.msra.mxu1 %v10778_v23  ;;  %v13940_v47 = vld [vmem:[#allocation33_spill] sm:$0xff] }
 0x740   :  { %8307 = vmatprep.subr.bf16.mxu1 %v10783_v51  ;;  %v13461_v44 = vrot.slane %v13457_v6, %v13940_v47  ;;  %v10804_v47 = vld [vmem:[#allocation21 + $0xc54] ss:$28 sps:$4 sm:$0xff]  }
 0x743   :  { %8308 = vmatpush1.bf16.msra.mxu1 %v10781_v40 }
 0x744   :  { %8309 = vmatprep.subr.bf16.mxu1 %v10786_v46 }
 0x746   :  { %8275 = vmatmul.mubr.bf16.gmra.mrb[52].mxu1 %v13241_v21  ;;  %v13942_v21 = vld [vmem:[#allocation34_spill] sm:$0xff] }
 0x747   :  { %8284 = vmatprep.mubr.bf16.mxu1 %v13243_v34  ;;  %8310 = vmatpush1.bf16.msra.mxu1 %v10784_v0  ;;  %v13469_v34 = vrot.slane %v13457_v6, %v13942_v21  ;;  %v10799_v0 = vld [vmem:[#allocation21 + $0xc18] ss:$28 sps:$4 sm:$0xff]  }
 0x748   :  { %8311 = vmatprep.subr.bf16.mxu1 %v10789_v3 }
 0x74b   :  { %8312 = vmatpush1.bf16.msra.mxu1 %v10787_v61 }
 0x74c   :  { %8313 = vmatprep.subr.bf16.mxu1 %v10792_v4 }
 0x74e   :  { %8285 = vmatmul.mubr.bf16.gmra.mrb[56].mxu1 %v13247_v57  ;;  %v7755_v39 = vpop.f32.mrb[32].mxu1 }
 0x74f   :  { %8294 = vmatprep.mubr.bf16.mxu1 %v13263_v58  ;;  %8314 = vmatpush1.bf16.msra.mxu1 %v10790_v63  ;;  %v9786_v22 = vadd.f32 %v7755_v39, %v13461_v44  ;;  %v8047_v35 = vpop.f32.mrb[80].mxu0  ;;  %v7757_v14 = vpop.f32.mrb[33].mxu1 }
 0x750   :  { %v9802_v13 = vadd.f32 %v8047_v35, %v13465_v50  ;;  %v9787_v17 = vadd.f32 %v7757_v14, %v13469_v34  ;;  %v8049_v30 = vpop.f32.mrb[81].mxu0  ;;  %8315 = vmatprep.subr.bf16.mxu1 %v10795_v59  ;;  %v7759_v52 = vpop.f32.mrb[34].mxu1  ;;  %v10802_v35 = vld [vmem:[#allocation21 + $0xc50] ss:$28 sps:$4 sm:$0xff]  }
 0x751   :  { %10854 = vtanh.f32 %v9786_v22  ;;  %v9803_v57 = vadd.f32 %v8049_v30, %v13473_v54  ;;  %v9788_v20 = vadd.f32 %v7759_v52, %v13461_v44  ;;  %v8051_v58 = vpop.f32.mrb[82].mxu0  ;;  %v7761_v1 = vpop.f32.mrb[35].mxu1 }
 0x752   :  { %10856 = vtanh.f32 %v9802_v13  ;;  %v9804_v7 = vadd.f32 %v8051_v58, %v13465_v50  ;;  %v8053_v55 = vpop.f32.mrb[83].mxu0  ;;  %v9789_v37 = vadd.f32 %v7761_v1, %v13469_v34  ;;  %v10807_v13 = vld [vmem:[#allocation21 + $0xc8c] ss:$28 sps:$4 sm:$0xff]  }
 0x753   :  { %10858 = vtanh.f32 %v9787_v17  ;;  %8316 = vmatpush1.bf16.msra.mxu1 %v10793_v45  ;;  %v9805_v48 = vadd.f32 %v8053_v55, %v13473_v54  ;;  %v10805_v1 = vld [vmem:[#allocation21 + $0xc88] ss:$28 sps:$4 sm:$0xff]  }
 0x754   :  { %10860 = vtanh.f32 %v9803_v57  ;;  %8317 = vmatprep.subr.bf16.mxu1 %v10798_v16 }
 0x755   :  { %10862 = vtanh.f32 %v9788_v20 }
 0x756   :  { %10864 = vtanh.f32 %v9804_v7  ;;  %8295 = vmatmul.mubr.bf16.gmra.mrb[60].mxu1 %v13265_v43  ;;  %v7765_v23 = vpop.f32.mrb[36].mxu1 }
 0x757   :  { %10866 = vtanh.f32 %v9789_v37  ;;  %8318 = vmatpush1.bf16.msra.mxu1 %v10796_v18  ;;  %8337 = vmatprep.mubr.bf16.mxu1 %v13271_v29  ;;  %v9790_v51 = vadd.f32 %v7765_v23, %v13461_v44  ;;  %v8057_v40 = vpop.f32.mrb[84].mxu0  ;;  %v7767_v46 = vpop.f32.mrb[37].mxu1 }
 0x758   :  { %10868 = vtanh.f32 %v9805_v48  ;;  %v9806_v3 = vadd.f32 %v8057_v40, %v13465_v50  ;;  %v9791_v61 = vadd.f32 %v7767_v46, %v13469_v34  ;;  %v8059_v4 = vpop.f32.mrb[85].mxu0  ;;  %8319 = vmatprep.subr.bf16.mxu1 %v10801_v32  ;;  %v7769_v63 = vpop.f32.mrb[38].mxu1  ;;  %v10810_v32 = vld [vmem:[#allocation21 + $0xcc4] ss:$28 sps:$4 sm:$0xff]  }
 0x759   :  { %10870 = vtanh.f32 %v9790_v51  ;;  %v9807_v43 = vadd.f32 %v8059_v4, %v13473_v54  ;;  %v9792_v56 = vadd.f32 %v7769_v63, %v13461_v44  ;;  %v8061_v29 = vpop.f32.mrb[86].mxu0  ;;  %v7771_v21 = vpop.f32.mrb[39].mxu1 }
 0x75a   :  { %10872 = vtanh.f32 %v9806_v3  ;;  %v9808_v59 = vadd.f32 %v8061_v29, %v13465_v50  ;;  %v8063_v49 = vpop.f32.mrb[87].mxu0  ;;  %v9793_v22 = vadd.f32 %v7771_v21, %v13469_v34  ;;  %v10813_v21 = vld [vmem:[#allocation21 + $0xcfc] ss:$28 sps:$4 sm:$0xff]  }
 0x75b   :  { %v10855_v39 = vpop.eup %10854  ;;  %10874 = vtanh.f32 %v9791_v61  ;;  %8320 = vmatpush1.bf16.msra.mxu1 %v10799_v0  ;;  %v9809_v45 = vadd.f32 %v8063_v49, %v13473_v54 }
 0x75c   :  { %v10857_v14 = vpop.eup %10856  ;;  %8694 = vst [vmem:[%s13745_s15] sm:$0xff] %v10855_v39  ;;  %10876 = vtanh.f32 %v9807_v43  ;;  %8321 = vmatprep.subr.bf16.mxu1 %v10804_v47  ;;  %v10808_v43 = vld [vmem:[#allocation21 + $0xcc0] ss:$28 sps:$4 sm:$0xff]  }
 0x75d   :  { %v10859_v17 = vpop.eup %10858  ;;  %8696 = vst [vmem:[%s13745_s15 + $0x10] sm:$0xff] %v10857_v14  ;;  %10878 = vtanh.f32 %v9792_v56 }
 0x75e   :  { %v10861_v30 = vpop.eup %10860  ;;  %8695 = vst [vmem:[%s13745_s15 + $0x8] sm:$0xff] %v10859_v17  ;;  %10880 = vtanh.f32 %v9808_v59  ;;  %v7775_v52 = vpop.f32.mrb[40].mxu1 }
 0x75f   :  { %v10863_v16 = vpop.eup %10862  ;;  %8697 = vst [vmem:[%s13745_s15 + $0x18] sm:$0xff] %v10861_v30  ;;  %10882 = vtanh.f32 %v9793_v22  ;;  %8322 = vmatpush1.bf16.msra.mxu1 %v10802_v35  ;;  %v9794_v57 = vadd.f32 %v7775_v52, %v13461_v44  ;;  %v8067_v20 = vpop.f32.mrb[88].mxu0 }
 0x760   :  { %v7777_v58 = vpop.f32.mrb[41].mxu1  ;;  %v10865_v7 = vpop.eup %10864  ;;  %8701 = vst [vmem:[%s13745_s15 + $0x38] sm:$0xff] %v10863_v16  ;;  %10884 = vtanh.f32 %v9809_v45  ;;  %v9810_v55 = vadd.f32 %v8067_v20, %v13465_v50  ;;  %8323 = vmatprep.subr.bf16.mxu1 %v10807_v13  ;;  %v10811_v13 = vld [vmem:[#allocation21 + $0xcf8] ss:$28 sps:$4 sm:$0xff]  }
 0x761   :  { %v9795_v37 = vadd.f32 %v7777_v58, %v13469_v34  ;;  %v8069_v18 = vpop.f32.mrb[89].mxu0  ;;  %v7779_v48 = vpop.f32.mrb[42].mxu1  ;;  %8703 = vst [vmem:[%s13745_s15 + $0x48] sm:$0xff] %v10865_v7  ;;  %10886 = vtanh.f32 %v9794_v57  ;;  %v10816_v20 = vld [vmem:[#allocation21 + $0xd34] ss:$28 sps:$4 sm:$0xff]  }
 0x762   :  { %v10867_v23 = vpop.eup %10866  ;;  %v9811_v51 = vadd.f32 %v8069_v18, %v13473_v54  ;;  %v9796_v40 = vadd.f32 %v7779_v48, %v13461_v44  ;;  %v8071_v46 = vpop.f32.mrb[90].mxu0  ;;  %10888 = vtanh.f32 %v9810_v55 }
 0x763   :  { %v7781_v0 = vpop.f32.mrb[43].mxu1  ;;  %v10869_v3 = vpop.eup %10868  ;;  %8702 = vst [vmem:[%s13745_s15 + $0x40] sm:$0xff] %v10867_v23  ;;  %v9812_v61 = vadd.f32 %v8071_v46, %v13465_v50  ;;  %10890 = vtanh.f32 %v9795_v37  ;;  %8324 = vmatpush1.bf16.msra.mxu1 %v10805_v1 }
 0x764   :  { %v8073_v4 = vpop.f32.mrb[91].mxu0  ;;  %v10871_v63 = vpop.eup %10870  ;;  %8704 = vst [vmem:[%s13745_s15 + $0x50] sm:$0xff] %v10869_v3  ;;  %v9797_v47 = vadd.f32 %v7781_v0, %v13469_v34  ;;  %10892 = vtanh.f32 %v9811_v51  ;;  %8325 = vmatprep.subr.bf16.mxu1 %v10810_v32  ;;  %v10814_v51 = vld [vmem:[#allocation21 + $0xd30] ss:$28 sps:$4 sm:$0xff]  }
 0x765   :  { %v10873_v56 = vpop.eup %10872  ;;  %8708 = vst [vmem:[%s13745_s15 + $0x70] sm:$0xff] %v10871_v63  ;;  %v9813_v29 = vadd.f32 %v8073_v4, %v13473_v54  ;;  %10894 = vtanh.f32 %v9796_v40  ;;  %v10822_v63 = vld [vmem:[#allocation21 + $0xda4] ss:$28 sps:$4 sm:$0xff]  }
 0x766   :  { %v10875_v59 = vpop.eup %10874  ;;  %8710 = vst [vmem:[%s13745_s15 + $0x80] sm:$0xff] %v10873_v56  ;;  %10896 = vtanh.f32 %v9812_v61  ;;  %v7785_v39 = vpop.f32.mrb[44].mxu1 }
 0x767   :  { %v10877_v49 = vpop.eup %10876  ;;  %8709 = vst [vmem:[%s13745_s15 + $0x78] sm:$0xff] %v10875_v59  ;;  %10898 = vtanh.f32 %v9797_v47  ;;  %8326 = vmatpush1.bf16.msra.mxu1 %v10808_v43  ;;  %v9798_v35 = vadd.f32 %v7785_v39, %v13461_v44  ;;  %v8077_v14 = vpop.f32.mrb[92].mxu0  ;;  %v10820_v39 = vld [vmem:[#allocation21 + $0xda0] ss:$28 sps:$4 sm:$0xff]  }
 0x768   :  { %v10879_v22 = vpop.eup %10878  ;;  %8711 = vst [vmem:[%s13745_s15 + $0x88] sm:$0xff] %v10877_v49  ;;  %v7787_v45 = vpop.f32.mrb[45].mxu1  ;;  %10900 = vtanh.f32 %v9813_v29  ;;  %v9814_v30 = vadd.f32 %v8077_v14, %v13465_v50  ;;  %8327 = vmatprep.subr.bf16.mxu1 %v10813_v21  ;;  %v10825_v14 = vld [vmem:[#allocation21 + $0xddc] ss:$28 sps:$4 sm:$0xff]  }
 0x769   :  { %v10881_v17 = vpop.eup %10880  ;;  %8715 = vst [vmem:[%s13745_s15 + $0xa8] sm:$0xff] %v10879_v22  ;;  %v9799_v52 = vadd.f32 %v7787_v45, %v13469_v34  ;;  %v8079_v16 = vpop.f32.mrb[93].mxu0  ;;  %10902 = vtanh.f32 %v9798_v35 }
 0x76a   :  { %v7789_v57 = vpop.f32.mrb[46].mxu1  ;;  %v10883_v58 = vpop.eup %10882  ;;  %8717 = vst [vmem:[%s13745_s15 + $0xb8] sm:$0xff] %v10881_v17  ;;  %v9815_v1 = vadd.f32 %v8079_v16, %v13473_v54  ;;  %10904 = vtanh.f32 %v9814_v30  ;;  %v10823_v30 = vld [vmem:[#allocation21 + $0xdd8] ss:$28 sps:$4 sm:$0xff]  }
 0x76b   :  { %v9800_v7 = vadd.f32 %v7789_v57, %v13461_v44  ;;  %v8081_v55 = vpop.f32.mrb[94].mxu0  ;;  %v7791_v37 = vpop.f32.mrb[47].mxu1  ;;  %8716 = vst [vmem:[%s13745_s15 + $0xb0] sm:$0xff] %v10883_v58  ;;  %10906 = vtanh.f32 %v9799_v52  ;;  %8328 = vmatpush1.bf16.msra.mxu1 %v10811_v13 }
 0x76c   :  { %v10885_v18 = vpop.eup %10884  ;;  %v9816_v48 = vadd.f32 %v8081_v55, %v13465_v50  ;;  %v8083_v32 = vpop.f32.mrb[95].mxu0  ;;  %v9801_v44 = vadd.f32 %v7791_v37, %v13469_v34  ;;  %10908 = vtanh.f32 %v9815_v1  ;;  %8329 = vmatprep.subr.bf16.mxu1 %v10816_v20  ;;  %v10819_v50 = vld [vmem:[#allocation21 + $0xd6c] ss:$28 sps:$4 sm:$0xff]  }
 0x76d   :  { %v10887_v23 = vpop.eup %10886  ;;  %8718 = vst [vmem:[%s13745_s15 + $0xc0] sm:$0xff] %v10885_v18  ;;  %v9817_v46 = vadd.f32 %v8083_v32, %v13473_v54  ;;  %10910 = vtanh.f32 %v9800_v7  ;;  %v10817_v54 = vld [vmem:[#allocation21 + $0xd68] ss:$28 sps:$4 sm:$0xff]   ;;  %v13944_v32 = vld [vmem:[#allocation66_spill] sm:$0xff] }
 0x76e   :  { %v10889_v40 = vpop.eup %10888  ;;  %8722 = vst [vmem:[%s13745_s15 + $0xe0] sm:$0xff] %v10887_v23  ;;  %10912 = vtanh.f32 %v9816_v48  ;;  %v5190_v23 = vrot.slane %v13457_v6, %v13944_v32 }
 0x76f   :  { %v10891_v0 = vpop.eup %10890  ;;  %8724 = vst [vmem:[%s13745_s15 + $0xf0] sm:$0xff] %v10889_v40  ;;  %10914 = vtanh.f32 %v9801_v44  ;;  %8330 = vmatpush1.bf16.msra.mxu1 %v10814_v51 }
 0x770   :  { %v10893_v3 = vpop.eup %10892  ;;  %8723 = vst [vmem:[%s13745_s15 + $0xe8] sm:$0xff] %v10891_v0  ;;  %10916 = vtanh.f32 %v9817_v46  ;;  %v9562_v4 = vpop.f32.mrb[96].mxu0  ;;  %8331 = vmatprep.subr.bf16.mxu1 %v10819_v50 }
 0x771   :  { %v10895_v34 = vpop.eup %10894  ;;  %8725 = vst [vmem:[%s13745_s15 + $0xf8] sm:$0xff] %v10893_v3  ;;  %v9563_v43 = vpop.f32.mrb[97].mxu0 }
 0x772   :  { %v10897_v61 = vpop.eup %10896  ;;  %8729 = vst [vmem:[%s13745_s15 + $0x118] sm:$0xff] %v10895_v34  ;;  %v13580_v29 = vadd.f32 %v9563_v43, %v9562_v4  ;;  %v9565_v21 = vpop.f32.mrb[98].mxu0 }
 0x773   :  { %v10899_v47 = vpop.eup %10898  ;;  %8731 = vst [vmem:[%s13745_s15 + $0x128] sm:$0xff] %v10897_v61  ;;  %8332 = vmatpush1.bf16.msra.mxu1 %v10817_v54  ;;  %v9566_v49 = vpop.f32.mrb[99].mxu0 }
 0x774   :  { %v10901_v56 = vpop.eup %10900  ;;  %8730 = vst [vmem:[%s13745_s15 + $0x120] sm:$0xff] %v10899_v47  ;;  %v13588_v35 = vadd.f32 %v9566_v49, %v9565_v21  ;;  %8333 = vmatprep.subr.bf16.mxu1 %v10822_v63 }
 0x775   :  { %v10903_v59 = vpop.eup %10902  ;;  %8732 = vst [vmem:[%s13745_s15 + $0x130] sm:$0xff] %v10901_v56 }
 0x776   :  { %v10905_v22 = vpop.eup %10904  ;;  %8736 = vst [vmem:[%s13745_s15 + $0x150] sm:$0xff] %v10903_v59 }
 0x777   :  { %v10907_v45 = vpop.eup %10906  ;;  %8738 = vst [vmem:[%s13745_s15 + $0x160] sm:$0xff] %v10905_v22  ;;  %8334 = vmatpush1.bf16.msra.mxu1 %v10820_v39 }
 0x778   :  { %v10909_v13 = vpop.eup %10908  ;;  %8737 = vst [vmem:[%s13745_s15 + $0x158] sm:$0xff] %v10907_v45  ;;  %v9568_v16 = vpop.f32.mrb[100].mxu0  ;;  %8335 = vmatprep.subr.bf16.mxu1 %v10825_v14 }
 0x779   :  { %v10911_v17 = vpop.eup %10910  ;;  %8739 = vst [vmem:[%s13745_s15 + $0x168] sm:$0xff] %v10909_v13  ;;  %v9569_v20 = vpop.f32.mrb[101].mxu0 }
 0x77a   :  { %v10913_v52 = vpop.eup %10912  ;;  %8743 = vst [vmem:[%s13745_s15 + $0x188] sm:$0xff] %v10911_v17  ;;  %v9570_v1 = vadd.f32 %v9569_v20, %v9568_v16  ;;  %v9571_v7 = vpop.f32.mrb[102].mxu0 }
 0x77b   :  { %v10915_v57 = vpop.eup %10914  ;;  %8745 = vst [vmem:[%s13745_s15 + $0x198] sm:$0xff] %v10913_v52  ;;  %8336 = vmatpush1.bf16.msra.mxu1 %v10823_v30  ;;  %v9572_v55 = vpop.f32.mrb[103].mxu0 }
 0x77c   :  { %v10917_v58 = vpop.eup %10916  ;;  %8744 = vst [vmem:[%s13745_s15 + $0x190] sm:$0xff] %v10915_v57  ;;  %v9573_v37 = vadd.f32 %v9572_v55, %v9571_v7  ;;  %9706 = vmatprep.subr.bf16.mxu1 %v13386_v12  ;;  %v8421_v47 = vadd.f32 %v9570_v1, %v5190_v23 }
 0x77d   :  { %8746 = vst [vmem:[%s13745_s15 + $0x1a0] sm:$0xff] %v10917_v58 }
 0x77e   :  { %8338 = vmatmul.mubr.bf16.vlgmr.msra.gmra.mrb[48].mxu1 %v13277_v8 }
 0x77f   :  { %8347 = vmatprep.mubr.bf16.mxu1 %v13283_v19  ;;  %9714 = vmatpush3.bf16.msra.mxu1 %v13388_v2 }
 0x780   :  { %v9574_v18 = vpop.f32.mrb[104].mxu0  ;;  %9707 = vmatprep.subr.bf16.mxu1 %v13391_v11 }
 0x781   :  { %v9575_v48 = vpop.f32.mrb[105].mxu0 }
 0x782   :  { %v9576_v44 = vadd.f32 %v9575_v48, %v9574_v18  ;;  %v9577_v51 = vpop.f32.mrb[106].mxu0 }
 0x783   :  { %9715 = vmatpush3.bf16.msra.mxu1 %v13396_v33  ;;  %v9578_v40 = vpop.f32.mrb[107].mxu0 }
 0x784   :  { %v8429_v46 = vadd.f32 %v9576_v44, %v5190_v23  ;;  %v9579_v12 = vadd.f32 %v9578_v40, %v9577_v51  ;;  %9708 = vmatprep.subr.bf16.mxu1 %v13399_v15 }
 0x786   :  { %v8432_v8 = vadd.f32 %v9579_v12, %v5190_v23  ;;  %8348 = vmatmul.mubr.bf16.gmra.mrb[52].mxu1 %v13291_v27 }
 0x787   :  { %8357 = vmatprep.mubr.bf16.mxu1 %v13297_v5  ;;  %9716 = vmatpush3.bf16.msra.mxu1 %v13402_v25 }
 0x788   :  { %v9580_v19 = vpop.f32.mrb[108].mxu0  ;;  %9709 = vmatprep.subr.bf16.mxu1 %v13405_v24  ;;  %v8413_v24 = vadd.f32 %v13580_v29, %v5190_v23  ;;  %v8424_v29 = vadd.f32 %v9573_v37, %v5190_v23 }
 0x789   :  { %v9581_v2 = vpop.f32.mrb[109].mxu0 }
 0x78a   :  { %v9582_v11 = vadd.f32 %v9581_v2, %v9580_v19  ;;  %v9583_v50 = vpop.f32.mrb[110].mxu0 }
 0x78b   :  { %9717 = vmatpush3.bf16.msra.mxu1 %v13410_v31  ;;  %v9584_v33 = vpop.f32.mrb[111].mxu0 }
 0x78c   :  { %v8437_v0 = vadd.f32 %v9582_v11, %v5190_v23  ;;  %v9585_v3 = vadd.f32 %v9584_v33, %v9583_v50  ;;  %9710 = vmatprep.subr.bf16.mxu1 %v13413_v26  ;;  %v8416_v26 = vadd.f32 %v13588_v35, %v5190_v23 }
 0x78e   :  { %v8440_v15 = vadd.f32 %v9585_v3, %v5190_v23  ;;  %8358 = vmatmul.mubr.bf16.gmra.mrb[56].mxu1 %v13303_v38 }
 0x78f   :  { %8367 = vmatprep.mubr.bf16.mxu1 %v13306_v41  ;;  %9718 = vmatpush3.bf16.msra.mxu1 %v13416_v42 }
 0x790   :  { %v9602_v27 = vpop.f32.mrb[112].mxu0  ;;  %9711 = vmatprep.subr.bf16.mxu1 %v13419_v36 }
 0x791   :  { %v9603_v25 = vpop.f32.mrb[113].mxu0 }
 0x792   :  { %v9604_v34 = vadd.f32 %v9603_v25, %v9602_v27  ;;  %v9605_v31 = vpop.f32.mrb[114].mxu0 }
 0x793   :  { %9719 = vmatpush3.bf16.msra.mxu1 %v13424_v9  ;;  %v9606_v54 = vpop.f32.mrb[115].mxu0 }
 0x794   :  { %v8478_v61 = vadd.f32 %v9604_v34, %v8413_v24  ;;  %v9607_v4 = vadd.f32 %v9606_v54, %v9605_v31  ;;  %9712 = vmatprep.subr.bf16.mxu1 %v13427_v10 }
 0x796   :  { %v8481_v63 = vadd.f32 %v9607_v4, %v8416_v26  ;;  %8368 = vmatmul.mubr.bf16.gmra.mrb[60].mxu1 %v13310_v62 }
 0x797   :  { %9720 = vmatpush3.bf16.msra.mxu1 %v13430_v53  ;;  %8621 = vmatprep.mubr.bf16.mxu1 %v13297_v5 }
 0x798   :  { %v9608_v42 = vpop.f32.mrb[116].mxu0  ;;  %9713 = vmatprep.subr.bf16.mxu1 %v13433_v60 }
 0x799   :  { %v9609_v36 = vpop.f32.mrb[117].mxu0 }
 0x79a   :  { %v9610_v9 = vadd.f32 %v9609_v36, %v9608_v42  ;;  %v9611_v43 = vpop.f32.mrb[118].mxu0 }
 0x79b   :  { %9721 = vmatpush3.bf16.msra.mxu1 %v13438_v28  ;;  %v9612_v56 = vpop.f32.mrb[119].mxu0 }
 0x79c   :  { %v8486_v21 = vadd.f32 %v9610_v9, %v8421_v47  ;;  %v9613_v10 = vadd.f32 %v9612_v56, %v9611_v43 }
 0x79e   :  { %v8489_v59 = vadd.f32 %v9613_v10, %v8424_v29  ;;  %8622 = vmatmul.mubr.bf16.vlgmr.msra.gmra.mrb[64].mxu1 %v13303_v38 }
 0x79f   :  { %8629 = vmatprep.mubr.bf16.mxu1 %v13306_v41 }
 0x7a0   :  { %v9614_v53 = vpop.f32.mrb[120].mxu0 }
 0x7a1   :  { %v9615_v5 = vpop.f32.mrb[121].mxu0 }
 0x7a2   :  { %v9616_v49 = vadd.f32 %v9615_v5, %v9614_v53  ;;  %v9617_v39 = vpop.f32.mrb[122].mxu0 }
 0x7a3   :  { %v9618_v60 = vpop.f32.mrb[123].mxu0 }
 0x7a4   :  { %v8494_v22 = vadd.f32 %v9616_v49, %v8429_v46  ;;  %v9619_v35 = vadd.f32 %v9618_v60, %v9617_v39 }
 0x7a6   :  { %v8497_v14 = vadd.f32 %v9619_v35, %v8432_v8  ;;  %8630 = vmatmul.mubr.bf16.gmra.mrb[68].mxu1 %v13310_v62 }
 0x7a8   :  { %v9620_v28 = vpop.f32.mrb[124].mxu0 }
 0x7a9   :  { %v9621_v45 = vpop.f32.mrb[125].mxu0 }
 0x7aa   :  { %v9622_v13 = vadd.f32 %v9621_v45, %v9620_v28  ;;  %v9623_v17 = vpop.f32.mrb[126].mxu0 }
 0x7ab   :  { %v9624_v30 = vpop.f32.mrb[127].mxu0 }
 0x7ac   :  { %v8502_v52 = vadd.f32 %v9622_v13, %v8437_v0  ;;  %v9625_v16 = vadd.f32 %v9624_v30, %v9623_v17 }
 0x7ae   :  { %v8505_v38 = vadd.f32 %v9625_v16, %v8440_v15 }
 0x7b1   :  { %v9642_v57 = vpop.f32.mrb[128].mxu0 }
 0x7b2   :  { %v9643_v41 = vpop.f32.mrb[129].mxu0 }
 0x7b3   :  { %v9644_v20 = vadd.f32 %v9643_v41, %v9642_v57  ;;  %v9645_v58 = vpop.f32.mrb[130].mxu0 }
 0x7b4   :  { %v9646_v1 = vpop.f32.mrb[131].mxu0 }
 0x7b5   :  { %v8543_v7 = vadd.f32 %v9644_v20, %v8478_v61  ;;  %v9647_v55 = vadd.f32 %v9646_v1, %v9645_v58 }
 0x7b7   :  { %v8546_v37 = vadd.f32 %v9647_v55, %v8481_v63 }
 0x7b9   :  { %v9648_v18 = vpop.f32.mrb[132].mxu0 }
 0x7ba   :  { %v9649_v48 = vpop.f32.mrb[133].mxu0 }
 0x7bb   :  { %v9650_v32 = vadd.f32 %v9649_v48, %v9648_v18  ;;  %v9651_v62 = vpop.f32.mrb[134].mxu0 }
 0x7bc   :  { %v9652_v23 = vpop.f32.mrb[135].mxu0 }
 0x7bd   :  { %v8551_v44 = vadd.f32 %v9650_v32, %v8486_v21  ;;  %v9653_v51 = vadd.f32 %v9652_v23, %v9651_v62 }
 0x7bf   :  { %v8554_v40 = vadd.f32 %v9653_v51, %v8489_v59 }
 0x7c1   :  { %v9654_v46 = vpop.f32.mrb[136].mxu0 }
 0x7c2   :  { %v9655_v12 = vpop.f32.mrb[137].mxu0 }
 0x7c3   :  { %v9656_v8 = vadd.f32 %v9655_v12, %v9654_v46  ;;  %v9657_v19 = vpop.f32.mrb[138].mxu0 }
 0x7c4   :  { %v9658_v2 = vpop.f32.mrb[139].mxu0 }
 0x7c5   :  { %v13642_v11 = vadd.f32 %v9656_v8, %v8494_v22  ;;  %v9659_v50 = vadd.f32 %v9658_v2, %v9657_v19  ;;  %v13945_v22 = vld [vmem:[#allocation32_spill] sm:$0xff] }
 0x7c6   :  { %v5182_v35 = vrot.slane %v13457_v6, %v13945_v22 }
 0x7c7   :  { %v13644_v33 = vadd.f32 %v9659_v50, %v8497_v14  ;;  %v13946_v14 = vld [vmem:[#allocation67_spill] sm:$0xff] }
 0x7c8   :  { %v5186_v28 = vrot.slane %v13457_v6, %v13946_v14 }
 0x7c9   :  { %v9660_v0 = vpop.f32.mrb[140].mxu0 }
 0x7ca   :  { %v9661_v3 = vpop.f32.mrb[141].mxu0 }
 0x7cb   :  { %v9662_v15 = vadd.f32 %v9661_v3, %v9660_v0  ;;  %v9663_v27 = vpop.f32.mrb[142].mxu0 }
 0x7cc   :  { %v9664_v25 = vpop.f32.mrb[143].mxu0 }
 0x7cd   :  { %v13646_v24 = vadd.f32 %v9662_v15, %v8502_v52  ;;  %v9665_v34 = vadd.f32 %v9664_v25, %v9663_v27 }
 0x7cf   :  { %v13648_v31 = vadd.f32 %v9665_v34, %v8505_v38 }
 0x7d1   :  { %v9682_v54 = vpop.f32.mrb[144].mxu0 }
 0x7d2   :  { %v9683_v26 = vpop.f32.mrb[145].mxu0 }
 0x7d3   :  { %v9684_v61 = vadd.f32 %v9683_v26, %v9682_v54  ;;  %v9685_v4 = vpop.f32.mrb[146].mxu0 }
 0x7d4   :  { %v9686_v63 = vpop.f32.mrb[147].mxu0 }
 0x7d5   :  { %v8608_v42 = vadd.f32 %v9684_v61, %v8543_v7  ;;  %v9687_v36 = vadd.f32 %v9686_v63, %v9685_v4 }
 0x7d7   :  { %10918 = vtanh.f32 %v8608_v42  ;;  %v8611_v47 = vadd.f32 %v9687_v36, %v8546_v37 }
 0x7d9   :  { %10920 = vtanh.f32 %v8611_v47  ;;  %v9688_v9 = vpop.f32.mrb[148].mxu0 }
 0x7da   :  { %v9689_v43 = vpop.f32.mrb[149].mxu0 }
 0x7db   :  { %v9690_v56 = vadd.f32 %v9689_v43, %v9688_v9  ;;  %v9691_v29 = vpop.f32.mrb[150].mxu0 }
 0x7dc   :  { %v9692_v21 = vpop.f32.mrb[151].mxu0 }
 0x7dd   :  { %v8616_v10 = vadd.f32 %v9690_v56, %v8551_v44  ;;  %v9693_v59 = vadd.f32 %v9692_v21, %v9691_v29 }
 0x7df   :  { %10922 = vtanh.f32 %v8616_v10  ;;  %v8619_v53 = vadd.f32 %v9693_v59, %v8554_v40 }
 0x7e1   :  { %v10919_v5 = vpop.eup %10918  ;;  %10924 = vtanh.f32 %v8619_v53 }
 0x7e2   :  { %8700 = vst [vmem:[%s13745_s15 + $0x30] sm:$0xff] %v10919_v5 }
 0x7e3   :  { %v10921_v49 = vpop.eup %10920 }
 0x7e4   :  { %8707 = vst [vmem:[%s13745_s15 + $0x68] sm:$0xff] %v10921_v49 }
 0x7e9   :  { %v10923_v39 = vpop.eup %10922 }
 0x7ea   :  { %8714 = vst [vmem:[%s13745_s15 + $0xa0] sm:$0xff] %v10923_v39 }
 0x7eb   :  { %v10925_v60 = vpop.eup %10924 }
 0x7ec   :  { %8721 = vst [vmem:[%s13745_s15 + $0xd8] sm:$0xff] %v10925_v60 }
 0x851   :  { %v8339_v45 = vpop.f32.mrb[48].mxu1 }
 0x852   :  { %v9818_v13 = vadd.f32 %v8339_v45, %v5182_v35  ;;  %v8341_v17 = vpop.f32.mrb[49].mxu1 }
 0x853   :  { %v9819_v30 = vadd.f32 %v8341_v17, %v5186_v28  ;;  %v8343_v52 = vpop.f32.mrb[50].mxu1 }
 0x854   :  { %10926 = vtanh.f32 %v9818_v13  ;;  %v9820_v16 = vadd.f32 %v8343_v52, %v5182_v35  ;;  %v8345_v38 = vpop.f32.mrb[51].mxu1 }
 0x855   :  { %10928 = vtanh.f32 %v9819_v30  ;;  %v9821_v57 = vadd.f32 %v8345_v38, %v5186_v28 }
 0x856   :  { %10930 = vtanh.f32 %v9820_v16 }
 0x857   :  { %10932 = vtanh.f32 %v9821_v57 }
 0x859   :  { %v8349_v41 = vpop.f32.mrb[52].mxu1 }
 0x85a   :  { %v9822_v20 = vadd.f32 %v8349_v41, %v5182_v35  ;;  %v8351_v58 = vpop.f32.mrb[53].mxu1 }
 0x85b   :  { %v9823_v1 = vadd.f32 %v8351_v58, %v5186_v28  ;;  %v8353_v7 = vpop.f32.mrb[54].mxu1 }
 0x85c   :  { %10934 = vtanh.f32 %v9822_v20  ;;  %v9824_v55 = vadd.f32 %v8353_v7, %v5182_v35  ;;  %v8355_v6 = vpop.f32.mrb[55].mxu1 }
 0x85d   :  { %10936 = vtanh.f32 %v9823_v1  ;;  %v9825_v37 = vadd.f32 %v8355_v6, %v5186_v28 }
 0x85e   :  { %v10927_v18 = vpop.eup %10926  ;;  %10938 = vtanh.f32 %v9824_v55 }
 0x85f   :  { %v10929_v48 = vpop.eup %10928  ;;  %8698 = vst [vmem:[%s13745_s15 + $0x20] sm:$0xff] %v10927_v18  ;;  %10940 = vtanh.f32 %v9825_v37 }
 0x860   :  { %v10931_v32 = vpop.eup %10930  ;;  %8699 = vst [vmem:[%s13745_s15 + $0x28] sm:$0xff] %v10929_v48 }
 0x861   :  { %v10933_v62 = vpop.eup %10932  ;;  %8705 = vst [vmem:[%s13745_s15 + $0x58] sm:$0xff] %v10931_v32  ;;  %v8359_v23 = vpop.f32.mrb[56].mxu1 }
 0x862   :  { %8706 = vst [vmem:[%s13745_s15 + $0x60] sm:$0xff] %v10933_v62  ;;  %v9826_v44 = vadd.f32 %v8359_v23, %v5182_v35  ;;  %v8361_v51 = vpop.f32.mrb[57].mxu1 }
 0x863   :  { %v9827_v40 = vadd.f32 %v8361_v51, %v5186_v28  ;;  %v8363_v46 = vpop.f32.mrb[58].mxu1 }
 0x864   :  { %10942 = vtanh.f32 %v9826_v44  ;;  %v9828_v12 = vadd.f32 %v8363_v46, %v5182_v35  ;;  %v8365_v8 = vpop.f32.mrb[59].mxu1 }
 0x865   :  { %10944 = vtanh.f32 %v9827_v40  ;;  %v9829_v19 = vadd.f32 %v8365_v8, %v5186_v28 }
 0x866   :  { %v10935_v2 = vpop.eup %10934  ;;  %10946 = vtanh.f32 %v9828_v12 }
 0x867   :  { %v10937_v50 = vpop.eup %10936  ;;  %8712 = vst [vmem:[%s13745_s15 + $0x90] sm:$0xff] %v10935_v2  ;;  %10948 = vtanh.f32 %v9829_v19 }
 0x868   :  { %v10939_v0 = vpop.eup %10938  ;;  %8713 = vst [vmem:[%s13745_s15 + $0x98] sm:$0xff] %v10937_v50 }
 0x869   :  { %v10941_v3 = vpop.eup %10940  ;;  %8719 = vst [vmem:[%s13745_s15 + $0xc8] sm:$0xff] %v10939_v0  ;;  %v8369_v15 = vpop.f32.mrb[60].mxu1 }
 0x86a   :  { %8720 = vst [vmem:[%s13745_s15 + $0xd0] sm:$0xff] %v10941_v3  ;;  %v9830_v27 = vadd.f32 %v8369_v15, %v5182_v35  ;;  %v8371_v25 = vpop.f32.mrb[61].mxu1 }
 0x86b   :  { %v9831_v34 = vadd.f32 %v8371_v25, %v5186_v28  ;;  %v8373_v54 = vpop.f32.mrb[62].mxu1 }
 0x86c   :  { %10950 = vtanh.f32 %v9830_v27  ;;  %v9832_v26 = vadd.f32 %v8373_v54, %v5182_v35  ;;  %v8375_v61 = vpop.f32.mrb[63].mxu1 }
 0x86d   :  { %10952 = vtanh.f32 %v9831_v34  ;;  %v9833_v4 = vadd.f32 %v8375_v61, %v5186_v28 }
 0x86e   :  { %v10943_v63 = vpop.eup %10942  ;;  %10954 = vtanh.f32 %v9832_v26 }
 0x86f   :  { %v10945_v42 = vpop.eup %10944  ;;  %8726 = vst [vmem:[%s13745_s15 + $0x100] sm:$0xff] %v10943_v63  ;;  %10956 = vtanh.f32 %v9833_v4 }
 0x870   :  { %v10947_v36 = vpop.eup %10946  ;;  %8727 = vst [vmem:[%s13745_s15 + $0x108] sm:$0xff] %v10945_v42 }
 0x871   :  { %v10949_v47 = vpop.eup %10948  ;;  %8733 = vst [vmem:[%s13745_s15 + $0x138] sm:$0xff] %v10947_v36  ;;  %v9694_v9 = vpop.f32.mrb[64].mxu1 }
 0x872   :  { %8734 = vst [vmem:[%s13745_s15 + $0x140] sm:$0xff] %v10949_v47  ;;  %v9695_v43 = vpop.f32.mrb[65].mxu1 }
 0x873   :  { %v9696_v56 = vadd.f32 %v9695_v43, %v9694_v9  ;;  %v9697_v29 = vpop.f32.mrb[66].mxu1 }
 0x874   :  { %v9698_v21 = vpop.f32.mrb[67].mxu1 }
 0x875   :  { %v8624_v10 = vadd.f32 %v9696_v56, %v13642_v11  ;;  %v9699_v59 = vadd.f32 %v9698_v21, %v9697_v29 }
 0x876   :  { %v10951_v53 = vpop.eup %10950 }
 0x877   :  { %v10953_v5 = vpop.eup %10952  ;;  %8740 = vst [vmem:[%s13745_s15 + $0x170] sm:$0xff] %v10951_v53  ;;  %10958 = vtanh.f32 %v8624_v10  ;;  %v8627_v49 = vadd.f32 %v9699_v59, %v13644_v33 }
 0x878   :  { %v10955_v39 = vpop.eup %10954  ;;  %8741 = vst [vmem:[%s13745_s15 + $0x178] sm:$0xff] %v10953_v5 }
 0x879   :  { %v10957_v60 = vpop.eup %10956  ;;  %8747 = vst [vmem:[%s13745_s15 + $0x1a8] sm:$0xff] %v10955_v39  ;;  %10960 = vtanh.f32 %v8627_v49  ;;  %v9700_v11 = vpop.f32.mrb[68].mxu1 }
 0x87a   :  { %8748 = vst [vmem:[%s13745_s15 + $0x1b0] sm:$0xff] %v10957_v60  ;;  %v9701_v22 = vpop.f32.mrb[69].mxu1 }
 0x87b   :  { %v9702_v35 = vadd.f32 %v9701_v22, %v9700_v11  ;;  %v9703_v14 = vpop.f32.mrb[70].mxu1 }
 0x87c   :  { %v9704_v33 = vpop.f32.mrb[71].mxu1 }
 0x87d   :  { %v8632_v28 = vadd.f32 %v9702_v35, %v13646_v24  ;;  %v9705_v45 = vadd.f32 %v9704_v33, %v9703_v14 }
 0x87f   :  { %10962 = vtanh.f32 %v8632_v28  ;;  %v8635_v13 = vadd.f32 %v9705_v45, %v13648_v31 }
 0x881   :  { %v10959_v17 = vpop.eup %10958  ;;  %10964 = vtanh.f32 %v8635_v13 }
 0x882   :  { %8728 = vst [vmem:[%s13745_s15 + $0x110] sm:$0xff] %v10959_v17 }
 0x883   :  { %v10961_v30 = vpop.eup %10960 }
 0x884   :  { %8735 = vst [vmem:[%s13745_s15 + $0x148] sm:$0xff] %v10961_v30 }
 0x889   :  { %v10963_v52 = vpop.eup %10962 }
 0x88a   :  { %8742 = vst [vmem:[%s13745_s15 + $0x180] sm:$0xff] %v10963_v52 }
 0x88b   :  { %v10965_v24 = vpop.eup %10964 }
 0x88c   :  { %8749 = vst [vmem:[%s13745_s15 + $0x1b8] sm:$0xff] %v10965_v24 }
 0x88d   :  { %8754 = vsyncpa [#allocation3], 1 }
 0x88e   :  { %8755 = vsyncpa [#allocation5], 1 }
 0x88f   :  { %8756 = vsyncpa [#allocation8], 1 }
 0x890   :  { %8757 = vsyncpa [#allocation11], 1 }
 0x891   :  { %8758 = vsyncpa [#allocation14], 1 }
 0x892   :  { %8759 = vsyncpa [#allocation17], 1 }
 0x893   :  { %8760 = vsyncpa [#allocation20], 1 }
 0x894   :  { %8761 = vsyncpa [#allocation23], 1 }

</bundles_post_ra>
